<compile_context>
chip_gen: v7x
topology: tpu7x:2x2x1
jax: 0.10.0
libtpu: 0.0.40
codegen_flags: <defaults>
</compile_context>

<pallas_src>
import functools

import jax
import jax.numpy as jnp
import numpy as np
from jax.experimental import pallas as pl
from jax.experimental.pallas import tpu as pltpu


def _round_up(x, m):
    return ((x + m - 1) // m) * m


def _pick_tk(kp, cap=2048):
    """Largest multiple of 128 that divides kp and is <= cap."""
    if kp <= cap:
        return kp
    q = kp // 128
    best = 1
    for d in range(2, cap // 128 + 1):
        if q % d == 0:
            best = d
    return 128 * best


# ---------------------------------------------------------------------------
# Batched GEMM + bias (+ tanh) Pallas kernel.
# ---------------------------------------------------------------------------
def _gemm_bias_act_kernel(x_ref, w_ref, b_ref, o_ref, acc_ref, *, activation):
    @pl.when(pl.program_id(3) == 0)
    def _():
        acc_ref[...] = jnp.zeros_like(acc_ref)

    acc_ref[...] += jnp.dot(x_ref[...], w_ref[...],
                            preferred_element_type=jnp.float32)

    @pl.when(pl.program_id(3) == pl.num_programs(3) - 1)
    def _():
        r = acc_ref[...] + b_ref[...].astype(jnp.float32)
        if activation == "tanh":
            r = jnp.tanh(r)
        o_ref[...] = r.astype(o_ref.dtype)


def fused_matmul(x, w, b, activation="none", use_pallas=True):
    """y = act(x @ w + b), batched over a leading phase axis.

    x: (P, M, K)   compute dtype (e.g. bf16)
    w: (P, Kp, Np) compute dtype, K zero-padded to Kp, N padded to Np (128-mult)
    b: (1, Np)     float32
    returns (P, M, Np) float32.
    """
    P, M, K = x.shape
    Pw, Kp, Np = w.shape
    assert Pw == P and Kp >= K and Kp % 128 == 0 and Np % 128 == 0

    if not use_pallas:  # same-precision pure-JAX reference path
        y = jax.lax.dot_general(
            x.astype(jnp.float32), w[:, :K, :].astype(jnp.float32),
            (((2,), (1,)), ((0,), (0,))),
            precision=jax.lax.Precision.HIGHEST) + b[None].astype(jnp.float32)
        return jnp.tanh(y) if activation == "tanh" else y

    tm = 256 if M >= 256 else _round_up(M, 16)
    tn = 256 if Np % 256 == 0 else 128
    tk = _pick_tk(Kp)
    Mp = _round_up(M, tm)

    xp = jnp.pad(x, ((0, 0), (0, Mp - M), (0, Kp - K)))

    grid = (P, Mp // tm, Np // tn, Kp // tk)  # reduction axis last
    flops = 2 * P * Mp * Kp * Np
    bytes_accessed = (P * Mp * Kp * xp.dtype.itemsize
                      + P * Kp * Np * w.dtype.itemsize
                      + Np * 4 + P * Mp * Np * 4)

    out = pl.pallas_call(
        functools.partial(_gemm_bias_act_kernel, activation=activation),
        out_shape=jax.ShapeDtypeStruct((P, Mp, Np), jnp.float32),
        grid_spec=pltpu.PrefetchScalarGridSpec(
            num_scalar_prefetch=0,
            grid=grid,
            in_specs=[
                pl.BlockSpec((None, tm, tk), lambda p, i, j, k: (p, i, k)),
                pl.BlockSpec((None, tk, tn), lambda p, i, j, k: (p, k, j)),
                pl.BlockSpec((1, tn), lambda p, i, j, k: (0, j)),
            ],
            out_specs=pl.BlockSpec((None, tm, tn), lambda p, i, j, k: (p, i, j)),
            scratch_shapes=[pltpu.VMEM((tm, tn), jnp.float32)],
        ),
        compiler_params=pltpu.CompilerParams(
            dimension_semantics=("parallel", "parallel", "parallel",
                                 "arbitrary")),
        cost_estimate=pl.CostEstimate(
            flops=flops,
            transcendentals=P * Mp * Np if activation == "tanh" else 0,
            bytes_accessed=bytes_accessed),
    )(xp, w, b)
    return out[:, :M, :]


# ---------------------------------------------------------------------------
# Hoisted weight preparation (runs ONCE per parameter set, outside jit).
# ---------------------------------------------------------------------------
_PHASE_KH = {0: (3, 1), 1: (2, 0)}  # output parity -> kernel tap for (d=0, d=1)


def _deconv_phase_weight_mats(wt):
    """wt: (Cin, Cout, 4, 4) torch ConvTranspose2d weight ->
    (4, Kp, Cout) per-phase matrices.  Phase order (py, px) row-major;
    rows ordered (dy, dx, ci) to match the NHWC patch column layout."""
    cin, cout = wt.shape[0], wt.shape[1]
    K = 4 * cin
    Kp = _round_up(K, 128)
    mats = []
    for py in range(2):
        for px in range(2):
            khs, kws = _PHASE_KH[py], _PHASE_KH[px]
            blocks = [wt[:, :, khs[dy], kws[dx]]
                      for dy in range(2) for dx in range(2)]     # (Cin, Cout) each
            m = jnp.concatenate(blocks, axis=0)                  # (4*Cin, Cout)
            mats.append(jnp.pad(m, ((0, Kp - K), (0, 0))))
    return jnp.stack(mats, axis=0)


def prepare_params(params, compute_dtype=jnp.bfloat16):
    prepped = {}
    for name in ("up4", "up3", "up2"):
        w, b = params[name + "_w"], params[name + "_b"]
        prepped[name] = {
            "w": _deconv_phase_weight_mats(w).astype(compute_dtype),
            "b": jnp.asarray(b, jnp.float32).reshape(1, -1),
        }
    # out conv: 3x3, Cout=2.  Pad N to 128 for a lane-dense output slab.
    w, b = params["out_w"], params["out_b"]
    cout, cin = w.shape[0], w.shape[1]
    K = 9 * cin
    Kp = _round_up(K, 128)
    Np = _round_up(max(cout, 128), 128)
    m = jnp.transpose(w, (2, 3, 1, 0)).reshape(K, cout)   # rows (kh, kw, ci)
    m = jnp.pad(m, ((0, Kp - K), (0, Np - cout)))
    prepped["out"] = {
        "w": m[None].astype(compute_dtype),
        "b": jnp.pad(jnp.asarray(b, jnp.float32), (0, Np - cout)).reshape(1, Np),
    }
    return prepped


# ---------------------------------------------------------------------------
# NHWC layers built on the fused GEMM.
# ---------------------------------------------------------------------------
def conv_transpose2d_k4s2p1_nhwc(x, layer, compute_dtype, use_pallas=True):
    """PyTorch ConvTranspose2d(Cin, Cout, 4, 2, 1) as 4 phase 2x2 convs.
    x: (N, H, W, Cin) -> (N, 2H, 2W, Cout) float32."""
    n, h, w, c = x.shape
    w_ph, b = layer["w"], layer["b"]
    cout = w_ph.shape[-1]
    xc = x.astype(compute_dtype)

    phase_patches = []
    for py in range(2):
        for px in range(2):
            xp = jnp.pad(xc, ((0, 0), (1 - py, py), (1 - px, px), (0, 0)))
            cols = [xp[:, dy:dy + h, dx:dx + w, :]
                    for dy in range(2) for dx in range(2)]
            phase_patches.append(
                jnp.concatenate(cols, axis=-1).reshape(n * h * w, 4 * c))
    X = jnp.stack(phase_patches, axis=0)                  # (4, M, 4*Cin)

    Y = fused_matmul(X, w_ph, b, activation="none", use_pallas=use_pallas)
    Y = Y[..., :cout].reshape(4, n, h, w, cout)

    # Interleave phases: out[:, 2j+py, 2i+px, :] = Y[2*py+px][:, j, i, :]
    out = jnp.stack([jnp.stack([Y[0], Y[1]], axis=3),
                     jnp.stack([Y[2], Y[3]], axis=3)], axis=2)  # (n,h,2,w,2,c)
    return out.reshape(n, 2 * h, 2 * w, cout)


def conv2d_k3s1p1_nhwc(x, layer, out_channels, activation, compute_dtype,
                       use_pallas=True):
    """PyTorch Conv2d(Cin, Cout, 3, padding=1).  x: (N,H,W,Cin) -> (N,H,W,Cout)."""
    n, h, w, c = x.shape
    w_mat, b = layer["w"], layer["b"]
    xc = jnp.pad(x.astype(compute_dtype), ((0, 0), (1, 1), (1, 1), (0, 0)))
    cols = [xc[:, kh:kh + h, kw:kw + w, :]
            for kh in range(3) for kw in range(3)]
    patches = jnp.concatenate(cols, axis=-1).reshape(1, n * h * w, 9 * c)
    y = fused_matmul(patches, w_mat, b, activation=activation,
                     use_pallas=use_pallas)
    return y[0, :, :out_channels].reshape(n, h, w, out_channels)


def pixel_decoder_forward(prepped, x4, x3, x2, *, out_channels=2,
                          compute_dtype=jnp.bfloat16, use_pallas=True):
    # NCHW -> NHWC once at entry.
    x4 = jnp.transpose(x4, (0, 2, 3, 1))
    x3 = jnp.transpose(x3, (0, 2, 3, 1))
    x2 = jnp.transpose(x2, (0, 2, 3, 1))

    x = conv_transpose2d_k4s2p1_nhwc(x4, prepped["up4"], compute_dtype, use_pallas)
    x = jnp.concatenate([x, x3.astype(x.dtype)], axis=-1)
    x = conv_transpose2d_k4s2p1_nhwc(x, prepped["up3"], compute_dtype, use_pallas)
    x = jnp.concatenate([x, x2.astype(x.dtype)], axis=-1)
    x = conv_transpose2d_k4s2p1_nhwc(x, prepped["up2"], compute_dtype, use_pallas)
    out = conv2d_k3s1p1_nhwc(x, prepped["out"], out_channels, "tanh",
                             compute_dtype, use_pallas)
    return jnp.transpose(out, (0, 3, 1, 2))  # back to NCHW


# ---------------------------------------------------------------------------
# Full-precision NCHW reference (lax convolutions) for validation.
# ---------------------------------------------------------------------------
def _ref_deconv(x, wt, b):
    w_flip = jnp.transpose(jnp.flip(wt, (2, 3)), (1, 0, 2, 3))  # (Cout,Cin,4,4)
    y = jax.lax.conv_general_dilated(
        x, w_flip, window_strides=(1, 1), padding=((2, 2), (2, 2)),
        lhs_dilation=(2, 2), dimension_numbers=("NCHW", "OIHW", "NCHW"),
        precision=jax.lax.Precision.HIGHEST)
    return y + b[None, :, None, None]


def _ref_conv3(x, w, b):
    y = jax.lax.conv_general_dilated(
        x, w, window_strides=(1, 1), padding=((1, 1), (1, 1)),
        dimension_numbers=("NCHW", "OIHW", "NCHW"),
        precision=jax.lax.Precision.HIGHEST)
    return y + b[None, :, None, None]


def pixel_decoder_reference(params, x4, x3, x2):
    x = _ref_deconv(x4, params["up4_w"], params["up4_b"])
    x = jnp.concatenate([x, x3], axis=1)
    x = _ref_deconv(x, params["up3_w"], params["up3_b"])
    x = jnp.concatenate([x, x2], axis=1)
    x = _ref_deconv(x, params["up2_w"], params["up2_b"])
    return jnp.tanh(_ref_conv3(x, params["out_w"], params["out_b"]))


# ---------------------------------------------------------------------------
# Param init (PyTorch-style uniform) and test harness.
# ---------------------------------------------------------------------------
def init_params(key, in_channels):
    keys = jax.random.split(key, 8)

    def u(k, shape, fan_in):
        bound = 1.0 / np.sqrt(fan_in)
        return jax.random.uniform(k, shape, jnp.float32, -bound, bound)

    p = {}
    # ConvTranspose2d weights are (Cin, Cout, kH, kW) in PyTorch
    p["up4_w"] = u(keys[0], (in_channels, 512, 4, 4), in_channels * 16)
    p["up4_b"] = u(keys[1], (512,), in_channels * 16)
    p["up3_w"] = u(keys[2], (512 + 1024, 256, 4, 4), 1536 * 16)
    p["up3_b"] = u(keys[3], (256,), 1536 * 16)
    p["up2_w"] = u(keys[4], (256 + 512, 128, 4, 4), 768 * 16)
    p["up2_b"] = u(keys[5], (128,), 768 * 16)
    # Conv2d weight is (Cout, Cin, kH, kW)
    p["out_w"] = u(keys[6], (2, 128, 3, 3), 128 * 9)
    p["out_b"] = u(keys[7], (2,), 128 * 9)
    return p


if __name__ == "__main__":
    key = jax.random.PRNGKey(0)
    kp, k4, k3, k2 = jax.random.split(key, 4)

    in_channels = 32
    B, H, W = 2, 2, 2  # x4 spatial; each deconv stage upsamples 2x

    params = init_params(kp, in_channels)
    x4 = jax.random.normal(k4, (B, in_channels, H, W), jnp.float32)
    x3 = jax.random.normal(k3, (B, 1024, 2 * H, 2 * W), jnp.float32)
    x2 = jax.random.normal(k2, (B, 512, 4 * H, 4 * W), jnp.float32)

    # Weight prep hoisted out of the jitted forward (runs once).
    prepped = prepare_params(params, compute_dtype=jnp.bfloat16)

    fwd = jax.jit(functools.partial(pixel_decoder_forward, out_channels=2,
                                    compute_dtype=jnp.bfloat16, use_pallas=True))
    out = jax.block_until_ready(fwd(prepped, x4, x3, x2))
    assert out.shape == (B, 2, 8 * H, 8 * W), out.shape

    # Check A: Pallas GEMM vs identical same-precision pure-JAX pipeline.
    ref_same = jax.block_until_ready(jax.jit(functools.partial(
        pixel_decoder_forward, out_channels=2, compute_dtype=jnp.bfloat16,
        use_pallas=False))(prepped, x4, x3, x2))
    np.testing.assert_allclose(np.asarray(out), np.asarray(ref_same),
                               rtol=1e-3, atol=1e-3)

    # Check B: full-f32 NCHW lax-conv reference validates the phase-decomposed
    # deconv / NHWC layout algebra (loose tolerance covers bf16 inputs).
    ref_f32 = jax.block_until_ready(
        jax.jit(pixel_decoder_reference)(params, x4, x3, x2))
    np.testing.assert_allclose(np.asarray(out), np.asarray(ref_f32),
                               rtol=5e-2, atol=5e-2)

    print("KERNEL_OK")
</pallas_src>

<mosaic_0001>
module attributes {stable_mosaic.version = 11 : i64} {
  func.func @_gemm_bias_act_kernel(%arg0: i32, %arg1: i32, %arg2: i32, %arg3: i32, %arg4: memref<1x16x128xbf16, #tpu.memory_space<vmem>>, %arg5: memref<1x128x256xbf16, #tpu.memory_space<vmem>>, %arg6: memref<1x256xf32, #tpu.memory_space<vmem>>, %arg7: memref<1x16x256xf32, #tpu.memory_space<vmem>>, %arg8: memref<16x256xf32, #tpu.memory_space<vmem>>) attributes {dimension_semantics = [#tpu.dimension_semantics<parallel>, #tpu.dimension_semantics<parallel>, #tpu.dimension_semantics<parallel>, #tpu.dimension_semantics<arbitrary>], iteration_bounds = array<i64: 4, 1, 2, 1>, scalar_prefetch = 0 : i64, scratch_operands = 1 : i64, tpu.core_type = #tpu.core_type<tc>, window_params = [{transform_indices = @transform_0, window_bounds = array<i64: 1, 16, 128>}, {transform_indices = @transform_1, window_bounds = array<i64: 1, 128, 256>}, {transform_indices = @transform_2, window_bounds = array<i64: 1, 256>}, {transform_indices = @transform_3, window_bounds = array<i64: 1, 16, 256>}]} {
    %c0_i32 = arith.constant 0 : i32
    %0 = arith.cmpi eq, %arg3, %c0_i32 : i32
    %1 = arith.extui %0 : i1 to i32
    %c0_i32_0 = arith.constant 0 : i32
    %2 = arith.cmpi ne, %1, %c0_i32_0 : i32
    scf.if %2 {
      %cst_12 = arith.constant 0.000000e+00 : f32
      %14 = vector.broadcast %cst_12 : f32 to vector<16x256xf32>
      %c0_13 = arith.constant 0 : index
      %c0_14 = arith.constant 0 : index
      %15 = vector.load %arg8[%c0_13, %c0_14] : memref<16x256xf32, #tpu.memory_space<vmem>>, vector<16x256xf32>
      tpu.vector_store %arg8[%c0_13, %c0_14], %14 {strides = array<i32>} : memref<16x256xf32, #tpu.memory_space<vmem>>, vector<16x256xf32>,
    } else {
    }
    %c0 = arith.constant 0 : index
    %c0_1 = arith.constant 0 : index
    %3 = vector.load %arg8[%c0, %c0_1] : memref<16x256xf32, #tpu.memory_space<vmem>>, vector<16x256xf32>
    %c0_2 = arith.constant 0 : index
    %c0_3 = arith.constant 0 : index
    %c0_4 = arith.constant 0 : index
    %4 = vector.load %arg4[%c0_2, %c0_3, %c0_4] : memref<1x16x128xbf16, #tpu.memory_space<vmem>>, vector<1x16x128xbf16>
    %5 = vector.shape_cast %4 : vector<1x16x128xbf16> to vector<16x128xbf16>
    %c0_5 = arith.constant 0 : index
    %c0_6 = arith.constant 0 : index
    %c0_7 = arith.constant 0 : index
    %6 = vector.load %arg5[%c0_5, %c0_6, %c0_7] : memref<1x128x256xbf16, #tpu.memory_space<vmem>>, vector<1x128x256xbf16>
    %7 = vector.shape_cast %6 : vector<1x128x256xbf16> to vector<128x256xbf16>
    %cst = arith.constant dense<0.000000e+00> : vector<16x256xf32>
    %8 = tpu.matmul %5, %7, %cst {dimension_numbers = #tpu.dot_dimension_numbers<[1], [0], [0], [1], [0, 0, 1, 1], [], []>} : vector<16x128xbf16>, vector<128x256xbf16>, vector<16x256xf32> -> vector<16x256xf32>
    %9 = arith.addf %3, %8 : vector<16x256xf32>
    %c0_8 = arith.constant 0 : index
    %c0_9 = arith.constant 0 : index
    %10 = vector.load %arg8[%c0_8, %c0_9] : memref<16x256xf32, #tpu.memory_space<vmem>>, vector<16x256xf32>
    tpu.vector_store %arg8[%c0_8, %c0_9], %9 {strides = array<i32>} : memref<16x256xf32, #tpu.memory_space<vmem>>, vector<16x256xf32>,
    %c0_i32_10 = arith.constant 0 : i32
    %11 = arith.cmpi eq, %arg3, %c0_i32_10 : i32
    %12 = arith.extui %11 : i1 to i32
    %c0_i32_11 = arith.constant 0 : i32
    %13 = arith.cmpi ne, %12, %c0_i32_11 : i32
    scf.if %13 {
      %c0_12 = arith.constant 0 : index
      %c0_13 = arith.constant 0 : index
      %14 = vector.load %arg8[%c0_12, %c0_13] : memref<16x256xf32, #tpu.memory_space<vmem>>, vector<16x256xf32>
      %c0_14 = arith.constant 0 : index
      %c0_15 = arith.constant 0 : index
      %15 = vector.load %arg6[%c0_14, %c0_15] : memref<1x256xf32, #tpu.memory_space<vmem>>, vector<1x256xf32>
      %16 = vector.broadcast %15 : vector<1x256xf32> to vector<16x256xf32>
      %17 = arith.addf %14, %16 : vector<16x256xf32>
      %c0_16 = arith.constant 0 : index
      %c0_17 = arith.constant 0 : index
      %c0_18 = arith.constant 0 : index
      %18 = vector.load %arg7[%c0_16, %c0_17, %c0_18] : memref<1x16x256xf32, #tpu.memory_space<vmem>>, vector<1x16x256xf32>
      %19 = vector.shape_cast %18 : vector<1x16x256xf32> to vector<16x256xf32>
      %20 = vector.shape_cast %17 : vector<16x256xf32> to vector<1x16x256xf32>
      tpu.vector_store %arg7[%c0_16, %c0_17, %c0_18], %20 {strides = array<i32>} : memref<1x16x256xf32, #tpu.memory_space<vmem>>, vector<1x16x256xf32>,
    } else {
    }
    return
  }
  func.func @transform_0(%arg0: i32, %arg1: i32, %arg2: i32, %arg3: i32) -> (i32, i32, i32) {
    %c0_i32 = arith.constant 0 : i32
    return %arg0, %arg1, %arg3 : i32, i32, i32
  }
  func.func @transform_1(%arg0: i32, %arg1: i32, %arg2: i32, %arg3: i32) -> (i32, i32, i32) {
    %c0_i32 = arith.constant 0 : i32
    return %arg0, %arg3, %arg2 : i32, i32, i32
  }
  func.func @transform_2(%arg0: i32, %arg1: i32, %arg2: i32, %arg3: i32) -> (i32, i32) {
    %c0_i32 = arith.constant 0 : i32
    %c0_i32_0 = arith.constant 0 : i32
    return %c0_i32, %arg2 : i32, i32
  }
  func.func @transform_3(%arg0: i32, %arg1: i32, %arg2: i32, %arg3: i32) -> (i32, i32, i32) {
    %c0_i32 = arith.constant 0 : i32
    return %arg0, %arg1, %arg2 : i32, i32, i32
  }
}

module attributes {stable_mosaic.version = 11 : i64} {
  func.func @_gemm_bias_act_kernel(%arg0: i32, %arg1: i32, %arg2: i32, %arg3: i32, %arg4: memref<1x32x2048xbf16, #tpu.memory_space<vmem>>, %arg5: memref<1x2048x256xbf16, #tpu.memory_space<vmem>>, %arg6: memref<1x256xf32, #tpu.memory_space<vmem>>, %arg7: memref<1x32x256xf32, #tpu.memory_space<vmem>>, %arg8: memref<32x256xf32, #tpu.memory_space<vmem>>) attributes {dimension_semantics = [#tpu.dimension_semantics<parallel>, #tpu.dimension_semantics<parallel>, #tpu.dimension_semantics<parallel>, #tpu.dimension_semantics<arbitrary>], iteration_bounds = array<i64: 4, 1, 1, 3>, scalar_prefetch = 0 : i64, scratch_operands = 1 : i64, tpu.core_type = #tpu.core_type<tc>, window_params = [{transform_indices = @transform_0, window_bounds = array<i64: 1, 32, 2048>}, {transform_indices = @transform_1, window_bounds = array<i64: 1, 2048, 256>}, {transform_indices = @transform_2, window_bounds = array<i64: 1, 256>}, {transform_indices = @transform_3, window_bounds = array<i64: 1, 32, 256>}]} {
    %c0_i32 = arith.constant 0 : i32
    %0 = arith.cmpi eq, %arg3, %c0_i32 : i32
    %1 = arith.extui %0 : i1 to i32
    %c0_i32_0 = arith.constant 0 : i32
    %2 = arith.cmpi ne, %1, %c0_i32_0 : i32
    scf.if %2 {
      %cst_11 = arith.constant 0.000000e+00 : f32
      %14 = vector.broadcast %cst_11 : f32 to vector<32x256xf32>
      %c0_12 = arith.constant 0 : index
      %c0_13 = arith.constant 0 : index
      %15 = vector.load %arg8[%c0_12, %c0_13] : memref<32x256xf32, #tpu.memory_space<vmem>>, vector<32x256xf32>
      tpu.vector_store %arg8[%c0_12, %c0_13], %14 {strides = array<i32>} : memref<32x256xf32, #tpu.memory_space<vmem>>, vector<32x256xf32>,
    } else {
    }
    %c0 = arith.constant 0 : index
    %c0_1 = arith.constant 0 : index
    %3 = vector.load %arg8[%c0, %c0_1] : memref<32x256xf32, #tpu.memory_space<vmem>>, vector<32x256xf32>
    %c0_2 = arith.constant 0 : index
    %c0_3 = arith.constant 0 : index
    %c0_4 = arith.constant 0 : index
    %4 = vector.load %arg4[%c0_2, %c0_3, %c0_4] : memref<1x32x2048xbf16, #tpu.memory_space<vmem>>, vector<1x32x2048xbf16>
    %5 = vector.shape_cast %4 : vector<1x32x2048xbf16> to vector<32x2048xbf16>
    %c0_5 = arith.constant 0 : index
    %c0_6 = arith.constant 0 : index
    %c0_7 = arith.constant 0 : index
    %6 = vector.load %arg5[%c0_5, %c0_6, %c0_7] : memref<1x2048x256xbf16, #tpu.memory_space<vmem>>, vector<1x2048x256xbf16>
    %7 = vector.shape_cast %6 : vector<1x2048x256xbf16> to vector<2048x256xbf16>
    %cst = arith.constant dense<0.000000e+00> : vector<32x256xf32>
    %8 = tpu.matmul %5, %7, %cst {dimension_numbers = #tpu.dot_dimension_numbers<[1], [0], [0], [1], [0, 0, 1, 1], [], []>} : vector<32x2048xbf16>, vector<2048x256xbf16>, vector<32x256xf32> -> vector<32x256xf32>
    %9 = arith.addf %3, %8 : vector<32x256xf32>
    %c0_8 = arith.constant 0 : index
    %c0_9 = arith.constant 0 : index
    %10 = vector.load %arg8[%c0_8, %c0_9] : memref<32x256xf32, #tpu.memory_space<vmem>>, vector<32x256xf32>
    tpu.vector_store %arg8[%c0_8, %c0_9], %9 {strides = array<i32>} : memref<32x256xf32, #tpu.memory_space<vmem>>, vector<32x256xf32>,
    %c2_i32 = arith.constant 2 : i32
    %11 = arith.cmpi eq, %arg3, %c2_i32 : i32
    %12 = arith.extui %11 : i1 to i32
    %c0_i32_10 = arith.constant 0 : i32
    %13 = arith.cmpi ne, %12, %c0_i32_10 : i32
    scf.if %13 {
      %c0_11 = arith.constant 0 : index
      %c0_12 = arith.constant 0 : index
      %14 = vector.load %arg8[%c0_11, %c0_12] : memref<32x256xf32, #tpu.memory_space<vmem>>, vector<32x256xf32>
      %c0_13 = arith.constant 0 : index
      %c0_14 = arith.constant 0 : index
      %15 = vector.load %arg6[%c0_13, %c0_14] : memref<1x256xf32, #tpu.memory_space<vmem>>, vector<1x256xf32>
      %16 = vector.broadcast %15 : vector<1x256xf32> to vector<32x256xf32>
      %17 = arith.addf %14, %16 : vector<32x256xf32>
      %c0_15 = arith.constant 0 : index
      %c0_16 = arith.constant 0 : index
      %c0_17 = arith.constant 0 : index
      %18 = vector.load %arg7[%c0_15, %c0_16, %c0_17] : memref<1x32x256xf32, #tpu.memory_space<vmem>>, vector<1x32x256xf32>
      %19 = vector.shape_cast %18 : vector<1x32x256xf32> to vector<32x256xf32>
      %20 = vector.shape_cast %17 : vector<32x256xf32> to vector<1x32x256xf32>
      tpu.vector_store %arg7[%c0_15, %c0_16, %c0_17], %20 {strides = array<i32>} : memref<1x32x256xf32, #tpu.memory_space<vmem>>, vector<1x32x256xf32>,
    } else {
    }
    return
  }
  func.func @transform_0(%arg0: i32, %arg1: i32, %arg2: i32, %arg3: i32) -> (i32, i32, i32) {
    %c0_i32 = arith.constant 0 : i32
    return %arg0, %arg1, %arg3 : i32, i32, i32
  }
  func.func @transform_1(%arg0: i32, %arg1: i32, %arg2: i32, %arg3: i32) -> (i32, i32, i32) {
    %c0_i32 = arith.constant 0 : i32
    return %arg0, %arg3, %arg2 : i32, i32, i32
  }
  func.func @transform_2(%arg0: i32, %arg1: i32, %arg2: i32, %arg3: i32) -> (i32, i32) {
    %c0_i32 = arith.constant 0 : i32
    %c0_i32_0 = arith.constant 0 : i32
    return %c0_i32, %arg2 : i32, i32
  }
  func.func @transform_3(%arg0: i32, %arg1: i32, %arg2: i32, %arg3: i32) -> (i32, i32, i32) {
    %c0_i32 = arith.constant 0 : i32
    return %arg0, %arg1, %arg2 : i32, i32, i32
  }
}

module attributes {stable_mosaic.version = 11 : i64} {
  func.func @_gemm_bias_act_kernel(%arg0: i32, %arg1: i32, %arg2: i32, %arg3: i32, %arg4: memref<1x128x1536xbf16, #tpu.memory_space<vmem>>, %arg5: memref<1x1536x128xbf16, #tpu.memory_space<vmem>>, %arg6: memref<1x128xf32, #tpu.memory_space<vmem>>, %arg7: memref<1x128x128xf32, #tpu.memory_space<vmem>>, %arg8: memref<128x128xf32, #tpu.memory_space<vmem>>) attributes {dimension_semantics = [#tpu.dimension_semantics<parallel>, #tpu.dimension_semantics<parallel>, #tpu.dimension_semantics<parallel>, #tpu.dimension_semantics<arbitrary>], iteration_bounds = array<i64: 4, 1, 1, 2>, scalar_prefetch = 0 : i64, scratch_operands = 1 : i64, tpu.core_type = #tpu.core_type<tc>, window_params = [{transform_indices = @transform_0, window_bounds = array<i64: 1, 128, 1536>}, {transform_indices = @transform_1, window_bounds = array<i64: 1, 1536, 128>}, {transform_indices = @transform_2, window_bounds = array<i64: 1, 128>}, {transform_indices = @transform_3, window_bounds = array<i64: 1, 128, 128>}]} {
    %c0_i32 = arith.constant 0 : i32
    %0 = arith.cmpi eq, %arg3, %c0_i32 : i32
    %1 = arith.extui %0 : i1 to i32
    %c0_i32_0 = arith.constant 0 : i32
    %2 = arith.cmpi ne, %1, %c0_i32_0 : i32
    scf.if %2 {
      %cst_11 = arith.constant 0.000000e+00 : f32
      %14 = vector.broadcast %cst_11 : f32 to vector<128x128xf32>
      %c0_12 = arith.constant 0 : index
      %c0_13 = arith.constant 0 : index
      %15 = vector.load %arg8[%c0_12, %c0_13] : memref<128x128xf32, #tpu.memory_space<vmem>>, vector<128x128xf32>
      tpu.vector_store %arg8[%c0_12, %c0_13], %14 {strides = array<i32>} : memref<128x128xf32, #tpu.memory_space<vmem>>, vector<128x128xf32>,
    } else {
    }
    %c0 = arith.constant 0 : index
    %c0_1 = arith.constant 0 : index
    %3 = vector.load %arg8[%c0, %c0_1] : memref<128x128xf32, #tpu.memory_space<vmem>>, vector<128x128xf32>
    %c0_2 = arith.constant 0 : index
    %c0_3 = arith.constant 0 : index
    %c0_4 = arith.constant 0 : index
    %4 = vector.load %arg4[%c0_2, %c0_3, %c0_4] : memref<1x128x1536xbf16, #tpu.memory_space<vmem>>, vector<1x128x1536xbf16>
    %5 = vector.shape_cast %4 : vector<1x128x1536xbf16> to vector<128x1536xbf16>
    %c0_5 = arith.constant 0 : index
    %c0_6 = arith.constant 0 : index
    %c0_7 = arith.constant 0 : index
    %6 = vector.load %arg5[%c0_5, %c0_6, %c0_7] : memref<1x1536x128xbf16, #tpu.memory_space<vmem>>, vector<1x1536x128xbf16>
    %7 = vector.shape_cast %6 : vector<1x1536x128xbf16> to vector<1536x128xbf16>
    %cst = arith.constant dense<0.000000e+00> : vector<128x128xf32>
    %8 = tpu.matmul %5, %7, %cst {dimension_numbers = #tpu.dot_dimension_numbers<[1], [0], [0], [1], [0, 0, 1, 1], [], []>} : vector<128x1536xbf16>, vector<1536x128xbf16>, vector<128x128xf32> -> vector<128x128xf32>
    %9 = arith.addf %3, %8 : vector<128x128xf32>
    %c0_8 = arith.constant 0 : index
    %c0_9 = arith.constant 0 : index
    %10 = vector.load %arg8[%c0_8, %c0_9] : memref<128x128xf32, #tpu.memory_space<vmem>>, vector<128x128xf32>
    tpu.vector_store %arg8[%c0_8, %c0_9], %9 {strides = array<i32>} : memref<128x128xf32, #tpu.memory_space<vmem>>, vector<128x128xf32>,
    %c1_i32 = arith.constant 1 : i32
    %11 = arith.cmpi eq, %arg3, %c1_i32 : i32
    %12 = arith.extui %11 : i1 to i32
    %c0_i32_10 = arith.constant 0 : i32
    %13 = arith.cmpi ne, %12, %c0_i32_10 : i32
    scf.if %13 {
      %c0_11 = arith.constant 0 : index
      %c0_12 = arith.constant 0 : index
      %14 = vector.load %arg8[%c0_11, %c0_12] : memref<128x128xf32, #tpu.memory_space<vmem>>, vector<128x128xf32>
      %c0_13 = arith.constant 0 : index
      %c0_14 = arith.constant 0 : index
      %15 = vector.load %arg6[%c0_13, %c0_14] : memref<1x128xf32, #tpu.memory_space<vmem>>, vector<1x128xf32>
      %16 = vector.broadcast %15 : vector<1x128xf32> to vector<128x128xf32>
      %17 = arith.addf %14, %16 : vector<128x128xf32>
      %c0_15 = arith.constant 0 : index
      %c0_16 = arith.constant 0 : index
      %c0_17 = arith.constant 0 : index
      %18 = vector.load %arg7[%c0_15, %c0_16, %c0_17] : memref<1x128x128xf32, #tpu.memory_space<vmem>>, vector<1x128x128xf32>
      %19 = vector.shape_cast %18 : vector<1x128x128xf32> to vector<128x128xf32>
      %20 = vector.shape_cast %17 : vector<128x128xf32> to vector<1x128x128xf32>
      tpu.vector_store %arg7[%c0_15, %c0_16, %c0_17], %20 {strides = array<i32>} : memref<1x128x128xf32, #tpu.memory_space<vmem>>, vector<1x128x128xf32>,
    } else {
    }
    return
  }
  func.func @transform_0(%arg0: i32, %arg1: i32, %arg2: i32, %arg3: i32) -> (i32, i32, i32) {
    %c0_i32 = arith.constant 0 : i32
    return %arg0, %arg1, %arg3 : i32, i32, i32
  }
  func.func @transform_1(%arg0: i32, %arg1: i32, %arg2: i32, %arg3: i32) -> (i32, i32, i32) {
    %c0_i32 = arith.constant 0 : i32
    return %arg0, %arg3, %arg2 : i32, i32, i32
  }
  func.func @transform_2(%arg0: i32, %arg1: i32, %arg2: i32, %arg3: i32) -> (i32, i32) {
    %c0_i32 = arith.constant 0 : i32
    %c0_i32_0 = arith.constant 0 : i32
    return %c0_i32, %arg2 : i32, i32
  }
  func.func @transform_3(%arg0: i32, %arg1: i32, %arg2: i32, %arg3: i32) -> (i32, i32, i32) {
    %c0_i32 = arith.constant 0 : i32
    return %arg0, %arg1, %arg2 : i32, i32, i32
  }
}

module attributes {stable_mosaic.version = 11 : i64} {
  func.func @_gemm_bias_act_kernel(%arg0: i32, %arg1: i32, %arg2: i32, %arg3: i32, %arg4: memref<1x256x1152xbf16, #tpu.memory_space<vmem>>, %arg5: memref<1x1152x128xbf16, #tpu.memory_space<vmem>>, %arg6: memref<1x128xf32, #tpu.memory_space<vmem>>, %arg7: memref<1x256x128xf32, #tpu.memory_space<vmem>>, %arg8: memref<256x128xf32, #tpu.memory_space<vmem>>) attributes {dimension_semantics = [#tpu.dimension_semantics<parallel>, #tpu.dimension_semantics<parallel>, #tpu.dimension_semantics<parallel>, #tpu.dimension_semantics<arbitrary>], iteration_bounds = array<i64: 1, 2, 1, 1>, scalar_prefetch = 0 : i64, scratch_operands = 1 : i64, tpu.core_type = #tpu.core_type<tc>, window_params = [{transform_indices = @transform_0, window_bounds = array<i64: 1, 256, 1152>}, {transform_indices = @transform_1, window_bounds = array<i64: 1, 1152, 128>}, {transform_indices = @transform_2, window_bounds = array<i64: 1, 128>}, {transform_indices = @transform_3, window_bounds = array<i64: 1, 256, 128>}]} {
    %c0_i32 = arith.constant 0 : i32
    %0 = arith.cmpi eq, %arg3, %c0_i32 : i32
    %1 = arith.extui %0 : i1 to i32
    %c0_i32_0 = arith.constant 0 : i32
    %2 = arith.cmpi ne, %1, %c0_i32_0 : i32
    scf.if %2 {
      %cst_12 = arith.constant 0.000000e+00 : f32
      %14 = vector.broadcast %cst_12 : f32 to vector<256x128xf32>
      %c0_13 = arith.constant 0 : index
      %c0_14 = arith.constant 0 : index
      %15 = vector.load %arg8[%c0_13, %c0_14] : memref<256x128xf32, #tpu.memory_space<vmem>>, vector<256x128xf32>
      tpu.vector_store %arg8[%c0_13, %c0_14], %14 {strides = array<i32>} : memref<256x128xf32, #tpu.memory_space<vmem>>, vector<256x128xf32>,
    } else {
    }
    %c0 = arith.constant 0 : index
    %c0_1 = arith.constant 0 : index
    %3 = vector.load %arg8[%c0, %c0_1] : memref<256x128xf32, #tpu.memory_space<vmem>>, vector<256x128xf32>
    %c0_2 = arith.constant 0 : index
    %c0_3 = arith.constant 0 : index
    %c0_4 = arith.constant 0 : index
    %4 = vector.load %arg4[%c0_2, %c0_3, %c0_4] : memref<1x256x1152xbf16, #tpu.memory_space<vmem>>, vector<1x256x1152xbf16>
    %5 = vector.shape_cast %4 : vector<1x256x1152xbf16> to vector<256x1152xbf16>
    %c0_5 = arith.constant 0 : index
    %c0_6 = arith.constant 0 : index
    %c0_7 = arith.constant 0 : index
    %6 = vector.load %arg5[%c0_5, %c0_6, %c0_7] : memref<1x1152x128xbf16, #tpu.memory_space<vmem>>, vector<1x1152x128xbf16>
    %7 = vector.shape_cast %6 : vector<1x1152x128xbf16> to vector<1152x128xbf16>
    %cst = arith.constant dense<0.000000e+00> : vector<256x128xf32>
    %8 = tpu.matmul %5, %7, %cst {dimension_numbers = #tpu.dot_dimension_numbers<[1], [0], [0], [1], [0, 0, 1, 1], [], []>} : vector<256x1152xbf16>, vector<1152x128xbf16>, vector<256x128xf32> -> vector<256x128xf32>
    %9 = arith.addf %3, %8 : vector<256x128xf32>
    %c0_8 = arith.constant 0 : index
    %c0_9 = arith.constant 0 : index
    %10 = vector.load %arg8[%c0_8, %c0_9] : memref<256x128xf32, #tpu.memory_space<vmem>>, vector<256x128xf32>
    tpu.vector_store %arg8[%c0_8, %c0_9], %9 {strides = array<i32>} : memref<256x128xf32, #tpu.memory_space<vmem>>, vector<256x128xf32>,
    %c0_i32_10 = arith.constant 0 : i32
    %11 = arith.cmpi eq, %arg3, %c0_i32_10 : i32
    %12 = arith.extui %11 : i1 to i32
    %c0_i32_11 = arith.constant 0 : i32
    %13 = arith.cmpi ne, %12, %c0_i32_11 : i32
    scf.if %13 {
      %c0_12 = arith.constant 0 : index
      %c0_13 = arith.constant 0 : index
      %14 = vector.load %arg8[%c0_12, %c0_13] : memref<256x128xf32, #tpu.memory_space<vmem>>, vector<256x128xf32>
      %c0_14 = arith.constant 0 : index
      %c0_15 = arith.constant 0 : index
      %15 = vector.load %arg6[%c0_14, %c0_15] : memref<1x128xf32, #tpu.memory_space<vmem>>, vector<1x128xf32>
      %16 = vector.broadcast %15 : vector<1x128xf32> to vector<256x128xf32>
      %17 = arith.addf %14, %16 : vector<256x128xf32>
      %18 = math.tanh %17 : vector<256x128xf32>
      %c0_16 = arith.constant 0 : index
      %c0_17 = arith.constant 0 : index
      %c0_18 = arith.constant 0 : index
      %19 = vector.load %arg7[%c0_16, %c0_17, %c0_18] : memref<1x256x128xf32, #tpu.memory_space<vmem>>, vector<1x256x128xf32>
      %20 = vector.shape_cast %19 : vector<1x256x128xf32> to vector<256x128xf32>
      %21 = vector.shape_cast %18 : vector<256x128xf32> to vector<1x256x128xf32>
      tpu.vector_store %arg7[%c0_16, %c0_17, %c0_18], %21 {strides = array<i32>} : memref<1x256x128xf32, #tpu.memory_space<vmem>>, vector<1x256x128xf32>,
    } else {
    }
    return
  }
  func.func @transform_0(%arg0: i32, %arg1: i32, %arg2: i32, %arg3: i32) -> (i32, i32, i32) {
    %c0_i32 = arith.constant 0 : i32
    return %arg0, %arg1, %arg3 : i32, i32, i32
  }
  func.func @transform_1(%arg0: i32, %arg1: i32, %arg2: i32, %arg3: i32) -> (i32, i32, i32) {
    %c0_i32 = arith.constant 0 : i32
    return %arg0, %arg3, %arg2 : i32, i32, i32
  }
  func.func @transform_2(%arg0: i32, %arg1: i32, %arg2: i32, %arg3: i32) -> (i32, i32) {
    %c0_i32 = arith.constant 0 : i32
    %c0_i32_0 = arith.constant 0 : i32
    return %c0_i32, %arg2 : i32, i32
  }
  func.func @transform_3(%arg0: i32, %arg1: i32, %arg2: i32, %arg3: i32) -> (i32, i32, i32) {
    %c0_i32 = arith.constant 0 : i32
    return %arg0, %arg1, %arg2 : i32, i32, i32
  }
}

</mosaic_0001>

<bundles_post_ra>
// kernel: squeeze.11
= control target key start
LH: loop header
LB: loop body
LE: loop exit
PB: predicated region body
PF: predicated region fallthrough
CT: control target
= control target key end

     0   :  { %v259_v9 = vmov 0.0   ;;  %s324_s0 = inlined_call_operand.vmem [shape: bf16[1,8,512], index: 0, kind: input, shape index: {}]   ;;  %s325_s1 = inlined_call_operand.vmem [shape: bf16[2,2,2,1,512], index: 1, kind: output, shape index: {}]  }
   0x1   :  { %v257_v0 = vld [vmem:[%s324_s0 + $0x8] sm:$0xff]   ;;  %v254_v1 = vld [vmem:[%s324_s0] sm:$0xff]  }
   0x2   :  { %v251_v2 = vunpack.c.l.bf16 %v257_v0  ;;  %v252_v3 = vunpack.c.h.bf16 %v257_v0  ;;  %v255_v4 = vunpack.c.l.bf16 %v254_v1  ;;  %v256_v5 = vunpack.c.h.bf16 %v254_v1 }
   0x4   :  { %66 = vst [vmem:[#allocation0] sm:$0x3] %v255_v4   ;;  %68 = vst [vmem:[#allocation0 + $0x1e] sm:$0xc] %v255_v4  }
   0x5   :  { %70 = vst [vmem:[#allocation0 + $0x3c] sm:$0x30] %v255_v4   ;;  %72 = vst [vmem:[#allocation0 + $0x5a] sm:$0xc0] %v255_v4  }
   0x6   :  { %76 = vst [vmem:[#allocation0 + $0x8] sm:$0x3] %v256_v5   ;;  %78 = vst [vmem:[#allocation0 + $0x26] sm:$0xc] %v256_v5  }
   0x7   :  { %80 = vst [vmem:[#allocation0 + $0x44] sm:$0x30] %v256_v5   ;;  %82 = vst [vmem:[#allocation0 + $0x62] sm:$0xc0] %v256_v5  }
   0x8   :  { %86 = vst [vmem:[#allocation0 + $0x10] sm:$0x3] %v251_v2   ;;  %88 = vst [vmem:[#allocation0 + $0x2e] sm:$0xc] %v251_v2  }
   0x9   :  { %90 = vst [vmem:[#allocation0 + $0x4c] sm:$0x30] %v251_v2   ;;  %92 = vst [vmem:[#allocation0 + $0x6a] sm:$0xc0] %v251_v2  }
   0xa   :  { %96 = vst [vmem:[#allocation0 + $0x18] sm:$0x3] %v252_v3   ;;  %98 = vst [vmem:[#allocation0 + $0x36] sm:$0xc] %v252_v3  }
   0xb   :  { %100 = vst [vmem:[#allocation0 + $0x54] sm:$0x30] %v252_v3   ;;  %102 = vst [vmem:[#allocation0 + $0x72] sm:$0xc0] %v252_v3   ;;  %v107_v6 = vld [vmem:[#allocation0] sm:$0x3] }
   0xc   :  { %v108_v10 = vpack.c.bf16 %v259_v9, %v107_v6  ;;  %v132_v14 = vld [vmem:[#allocation0 + $0x20] sm:$0x3] }
   0xd   :  { %v112_v7 = vld [vmem:[#allocation0 + $0x8] sm:$0x3]  ;;  %v133_v17 = vpack.c.bf16 %v259_v9, %v132_v14  ;;  %v160_v21 = vld [vmem:[#allocation0 + $0x40] sm:$0x3] }
   0xe   :  { %v113_v11 = vpack.c.bf16 %v259_v9, %v112_v7  ;;  %v139_v15 = vld [vmem:[#allocation0 + $0x28] sm:$0x3]  ;;  %110 = vst [vmem:[%s325_s1] sm:$0x1] %v108_v10  ;;  %v161_v24 = vpack.c.bf16 %v259_v9, %v160_v21  ;;  %v188_v31 = vld [vmem:[#allocation0 + $0x60] sm:$0x3] }
   0xf   :  { %v118_v8 = vld [vmem:[#allocation0 + $0x10] sm:$0x3]  ;;  %v140_v18 = vpack.c.bf16 %v259_v9, %v139_v15  ;;  %v167_v25 = vld [vmem:[#allocation0 + $0x48] sm:$0x3]  ;;  %237 = vst [vmem:[%s325_s1 + $0x4] sm:$0x1] %v133_v17  ;;  %v189_v34 = vpack.c.bf16 %v259_v9, %v188_v31 }
  0x10   :  { %v119_v12 = vpack.c.bf16 %v259_v9, %v118_v8  ;;  %v146_v19 = vld [vmem:[#allocation0 + $0x30] sm:$0x3]  ;;  %234 = vst [vmem:[%s325_s1 + $0x1] sm:$0x1] %v113_v11  ;;  %v168_v28 = vpack.c.bf16 %v259_v9, %v167_v25  ;;  %v195_v32 = vld [vmem:[#allocation0 + $0x68] sm:$0x3] }
  0x11   :  { %v125_v13 = vld [vmem:[#allocation0 + $0x18] sm:$0x3]  ;;  %v147_v22 = vpack.c.bf16 %v259_v9, %v146_v19  ;;  %v174_v26 = vld [vmem:[#allocation0 + $0x50] sm:$0x3]  ;;  %238 = vst [vmem:[%s325_s1 + $0x5] sm:$0x1] %v140_v18  ;;  %v196_v35 = vpack.c.bf16 %v259_v9, %v195_v32 }
  0x12   :  { %v126_v16 = vpack.c.bf16 %v259_v9, %v125_v13  ;;  %v153_v20 = vld [vmem:[#allocation0 + $0x38] sm:$0x3]  ;;  %235 = vst [vmem:[%s325_s1 + $0x2] sm:$0x1] %v119_v12  ;;  %v175_v29 = vpack.c.bf16 %v259_v9, %v174_v26  ;;  %v202_v33 = vld [vmem:[#allocation0 + $0x70] sm:$0x3] }
  0x13   :  { %v154_v23 = vpack.c.bf16 %v259_v9, %v153_v20  ;;  %v181_v27 = vld [vmem:[#allocation0 + $0x58] sm:$0x3]  ;;  %239 = vst [vmem:[%s325_s1 + $0x6] sm:$0x1] %v147_v22  ;;  %241 = vst [vmem:[%s325_s1 + $0x8] sm:$0x1] %v161_v24  ;;  %v203_v36 = vpack.c.bf16 %v259_v9, %v202_v33 }
  0x14   :  { %236 = vst [vmem:[%s325_s1 + $0x3] sm:$0x1] %v126_v16  ;;  %v182_v30 = vpack.c.bf16 %v259_v9, %v181_v27  ;;  %v209_v37 = vld [vmem:[#allocation0 + $0x78] sm:$0x3]  ;;  %242 = vst [vmem:[%s325_s1 + $0x9] sm:$0x1] %v168_v28 }
  0x15   :  { %240 = vst [vmem:[%s325_s1 + $0x7] sm:$0x1] %v154_v23  ;;  %243 = vst [vmem:[%s325_s1 + $0xa] sm:$0x1] %v175_v29  ;;  %v210_v38 = vpack.c.bf16 %v259_v9, %v209_v37 }
  0x16   :  { %244 = vst [vmem:[%s325_s1 + $0xb] sm:$0x1] %v182_v30  ;;  %245 = vst [vmem:[%s325_s1 + $0xc] sm:$0x1] %v189_v34 }
  0x17   :  { %246 = vst [vmem:[%s325_s1 + $0xd] sm:$0x1] %v196_v35  ;;  %247 = vst [vmem:[%s325_s1 + $0xe] sm:$0x1] %v203_v36 }
  0x18   :  { %248 = vst [vmem:[%s325_s1 + $0xf] sm:$0x1] %v210_v38 }

// kernel: pixel_decoder_forward.4
= control target key start
LH: loop header
LB: loop body
LE: loop exit
PB: predicated region body
PF: predicated region fallthrough
CT: control target
= control target key end

     0   :  { %s1329_s0 = inlined_call_operand.vmem [shape: bf16[4,16,128], index: 0, kind: input, shape index: {}]   ;;  %s1330_s1 = inlined_call_operand.hbm [shape: bf16[4,128,512], index: 1, kind: input, shape index: {}]   ;;  %s1331_s2 = inlined_call_operand.hbm [shape: f32[1,512], index: 2, kind: input, shape index: {}]   ;;  %s1332_s3 = inlined_call_operand.vmem [shape: f32[4,16,512], index: 3, kind: output, shape index: {}]  }
   0x1   :  { %1340 = sst [smem:[#allocation12_spill]] %s1330_s1 }
   0x2   :  { %8 = vsyncpa [#allocation4], 0 }
   0x3   :  { %10 = vsyncpa [#allocation4 + $0x1], 0 }
   0x4   :  { %11 = vsyncpa [#allocation6], 0 }
   0x5   :  { %13 = vsyncpa [#allocation6 + $0x1], 0  ;;  %s1033_s12 = smov 0   ;;  %s1035_s13 = smov 0  }
   0x6   :  { %s1037_s14 = smov 0   ;;  %s1039_s15 = smov 0  }
   0x7   :  { %s1041_s16 = smov 0   ;;  %s1043_s17 = smov 0  }
   0x8   :  { %s1045_s18 = smov 0   ;;  %s1047_s19 = smov 0  }
   0x9   :  { %s1049_s20 = smov 0   ;;  %s1051_s21 = smov 0  }
   0xa   :  { %s1053_s22 = smov 0  }
   0xb LB: > { %s45_s23 = sadd.s32 1, %s1001_s21  ;;  %s86_s24 = sadd.s32 1, %s985_s17  ;;  %s1005_s22 = sphi %s1053_s22, %s19_s22   ;;  %s1001_s21 = sphi %s1051_s21, %s1369_s21   ;;  %s997_s20 = sphi %s1049_s20, %s1368_s20   ;;  %s993_s19 = sphi %s1047_s19, %s1367_s19   ;;  %s989_s18 = sphi %s1045_s18, %s1366_s18   ;;  %s985_s17 = sphi %s1043_s17, %s1365_s17   ;;  %s981_s16 = sphi %s1041_s16, %s1364_s16   ;;  %s977_s15 = sphi %s1039_s15, %s1363_s15   ;;  %s973_s14 = sphi %s1037_s14, %s1362_s14   ;;  %s969_s13 = sphi %s1035_s13, %s1361_s13   ;;  %s965_s12 = sphi %s1033_s12, %s1360_s12  }
   0xc   : > { %p1334_p0 = scmp.ne.s32.totalorder %s985_s17, %s981_s16  ;;  %p1335_p1 = scmp.eq.s32.totalorder %s1005_s22, 0 }
   0xd   : > { %p1333_p2 = scmp.lt.s32.totalorder %s1005_s22, 8  ;;  %s195_s25 = sand.u32 1, %s985_s17  }
   0xe   : > { %p95_p3 = por %p1335_p1, %p1334_p0  ;;  %s684_s26 = sshll.u32 %s195_s25, 7 }
   0xf   : > { %s685_s27 = sshll.u32 %s997_s20, 1  ;;  %s686_s28 = sshll.u32 %s1001_s21, 6 }
  0x10   : > { %s199_s29 = scalar_lea.vmem [#allocation3], %s684_s26  ;;  %s208_s4 = sadd.s32 %s686_s28, %s685_s27 }
  0x11   : > { %s211_s30 = sshll.u32 %s199_s29, 4  ;;  %s687_s5 = sshll.u32 %s208_s4, 6  ;;  %s1102_s30 = int_to_ptr.vmem [resolvable:$true] %s211_s30 }
  0x12   : > { %p1106_p4 = pnand %p1333_p2, %p95_p3  ;;  %s1342_s1 = sld [smem:[#allocation12_spill]] }
  0x13   : > { %p691_p5 = scmp.ge.s32.totalorder %s1005_s22, 1  ;;  %s1116_s10 = scalar_lea.sflag [#allocation4], %s195_s25 }
  0x14   : > { %p853_p7 = pneg %p1106_p4 }
  0x18   : > { %s1113_s9 = scalar_lea.hbm %s1342_s1, %s687_s5  ;;  %s856_s28 = scalar_lea.hbm %s1342_s1, 16384 }
  0x19   : > { %s851_s11 = scalar_lea.hbm %s1113_s9, 2048  ;;  %p857_p10 = scmp.lt.u32.totalorder %s1113_s9, %s1342_s1 }
  0x1a   : > { %p852_p6 = scmp.ne.s32.totalorder %s1113_s9, %s851_s11  ;;  %p858_p11 = scmp.lt.u32.totalorder %s856_s28, %s851_s11 }
  0x1b   : > { %p860_p13 = scmp.lt.u32.totalorder %s851_s11, %s1113_s9 }
  0x1c   : > { %p854_p8 = pnand %p853_p7, %p852_p6  ;;  %p859_p12 = por %p858_p11, %p857_p10 }
  0x1e   : > { %p855_p9 = pneg %p854_p8  ;;  %p861_p3 = por %p860_p13, %p859_p12 }
  0x20   : > { %p862_p2 = pnand %p861_p3, %p855_p9 }
  0x22   : > { %865 = shalt.err (!%p862_p2)
}
  0x23   : > { %s866_s25 = scalar_lea.vmem %s1102_s30, 2048  ;;  %s1007_s5 = smov [#allocation3]  }
  0x24   : > { %p867_p6 = scmp.ne.s32.totalorder %s1102_s30, %s866_s25  ;;  %s871_s7 = sshll.u32 %s1007_s5, 4  ;;  %s872_s7 = int_to_ptr.vmem [resolvable:$false] %s871_s7 }
  0x25   : > { %s873_s8 = scalar_lea.vmem %s872_s7, 4096  ;;  %p874_p1 = scmp.lt.s32.totalorder %s1102_s30, %s872_s7 }
  0x26   : > { %p869_p8 = pnand %p867_p6, %p853_p7  ;;  %p875_p10 = scmp.lt.s32.totalorder %s873_s8, %s866_s25 }
  0x28   : > { %p870_p0 = pneg %p869_p8  ;;  %p876_p11 = por %p875_p10, %p874_p1 }
  0x2a   : > { %p877_p12 = pnand %p876_p11, %p870_p0 }
  0x2c   : > { %880 = shalt.err (!%p877_p12)
}
  0x2d   : > { %s1008_s11 = smov 256   ;;  %s1009_s26 = smov 128  }
  0x2e   : > { %s1010_s27 = smov 8   ;;  %p238_p0 = scmp.lt.s32.totalorder %s1005_s22, 9 }
  0x2f   : > { %729 = dma.hbm_to_vmem [thread:$0]  (!%p1106_p4), %s1113_s9, 2048, %s1102_s30, %s1116_s10, %s1008_s11, %s1009_s26, %s1010_s27  }
  0x30   : > { %p1147_p1 = pnand %p691_p5, %p238_p0  ;;  %s680_s29 = sadd.s32 4294967295, %s1005_s22  }
  0x31   : > { %s37_s4 = sadd.s32 1, %s997_s20  ;;  %p99_p7 = scmp.ne.s32.totalorder %s981_s16, %s977_s15 }
  0x32   : > { %p39_p2 = scmp.ge.s32.totalorder %s37_s4, 2  ;;  %p1155_p9 = scmp.eq.s32.totalorder %s680_s29, 0 }
  0x33   : > { %s112_s30 = sadd.s32 1, %s973_s14  ;;  %p119_p3 = scmp.ne.s32.totalorder %s973_s14, %s969_s13 }
  0x34   : > { %s1371_s4 = smov (%p39_p2, %s37_s4), 0  ;;  %s1373_s23 = smov (!%p39_p2, %s45_s23), %s1001_s21 }
  0x35   : > { %1345 = sst [smem:[#allocation10_spill]] %s1371_s4  ;;  %s82_s9 = ssub.s32 %s997_s20, %s1371_s4 }
  0x36   : > { %p1169_p4 = por %p1155_p9, %p99_p7  ;;  %p47_p5 = scmp.ge.s32.totalorder %s1373_s23, 4 }
  0x37   : > { %p110_p13 = scmp.eq.s32.totalorder %s82_s9, 0  ;;  %p125_p6 = scmp.ne.s32.totalorder %s969_s13, %s965_s12 }
  0x38   : > { %s1346_s15 = scalar_select %p1169_p4, 1, 0 }
  0x39   : > { %s1375_s23 = smov (%p47_p5, %s1373_s23), 0  ;;  %p1348_p8 = scmp.eq.s32.totalorder %s1005_s22, 0 }
  0x3a   : > { %1347 = sst [smem:[#allocation11_spill]] %s1375_s23  ;;  %s79_s25 = ssub.s32 %s1001_s21, %s1375_s23 }
  0x3b   : > { %s1180_s10 = scalar_select %p110_p13, %s973_s14, %s112_s30  }
  0x3c   : > { %p121_p10 = por %p119_p3, %p1348_p8  ;;  %s83_s5 = sor.u32 %s82_s9, %s79_s25 }
  0x3d   : > { %p1188_p11 = por %p125_p6, %p1155_p9  ;;  %p84_p12 = scmp.eq.s32.totalorder %s83_s5, 0 }
  0x3e   : > { %p153_p0 = scmp.eq.s32.totalorder %s680_s29, 7  ;;  %s221_s8 = sand.u32 1, %s973_s14  }
  0x3f   : > { %s1349_s7 = scalar_select %p1188_p11, 1, 0 }
  0x40   : > { %s720_s11 = sshll.u32 %s997_s20, 5  ;;  %p1350_p2 = scmp.ne.s32.totalorder %s985_s17, %s981_s16 }
  0x41   : > { %s1197_s12 = scalar_select %p84_p12, %s985_s17, %s86_s24  }
  0x42   : > { %p1202_p7 = por %p153_p0, %p1350_p2  ;;  %s688_s27 = sshll.u32 %s221_s8, 1 }
  0x43   : > { %s1209_s6 = scalar_lea.hbm %s1331_s2, %s720_s11  ;;  %p1352_p9 = scmp.lt.s32.totalorder %s1005_s22, 8 }
  0x44   : > { %s1351_s26 = scalar_select %p1202_p7, 1, 0 }
  0x45   : > { %p1213_p5 = pnand %p1352_p9, %p121_p10  ;;  %s225_s24 = scalar_lea.vmem [#allocation5], %s688_s27 }
  0x46   : > { %s233_s25 = sshll.u32 %s225_s24, 4  ;;  %s222_s5 = scalar_lea.sflag [#allocation6], %s221_s8  ;;  %s1217_s25 = int_to_ptr.vmem [resolvable:$true] %s233_s25 }
  0x47   : > { %s881_s1 = scalar_lea.hbm %s1209_s6, 32  ;;  %p883_p3 = pneg %p1213_p5 }
  0x48   : > { %p882_p13 = scmp.ne.s32.totalorder %s1209_s6, %s881_s1  ;;  %s886_s9 = scalar_lea.hbm %s1331_s2, 64 }
  0x49   : > { %p887_p10 = scmp.lt.u32.totalorder %s1209_s6, %s1331_s2  ;;  %p888_p12 = scmp.lt.u32.totalorder %s886_s9, %s881_s1 }
  0x4a   : > { %p884_p6 = pnand %p883_p3, %p882_p13  ;;  %p890_p2 = scmp.lt.u32.totalorder %s881_s1, %s1209_s6 }
  0x4b   : > { %p889_p0 = por %p888_p12, %p887_p10 }
  0x4c   : > { %p885_p8 = pneg %p884_p6 }
  0x4d   : > { %p891_p9 = por %p890_p2, %p889_p0 }
  0x4f   : > { %p892_p7 = pnand %p891_p9, %p885_p8 }
  0x51   : > { %895 = shalt.err (!%p892_p7)
}
  0x52   : > { %s896_s8 = scalar_lea.vmem %s1217_s25, 32  ;;  %s1011_s27 = smov [#allocation5]  }
  0x53   : > { %p897_p13 = scmp.ne.s32.totalorder %s1217_s25, %s896_s8  ;;  %s901_s24 = sshll.u32 %s1011_s27, 4  ;;  %s902_s24 = int_to_ptr.vmem [resolvable:$false] %s901_s24 }
  0x54   : > { %s903_s23 = scalar_lea.vmem %s902_s24, 64  ;;  %p904_p4 = scmp.lt.s32.totalorder %s1217_s25, %s902_s24 }
  0x55   : > { %p899_p6 = pnand %p897_p13, %p883_p3  ;;  %p905_p10 = scmp.lt.s32.totalorder %s903_s23, %s896_s8 }
  0x57   : > { %p900_p11 = pneg %p899_p6  ;;  %p906_p12 = por %p905_p10, %p904_p4 }
  0x59   : > { %p907_p0 = pnand %p906_p12, %p900_p11 }
  0x5b   : > { %910 = shalt.err (!%p907_p0)
}
  0x5c   : > { %732 = dma.hbm_to_vmem [thread:$0]  (!%p1213_p5), %s1209_s6, 32, %s1217_s25, %s222_s5  }
  0x5d   : > { %242 = sbr.rel (%p1147_p1) target bundleno = 364 (0x16c), region = 32  ;;  %s1247_s1 = sand.u32 (!%p1147_p1), 1, %s981_s16  }
  0x5e   : > { %s692_s4 = sshll.u32 (!%p1147_p1), %s1247_s1, 7  ;;  %s245_s11 = scalar_lea.sflag (!%p1147_p1), [#allocation4], %s1247_s1 }
  0x5f   : > { %s1251_s30 = scalar_lea.vmem (!%p1147_p1), [#allocation3], %s692_s4  ;;  %p1354_p4 = scmp.ne.s32.totalorder (!%p1147_p1), %s1346_s15, 0 }
  0x64   : > { %956 = dma.done.wait (%p1354_p4), %s245_s11, 2048  }
  0x65   : > { %958 = vsyncadd (%p1354_p4), %s245_s11, 4294965248  ;;  %s253_s6 = sand.u32 1, %s969_s13   ;;  %p1355_p1 = scmp.ne.s32.totalorder %s1349_s7, 0 }
  0x66   : > { %s1258_s28 = sshll.u32 %s253_s6, 1  ;;  %s254_s29 = scalar_lea.sflag [#allocation6], %s253_s6 }
  0x67   : > { %s257_s25 = scalar_lea.vmem [#allocation5], %s1258_s28 }
  0x68   : > { %960 = dma.done.wait (%p1355_p1), %s254_s29, 32  }
  0x69   : > { %962 = vsyncadd (%p1355_p1), %s254_s29, 4294967264  ;;  %v1012_v0 = vmov 0   ;;  %p297_p11 = scmp.lt.s32.totalorder %s993_s19, 3  ;;  %v826_v1 = vld [vmem:[%s1251_s30 + $0x4] ss:$8 sps:$4 sm:$0xff]   ;;  %v491_v18 = vlaneseq  ;;  %s694_s27 = sshll.u32 %s1247_s1, 5 }
  0x6a   : > { %463 = vmatprep.mubr.bf16.mxu0 %v1012_v0  ;;  %v828_v2 = vld [vmem:[%s1251_s30] ss:$8 sps:$4 sm:$0xff]   ;;  %431 = vmatprep.subr.bf16.mxu0 %v826_v1  ;;  %v829_v3 = vld [vmem:[%s1251_s30 + $0x14] ss:$8 sps:$4 sm:$0xff]   ;;  %v831_v4 = vld [vmem:[%s1251_s30 + $0x10] ss:$8 sps:$4 sm:$0xff]  }
  0x6b   : > { %s298_s15 = scalar_select %p297_p11, %s993_s19, 3  ;;  %432 = vmatpush1.bf16.msra.mxu0 %v828_v2  ;;  %v832_v5 = vld [vmem:[%s1251_s30 + $0x24] ss:$8 sps:$4 sm:$0xff]   ;;  %v834_v6 = vld [vmem:[%s1251_s30 + $0x20] ss:$8 sps:$4 sm:$0xff]   ;;  %v492_v19 = vshrl.u32 %v491_v18, 7 }
  0x6c   : > { %433 = vmatprep.subr.bf16.mxu0 %v829_v3  ;;  %v835_v7 = vld [vmem:[%s1251_s30 + $0x34] ss:$8 sps:$4 sm:$0xff]   ;;  %v837_v8 = vld [vmem:[%s1251_s30 + $0x30] ss:$8 sps:$4 sm:$0xff]   ;;  %v838_v9 = vld [vmem:[%s1251_s30 + $0x44] ss:$8 sps:$4 sm:$0xff]  }
  0x6d   : > { %s721_s7 = sshll.u32 %s298_s15, 3  ;;  %v840_v10 = vld [vmem:[%s1251_s30 + $0x40] ss:$8 sps:$4 sm:$0xff]   ;;  %v841_v11 = vld [vmem:[%s1251_s30 + $0x54] ss:$8 sps:$4 sm:$0xff]   ;;  %v493_v20 = vsub.s32 0, %v492_v19 }
  0x6e   : > { %s307_s8 = scalar_lea.vmem %s1329_s0, %s721_s7  ;;  %v843_v12 = vld [vmem:[%s1251_s30 + $0x50] ss:$8 sps:$4 sm:$0xff]   ;;  %v844_v13 = vld [vmem:[%s1251_s30 + $0x64] ss:$8 sps:$4 sm:$0xff]   ;;  %v846_v14 = vld [vmem:[%s1251_s30 + $0x60] ss:$8 sps:$4 sm:$0xff]  }
  0x6f   : > { %434 = vmatpush1.bf16.msra.mxu0 %v831_v4  ;;  %v847_v15 = vld [vmem:[%s1251_s30 + $0x74] ss:$8 sps:$4 sm:$0xff]   ;;  %v849_v16 = vld [vmem:[%s1251_s30 + $0x70] ss:$8 sps:$4 sm:$0xff]   ;;  %v850_v17 = vld [vmem:[%s307_s8] sm:$0xff]   ;;  %v497_v22 = vsub.s32 1, %v492_v19 }
  0x70   : > { %435 = vmatprep.subr.bf16.mxu0 %v832_v5  ;;  %v489_v21 = vld [vmem:[%s257_s25] sm:$0x3]  ;;  %s295_s24 = scalar_lea.vmem [#allocation7], %s694_s27  ;;  %p1356_p7 = scmp.ne.s32.totalorder %s1351_s26, 0 }
  0x71   : > { %v494_v23 = vrot.slane %v489_v21, %v493_v20  ;;  %v498_v24 = vrot.slane %v489_v21, %v497_v22  ;;  %s715_s23 = sshll.u32 (%p1356_p7), %s989_s18, 1  ;;  %s716_s1 = sshll.u32 (%p1356_p7), %s993_s19, 3 }
  0x72   : > { %s521_s4 = sadd.s32 (%p1356_p7), %s716_s1, %s715_s23 }
  0x73   : > { %436 = vmatpush1.bf16.msra.mxu0 %v834_v6  ;;  %s717_s11 = sshll.u32 (%p1356_p7), %s521_s4, 3 }
  0x74   : > { %437 = vmatprep.subr.bf16.mxu0 %v835_v7  ;;  %s523_s28 = scalar_lea.vmem (%p1356_p7), %s1332_s3, %s717_s11 }
  0x77   : > { %438 = vmatpush1.bf16.msra.mxu0 %v837_v8 }
  0x78   : > { %439 = vmatprep.subr.bf16.mxu0 %v838_v9 }
  0x7b   : > { %440 = vmatpush1.bf16.msra.mxu0 %v840_v10 }
  0x7c   : > { %441 = vmatprep.subr.bf16.mxu0 %v841_v11 }
  0x7f   : > { %442 = vmatpush1.bf16.msra.mxu0 %v843_v12 }
  0x80   : > { %443 = vmatprep.subr.bf16.mxu0 %v844_v13 }
  0x83   : > { %444 = vmatpush1.bf16.msra.mxu0 %v846_v14 }
  0x84   : > { %445 = vmatprep.subr.bf16.mxu0 %v847_v15 }
  0x87   : > { %446 = vmatpush1.bf16.msra.mxu0 %v849_v16 }
  0x8a   : > { %464 = vmatmul.mubr.bf16.vlgmr.msra.gmra.mrb[0].mxu0 %v850_v17 }
 0x15d   : > { %v465_v25 = vpop.f32.mrb[0].mxu0  ;;  %515 = sbr.rel (!%p1356_p7) target bundleno = 364 (0x16c), region = 52 }
 0x15e   : > { %v501_v26 = vadd.f32 %v494_v23, %v465_v25  ;;  %v467_v27 = vpop.f32.mrb[1].mxu0 }
 0x15f   : > { %v502_v28 = vadd.f32 %v498_v24, %v467_v27  ;;  %v469_v29 = vpop.f32.mrb[2].mxu0 }
 0x160   : > { %505 = vst [vmem:[%s295_s24] sm:$0xff] %v501_v26  ;;  %v503_v30 = vadd.f32 %v494_v23, %v469_v29  ;;  %v471_v31 = vpop.f32.mrb[3].mxu0 }
 0x161   : > { %506 = vst [vmem:[%s295_s24 + $0x8] sm:$0xff] %v502_v28  ;;  %v504_v32 = vadd.f32 %v498_v24, %v471_v31 }
 0x162   : > { %507 = vst [vmem:[%s295_s24 + $0x10] sm:$0xff] %v503_v30 }
 0x163   : > { %508 = vst [vmem:[%s295_s24 + $0x18] sm:$0xff] %v504_v32 }
 0x167   : > { %v536_v33 = vld [vmem:[%s295_s24] sm:$0xff] }
 0x168   : > { %v538_v34 = vld [vmem:[%s295_s24 + $0x8] sm:$0xff]  ;;  %537 = vst [vmem:[%s523_s28] sm:$0xff] %v536_v33 }
 0x169   : > { %v540_v35 = vld [vmem:[%s295_s24 + $0x10] sm:$0xff]  ;;  %539 = vst [vmem:[%s523_s28 + $0x8] sm:$0xff] %v538_v34 }
 0x16a   : > { %v542_v36 = vld [vmem:[%s295_s24 + $0x18] sm:$0xff]  ;;  %541 = vst [vmem:[%s523_s28 + $0x20] sm:$0xff] %v540_v35 }
 0x16b   : > { %543 = vst [vmem:[%s523_s28 + $0x28] sm:$0xff] %v542_v36 }
 0x16c PF: > { %s19_s22 = sadd.s32 1, %s1005_s22   ;;  %s1357_s18 = smov %s1197_s12 }
 0x16d   : > { %p16_p5 = scmp.ge.s32.totalorder %s19_s22, 10   ;;  %s1358_s26 = sld [smem:[#allocation10_spill]] }
 0x16e   : > { %s1359_s29 = sld [smem:[#allocation11_spill]]  ;;  %s1360_s12 = smov %s969_s13 }
 0x16f   : > { %s1361_s13 = smov %s973_s14  ;;  %s1362_s14 = smov %s1180_s10 }
 0x170   : > { %s1363_s15 = smov %s981_s16  ;;  %s1364_s16 = smov %s985_s17 }
 0x171   : > { %s1365_s17 = smov %s1357_s18  ;;  %s1366_s18 = smov %s997_s20 }
 0x172   : > { %s1367_s19 = smov %s1001_s21  ;;  %18 = sbr.rel (!%p16_p5) target bundleno = 11 (0xb), region = 119 }
 0x173   : > { %s1368_s20 = smov %s1358_s26 }
 0x174   : > { %s1369_s21 = smov %s1359_s29 }
 0x179   :  { %559 = vsyncpa [#allocation4], 1 }
 0x17a   :  { %561 = vsyncpa [#allocation4 + $0x1], 1 }
 0x17b   :  { %562 = vsyncpa [#allocation6], 1 }
 0x17c   :  { %564 = vsyncpa [#allocation6 + $0x1], 1 }

// kernel: squeeze.7
= control target key start
LH: loop header
LB: loop body
LE: loop exit
PB: predicated region body
PF: predicated region fallthrough
CT: control target
= control target key end

     0   :  { %v349_v18 = vmov 0.0   ;;  %s420_s0 = inlined_call_operand.vmem [shape: bf16[1,32,256], index: 0, kind: input, shape index: {}]   ;;  %s421_s1 = inlined_call_operand.vmem [shape: bf16[2,4,4,1,256], index: 1, kind: output, shape index: {}]  }
   0x1   :  { %v345_v0 = vld [vmem:[%s420_s0 + $0x18] sm:$0xff]   ;;  %v346_v1 = vld [vmem:[%s420_s0 + $0x10] sm:$0xff]   ;;  %v347_v2 = vld [vmem:[%s420_s0 + $0x8] sm:$0xff]  }
   0x2   :  { %v331_v3 = vunpack.c.l.bf16 %v345_v0  ;;  %v332_v4 = vunpack.c.h.bf16 %v345_v0  ;;  %v335_v5 = vunpack.c.l.bf16 %v346_v1  ;;  %v336_v6 = vunpack.c.h.bf16 %v346_v1  ;;  %v342_v7 = vld [vmem:[%s420_s0] sm:$0xff]  }
   0x3   :  { %v339_v8 = vunpack.c.l.bf16 %v347_v2  ;;  %v340_v9 = vunpack.c.h.bf16 %v347_v2  ;;  %v343_v10 = vunpack.c.l.bf16 %v342_v7  ;;  %v344_v11 = vunpack.c.h.bf16 %v342_v7 }
   0x4   :  { %154 = vst [vmem:[#allocation0 + $0x40] ss:$16 sps:$4 sm:$0xff] %v335_v5   ;;  %160 = vst [vmem:[#allocation0 + $0x48] ss:$16 sps:$4 sm:$0xff] %v336_v6  }
   0x5   :  { %166 = vst [vmem:[#allocation0 + $0x60] ss:$16 sps:$4 sm:$0xff] %v331_v3   ;;  %172 = vst [vmem:[#allocation0 + $0x68] ss:$16 sps:$4 sm:$0xff] %v332_v4  }
   0x6   :  { %130 = vst [vmem:[#allocation0] ss:$16 sps:$4 sm:$0xff] %v343_v10   ;;  %136 = vst [vmem:[#allocation0 + $0x8] ss:$16 sps:$4 sm:$0xff] %v344_v11  }
   0x7   :  { %142 = vst [vmem:[#allocation0 + $0x20] ss:$16 sps:$4 sm:$0xff] %v339_v8   ;;  %148 = vst [vmem:[#allocation0 + $0x28] ss:$16 sps:$4 sm:$0xff] %v340_v9  }
   0xb   :  { %v232_v12 = vld [vmem:[#allocation0 + $0x40] sm:$0xf]  ;;  %v239_v13 = vld [vmem:[#allocation0 + $0x48] sm:$0xf]  ;;  %v246_v14 = vld [vmem:[#allocation0 + $0x50] sm:$0xf] }
   0xc   :  { %v233_v19 = vpack.c.bf16 %v349_v18, %v232_v12  ;;  %v240_v20 = vpack.c.bf16 %v349_v18, %v239_v13  ;;  %v247_v21 = vpack.c.bf16 %v349_v18, %v246_v14  ;;  %v253_v33 = vld [vmem:[#allocation0 + $0x58] sm:$0xf]  ;;  %v260_v37 = vld [vmem:[#allocation0 + $0x60] sm:$0xf]  ;;  %v267_v38 = vld [vmem:[#allocation0 + $0x68] sm:$0xf] }
   0xd   :  { %v179_v15 = vld [vmem:[#allocation0] sm:$0xf]  ;;  %v184_v16 = vld [vmem:[#allocation0 + $0x8] sm:$0xf]  ;;  %v190_v17 = vld [vmem:[#allocation0 + $0x10] sm:$0xf]  ;;  %v254_v36 = vpack.c.bf16 %v349_v18, %v253_v33  ;;  %v261_v40 = vpack.c.bf16 %v349_v18, %v260_v37  ;;  %v268_v41 = vpack.c.bf16 %v349_v18, %v267_v38 }
   0xe   :  { %v180_v22 = vpack.c.bf16 %v349_v18, %v179_v15  ;;  %v185_v23 = vpack.c.bf16 %v349_v18, %v184_v16  ;;  %v191_v24 = vpack.c.bf16 %v349_v18, %v190_v17  ;;  %v197_v25 = vld [vmem:[#allocation0 + $0x18] sm:$0xf]  ;;  %v204_v26 = vld [vmem:[#allocation0 + $0x20] sm:$0xf]  ;;  %v211_v27 = vld [vmem:[#allocation0 + $0x28] sm:$0xf] }
   0xf   :  { %v198_v28 = vpack.c.bf16 %v349_v18, %v197_v25  ;;  %v205_v29 = vpack.c.bf16 %v349_v18, %v204_v26  ;;  %v212_v30 = vpack.c.bf16 %v349_v18, %v211_v27  ;;  %v218_v31 = vld [vmem:[#allocation0 + $0x30] sm:$0xf]  ;;  %v225_v32 = vld [vmem:[#allocation0 + $0x38] sm:$0xf]  ;;  %321 = vst [vmem:[%s421_s1 + $0x10] sm:$0x3] %v233_v19 }
  0x10   :  { %322 = vst [vmem:[%s421_s1 + $0x12] sm:$0x3] %v240_v20  ;;  %323 = vst [vmem:[%s421_s1 + $0x14] sm:$0x3] %v247_v21  ;;  %v219_v34 = vpack.c.bf16 %v349_v18, %v218_v31  ;;  %v226_v35 = vpack.c.bf16 %v349_v18, %v225_v32  ;;  %v274_v39 = vld [vmem:[#allocation0 + $0x70] sm:$0xf] }
  0x11   :  { %182 = vst [vmem:[%s421_s1] sm:$0x3] %v180_v22  ;;  %314 = vst [vmem:[%s421_s1 + $0x2] sm:$0x3] %v185_v23  ;;  %v275_v42 = vpack.c.bf16 %v349_v18, %v274_v39  ;;  %v281_v43 = vld [vmem:[#allocation0 + $0x78] sm:$0xf] }
  0x12   :  { %315 = vst [vmem:[%s421_s1 + $0x4] sm:$0x3] %v191_v24  ;;  %316 = vst [vmem:[%s421_s1 + $0x6] sm:$0x3] %v198_v28  ;;  %v282_v44 = vpack.c.bf16 %v349_v18, %v281_v43 }
  0x13   :  { %317 = vst [vmem:[%s421_s1 + $0x8] sm:$0x3] %v205_v29  ;;  %318 = vst [vmem:[%s421_s1 + $0xa] sm:$0x3] %v212_v30 }
  0x14   :  { %319 = vst [vmem:[%s421_s1 + $0xc] sm:$0x3] %v219_v34  ;;  %320 = vst [vmem:[%s421_s1 + $0xe] sm:$0x3] %v226_v35 }
  0x15   :  { %324 = vst [vmem:[%s421_s1 + $0x16] sm:$0x3] %v254_v36  ;;  %325 = vst [vmem:[%s421_s1 + $0x18] sm:$0x3] %v261_v40 }
  0x16   :  { %326 = vst [vmem:[%s421_s1 + $0x1a] sm:$0x3] %v268_v41  ;;  %327 = vst [vmem:[%s421_s1 + $0x1c] sm:$0x3] %v275_v42 }
  0x17   :  { %328 = vst [vmem:[%s421_s1 + $0x1e] sm:$0x3] %v282_v44 }

// kernel: pixel_decoder_forward.5
= control target key start
LH: loop header
LB: loop body
LE: loop exit
PB: predicated region body
PF: predicated region fallthrough
CT: control target
= control target key end

     0   :  { %8 = vsyncpa [#allocation5], 0  ;;  %s4282_s0 = inlined_call_operand.vmem [shape: bf16[4,32,6144], index: 0, kind: input, shape index: {}]   ;;  %s4283_s1 = inlined_call_operand.hbm [shape: bf16[4,6144,256], index: 1, kind: input, shape index: {}]   ;;  %s4284_s2 = inlined_call_operand.vmem [shape: f32[1,256], index: 2, kind: input, shape index: {}]   ;;  %s4285_s3 = inlined_call_operand.vmem [shape: f32[4,32,256], index: 3, kind: output, shape index: {}]  }
   0x1   :  { %10 = vsyncpa [#allocation5 + $0x1], 0  ;;  %s3714_s12 = smov 0   ;;  %s3716_s13 = smov 0  }
   0x2   :  { %s3718_s14 = smov 0   ;;  %s3720_s15 = smov 0  }
   0x3   :  { %s3722_s16 = smov 0   ;;  %s3724_s17 = smov 0  }
   0x4   :  { %s3726_s18 = smov 0   ;;  %s3728_s19 = smov 0  }
   0x5 LB: > { %s31_s20 = sadd.s32 1, %s3680_s17  ;;  %s42_s21 = sadd.s32 1, %s3684_s18  ;;  %s3688_s19 = sphi %s3728_s19, %s16_s19   ;;  %s3684_s18 = sphi %s3726_s18, %s4294_s18   ;;  %s3680_s17 = sphi %s3724_s17, %s4293_s17   ;;  %s3676_s16 = sphi %s3722_s16, %s4292_s16   ;;  %s3672_s15 = sphi %s3720_s15, %s4291_s15   ;;  %s3668_s14 = sphi %s3718_s14, %s4290_s14   ;;  %s3664_s13 = sphi %s3716_s13, %s4289_s13   ;;  %s3660_s12 = sphi %s3714_s12, %s4288_s12  }
   0x6   : > { %p32_p0 = scmp.ge.s32.totalorder %s31_s20, 3  ;;  %s2772_s22 = sadd.s32 4294967295, %s3688_s19  }
   0x7   : > { %p60_p1 = scmp.ne.s32.totalorder %s3668_s14, %s3664_s13  ;;  %p61_p2 = scmp.eq.s32.totalorder %s3688_s19, 0 }
   0x8   : > { %s4296_s20 = smov (%p32_p0, %s31_s20), 0  ;;  %s4298_s21 = smov (!%p32_p0, %s42_s21), %s3684_s18 }
   0x9   : > { %s49_s23 = ssub.s32 %s3680_s17, %s4296_s20  ;;  %p44_p3 = scmp.ge.s32.totalorder %s4298_s21, 4 }
   0xa   : > { %p96_p4 = scmp.ne.s32.totalorder %s3664_s13, %s3660_s12  ;;  %p3764_p5 = por %p61_p2, %p60_p1 }
   0xb   : > { %p97_p6 = scmp.eq.s32.totalorder %s2772_s22, 0  ;;  %s4300_s21 = smov (%p44_p3, %s4298_s21), 0 }
   0xc   : > { %s46_s26 = ssub.s32 %s3684_s18, %s4300_s21  ;;  %s53_s28 = sadd.s32 1, %s3668_s14 }
   0xd   : > { %p3770_p7 = por %p97_p6, %p96_p4  ;;  %s50_s27 = sor.u32 %s49_s23, %s46_s26 }
   0xe   : > { %p51_p8 = scmp.eq.s32.totalorder %s50_s27, 0  ;;  %p2776_p9 = scmp.ge.s32.totalorder %s3688_s19, 12 }
  0x10   : > { %s3778_s29 = scalar_select %p51_p8, %s3668_s14, %s53_s28  }
  0x11   : > { %180 = sbr.rel (%p2776_p9) target bundleno = 76 (0x4c), region = 20 }
  0x18   : > { %183 = sbr.rel (!%p3764_p5) target bundleno = 48 (0x30), region = 24  ;;  %s185_s30 = sand.u32 (%p3764_p5), 1, %s3668_s14  }
  0x19   : > { %s2778_s4 = sshll.u32 (%p3764_p5), %s3680_s17, 4  ;;  %s2777_s5 = sshll.u32 (%p3764_p5), %s185_s30, 8 }
  0x1a   : > { %s3139_s6 = smul.u32 (%p3764_p5), 192, %s3684_s18  ;;  %s3794_s12 = scalar_lea.vmem (%p3764_p5), [#allocation3], %s2777_s5 }
  0x1c   : > { %s193_s7 = sadd.s32 (%p3764_p5), %s3139_s6, %s2778_s4 }
  0x1d   : > { %s2779_s8 = sshll.u32 (%p3764_p5), %s193_s7, 2 }
  0x1e   : > { %s3789_s11 = scalar_lea.vmem (%p3764_p5), %s4282_s0, %s2779_s8 }
  0x1f   : > { %v208_v0 = vld [vmem:[%s3789_s11] sm:$0xff]  ;;  %v210_v1 = vld [vmem:[%s3789_s11 + $0x8] sm:$0xff]  ;;  %v212_v2 = vld [vmem:[%s3789_s11 + $0x10] sm:$0xff] }
  0x20   : > { %209 = vst [vmem:[%s3794_s12] sm:$0xff] %v208_v0  ;;  %211 = vst [vmem:[%s3794_s12 + $0x8] sm:$0xff] %v210_v1  ;;  %v214_v3 = vld [vmem:[%s3789_s11 + $0x18] sm:$0xff]  ;;  %v216_v4 = vld [vmem:[%s3789_s11 + $0x20] sm:$0xff] }
  0x21   : > { %213 = vst [vmem:[%s3794_s12 + $0x10] sm:$0xff] %v212_v2  ;;  %v218_v5 = vld [vmem:[%s3789_s11 + $0x28] sm:$0xff]  ;;  %215 = vst [vmem:[%s3794_s12 + $0x18] sm:$0xff] %v214_v3  ;;  %v220_v6 = vld [vmem:[%s3789_s11 + $0x30] sm:$0xff] }
  0x22   : > { %217 = vst [vmem:[%s3794_s12 + $0x20] sm:$0xff] %v216_v4  ;;  %219 = vst [vmem:[%s3794_s12 + $0x28] sm:$0xff] %v218_v5  ;;  %v222_v7 = vld [vmem:[%s3789_s11 + $0x38] sm:$0xff]  ;;  %v224_v8 = vld [vmem:[%s3789_s11 + $0xc0] sm:$0xff] }
  0x23   : > { %221 = vst [vmem:[%s3794_s12 + $0x30] sm:$0xff] %v220_v6  ;;  %223 = vst [vmem:[%s3794_s12 + $0x38] sm:$0xff] %v222_v7  ;;  %v226_v9 = vld [vmem:[%s3789_s11 + $0xc8] sm:$0xff]  ;;  %v228_v10 = vld [vmem:[%s3789_s11 + $0xd0] sm:$0xff] }
  0x24   : > { %225 = vst [vmem:[%s3794_s12 + $0x40] sm:$0xff] %v224_v8  ;;  %v230_v11 = vld [vmem:[%s3789_s11 + $0xd8] sm:$0xff]  ;;  %227 = vst [vmem:[%s3794_s12 + $0x48] sm:$0xff] %v226_v9  ;;  %v232_v12 = vld [vmem:[%s3789_s11 + $0xe0] sm:$0xff] }
  0x25   : > { %229 = vst [vmem:[%s3794_s12 + $0x50] sm:$0xff] %v228_v10  ;;  %231 = vst [vmem:[%s3794_s12 + $0x58] sm:$0xff] %v230_v11  ;;  %v234_v13 = vld [vmem:[%s3789_s11 + $0xe8] sm:$0xff]  ;;  %v236_v14 = vld [vmem:[%s3789_s11 + $0xf0] sm:$0xff] }
  0x26   : > { %233 = vst [vmem:[%s3794_s12 + $0x60] sm:$0xff] %v232_v12  ;;  %235 = vst [vmem:[%s3794_s12 + $0x68] sm:$0xff] %v234_v13  ;;  %v238_v15 = vld [vmem:[%s3789_s11 + $0xf8] sm:$0xff]  ;;  %v240_v16 = vld [vmem:[%s3789_s11 + $0x180] sm:$0xff] }
  0x27   : > { %237 = vst [vmem:[%s3794_s12 + $0x70] sm:$0xff] %v236_v14  ;;  %v242_v17 = vld [vmem:[%s3789_s11 + $0x188] sm:$0xff]  ;;  %239 = vst [vmem:[%s3794_s12 + $0x78] sm:$0xff] %v238_v15  ;;  %v244_v18 = vld [vmem:[%s3789_s11 + $0x190] sm:$0xff] }
  0x28   : > { %241 = vst [vmem:[%s3794_s12 + $0x80] sm:$0xff] %v240_v16  ;;  %243 = vst [vmem:[%s3794_s12 + $0x88] sm:$0xff] %v242_v17  ;;  %v246_v19 = vld [vmem:[%s3789_s11 + $0x198] sm:$0xff]  ;;  %v248_v20 = vld [vmem:[%s3789_s11 + $0x1a0] sm:$0xff] }
  0x29   : > { %245 = vst [vmem:[%s3794_s12 + $0x90] sm:$0xff] %v244_v18  ;;  %247 = vst [vmem:[%s3794_s12 + $0x98] sm:$0xff] %v246_v19  ;;  %v250_v21 = vld [vmem:[%s3789_s11 + $0x1a8] sm:$0xff]  ;;  %v252_v22 = vld [vmem:[%s3789_s11 + $0x1b0] sm:$0xff] }
  0x2a   : > { %249 = vst [vmem:[%s3794_s12 + $0xa0] sm:$0xff] %v248_v20  ;;  %v254_v23 = vld [vmem:[%s3789_s11 + $0x1b8] sm:$0xff]  ;;  %251 = vst [vmem:[%s3794_s12 + $0xa8] sm:$0xff] %v250_v21  ;;  %v256_v24 = vld [vmem:[%s3789_s11 + $0x240] sm:$0xff] }
  0x2b   : > { %253 = vst [vmem:[%s3794_s12 + $0xb0] sm:$0xff] %v252_v22  ;;  %255 = vst [vmem:[%s3794_s12 + $0xb8] sm:$0xff] %v254_v23  ;;  %v258_v25 = vld [vmem:[%s3789_s11 + $0x248] sm:$0xff]  ;;  %v260_v26 = vld [vmem:[%s3789_s11 + $0x250] sm:$0xff] }
  0x2c   : > { %257 = vst [vmem:[%s3794_s12 + $0xc0] sm:$0xff] %v256_v24  ;;  %259 = vst [vmem:[%s3794_s12 + $0xc8] sm:$0xff] %v258_v25  ;;  %v262_v27 = vld [vmem:[%s3789_s11 + $0x258] sm:$0xff]  ;;  %v264_v28 = vld [vmem:[%s3789_s11 + $0x260] sm:$0xff] }
  0x2d   : > { %261 = vst [vmem:[%s3794_s12 + $0xd0] sm:$0xff] %v260_v26  ;;  %v266_v29 = vld [vmem:[%s3789_s11 + $0x268] sm:$0xff]  ;;  %263 = vst [vmem:[%s3794_s12 + $0xd8] sm:$0xff] %v262_v27  ;;  %v268_v30 = vld [vmem:[%s3789_s11 + $0x270] sm:$0xff] }
  0x2e   : > { %265 = vst [vmem:[%s3794_s12 + $0xe0] sm:$0xff] %v264_v28  ;;  %267 = vst [vmem:[%s3794_s12 + $0xe8] sm:$0xff] %v266_v29  ;;  %v270_v31 = vld [vmem:[%s3789_s11 + $0x278] sm:$0xff] }
  0x2f   : > { %269 = vst [vmem:[%s3794_s12 + $0xf0] sm:$0xff] %v268_v30  ;;  %271 = vst [vmem:[%s3794_s12 + $0xf8] sm:$0xff] %v270_v31 }
  0x30 PF: > { %s278_s22 = sand.u32 1, %s3668_s14   ;;  %s3081_s23 = sshll.u32 %s3680_s17, 9 }
  0x31   : > { %s2780_s26 = sshll.u32 %s278_s22, 11  ;;  %s3140_s27 = smul.u32 1536, %s3684_s18 }
  0x32   : > { %s282_s28 = scalar_lea.vmem [#allocation4], %s2780_s26  ;;  %s3867_s9 = scalar_lea.sflag [#allocation5], %s278_s22 }
  0x33   : > { %s294_s30 = sshll.u32 %s282_s28, 4  ;;  %s291_s4 = sadd.s32 %s3140_s27, %s3081_s23  ;;  %s3860_s30 = int_to_ptr.vmem [resolvable:$true] %s294_s30 }
  0x34   : > { %s2783_s5 = sshll.u32 %s291_s4, 6  ;;  %s3598_s23 = scalar_lea.hbm %s4283_s1, 393216 }
  0x35   : > { %s3865_s8 = scalar_lea.hbm %s4283_s1, %s2783_s5 }
  0x36   : > { %s3594_s10 = scalar_lea.hbm %s3865_s8, 32768  ;;  %p3599_p13 = scmp.lt.u32.totalorder %s3865_s8, %s4283_s1 }
  0x37   : > { %p3595_p10 = scmp.ne.s32.totalorder %s3865_s8, %s3594_s10  ;;  %p3600_p0 = scmp.lt.u32.totalorder %s3598_s23, %s3594_s10 }
  0x38   : > { %p3602_p2 = scmp.lt.u32.totalorder %s3594_s10, %s3865_s8 }
  0x39   : > { %p3596_p11 = pnand %p3595_p10, %p3764_p5  ;;  %p3601_p1 = por %p3600_p0, %p3599_p13 }
  0x3b   : > { %p3597_p12 = pneg %p3596_p11  ;;  %p3603_p3 = por %p3602_p2, %p3601_p1 }
  0x3d   : > { %p3604_p4 = pnand %p3603_p3, %p3597_p12 }
  0x3f   : > { %3607 = shalt.err (!%p3604_p4)
}
  0x40   : > { %s3608_s22 = scalar_lea.vmem %s3860_s30, 32768  ;;  %s3690_s28 = smov [#allocation4]  }
  0x41   : > { %p3609_p6 = scmp.ne.s32.totalorder %s3860_s30, %s3608_s22  ;;  %s3612_s4 = sshll.u32 %s3690_s28, 4  ;;  %s3613_s4 = int_to_ptr.vmem [resolvable:$false] %s3612_s4 }
  0x42   : > { %s3614_s5 = scalar_lea.vmem %s3613_s4, 65536  ;;  %p3615_p10 = scmp.lt.s32.totalorder %s3860_s30, %s3613_s4 }
  0x43   : > { %p3610_p8 = pnand %p3609_p6, %p3764_p5  ;;  %p3616_p11 = scmp.lt.s32.totalorder %s3614_s5, %s3608_s22 }
  0x45   : > { %p3611_p9 = pneg %p3610_p8  ;;  %p3617_p13 = por %p3616_p11, %p3615_p10 }
  0x47   : > { %p3618_p0 = pnand %p3617_p13, %p3611_p9 }
  0x49   : > { %3621 = shalt.err (!%p3618_p0)
}
  0x4a   : > { %s3691_s6 = smov 128   ;;  %s3692_s7 = smov 8  }
  0x4b   : > { %3141 = dma.hbm_to_vmem [thread:$0]  (%p3764_p5), %s3865_s8, 32768, %s3860_s30, %s3867_s9, %s3691_s6, %s3691_s6, %s3692_s7  }
  0x4c PF: > { %p2784_p12 = scmp.ge.s32.totalorder %s3688_s19, 1  ;;  %p302_p1 = scmp.lt.s32.totalorder %s3688_s19, 13 }
  0x4e   : > { %p303_p2 = pnand %p2784_p12, %p302_p1 }
  0x4f   : > { %s309_s10 = sand.u32 (!%p303_p2), 1, %s3664_s13  }
  0x50   : > { %306 = sbr.rel (%p303_p2) target bundleno = 593 (0x251), region = 51  ;;  %s2785_s11 = sshll.u32 (!%p303_p2), %s309_s10, 8 }
  0x51   : > { %s2786_s12 = sshll.u32 (!%p303_p2), %s309_s10, 11  ;;  %s3894_s23 = scalar_lea.vmem (!%p303_p2), [#allocation3], %s2785_s11 }
  0x52   : > { %s316_s26 = scalar_lea.sflag (!%p303_p2), [#allocation5], %s309_s10  ;;  %s3896_s27 = scalar_lea.vmem (!%p303_p2), [#allocation4], %s2786_s12 }
  0x57   : > { %3655 = dma.done.wait (%p3770_p7), %s316_s26, 32768  }
  0x58   : > { %3657 = vsyncadd (%p3770_p7), %s316_s26, 4294934528  ;;  %p370_p5 = scmp.lt.s32.totalorder %s3676_s16, 3  ;;  %p2789_p3 = scmp.ne.s32.totalorder %s3672_s15, 0 }
  0x59   : > { %v3693_v32 = vmov (!%p2789_p3), 0.0  }
  0x5a   : > { %s4302_s16 = smov (!%p370_p5, %s3676_s16), 3  ;;  %387 = sbr.rel (%p2789_p3) target bundleno = 97 (0x61), region = 63 }
  0x5b   : > { %s3082_s24 = sshll.u32 %s4302_s16, 6  ;;  %388 = vst [vmem:[#allocation2] sm:$0xff] (!%p2789_p3), %v3693_v32  ;;  %389 = vst [vmem:[#allocation2 + $0x8] sm:$0xff] (!%p2789_p3), %v3693_v32 }
  0x5c   : > { %s3907_s9 = scalar_lea.vmem %s4285_s3, %s3082_s24  ;;  %390 = vst [vmem:[#allocation2 + $0x10] sm:$0xff] (!%p2789_p3), %v3693_v32  ;;  %391 = vst [vmem:[#allocation2 + $0x18] sm:$0xff] (!%p2789_p3), %v3693_v32 }
  0x5d   : > { %392 = vst [vmem:[#allocation2 + $0x20] sm:$0xff] (!%p2789_p3), %v3693_v32  ;;  %393 = vst [vmem:[#allocation2 + $0x28] sm:$0xff] (!%p2789_p3), %v3693_v32 }
  0x5e   : > { %394 = vst [vmem:[#allocation2 + $0x30] sm:$0xff] (!%p2789_p3), %v3693_v32  ;;  %395 = vst [vmem:[#allocation2 + $0x38] sm:$0xff] (!%p2789_p3), %v3693_v32 }
  0x61 PF: > { %v3210_v33 = vld [vmem:[%s3896_s27 + $0x4] ss:$8 sps:$4 sm:$0xff]   ;;  %v3214_v35 = vld [vmem:[%s3896_s27] ss:$8 sps:$4 sm:$0xff]   ;;  %v3216_v37 = vld [vmem:[%s3896_s27 + $0x14] ss:$8 sps:$4 sm:$0xff]  }
  0x62   : > { %v3212_v34 = vld [vmem:[%s3896_s27 + $0x404] ss:$8 sps:$4 sm:$0xff]   ;;  %2132 = vmatprep.subr.bf16.mxu1 %v3210_v33  ;;  %v3215_v36 = vld [vmem:[%s3896_s27 + $0x400] ss:$8 sps:$4 sm:$0xff]   ;;  %v3218_v38 = vld [vmem:[%s3896_s27 + $0x414] ss:$8 sps:$4 sm:$0xff]  }
  0x63   : > { %2344 = vmatprep.subr.bf16.mxu0 %v3212_v34  ;;  %2133 = vmatpush1.bf16.msra.mxu1 %v3214_v35  ;;  %v3220_v39 = vld [vmem:[%s3896_s27 + $0x10] ss:$8 sps:$4 sm:$0xff]   ;;  %v3222_v41 = vld [vmem:[%s3896_s27 + $0x24] ss:$8 sps:$4 sm:$0xff]   ;;  %v3226_v43 = vld [vmem:[%s3896_s27 + $0x20] ss:$8 sps:$4 sm:$0xff]  }
  0x64   : > { %2345 = vmatpush1.bf16.msra.mxu0 %v3215_v36  ;;  %2134 = vmatprep.subr.bf16.mxu1 %v3216_v37  ;;  %v3221_v40 = vld [vmem:[%s3896_s27 + $0x410] ss:$8 sps:$4 sm:$0xff]   ;;  %v3224_v42 = vld [vmem:[%s3896_s27 + $0x424] ss:$8 sps:$4 sm:$0xff]   ;;  %v3227_v44 = vld [vmem:[%s3896_s27 + $0x420] ss:$8 sps:$4 sm:$0xff]  }
  0x65   : > { %2346 = vmatprep.subr.bf16.mxu0 %v3218_v38  ;;  %v3228_v45 = vld [vmem:[%s3896_s27 + $0x34] ss:$8 sps:$4 sm:$0xff]   ;;  %v3232_v47 = vld [vmem:[%s3896_s27 + $0x30] ss:$8 sps:$4 sm:$0xff]   ;;  %v3234_v49 = vld [vmem:[%s3896_s27 + $0x44] ss:$8 sps:$4 sm:$0xff]  }
  0x66   : > { %v3230_v46 = vld [vmem:[%s3896_s27 + $0x434] ss:$8 sps:$4 sm:$0xff]   ;;  %v3233_v48 = vld [vmem:[%s3896_s27 + $0x430] ss:$8 sps:$4 sm:$0xff]   ;;  %v3236_v50 = vld [vmem:[%s3896_s27 + $0x444] ss:$8 sps:$4 sm:$0xff]  }
  0x67   : > { %2135 = vmatpush1.bf16.msra.mxu1 %v3220_v39  ;;  %v3238_v51 = vld [vmem:[%s3896_s27 + $0x40] ss:$8 sps:$4 sm:$0xff]   ;;  %v3240_v53 = vld [vmem:[%s3896_s27 + $0x54] ss:$8 sps:$4 sm:$0xff]   ;;  %v3244_v55 = vld [vmem:[%s3896_s27 + $0x50] ss:$8 sps:$4 sm:$0xff]  }
  0x68   : > { %2347 = vmatpush1.bf16.msra.mxu0 %v3221_v40  ;;  %2136 = vmatprep.subr.bf16.mxu1 %v3222_v41  ;;  %v3239_v52 = vld [vmem:[%s3896_s27 + $0x440] ss:$8 sps:$4 sm:$0xff]   ;;  %v3242_v54 = vld [vmem:[%s3896_s27 + $0x454] ss:$8 sps:$4 sm:$0xff]   ;;  %v3245_v56 = vld [vmem:[%s3896_s27 + $0x450] ss:$8 sps:$4 sm:$0xff]  }
  0x69   : > { %2348 = vmatprep.subr.bf16.mxu0 %v3224_v42  ;;  %v3246_v57 = vld [vmem:[%s3896_s27 + $0x64] ss:$8 sps:$4 sm:$0xff]   ;;  %v3250_v59 = vld [vmem:[%s3896_s27 + $0x60] ss:$8 sps:$4 sm:$0xff]   ;;  %v3252_v61 = vld [vmem:[%s3896_s27 + $0x74] ss:$8 sps:$4 sm:$0xff]  }
  0x6a   : > { %v3248_v58 = vld [vmem:[%s3896_s27 + $0x464] ss:$8 sps:$4 sm:$0xff]   ;;  %v3251_v60 = vld [vmem:[%s3896_s27 + $0x460] ss:$8 sps:$4 sm:$0xff]   ;;  %v3254_v62 = vld [vmem:[%s3896_s27 + $0x474] ss:$8 sps:$4 sm:$0xff]  }
  0x6b   : > { %2137 = vmatpush1.bf16.msra.mxu1 %v3226_v43  ;;  %v3256_v63 = vld [vmem:[%s3896_s27 + $0x70] ss:$8 sps:$4 sm:$0xff]   ;;  %v3258_v1 = vld [vmem:[%s3896_s27 + $0x84] ss:$8 sps:$4 sm:$0xff]   ;;  %v3262_v3 = vld [vmem:[%s3896_s27 + $0x80] ss:$8 sps:$4 sm:$0xff]  }
  0x6c   : > { %2349 = vmatpush1.bf16.msra.mxu0 %v3227_v44  ;;  %2138 = vmatprep.subr.bf16.mxu1 %v3228_v45  ;;  %v3257_v0 = vld [vmem:[%s3896_s27 + $0x470] ss:$8 sps:$4 sm:$0xff]   ;;  %v3260_v2 = vld [vmem:[%s3896_s27 + $0x484] ss:$8 sps:$4 sm:$0xff]   ;;  %v3263_v4 = vld [vmem:[%s3896_s27 + $0x480] ss:$8 sps:$4 sm:$0xff]  }
  0x6d   : > { %2350 = vmatprep.subr.bf16.mxu0 %v3230_v46  ;;  %v3264_v5 = vld [vmem:[%s3896_s27 + $0x94] ss:$8 sps:$4 sm:$0xff]   ;;  %v3268_v7 = vld [vmem:[%s3896_s27 + $0x90] ss:$8 sps:$4 sm:$0xff]   ;;  %v3270_v9 = vld [vmem:[%s3896_s27 + $0xa4] ss:$8 sps:$4 sm:$0xff]  }
  0x6e   : > { %v3266_v6 = vld [vmem:[%s3896_s27 + $0x494] ss:$8 sps:$4 sm:$0xff]   ;;  %v3269_v8 = vld [vmem:[%s3896_s27 + $0x490] ss:$8 sps:$4 sm:$0xff]   ;;  %v3272_v10 = vld [vmem:[%s3896_s27 + $0x4a4] ss:$8 sps:$4 sm:$0xff]  }
  0x6f   : > { %2139 = vmatpush1.bf16.msra.mxu1 %v3232_v47  ;;  %v3274_v11 = vld [vmem:[%s3896_s27 + $0xa0] ss:$8 sps:$4 sm:$0xff]   ;;  %v3276_v13 = vld [vmem:[%s3896_s27 + $0xb4] ss:$8 sps:$4 sm:$0xff]   ;;  %v3280_v15 = vld [vmem:[%s3896_s27 + $0xb0] ss:$8 sps:$4 sm:$0xff]  }
  0x70   : > { %2351 = vmatpush1.bf16.msra.mxu0 %v3233_v48  ;;  %2140 = vmatprep.subr.bf16.mxu1 %v3234_v49  ;;  %v3275_v12 = vld [vmem:[%s3896_s27 + $0x4a0] ss:$8 sps:$4 sm:$0xff]   ;;  %v3278_v14 = vld [vmem:[%s3896_s27 + $0x4b4] ss:$8 sps:$4 sm:$0xff]   ;;  %v3281_v16 = vld [vmem:[%s3896_s27 + $0x4b0] ss:$8 sps:$4 sm:$0xff]  }
  0x71   : > { %2352 = vmatprep.subr.bf16.mxu0 %v3236_v50  ;;  %v404_v17 = vld [vmem:[%s3894_s23] sm:$0xff]  ;;  %v3288_v27 = vld [vmem:[%s3896_s27 + $0xd4] ss:$8 sps:$4 sm:$0xff]   ;;  %v3292_v29 = vld [vmem:[%s3896_s27 + $0xd0] ss:$8 sps:$4 sm:$0xff]   ;;  %p3078_p7 = scmp.ne.s32.totalorder %s3672_s15, 2 }
  0x72   : > { %v412_v18 = vld [vmem:[%s3894_s23 + $0x40] sm:$0xff]  ;;  %v3290_v28 = vld [vmem:[%s3896_s27 + $0x4d4] ss:$8 sps:$4 sm:$0xff]   ;;  %v3293_v30 = vld [vmem:[%s3896_s27 + $0x4d0] ss:$8 sps:$4 sm:$0xff]  }
  0x73   : > { %2141 = vmatpush1.bf16.msra.mxu1 %v3238_v51  ;;  %v3282_v19 = vld [vmem:[%s3896_s27 + $0xc4] ss:$8 sps:$4 sm:$0xff]   ;;  %v2791_v21 = vcombine.high %v404_v17, %v412_v18  ;;  %v3286_v25 = vld [vmem:[%s3896_s27 + $0xc0] ss:$8 sps:$4 sm:$0xff]   ;;  %v3300_v35 = vld [vmem:[%s3896_s27 + $0xf4] ss:$8 sps:$4 sm:$0xff]   ;;  %v2790_v41 = vcombine.low %v404_v17, %v412_v18 }
  0x74   : > { %2353 = vmatpush1.bf16.msra.mxu0 %v3239_v52  ;;  %2142 = vmatprep.subr.bf16.mxu1 %v3240_v53  ;;  %v3284_v20 = vld [vmem:[%s3896_s27 + $0x4c4] ss:$8 sps:$4 sm:$0xff]   ;;  %v3287_v26 = vld [vmem:[%s3896_s27 + $0x4c0] ss:$8 sps:$4 sm:$0xff]   ;;  %v3302_v36 = vld [vmem:[%s3896_s27 + $0x4f4] ss:$8 sps:$4 sm:$0xff]  }
  0x75   : > { %2354 = vmatprep.subr.bf16.mxu0 %v3242_v54  ;;  %v408_v22 = vld [vmem:[%s3894_s23 + $0x20] sm:$0xff]  ;;  %2164 = vmatprep.mubr.bf16.mxu1 %v2791_v21  ;;  %v3304_v37 = vld [vmem:[%s3896_s27 + $0xf0] ss:$8 sps:$4 sm:$0xff]   ;;  %v3314_v45 = vld [vmem:[%s3896_s27 + $0x114] ss:$8 sps:$4 sm:$0xff]  }
  0x76   : > { %v416_v23 = vld [vmem:[%s3894_s23 + $0x60] sm:$0xff]  ;;  %v3305_v38 = vld [vmem:[%s3896_s27 + $0x4f0] ss:$8 sps:$4 sm:$0xff]   ;;  %v3317_v46 = vld [vmem:[%s3896_s27 + $0x514] ss:$8 sps:$4 sm:$0xff]  }
  0x77   : > { %2143 = vmatpush1.bf16.msra.mxu1 %v3244_v55  ;;  %v2799_v24 = vcombine.high %v408_v22, %v416_v23  ;;  %v3294_v31 = vld [vmem:[%s3896_s27 + $0xe4] ss:$8 sps:$4 sm:$0xff]   ;;  %v3298_v33 = vld [vmem:[%s3896_s27 + $0xe0] ss:$8 sps:$4 sm:$0xff]   ;;  %v2798_v43 = vcombine.low %v408_v22, %v416_v23  ;;  %v3312_v47 = vld [vmem:[%s3896_s27 + $0x110] ss:$8 sps:$4 sm:$0xff]  }
  0x78   : > { %2355 = vmatpush1.bf16.msra.mxu0 %v3245_v56  ;;  %2144 = vmatprep.subr.bf16.mxu1 %v3246_v57  ;;  %v3296_v32 = vld [vmem:[%s3896_s27 + $0x4e4] ss:$8 sps:$4 sm:$0xff]   ;;  %v3299_v34 = vld [vmem:[%s3896_s27 + $0x4e0] ss:$8 sps:$4 sm:$0xff]   ;;  %v3315_v48 = vld [vmem:[%s3896_s27 + $0x510] ss:$8 sps:$4 sm:$0xff]  }
  0x79   : > { %2356 = vmatprep.subr.bf16.mxu0 %v3248_v58  ;;  %2376 = vmatprep.mubr.bf16.mxu0 %v2799_v24  ;;  %v3308_v39 = vld [vmem:[%s3896_s27 + $0x104] ss:$8 sps:$4 sm:$0xff]   ;;  %v3306_v42 = vld [vmem:[%s3896_s27 + $0x100] ss:$8 sps:$4 sm:$0xff]   ;;  %v3326_v53 = vld [vmem:[%s3896_s27 + $0x134] ss:$8 sps:$4 sm:$0xff]  }
  0x7a   : > { %v3311_v40 = vld [vmem:[%s3896_s27 + $0x504] ss:$8 sps:$4 sm:$0xff]   ;;  %v3309_v44 = vld [vmem:[%s3896_s27 + $0x500] ss:$8 sps:$4 sm:$0xff]   ;;  %v3329_v54 = vld [vmem:[%s3896_s27 + $0x534] ss:$8 sps:$4 sm:$0xff]  }
  0x7b   : > { %2145 = vmatpush1.bf16.msra.mxu1 %v3250_v59  ;;  %v3320_v49 = vld [vmem:[%s3896_s27 + $0x124] ss:$8 sps:$4 sm:$0xff]   ;;  %v3318_v51 = vld [vmem:[%s3896_s27 + $0x120] ss:$8 sps:$4 sm:$0xff]   ;;  %v3324_v55 = vld [vmem:[%s3896_s27 + $0x130] ss:$8 sps:$4 sm:$0xff]  }
  0x7c   : > { %2357 = vmatpush1.bf16.msra.mxu0 %v3251_v60  ;;  %2146 = vmatprep.subr.bf16.mxu1 %v3252_v61  ;;  %v3323_v50 = vld [vmem:[%s3896_s27 + $0x524] ss:$8 sps:$4 sm:$0xff]   ;;  %v3321_v52 = vld [vmem:[%s3896_s27 + $0x520] ss:$8 sps:$4 sm:$0xff]   ;;  %v3327_v56 = vld [vmem:[%s3896_s27 + $0x530] ss:$8 sps:$4 sm:$0xff]  }
  0x7d   : > { %2358 = vmatprep.subr.bf16.mxu0 %v3254_v62  ;;  %v3332_v57 = vld [vmem:[%s3896_s27 + $0x144] ss:$8 sps:$4 sm:$0xff]   ;;  %v3330_v59 = vld [vmem:[%s3896_s27 + $0x140] ss:$8 sps:$4 sm:$0xff]   ;;  %v3338_v61 = vld [vmem:[%s3896_s27 + $0x154] ss:$8 sps:$4 sm:$0xff]  }
  0x7e   : > { %v3335_v58 = vld [vmem:[%s3896_s27 + $0x544] ss:$8 sps:$4 sm:$0xff]   ;;  %v3333_v60 = vld [vmem:[%s3896_s27 + $0x540] ss:$8 sps:$4 sm:$0xff]   ;;  %v3341_v62 = vld [vmem:[%s3896_s27 + $0x554] ss:$8 sps:$4 sm:$0xff]  }
  0x7f   : > { %2147 = vmatpush1.bf16.msra.mxu1 %v3256_v63  ;;  %v420_v63 = vld [vmem:[%s3894_s23 + $0x80] sm:$0xff]  ;;  %v4021_v18 = vld [vmem:[%s3894_s23 + $0x28] sm:$0xff]  ;;  %v3351_v21 = vld [vmem:[%s3896_s27 + $0x570] ss:$8 sps:$4 sm:$0xff]  }
  0x80   : > { %2359 = vmatpush1.bf16.msra.mxu0 %v3257_v0  ;;  %2148 = vmatprep.subr.bf16.mxu1 %v3258_v1  ;;  %v428_v0 = vld [vmem:[%s3894_s23 + $0xc0] sm:$0xff]  ;;  %v3336_v1 = vld [vmem:[%s3896_s27 + $0x150] ss:$8 sps:$4 sm:$0xff]  }
  0x81   : > { %2360 = vmatprep.subr.bf16.mxu0 %v3260_v2  ;;  %v2807_v2 = vcombine.high %v420_v63, %v428_v0  ;;  %v3356_v23 = vld [vmem:[%s3896_s27 + $0x184] ss:$8 sps:$4 sm:$0xff]  }
  0x82   : > { %v3359_v24 = vld [vmem:[%s3896_s27 + $0x584] ss:$8 sps:$4 sm:$0xff]  }
  0x83   : > { %2149 = vmatpush1.bf16.msra.mxu1 %v3262_v3  ;;  %v3339_v3 = vld [vmem:[%s3896_s27 + $0x550] ss:$8 sps:$4 sm:$0xff]  }
  0x84   : > { %2361 = vmatpush1.bf16.msra.mxu0 %v3263_v4  ;;  %2150 = vmatprep.subr.bf16.mxu1 %v3264_v5  ;;  %v424_v4 = vld [vmem:[%s3894_s23 + $0xa0] sm:$0xff] }
  0x85   : > { %2362 = vmatprep.subr.bf16.mxu0 %v3266_v6  ;;  %v432_v5 = vld [vmem:[%s3894_s23 + $0xe0] sm:$0xff]  ;;  %v2806_v6 = vcombine.low %v420_v63, %v428_v0  ;;  %v3410_v63 = vld [vmem:[%s3896_s27 + $0x214] ss:$8 sps:$4 sm:$0xff]  }
  0x86   : > { %v3413_v0 = vld [vmem:[%s3896_s27 + $0x614] ss:$8 sps:$4 sm:$0xff]  }
  0x87   : > { %2151 = vmatpush1.bf16.msra.mxu1 %v3268_v7  ;;  %v3344_v7 = vld [vmem:[%s3896_s27 + $0x164] ss:$8 sps:$4 sm:$0xff]  }
  0x88   : > { %2363 = vmatpush1.bf16.msra.mxu0 %v3269_v8  ;;  %2152 = vmatprep.subr.bf16.mxu1 %v3270_v9  ;;  %v2815_v8 = vcombine.high %v424_v4, %v432_v5  ;;  %v2814_v9 = vcombine.low %v424_v4, %v432_v5  ;;  %v3408_v5 = vld [vmem:[%s3896_s27 + $0x210] ss:$8 sps:$4 sm:$0xff]  }
  0x89   : > { %2364 = vmatprep.subr.bf16.mxu0 %v3272_v10  ;;  %v3347_v10 = vld [vmem:[%s3896_s27 + $0x564] ss:$8 sps:$4 sm:$0xff]  }
  0x8b   : > { %2153 = vmatpush1.bf16.msra.mxu1 %v3274_v11  ;;  %v3342_v11 = vld [vmem:[%s3896_s27 + $0x160] ss:$8 sps:$4 sm:$0xff]  }
  0x8c   : > { %2365 = vmatpush1.bf16.msra.mxu0 %v3275_v12  ;;  %2154 = vmatprep.subr.bf16.mxu1 %v3276_v13  ;;  %v3345_v12 = vld [vmem:[%s3896_s27 + $0x560] ss:$8 sps:$4 sm:$0xff]  }
  0x8d   : > { %2366 = vmatprep.subr.bf16.mxu0 %v3278_v14  ;;  %v4011_v13 = vld [vmem:[%s3894_s23 + $0x8] sm:$0xff] }
  0x8e   : > { %v4014_v14 = vld [vmem:[%s3894_s23 + $0x48] sm:$0xff] }
  0x8f   : > { %2155 = vmatpush1.bf16.msra.mxu1 %v3280_v15  ;;  %v3350_v15 = vld [vmem:[%s3896_s27 + $0x174] ss:$8 sps:$4 sm:$0xff]   ;;  %v2793_v17 = vcombine.high %v4011_v13, %v4014_v14 }
  0x90   : > { %2367 = vmatpush1.bf16.msra.mxu0 %v3281_v16  ;;  %2156 = vmatprep.subr.bf16.mxu1 %v3282_v19  ;;  %v3353_v16 = vld [vmem:[%s3896_s27 + $0x574] ss:$8 sps:$4 sm:$0xff]   ;;  %v4024_v19 = vld [vmem:[%s3894_s23 + $0x68] sm:$0xff] }
  0x91   : > { %2368 = vmatprep.subr.bf16.mxu0 %v3284_v20  ;;  %v3348_v20 = vld [vmem:[%s3896_s27 + $0x170] ss:$8 sps:$4 sm:$0xff]   ;;  %v2801_v22 = vcombine.high %v4021_v18, %v4024_v19 }
  0x93   : > { %2157 = vmatpush1.bf16.msra.mxu1 %v3286_v25  ;;  %v3354_v25 = vld [vmem:[%s3896_s27 + $0x180] ss:$8 sps:$4 sm:$0xff]  }
  0x94   : > { %2369 = vmatpush1.bf16.msra.mxu0 %v3287_v26  ;;  %2158 = vmatprep.subr.bf16.mxu1 %v3288_v27  ;;  %v3357_v26 = vld [vmem:[%s3896_s27 + $0x580] ss:$8 sps:$4 sm:$0xff]   ;;  %v3362_v27 = vld [vmem:[%s3896_s27 + $0x194] ss:$8 sps:$4 sm:$0xff]  }
  0x95   : > { %2370 = vmatprep.subr.bf16.mxu0 %v3290_v28  ;;  %v3365_v28 = vld [vmem:[%s3896_s27 + $0x594] ss:$8 sps:$4 sm:$0xff]  }
  0x97   : > { %2159 = vmatpush1.bf16.msra.mxu1 %v3292_v29  ;;  %v3360_v29 = vld [vmem:[%s3896_s27 + $0x190] ss:$8 sps:$4 sm:$0xff]  }
  0x98   : > { %2371 = vmatpush1.bf16.msra.mxu0 %v3293_v30  ;;  %2160 = vmatprep.subr.bf16.mxu1 %v3294_v31  ;;  %v3363_v30 = vld [vmem:[%s3896_s27 + $0x590] ss:$8 sps:$4 sm:$0xff]   ;;  %v3368_v31 = vld [vmem:[%s3896_s27 + $0x1a4] ss:$8 sps:$4 sm:$0xff]  }
  0x99   : > { %2372 = vmatprep.subr.bf16.mxu0 %v3296_v32  ;;  %v3371_v32 = vld [vmem:[%s3896_s27 + $0x5a4] ss:$8 sps:$4 sm:$0xff]  }
  0x9b   : > { %2161 = vmatpush1.bf16.msra.mxu1 %v3298_v33  ;;  %v3366_v33 = vld [vmem:[%s3896_s27 + $0x1a0] ss:$8 sps:$4 sm:$0xff]  }
  0x9c   : > { %2373 = vmatpush1.bf16.msra.mxu0 %v3299_v34  ;;  %2162 = vmatprep.subr.bf16.mxu1 %v3300_v35  ;;  %v3369_v34 = vld [vmem:[%s3896_s27 + $0x5a0] ss:$8 sps:$4 sm:$0xff]   ;;  %v3374_v35 = vld [vmem:[%s3896_s27 + $0x1b4] ss:$8 sps:$4 sm:$0xff]  }
  0x9d   : > { %2374 = vmatprep.subr.bf16.mxu0 %v3302_v36  ;;  %v3377_v36 = vld [vmem:[%s3896_s27 + $0x5b4] ss:$8 sps:$4 sm:$0xff]  }
  0x9f   : > { %2163 = vmatpush1.bf16.msra.mxu1 %v3304_v37  ;;  %v3372_v37 = vld [vmem:[%s3896_s27 + $0x1b0] ss:$8 sps:$4 sm:$0xff]  }
  0xa0   : > { %2375 = vmatpush1.bf16.msra.mxu0 %v3305_v38  ;;  %2185 = vmatprep.subr.bf16.mxu1 %v3308_v39  ;;  %v3375_v38 = vld [vmem:[%s3896_s27 + $0x5b0] ss:$8 sps:$4 sm:$0xff]   ;;  %v3380_v39 = vld [vmem:[%s3896_s27 + $0x1c4] ss:$8 sps:$4 sm:$0xff]  }
  0xa1   : > { %2397 = vmatprep.subr.bf16.mxu0 %v3311_v40  ;;  %v3383_v40 = vld [vmem:[%s3896_s27 + $0x5c4] ss:$8 sps:$4 sm:$0xff]  }
  0xa2   : > { %2165 = vmatmul.mubr.bf16.vlgmr.msra.gmra.mrb[0].mxu1 %v2790_v41  ;;  %v3378_v41 = vld [vmem:[%s3896_s27 + $0x1c0] ss:$8 sps:$4 sm:$0xff]  }
  0xa3   : > { %2377 = vmatmul.mubr.bf16.vlgmr.msra.gmra.mrb[0].mxu0 %v2798_v43  ;;  %2186 = vmatpush1.bf16.msra.mxu1 %v3306_v42  ;;  %v3381_v42 = vld [vmem:[%s3896_s27 + $0x5c0] ss:$8 sps:$4 sm:$0xff]   ;;  %v3386_v43 = vld [vmem:[%s3896_s27 + $0x1d4] ss:$8 sps:$4 sm:$0xff]  }
  0xa4   : > { %2398 = vmatpush1.bf16.msra.mxu0 %v3309_v44  ;;  %2187 = vmatprep.subr.bf16.mxu1 %v3314_v45  ;;  %v3389_v44 = vld [vmem:[%s3896_s27 + $0x5d4] ss:$8 sps:$4 sm:$0xff]   ;;  %v3384_v45 = vld [vmem:[%s3896_s27 + $0x1d0] ss:$8 sps:$4 sm:$0xff]  }
  0xa5   : > { %2399 = vmatprep.subr.bf16.mxu0 %v3317_v46  ;;  %2174 = vmatprep.mubr.bf16.mxu1 %v2807_v2  ;;  %v3387_v46 = vld [vmem:[%s3896_s27 + $0x5d0] ss:$8 sps:$4 sm:$0xff]   ;;  %v433_v2 = vld [vmem:[%s3894_s23 + $0xe8] sm:$0xff] }
  0xa6   : > { %2386 = vmatprep.mubr.bf16.mxu0 %v2815_v8  ;;  %v3419_v8 = vld [vmem:[%s3896_s27 + $0x624] ss:$8 sps:$4 sm:$0xff]  }
  0xa7   : > { %2188 = vmatpush1.bf16.msra.mxu1 %v3312_v47  ;;  %v3392_v47 = vld [vmem:[%s3896_s27 + $0x1e4] ss:$8 sps:$4 sm:$0xff]  }
  0xa8   : > { %2400 = vmatpush1.bf16.msra.mxu0 %v3315_v48  ;;  %2189 = vmatprep.subr.bf16.mxu1 %v3320_v49  ;;  %v3395_v48 = vld [vmem:[%s3896_s27 + $0x5e4] ss:$8 sps:$4 sm:$0xff]   ;;  %v3390_v49 = vld [vmem:[%s3896_s27 + $0x1e0] ss:$8 sps:$4 sm:$0xff]  }
  0xa9   : > { %2401 = vmatprep.subr.bf16.mxu0 %v3323_v50  ;;  %v3393_v50 = vld [vmem:[%s3896_s27 + $0x5e0] ss:$8 sps:$4 sm:$0xff]  }
  0xaa   : > { %2175 = vmatmul.mubr.bf16.gmra.mrb[4].mxu1 %v2806_v6  ;;  %v3411_v6 = vld [vmem:[%s3896_s27 + $0x610] ss:$8 sps:$4 sm:$0xff]  }
  0xab   : > { %2190 = vmatpush1.bf16.msra.mxu1 %v3318_v51  ;;  %2387 = vmatmul.mubr.bf16.gmra.mrb[4].mxu0 %v2814_v9  ;;  %v3398_v51 = vld [vmem:[%s3896_s27 + $0x1f4] ss:$8 sps:$4 sm:$0xff]   ;;  %v3414_v9 = vld [vmem:[%s3896_s27 + $0x220] ss:$8 sps:$4 sm:$0xff]  }
  0xac   : > { %2402 = vmatpush1.bf16.msra.mxu0 %v3321_v52  ;;  %2191 = vmatprep.subr.bf16.mxu1 %v3326_v53  ;;  %v3401_v52 = vld [vmem:[%s3896_s27 + $0x5f4] ss:$8 sps:$4 sm:$0xff]   ;;  %v3396_v53 = vld [vmem:[%s3896_s27 + $0x1f0] ss:$8 sps:$4 sm:$0xff]  }
  0xad   : > { %2403 = vmatprep.subr.bf16.mxu0 %v3329_v54  ;;  %2217 = vmatprep.mubr.bf16.mxu1 %v2793_v17  ;;  %v3399_v54 = vld [vmem:[%s3896_s27 + $0x5f0] ss:$8 sps:$4 sm:$0xff]   ;;  %v3422_v17 = vld [vmem:[%s3896_s27 + $0x234] ss:$8 sps:$4 sm:$0xff]  }
  0xae   : > { %2429 = vmatprep.mubr.bf16.mxu0 %v2801_v22  ;;  %v3423_v22 = vld [vmem:[%s3896_s27 + $0x630] ss:$8 sps:$4 sm:$0xff]  }
  0xaf   : > { %2192 = vmatpush1.bf16.msra.mxu1 %v3324_v55  ;;  %v3404_v55 = vld [vmem:[%s3896_s27 + $0x204] ss:$8 sps:$4 sm:$0xff]  }
  0xb0   : > { %2404 = vmatpush1.bf16.msra.mxu0 %v3327_v56  ;;  %2193 = vmatprep.subr.bf16.mxu1 %v3332_v57  ;;  %v3407_v56 = vld [vmem:[%s3896_s27 + $0x604] ss:$8 sps:$4 sm:$0xff]   ;;  %v3402_v57 = vld [vmem:[%s3896_s27 + $0x200] ss:$8 sps:$4 sm:$0xff]  }
  0xb1   : > { %2405 = vmatprep.subr.bf16.mxu0 %v3335_v58  ;;  %v3405_v58 = vld [vmem:[%s3896_s27 + $0x600] ss:$8 sps:$4 sm:$0xff]  }
  0xb3   : > { %2194 = vmatpush1.bf16.msra.mxu1 %v3330_v59  ;;  %v421_v59 = vld [vmem:[%s3894_s23 + $0x88] sm:$0xff] }
  0xb4   : > { %2406 = vmatpush1.bf16.msra.mxu0 %v3333_v60  ;;  %2195 = vmatprep.subr.bf16.mxu1 %v3338_v61  ;;  %v2792_v60 = vcombine.low %v4011_v13, %v4014_v14  ;;  %v2800_v61 = vcombine.low %v4021_v18, %v4024_v19  ;;  %v4086_v14 = vld [vmem:[%s3894_s23 + $0x50] sm:$0xff] }
  0xb5   : > { %2407 = vmatprep.subr.bf16.mxu0 %v3341_v62  ;;  %v429_v62 = vld [vmem:[%s3894_s23 + $0xc8] sm:$0xff]  ;;  %v3425_v18 = vld [vmem:[%s3896_s27 + $0x634] ss:$8 sps:$4 sm:$0xff]  }
  0xb7   : > { %2196 = vmatpush1.bf16.msra.mxu1 %v3336_v1  ;;  %v425_v1 = vld [vmem:[%s3894_s23 + $0xa8] sm:$0xff] }
  0xb8   : > { %2408 = vmatpush1.bf16.msra.mxu0 %v3339_v3  ;;  %2197 = vmatprep.subr.bf16.mxu1 %v3344_v7  ;;  %v2809_v3 = vcombine.high %v421_v59, %v429_v62  ;;  %v2817_v4 = vcombine.high %v425_v1, %v433_v2  ;;  %v3416_v7 = vld [vmem:[%s3896_s27 + $0x224] ss:$8 sps:$4 sm:$0xff]   ;;  %v2816_v13 = vcombine.low %v425_v1, %v433_v2  ;;  %v3486_v1 = vld [vmem:[%s3896_s27 + $0x2e0] ss:$8 sps:$4 sm:$0xff]  }
  0xb9   : > { %2409 = vmatprep.subr.bf16.mxu0 %v3347_v10  ;;  %v3417_v10 = vld [vmem:[%s3896_s27 + $0x620] ss:$8 sps:$4 sm:$0xff]  }
  0xba   : > { %v3489_v2 = vld [vmem:[%s3896_s27 + $0x6e0] ss:$8 sps:$4 sm:$0xff]  }
  0xbb   : > { %2198 = vmatpush1.bf16.msra.mxu1 %v3342_v11  ;;  %v4083_v11 = vld [vmem:[%s3894_s23 + $0x10] sm:$0xff] }
  0xbc   : > { %2410 = vmatpush1.bf16.msra.mxu0 %v3345_v12  ;;  %2199 = vmatprep.subr.bf16.mxu1 %v3350_v15  ;;  %v2808_v12 = vcombine.low %v421_v59, %v429_v62  ;;  %v4089_v15 = vld [vmem:[%s3894_s23 + $0x30] sm:$0xff]  ;;  %v2795_v19 = vcombine.high %v4083_v11, %v4086_v14 }
  0xbd   : > { %2411 = vmatprep.subr.bf16.mxu0 %v3353_v16  ;;  %v4092_v16 = vld [vmem:[%s3894_s23 + $0x70] sm:$0xff] }
  0xbe   : > { %v3482_v59 = vld [vmem:[%s3896_s27 + $0x2d4] ss:$8 sps:$4 sm:$0xff]   ;;  %v3483_v62 = vld [vmem:[%s3896_s27 + $0x6d0] ss:$8 sps:$4 sm:$0xff]  }
  0xbf   : > { %2200 = vmatpush1.bf16.msra.mxu1 %v3348_v20  ;;  %v2803_v20 = vcombine.high %v4089_v15, %v4092_v16 }
  0xc0   : > { %2412 = vmatpush1.bf16.msra.mxu0 %v3351_v21  ;;  %2201 = vmatprep.subr.bf16.mxu1 %v3356_v23  ;;  %v3420_v21 = vld [vmem:[%s3896_s27 + $0x230] ss:$8 sps:$4 sm:$0xff]   ;;  %v3428_v23 = vld [vmem:[%s3896_s27 + $0x244] ss:$8 sps:$4 sm:$0xff]  }
  0xc1   : > { %2413 = vmatprep.subr.bf16.mxu0 %v3359_v24  ;;  %v3431_v24 = vld [vmem:[%s3896_s27 + $0x644] ss:$8 sps:$4 sm:$0xff]  }
  0xc3   : > { %2202 = vmatpush1.bf16.msra.mxu1 %v3354_v25  ;;  %v3426_v25 = vld [vmem:[%s3896_s27 + $0x240] ss:$8 sps:$4 sm:$0xff]  }
  0xc4   : > { %2414 = vmatpush1.bf16.msra.mxu0 %v3357_v26  ;;  %2203 = vmatprep.subr.bf16.mxu1 %v3362_v27  ;;  %v3429_v26 = vld [vmem:[%s3896_s27 + $0x640] ss:$8 sps:$4 sm:$0xff]   ;;  %v3434_v27 = vld [vmem:[%s3896_s27 + $0x254] ss:$8 sps:$4 sm:$0xff]  }
  0xc5   : > { %2415 = vmatprep.subr.bf16.mxu0 %v3365_v28  ;;  %v3437_v28 = vld [vmem:[%s3896_s27 + $0x654] ss:$8 sps:$4 sm:$0xff]  }
  0xc7   : > { %2204 = vmatpush1.bf16.msra.mxu1 %v3360_v29  ;;  %v3432_v29 = vld [vmem:[%s3896_s27 + $0x250] ss:$8 sps:$4 sm:$0xff]  }
  0xc8   : > { %2416 = vmatpush1.bf16.msra.mxu0 %v3363_v30  ;;  %2205 = vmatprep.subr.bf16.mxu1 %v3368_v31  ;;  %v3435_v30 = vld [vmem:[%s3896_s27 + $0x650] ss:$8 sps:$4 sm:$0xff]   ;;  %v3440_v31 = vld [vmem:[%s3896_s27 + $0x264] ss:$8 sps:$4 sm:$0xff]  }
  0xc9   : > { %2417 = vmatprep.subr.bf16.mxu0 %v3371_v32  ;;  %v3443_v32 = vld [vmem:[%s3896_s27 + $0x664] ss:$8 sps:$4 sm:$0xff]  }
  0xcb   : > { %2206 = vmatpush1.bf16.msra.mxu1 %v3366_v33  ;;  %v3438_v33 = vld [vmem:[%s3896_s27 + $0x260] ss:$8 sps:$4 sm:$0xff]  }
  0xcc   : > { %2418 = vmatpush1.bf16.msra.mxu0 %v3369_v34  ;;  %2207 = vmatprep.subr.bf16.mxu1 %v3374_v35  ;;  %v3441_v34 = vld [vmem:[%s3896_s27 + $0x660] ss:$8 sps:$4 sm:$0xff]   ;;  %v3446_v35 = vld [vmem:[%s3896_s27 + $0x274] ss:$8 sps:$4 sm:$0xff]  }
  0xcd   : > { %2419 = vmatprep.subr.bf16.mxu0 %v3377_v36  ;;  %v3449_v36 = vld [vmem:[%s3896_s27 + $0x674] ss:$8 sps:$4 sm:$0xff]  }
  0xcf   : > { %2208 = vmatpush1.bf16.msra.mxu1 %v3372_v37  ;;  %v3444_v37 = vld [vmem:[%s3896_s27 + $0x270] ss:$8 sps:$4 sm:$0xff]  }
  0xd0   : > { %2420 = vmatpush1.bf16.msra.mxu0 %v3375_v38  ;;  %2209 = vmatprep.subr.bf16.mxu1 %v3380_v39  ;;  %v3447_v38 = vld [vmem:[%s3896_s27 + $0x670] ss:$8 sps:$4 sm:$0xff]   ;;  %v3452_v39 = vld [vmem:[%s3896_s27 + $0x284] ss:$8 sps:$4 sm:$0xff]  }
  0xd1   : > { %2421 = vmatprep.subr.bf16.mxu0 %v3383_v40  ;;  %v3455_v40 = vld [vmem:[%s3896_s27 + $0x684] ss:$8 sps:$4 sm:$0xff]  }
  0xd3   : > { %2210 = vmatpush1.bf16.msra.mxu1 %v3378_v41  ;;  %v3450_v41 = vld [vmem:[%s3896_s27 + $0x280] ss:$8 sps:$4 sm:$0xff]  }
  0xd4   : > { %2422 = vmatpush1.bf16.msra.mxu0 %v3381_v42  ;;  %2211 = vmatprep.subr.bf16.mxu1 %v3386_v43  ;;  %v3453_v42 = vld [vmem:[%s3896_s27 + $0x680] ss:$8 sps:$4 sm:$0xff]   ;;  %v3458_v43 = vld [vmem:[%s3896_s27 + $0x294] ss:$8 sps:$4 sm:$0xff]  }
  0xd5   : > { %2423 = vmatprep.subr.bf16.mxu0 %v3389_v44  ;;  %v3461_v44 = vld [vmem:[%s3896_s27 + $0x694] ss:$8 sps:$4 sm:$0xff]  }
  0xd7   : > { %2212 = vmatpush1.bf16.msra.mxu1 %v3384_v45  ;;  %v3456_v45 = vld [vmem:[%s3896_s27 + $0x290] ss:$8 sps:$4 sm:$0xff]  }
  0xd8   : > { %2424 = vmatpush1.bf16.msra.mxu0 %v3387_v46  ;;  %2213 = vmatprep.subr.bf16.mxu1 %v3392_v47  ;;  %v3459_v46 = vld [vmem:[%s3896_s27 + $0x690] ss:$8 sps:$4 sm:$0xff]   ;;  %v3464_v47 = vld [vmem:[%s3896_s27 + $0x2a4] ss:$8 sps:$4 sm:$0xff]  }
  0xd9   : > { %2425 = vmatprep.subr.bf16.mxu0 %v3395_v48  ;;  %v3467_v48 = vld [vmem:[%s3896_s27 + $0x6a4] ss:$8 sps:$4 sm:$0xff]  }
  0xdb   : > { %2214 = vmatpush1.bf16.msra.mxu1 %v3390_v49  ;;  %v3462_v49 = vld [vmem:[%s3896_s27 + $0x2a0] ss:$8 sps:$4 sm:$0xff]  }
  0xdc   : > { %2426 = vmatpush1.bf16.msra.mxu0 %v3393_v50  ;;  %2215 = vmatprep.subr.bf16.mxu1 %v3398_v51  ;;  %v3465_v50 = vld [vmem:[%s3896_s27 + $0x6a0] ss:$8 sps:$4 sm:$0xff]   ;;  %v3470_v51 = vld [vmem:[%s3896_s27 + $0x2b4] ss:$8 sps:$4 sm:$0xff]  }
  0xdd   : > { %2427 = vmatprep.subr.bf16.mxu0 %v3401_v52  ;;  %v3473_v52 = vld [vmem:[%s3896_s27 + $0x6b4] ss:$8 sps:$4 sm:$0xff]  }
  0xdf   : > { %2216 = vmatpush1.bf16.msra.mxu1 %v3396_v53  ;;  %v3468_v53 = vld [vmem:[%s3896_s27 + $0x2b0] ss:$8 sps:$4 sm:$0xff]  }
  0xe0   : > { %2428 = vmatpush1.bf16.msra.mxu0 %v3399_v54  ;;  %2238 = vmatprep.subr.bf16.mxu1 %v3404_v55  ;;  %v3471_v54 = vld [vmem:[%s3896_s27 + $0x6b0] ss:$8 sps:$4 sm:$0xff]   ;;  %v3476_v55 = vld [vmem:[%s3896_s27 + $0x2c4] ss:$8 sps:$4 sm:$0xff]  }
  0xe1   : > { %2450 = vmatprep.subr.bf16.mxu0 %v3407_v56  ;;  %v3479_v56 = vld [vmem:[%s3896_s27 + $0x6c4] ss:$8 sps:$4 sm:$0xff]  }
  0xe2   : > { %2218 = vmatmul.mubr.bf16.vlgmr.msra.gmra.mrb[0].mxu1 %v2792_v60  ;;  %v3485_v60 = vld [vmem:[%s3896_s27 + $0x6d4] ss:$8 sps:$4 sm:$0xff]  }
  0xe3   : > { %2430 = vmatmul.mubr.bf16.vlgmr.msra.gmra.mrb[0].mxu0 %v2800_v61  ;;  %2239 = vmatpush1.bf16.msra.mxu1 %v3402_v57  ;;  %v3474_v57 = vld [vmem:[%s3896_s27 + $0x2c0] ss:$8 sps:$4 sm:$0xff]   ;;  %v3480_v61 = vld [vmem:[%s3896_s27 + $0x2d0] ss:$8 sps:$4 sm:$0xff]  }
  0xe4   : > { %2451 = vmatpush1.bf16.msra.mxu0 %v3405_v58  ;;  %2240 = vmatprep.subr.bf16.mxu1 %v3410_v63  ;;  %v3477_v58 = vld [vmem:[%s3896_s27 + $0x6c0] ss:$8 sps:$4 sm:$0xff]   ;;  %v3488_v63 = vld [vmem:[%s3896_s27 + $0x2e4] ss:$8 sps:$4 sm:$0xff]  }
  0xe5   : > { %2452 = vmatprep.subr.bf16.mxu0 %v3413_v0  ;;  %2227 = vmatprep.mubr.bf16.mxu1 %v2809_v3  ;;  %v3491_v0 = vld [vmem:[%s3896_s27 + $0x6e4] ss:$8 sps:$4 sm:$0xff]   ;;  %v3494_v3 = vld [vmem:[%s3896_s27 + $0x2f4] ss:$8 sps:$4 sm:$0xff]  }
  0xe6   : > { %2439 = vmatprep.mubr.bf16.mxu0 %v2817_v4  ;;  %v3497_v4 = vld [vmem:[%s3896_s27 + $0x6f4] ss:$8 sps:$4 sm:$0xff]  }
  0xe7   : > { %2241 = vmatpush1.bf16.msra.mxu1 %v3408_v5  ;;  %v3492_v5 = vld [vmem:[%s3896_s27 + $0x2f0] ss:$8 sps:$4 sm:$0xff]  }
  0xe8   : > { %2453 = vmatpush1.bf16.msra.mxu0 %v3411_v6  ;;  %2242 = vmatprep.subr.bf16.mxu1 %v3416_v7  ;;  %v3495_v6 = vld [vmem:[%s3896_s27 + $0x6f0] ss:$8 sps:$4 sm:$0xff]   ;;  %v3500_v7 = vld [vmem:[%s3896_s27 + $0x304] ss:$8 sps:$4 sm:$0xff]  }
  0xe9   : > { %2454 = vmatprep.subr.bf16.mxu0 %v3419_v8  ;;  %v3503_v8 = vld [vmem:[%s3896_s27 + $0x704] ss:$8 sps:$4 sm:$0xff]  }
  0xea   : > { %2228 = vmatmul.mubr.bf16.gmra.mrb[4].mxu1 %v2808_v12  ;;  %v2802_v12 = vcombine.low %v4089_v15, %v4092_v16  ;;  %v3504_v15 = vld [vmem:[%s3896_s27 + $0x310] ss:$8 sps:$4 sm:$0xff]  }
  0xeb   : > { %2440 = vmatmul.mubr.bf16.gmra.mrb[4].mxu0 %v2816_v13  ;;  %2243 = vmatpush1.bf16.msra.mxu1 %v3414_v9  ;;  %v422_v9 = vld [vmem:[%s3894_s23 + $0x90] sm:$0xff] }
  0xec   : > { %2455 = vmatpush1.bf16.msra.mxu0 %v3417_v10  ;;  %2244 = vmatprep.subr.bf16.mxu1 %v3422_v17  ;;  %v2794_v10 = vcombine.low %v4083_v11, %v4086_v14  ;;  %v430_v13 = vld [vmem:[%s3894_s23 + $0xd0] sm:$0xff] }
  0xed   : > { %2456 = vmatprep.subr.bf16.mxu0 %v3425_v18  ;;  %2270 = vmatprep.mubr.bf16.mxu1 %v2795_v19  ;;  %v426_v17 = vld [vmem:[%s3894_s23 + $0xb0] sm:$0xff]  ;;  %v3498_v19 = vld [vmem:[%s3896_s27 + $0x300] ss:$8 sps:$4 sm:$0xff]   ;;  %v2811_v11 = vcombine.high %v422_v9, %v430_v13 }
  0xee   : > { %2482 = vmatprep.mubr.bf16.mxu0 %v2803_v20  ;;  %v434_v18 = vld [vmem:[%s3894_s23 + $0xf0] sm:$0xff]  ;;  %v3501_v20 = vld [vmem:[%s3896_s27 + $0x700] ss:$8 sps:$4 sm:$0xff]  }
  0xef   : > { %2245 = vmatpush1.bf16.msra.mxu1 %v3420_v21  ;;  %v3506_v21 = vld [vmem:[%s3896_s27 + $0x314] ss:$8 sps:$4 sm:$0xff]   ;;  %v2819_v14 = vcombine.high %v426_v17, %v434_v18  ;;  %v3507_v16 = vld [vmem:[%s3896_s27 + $0x710] ss:$8 sps:$4 sm:$0xff]  }
  0xf0   : > { %2457 = vmatpush1.bf16.msra.mxu0 %v3423_v22  ;;  %2246 = vmatprep.subr.bf16.mxu1 %v3428_v23  ;;  %v3509_v22 = vld [vmem:[%s3896_s27 + $0x714] ss:$8 sps:$4 sm:$0xff]   ;;  %v3512_v23 = vld [vmem:[%s3896_s27 + $0x324] ss:$8 sps:$4 sm:$0xff]  }
  0xf1   : > { %2458 = vmatprep.subr.bf16.mxu0 %v3431_v24  ;;  %v3515_v24 = vld [vmem:[%s3896_s27 + $0x724] ss:$8 sps:$4 sm:$0xff]  }
  0xf3   : > { %2247 = vmatpush1.bf16.msra.mxu1 %v3426_v25  ;;  %v4169_v25 = vld [vmem:[%s3894_s23 + $0x18] sm:$0xff] }
  0xf4   : > { %2459 = vmatpush1.bf16.msra.mxu0 %v3429_v26  ;;  %2248 = vmatprep.subr.bf16.mxu1 %v3434_v27  ;;  %v2810_v26 = vcombine.low %v422_v9, %v430_v13  ;;  %v2818_v27 = vcombine.low %v426_v17, %v434_v18  ;;  %v3570_v9 = vld [vmem:[%s3896_s27 + $0x3c0] ss:$8 sps:$4 sm:$0xff]   ;;  %v3581_v13 = vld [vmem:[%s3896_s27 + $0x7d4] ss:$8 sps:$4 sm:$0xff]   ;;  %v3576_v17 = vld [vmem:[%s3896_s27 + $0x3d0] ss:$8 sps:$4 sm:$0xff]  }
  0xf5   : > { %2460 = vmatprep.subr.bf16.mxu0 %v3437_v28  ;;  %v4172_v28 = vld [vmem:[%s3894_s23 + $0x58] sm:$0xff] }
  0xf6   : > { %v3579_v18 = vld [vmem:[%s3896_s27 + $0x7d0] ss:$8 sps:$4 sm:$0xff]  }
  0xf7   : > { %2249 = vmatpush1.bf16.msra.mxu1 %v3432_v29  ;;  %v4175_v29 = vld [vmem:[%s3894_s23 + $0x38] sm:$0xff] }
  0xf8   : > { %2461 = vmatpush1.bf16.msra.mxu0 %v3435_v30  ;;  %2250 = vmatprep.subr.bf16.mxu1 %v3440_v31  ;;  %v4178_v30 = vld [vmem:[%s3894_s23 + $0x78] sm:$0xff]  ;;  %v3510_v31 = vld [vmem:[%s3896_s27 + $0x320] ss:$8 sps:$4 sm:$0xff]  }
  0xf9   : > { %2462 = vmatprep.subr.bf16.mxu0 %v3443_v32  ;;  %v3513_v32 = vld [vmem:[%s3896_s27 + $0x720] ss:$8 sps:$4 sm:$0xff]  }
  0xfb   : > { %2251 = vmatpush1.bf16.msra.mxu1 %v3438_v33  ;;  %v3518_v33 = vld [vmem:[%s3896_s27 + $0x334] ss:$8 sps:$4 sm:$0xff]  }
  0xfc   : > { %2463 = vmatpush1.bf16.msra.mxu0 %v3441_v34  ;;  %2252 = vmatprep.subr.bf16.mxu1 %v3446_v35  ;;  %v3521_v34 = vld [vmem:[%s3896_s27 + $0x734] ss:$8 sps:$4 sm:$0xff]   ;;  %v2797_v35 = vcombine.high %v4169_v25, %v4172_v28 }
  0xfd   : > { %2464 = vmatprep.subr.bf16.mxu0 %v3449_v36  ;;  %v2805_v36 = vcombine.high %v4175_v29, %v4178_v30 }
  0xff   : > { %2253 = vmatpush1.bf16.msra.mxu1 %v3444_v37  ;;  %v3516_v37 = vld [vmem:[%s3896_s27 + $0x330] ss:$8 sps:$4 sm:$0xff]  }
 0x100   : > { %2465 = vmatpush1.bf16.msra.mxu0 %v3447_v38  ;;  %2254 = vmatprep.subr.bf16.mxu1 %v3452_v39  ;;  %v3519_v38 = vld [vmem:[%s3896_s27 + $0x730] ss:$8 sps:$4 sm:$0xff]   ;;  %v3524_v39 = vld [vmem:[%s3896_s27 + $0x344] ss:$8 sps:$4 sm:$0xff]  }
 0x101   : > { %2466 = vmatprep.subr.bf16.mxu0 %v3455_v40  ;;  %v3527_v40 = vld [vmem:[%s3896_s27 + $0x744] ss:$8 sps:$4 sm:$0xff]  }
 0x103   : > { %2255 = vmatpush1.bf16.msra.mxu1 %v3450_v41  ;;  %v3522_v41 = vld [vmem:[%s3896_s27 + $0x340] ss:$8 sps:$4 sm:$0xff]  }
 0x104   : > { %2467 = vmatpush1.bf16.msra.mxu0 %v3453_v42  ;;  %2256 = vmatprep.subr.bf16.mxu1 %v3458_v43  ;;  %v3525_v42 = vld [vmem:[%s3896_s27 + $0x740] ss:$8 sps:$4 sm:$0xff]   ;;  %v3530_v43 = vld [vmem:[%s3896_s27 + $0x354] ss:$8 sps:$4 sm:$0xff]  }
 0x105   : > { %2468 = vmatprep.subr.bf16.mxu0 %v3461_v44  ;;  %v3533_v44 = vld [vmem:[%s3896_s27 + $0x754] ss:$8 sps:$4 sm:$0xff]  }
 0x107   : > { %2257 = vmatpush1.bf16.msra.mxu1 %v3456_v45  ;;  %v3528_v45 = vld [vmem:[%s3896_s27 + $0x350] ss:$8 sps:$4 sm:$0xff]  }
 0x108   : > { %2469 = vmatpush1.bf16.msra.mxu0 %v3459_v46  ;;  %2258 = vmatprep.subr.bf16.mxu1 %v3464_v47  ;;  %v3531_v46 = vld [vmem:[%s3896_s27 + $0x750] ss:$8 sps:$4 sm:$0xff]   ;;  %v3536_v47 = vld [vmem:[%s3896_s27 + $0x364] ss:$8 sps:$4 sm:$0xff]  }
 0x109   : > { %2470 = vmatprep.subr.bf16.mxu0 %v3467_v48  ;;  %v3539_v48 = vld [vmem:[%s3896_s27 + $0x764] ss:$8 sps:$4 sm:$0xff]  }
 0x10b   : > { %2259 = vmatpush1.bf16.msra.mxu1 %v3462_v49  ;;  %v3534_v49 = vld [vmem:[%s3896_s27 + $0x360] ss:$8 sps:$4 sm:$0xff]  }
 0x10c   : > { %2471 = vmatpush1.bf16.msra.mxu0 %v3465_v50  ;;  %2260 = vmatprep.subr.bf16.mxu1 %v3470_v51  ;;  %v3537_v50 = vld [vmem:[%s3896_s27 + $0x760] ss:$8 sps:$4 sm:$0xff]   ;;  %v3542_v51 = vld [vmem:[%s3896_s27 + $0x374] ss:$8 sps:$4 sm:$0xff]  }
 0x10d   : > { %2472 = vmatprep.subr.bf16.mxu0 %v3473_v52  ;;  %v3545_v52 = vld [vmem:[%s3896_s27 + $0x774] ss:$8 sps:$4 sm:$0xff]  }
 0x10f   : > { %2261 = vmatpush1.bf16.msra.mxu1 %v3468_v53  ;;  %v3540_v53 = vld [vmem:[%s3896_s27 + $0x370] ss:$8 sps:$4 sm:$0xff]  }
 0x110   : > { %2473 = vmatpush1.bf16.msra.mxu0 %v3471_v54  ;;  %2262 = vmatprep.subr.bf16.mxu1 %v3476_v55  ;;  %v3543_v54 = vld [vmem:[%s3896_s27 + $0x770] ss:$8 sps:$4 sm:$0xff]   ;;  %v3548_v55 = vld [vmem:[%s3896_s27 + $0x384] ss:$8 sps:$4 sm:$0xff]  }
 0x111   : > { %2474 = vmatprep.subr.bf16.mxu0 %v3479_v56  ;;  %v3551_v56 = vld [vmem:[%s3896_s27 + $0x784] ss:$8 sps:$4 sm:$0xff]  }
 0x113   : > { %2263 = vmatpush1.bf16.msra.mxu1 %v3474_v57  ;;  %v3546_v57 = vld [vmem:[%s3896_s27 + $0x380] ss:$8 sps:$4 sm:$0xff]  }
 0x114   : > { %2475 = vmatpush1.bf16.msra.mxu0 %v3477_v58  ;;  %2264 = vmatprep.subr.bf16.mxu1 %v3482_v59  ;;  %v3549_v58 = vld [vmem:[%s3896_s27 + $0x780] ss:$8 sps:$4 sm:$0xff]   ;;  %v3554_v59 = vld [vmem:[%s3896_s27 + $0x394] ss:$8 sps:$4 sm:$0xff]  }
 0x115   : > { %2476 = vmatprep.subr.bf16.mxu0 %v3485_v60  ;;  %v3557_v60 = vld [vmem:[%s3896_s27 + $0x794] ss:$8 sps:$4 sm:$0xff]  }
 0x117   : > { %2265 = vmatpush1.bf16.msra.mxu1 %v3480_v61  ;;  %v3552_v61 = vld [vmem:[%s3896_s27 + $0x390] ss:$8 sps:$4 sm:$0xff]  }
 0x118   : > { %2477 = vmatpush1.bf16.msra.mxu0 %v3483_v62  ;;  %2266 = vmatprep.subr.bf16.mxu1 %v3488_v63  ;;  %v3555_v62 = vld [vmem:[%s3896_s27 + $0x790] ss:$8 sps:$4 sm:$0xff]   ;;  %v3560_v63 = vld [vmem:[%s3896_s27 + $0x3a4] ss:$8 sps:$4 sm:$0xff]  }
 0x119   : > { %2478 = vmatprep.subr.bf16.mxu0 %v3491_v0  ;;  %v3563_v0 = vld [vmem:[%s3896_s27 + $0x7a4] ss:$8 sps:$4 sm:$0xff]  }
 0x11b   : > { %2267 = vmatpush1.bf16.msra.mxu1 %v3486_v1  ;;  %v3558_v1 = vld [vmem:[%s3896_s27 + $0x3a0] ss:$8 sps:$4 sm:$0xff]  }
 0x11c   : > { %2479 = vmatpush1.bf16.msra.mxu0 %v3489_v2  ;;  %2268 = vmatprep.subr.bf16.mxu1 %v3494_v3  ;;  %v3561_v2 = vld [vmem:[%s3896_s27 + $0x7a0] ss:$8 sps:$4 sm:$0xff]   ;;  %v3566_v3 = vld [vmem:[%s3896_s27 + $0x3b4] ss:$8 sps:$4 sm:$0xff]  }
 0x11d   : > { %2480 = vmatprep.subr.bf16.mxu0 %v3497_v4  ;;  %v3569_v4 = vld [vmem:[%s3896_s27 + $0x7b4] ss:$8 sps:$4 sm:$0xff]  }
 0x11f   : > { %2269 = vmatpush1.bf16.msra.mxu1 %v3492_v5  ;;  %v3564_v5 = vld [vmem:[%s3896_s27 + $0x3b0] ss:$8 sps:$4 sm:$0xff]  }
 0x120   : > { %2481 = vmatpush1.bf16.msra.mxu0 %v3495_v6  ;;  %2291 = vmatprep.subr.bf16.mxu1 %v3500_v7  ;;  %v3567_v6 = vld [vmem:[%s3896_s27 + $0x7b0] ss:$8 sps:$4 sm:$0xff]   ;;  %v3572_v7 = vld [vmem:[%s3896_s27 + $0x3c4] ss:$8 sps:$4 sm:$0xff]  }
 0x121   : > { %2503 = vmatprep.subr.bf16.mxu0 %v3503_v8  ;;  %v3575_v8 = vld [vmem:[%s3896_s27 + $0x7c4] ss:$8 sps:$4 sm:$0xff]  }
 0x122   : > { %2271 = vmatmul.mubr.bf16.vlgmr.msra.gmra.mrb[0].mxu1 %v2794_v10  ;;  %v3573_v10 = vld [vmem:[%s3896_s27 + $0x7c0] ss:$8 sps:$4 sm:$0xff]  }
 0x123   : > { %2483 = vmatmul.mubr.bf16.vlgmr.msra.gmra.mrb[0].mxu0 %v2802_v12  ;;  %2292 = vmatpush1.bf16.msra.mxu1 %v3498_v19  ;;  %v3578_v12 = vld [vmem:[%s3896_s27 + $0x3d4] ss:$8 sps:$4 sm:$0xff]   ;;  %v3584_v19 = vld [vmem:[%s3896_s27 + $0x3e4] ss:$8 sps:$4 sm:$0xff]  }
 0x124   : > { %2504 = vmatpush1.bf16.msra.mxu0 %v3501_v20  ;;  %2293 = vmatprep.subr.bf16.mxu1 %v3506_v21  ;;  %v3587_v20 = vld [vmem:[%s3896_s27 + $0x7e4] ss:$8 sps:$4 sm:$0xff]   ;;  %v3582_v21 = vld [vmem:[%s3896_s27 + $0x3e0] ss:$8 sps:$4 sm:$0xff]  }
 0x125   : > { %2505 = vmatprep.subr.bf16.mxu0 %v3509_v22  ;;  %2280 = vmatprep.mubr.bf16.mxu1 %v2811_v11  ;;  %v3585_v22 = vld [vmem:[%s3896_s27 + $0x7e0] ss:$8 sps:$4 sm:$0xff]   ;;  %v3590_v11 = vld [vmem:[%s3896_s27 + $0x3f4] ss:$8 sps:$4 sm:$0xff]  }
 0x126   : > { %2492 = vmatprep.mubr.bf16.mxu0 %v2819_v14  ;;  %v3593_v14 = vld [vmem:[%s3896_s27 + $0x7f4] ss:$8 sps:$4 sm:$0xff]  }
 0x127   : > { %2294 = vmatpush1.bf16.msra.mxu1 %v3504_v15  ;;  %v3588_v15 = vld [vmem:[%s3896_s27 + $0x3f0] ss:$8 sps:$4 sm:$0xff]  }
 0x128   : > { %2506 = vmatpush1.bf16.msra.mxu0 %v3507_v16  ;;  %2295 = vmatprep.subr.bf16.mxu1 %v3512_v23  ;;  %v3591_v16 = vld [vmem:[%s3896_s27 + $0x7f0] ss:$8 sps:$4 sm:$0xff]  }
 0x129   : > { %2507 = vmatprep.subr.bf16.mxu0 %v3515_v24  ;;  %v423_v23 = vld [vmem:[%s3894_s23 + $0x98] sm:$0xff] }
 0x12a   : > { %2281 = vmatmul.mubr.bf16.gmra.mrb[4].mxu1 %v2810_v26  ;;  %v431_v24 = vld [vmem:[%s3894_s23 + $0xd8] sm:$0xff] }
 0x12b   : > { %2493 = vmatmul.mubr.bf16.gmra.mrb[4].mxu0 %v2818_v27  ;;  %2296 = vmatpush1.bf16.msra.mxu1 %v3510_v31  ;;  %v427_v26 = vld [vmem:[%s3894_s23 + $0xb8] sm:$0xff]  ;;  %v2796_v31 = vcombine.low %v4169_v25, %v4172_v28  ;;  %v397_v28 = vld [vmem:[#allocation2 + $0x8] sm:$0xff] }
 0x12c   : > { %2508 = vmatpush1.bf16.msra.mxu0 %v3513_v32  ;;  %2297 = vmatprep.subr.bf16.mxu1 %v3518_v33  ;;  %v435_v27 = vld [vmem:[%s3894_s23 + $0xf8] sm:$0xff]  ;;  %v2804_v32 = vcombine.low %v4175_v29, %v4178_v30  ;;  %v2813_v33 = vcombine.high %v423_v23, %v431_v24 }
 0x12d   : > { %2509 = vmatprep.subr.bf16.mxu0 %v3521_v34  ;;  %2323 = vmatprep.mubr.bf16.mxu1 %v2797_v35  ;;  %v2821_v34 = vcombine.high %v427_v26, %v435_v27  ;;  %v2812_v35 = vcombine.low %v423_v23, %v431_v24 }
 0x12e   : > { %2535 = vmatprep.mubr.bf16.mxu0 %v2805_v36  ;;  %v2820_v36 = vcombine.low %v427_v26, %v435_v27 }
 0x12f   : > { %2298 = vmatpush1.bf16.msra.mxu1 %v3516_v37 }
 0x130   : > { %2510 = vmatpush1.bf16.msra.mxu0 %v3519_v38  ;;  %2299 = vmatprep.subr.bf16.mxu1 %v3524_v39  ;;  %v396_v38 = vld [vmem:[#allocation2] sm:$0xff] }
 0x131   : > { %2511 = vmatprep.subr.bf16.mxu0 %v3527_v40 }
 0x133   : > { %2300 = vmatpush1.bf16.msra.mxu1 %v3522_v41 }
 0x134   : > { %2512 = vmatpush1.bf16.msra.mxu0 %v3525_v42  ;;  %2301 = vmatprep.subr.bf16.mxu1 %v3530_v43  ;;  %v398_v42 = vld [vmem:[#allocation2 + $0x10] sm:$0xff] }
 0x135   : > { %2513 = vmatprep.subr.bf16.mxu0 %v3533_v44 }
 0x137   : > { %2302 = vmatpush1.bf16.msra.mxu1 %v3528_v45 }
 0x138   : > { %2514 = vmatpush1.bf16.msra.mxu0 %v3531_v46  ;;  %2303 = vmatprep.subr.bf16.mxu1 %v3536_v47  ;;  %v399_v47 = vld [vmem:[#allocation2 + $0x18] sm:$0xff] }
 0x139   : > { %2515 = vmatprep.subr.bf16.mxu0 %v3539_v48 }
 0x13b   : > { %2304 = vmatpush1.bf16.msra.mxu1 %v3534_v49 }
 0x13c   : > { %2516 = vmatpush1.bf16.msra.mxu0 %v3537_v50  ;;  %2305 = vmatprep.subr.bf16.mxu1 %v3542_v51 }
 0x13d   : > { %2517 = vmatprep.subr.bf16.mxu0 %v3545_v52 }
 0x13f   : > { %2306 = vmatpush1.bf16.msra.mxu1 %v3540_v53 }
 0x140   : > { %2518 = vmatpush1.bf16.msra.mxu0 %v3543_v54  ;;  %2307 = vmatprep.subr.bf16.mxu1 %v3548_v55  ;;  %v400_v54 = vld [vmem:[#allocation2 + $0x20] sm:$0xff] }
 0x141   : > { %2519 = vmatprep.subr.bf16.mxu0 %v3551_v56 }
 0x143   : > { %2308 = vmatpush1.bf16.msra.mxu1 %v3546_v57 }
 0x144   : > { %2520 = vmatpush1.bf16.msra.mxu0 %v3549_v58  ;;  %2309 = vmatprep.subr.bf16.mxu1 %v3554_v59  ;;  %v401_v58 = vld [vmem:[#allocation2 + $0x28] sm:$0xff] }
 0x145   : > { %2521 = vmatprep.subr.bf16.mxu0 %v3557_v60 }
 0x147   : > { %2310 = vmatpush1.bf16.msra.mxu1 %v3552_v61 }
 0x148   : > { %2522 = vmatpush1.bf16.msra.mxu0 %v3555_v62  ;;  %2311 = vmatprep.subr.bf16.mxu1 %v3560_v63  ;;  %v402_v62 = vld [vmem:[#allocation2 + $0x30] sm:$0xff] }
 0x149   : > { %2523 = vmatprep.subr.bf16.mxu0 %v3563_v0 }
 0x14b   : > { %2312 = vmatpush1.bf16.msra.mxu1 %v3558_v1 }
 0x14c   : > { %2524 = vmatpush1.bf16.msra.mxu0 %v3561_v2  ;;  %2313 = vmatprep.subr.bf16.mxu1 %v3566_v3  ;;  %v403_v3 = vld [vmem:[#allocation2 + $0x38] sm:$0xff] }
 0x14d   : > { %2525 = vmatprep.subr.bf16.mxu0 %v3569_v4 }
 0x14f   : > { %2314 = vmatpush1.bf16.msra.mxu1 %v3564_v5 }
 0x150   : > { %2526 = vmatpush1.bf16.msra.mxu0 %v3567_v6  ;;  %2315 = vmatprep.subr.bf16.mxu1 %v3572_v7 }
 0x151   : > { %2527 = vmatprep.subr.bf16.mxu0 %v3575_v8 }
 0x153   : > { %2316 = vmatpush1.bf16.msra.mxu1 %v3570_v9  ;;  %v2586_v9 = vlaneseq (!%p3078_p7) }
 0x154   : > { %2528 = vmatpush1.bf16.msra.mxu0 %v3573_v10  ;;  %2317 = vmatprep.subr.bf16.mxu1 %v3578_v12  ;;  %v2584_v12 = vld [vmem:[%s4284_s2] sm:$0x3] (!%p3078_p7) }
 0x155   : > { %2529 = vmatprep.subr.bf16.mxu0 %v3581_v13  ;;  %v2587_v10 = vshrl.u32 (!%p3078_p7), %v2586_v9, 7 }
 0x157   : > { %2318 = vmatpush1.bf16.msra.mxu1 %v3576_v17  ;;  %v2588_v17 = vsub.s32 (!%p3078_p7), 0, %v2587_v10 }
 0x158   : > { %2530 = vmatpush1.bf16.msra.mxu0 %v3579_v18  ;;  %2319 = vmatprep.subr.bf16.mxu1 %v3584_v19  ;;  %v2592_v19 = vsub.s32 (!%p3078_p7), 1, %v2587_v10 }
 0x159   : > { %2531 = vmatprep.subr.bf16.mxu0 %v3587_v20 }
 0x15b   : > { %2320 = vmatpush1.bf16.msra.mxu1 %v3582_v21 }
 0x15c   : > { %2532 = vmatpush1.bf16.msra.mxu0 %v3585_v22  ;;  %2321 = vmatprep.subr.bf16.mxu1 %v3590_v11  ;;  %v2589_v11 = vrot.slane (!%p3078_p7), %v2584_v12, %v2588_v17 }
 0x15d   : > { %2533 = vmatprep.subr.bf16.mxu0 %v3593_v14  ;;  %v2593_v14 = vrot.slane (!%p3078_p7), %v2584_v12, %v2592_v19 }
 0x15f   : > { %2322 = vmatpush1.bf16.msra.mxu1 %v3588_v15 }
 0x160   : > { %2534 = vmatpush1.bf16.msra.mxu0 %v3591_v16 }
 0x162   : > { %2324 = vmatmul.mubr.bf16.vlgmr.msra.gmra.mrb[0].mxu1 %v2796_v31 }
 0x163   : > { %2536 = vmatmul.mubr.bf16.vlgmr.msra.gmra.mrb[0].mxu0 %v2804_v32  ;;  %2333 = vmatprep.mubr.bf16.mxu1 %v2813_v33 }
 0x164   : > { %2545 = vmatprep.mubr.bf16.mxu0 %v2821_v34 }
 0x16a   : > { %2334 = vmatmul.mubr.bf16.gmra.mrb[4].mxu1 %v2812_v35 }
 0x16b   : > { %2546 = vmatmul.mubr.bf16.gmra.mrb[4].mxu0 %v2820_v36 }
 0x235   : > { %v2325_v37 = vpop.f32.mrb[0].mxu1 }
 0x236   : > { %v2537_v39 = vpop.f32.mrb[0].mxu0  ;;  %v2327_v25 = vpop.f32.mrb[1].mxu1 }
 0x237   : > { %v3083_v40 = vadd.f32 %v2537_v39, %v2325_v37  ;;  %v2539_v41 = vpop.f32.mrb[1].mxu0  ;;  %v2329_v30 = vpop.f32.mrb[2].mxu1 }
 0x238   : > { %v3084_v29 = vadd.f32 %v2539_v41, %v2327_v25  ;;  %v2541_v43 = vpop.f32.mrb[2].mxu0  ;;  %v2331_v46 = vpop.f32.mrb[3].mxu1 }
 0x239   : > { %v2556_v44 = vadd.f32 %v3083_v40, %v396_v38  ;;  %v3085_v45 = vadd.f32 %v2541_v43, %v2329_v30  ;;  %v2543_v48 = vpop.f32.mrb[3].mxu0 }
 0x23a   : > { %v2557_v49 = vadd.f32 %v3084_v29, %v397_v28  ;;  %v3086_v50 = vadd.f32 %v2543_v48, %v2331_v46 }
 0x23b   : > { %2564 = vst [vmem:[#allocation2] sm:$0xff] %v2556_v44  ;;  %v2558_v51 = vadd.f32 %v3085_v45, %v398_v42 }
 0x23c   : > { %2565 = vst [vmem:[#allocation2 + $0x8] sm:$0xff] %v2557_v49  ;;  %v2559_v52 = vadd.f32 %v3086_v50, %v399_v47 }
 0x23d   : > { %2566 = vst [vmem:[#allocation2 + $0x10] sm:$0xff] %v2558_v51  ;;  %v2335_v53 = vpop.f32.mrb[4].mxu1 }
 0x23e   : > { %2567 = vst [vmem:[#allocation2 + $0x18] sm:$0xff] %v2559_v52  ;;  %v2547_v55 = vpop.f32.mrb[4].mxu0  ;;  %v2337_v57 = vpop.f32.mrb[5].mxu1 }
 0x23f   : > { %v3087_v56 = vadd.f32 %v2547_v55, %v2335_v53  ;;  %v2549_v59 = vpop.f32.mrb[5].mxu0  ;;  %v2339_v61 = vpop.f32.mrb[6].mxu1 }
 0x240   : > { %v3088_v60 = vadd.f32 %v2549_v59, %v2337_v57  ;;  %v2551_v63 = vpop.f32.mrb[6].mxu0  ;;  %v2341_v2 = vpop.f32.mrb[7].mxu1  ;;  %2575 = sbr.rel (%p3078_p7) target bundleno = 593 (0x251), region = 67 }
 0x241   : > { %v2560_v0 = vadd.f32 %v3087_v56, %v400_v54  ;;  %v3089_v1 = vadd.f32 %v2551_v63, %v2339_v61  ;;  %v2553_v4 = vpop.f32.mrb[7].mxu0 }
 0x242   : > { %v2561_v5 = vadd.f32 %v3088_v60, %v401_v58  ;;  %v3090_v6 = vadd.f32 %v2553_v4, %v2341_v2  ;;  %v2576_v13 = vld [vmem:[#allocation2] sm:$0xff] (!%p3078_p7) }
 0x243   : > { %2568 = vst [vmem:[#allocation2 + $0x20] sm:$0xff] %v2560_v0  ;;  %v2562_v7 = vadd.f32 %v3089_v1, %v402_v62  ;;  %v2577_v18 = vld [vmem:[#allocation2 + $0x8] sm:$0xff] (!%p3078_p7)  ;;  %v2596_v24 = vadd.f32 (!%p3078_p7), %v2589_v11, %v2576_v13 }
 0x244   : > { %2569 = vst [vmem:[#allocation2 + $0x28] sm:$0xff] %v2561_v5  ;;  %v2563_v8 = vadd.f32 %v3090_v6, %v403_v3  ;;  %v2578_v20 = vld [vmem:[#allocation2 + $0x10] sm:$0xff] (!%p3078_p7)  ;;  %v2597_v26 = vadd.f32 (!%p3078_p7), %v2593_v14, %v2577_v18 }
 0x245   : > { %2570 = vst [vmem:[#allocation2 + $0x30] sm:$0xff] %v2562_v7  ;;  %v2579_v21 = vld [vmem:[#allocation2 + $0x18] sm:$0xff] (!%p3078_p7)  ;;  %v2598_v27 = vadd.f32 (!%p3078_p7), %v2589_v11, %v2578_v20  ;;  %2604 = vst [vmem:[%s3907_s9] sm:$0xff] (!%p3078_p7), %v2596_v24 }
 0x246   : > { %2571 = vst [vmem:[#allocation2 + $0x38] sm:$0xff] %v2563_v8  ;;  %v2599_v31 = vadd.f32 (!%p3078_p7), %v2593_v14, %v2579_v21  ;;  %2605 = vst [vmem:[%s3907_s9 + $0x8] sm:$0xff] (!%p3078_p7), %v2597_v26 }
 0x247   : > { %2606 = vst [vmem:[%s3907_s9 + $0x10] sm:$0xff] %v2598_v27 }
 0x248   : > { %2607 = vst [vmem:[%s3907_s9 + $0x18] sm:$0xff] %v2599_v31 }
 0x24a   : > { %v2580_v22 = vld [vmem:[#allocation2 + $0x20] sm:$0xff] }
 0x24b   : > { %v2581_v15 = vld [vmem:[#allocation2 + $0x28] sm:$0xff]  ;;  %v2600_v32 = vadd.f32 %v2589_v11, %v2580_v22 }
 0x24c   : > { %v2582_v16 = vld [vmem:[#allocation2 + $0x30] sm:$0xff]  ;;  %v2601_v33 = vadd.f32 %v2593_v14, %v2581_v15 }
 0x24d   : > { %v2583_v23 = vld [vmem:[#allocation2 + $0x38] sm:$0xff]  ;;  %v2602_v34 = vadd.f32 %v2589_v11, %v2582_v16  ;;  %2608 = vst [vmem:[%s3907_s9 + $0x20] sm:$0xff] %v2600_v32 }
 0x24e   : > { %v2603_v35 = vadd.f32 %v2593_v14, %v2583_v23  ;;  %2609 = vst [vmem:[%s3907_s9 + $0x28] sm:$0xff] %v2601_v33 }
 0x24f   : > { %2610 = vst [vmem:[%s3907_s9 + $0x30] sm:$0xff] %v2602_v34 }
 0x250   : > { %2611 = vst [vmem:[%s3907_s9 + $0x38] sm:$0xff] %v2603_v35 }
 0x251 PF: > { %s16_s19 = sadd.s32 1, %s3688_s19   ;;  %s4288_s12 = smov %s3664_s13 }
 0x252   : > { %p13_p4 = scmp.ge.s32.totalorder %s16_s19, 14   ;;  %s4289_s13 = smov %s3668_s14 }
 0x253   : > { %s4290_s14 = smov %s3778_s29  ;;  %s4291_s15 = smov %s3680_s17 }
 0x254   : > { %s4292_s16 = smov %s3684_s18  ;;  %s4293_s17 = smov %s4296_s20 }
 0x255   : > { %s4294_s18 = smov %s4300_s21  ;;  %15 = sbr.rel (!%p13_p4) target bundleno = 5 (0x5), region = 114 }
 0x25c   :  { %2653 = vsyncpa [#allocation5], 1 }
 0x25d   :  { %2655 = vsyncpa [#allocation5 + $0x1], 1 }

// kernel: pixel_decoder_forward.6
= control target key start
LH: loop header
LB: loop body
LE: loop exit
PB: predicated region body
PF: predicated region fallthrough
CT: control target
= control target key end

     0   :  { %s3666_s12 = smov 0   ;;  %s3668_s13 = smov 0   ;;  %s4270_s0 = inlined_call_operand.vmem [shape: bf16[4,128,3072], index: 0, kind: input, shape index: {}]   ;;  %s4271_s1 = inlined_call_operand.vmem [shape: bf16[4,3072,128], index: 1, kind: input, shape index: {}]   ;;  %s4272_s2 = inlined_call_operand.vmem [shape: f32[1,128], index: 2, kind: input, shape index: {}]   ;;  %s4273_s3 = inlined_call_operand.vmem [shape: f32[4,128,128], index: 3, kind: output, shape index: {}]  }
   0x1   :  { %s3670_s14 = smov 0   ;;  %s3672_s15 = smov 0  }
   0x2   :  { %s3674_s16 = smov 0   ;;  %s3676_s17 = smov 0  }
   0x3   :  { %s3678_s18 = smov 0  }
   0x4 LB: > { %s28_s19 = sadd.s32 1, %s3635_s16  ;;  %s39_s20 = sadd.s32 1, %s3639_s17  ;;  %s3643_s18 = sphi %s3678_s18, %s13_s18   ;;  %s3639_s17 = sphi %s3676_s17, %s4279_s17   ;;  %s3635_s16 = sphi %s3674_s16, %s4278_s16   ;;  %s3631_s15 = sphi %s3672_s15, %s4277_s15   ;;  %s3627_s14 = sphi %s3670_s14, %s4276_s14   ;;  %s3623_s13 = sphi %s3668_s13, %s4275_s13   ;;  %s3619_s12 = sphi %s3666_s12, %s4274_s12  }
   0x5   : > { %p29_p0 = scmp.ge.s32.totalorder %s28_s19, 2  ;;  %p57_p1 = scmp.ne.s32.totalorder %s3623_s13, %s3619_s12 }
   0x6   : > { %p58_p2 = scmp.eq.s32.totalorder %s3643_s18, 0  ;;  %s50_s24 = sadd.s32 1, %s3623_s13 }
   0x7   : > { %s4281_s19 = smov (%p29_p0, %s28_s19), 0  ;;  %s4283_s20 = smov (!%p29_p0, %s39_s20), %s3639_s17 }
   0x8   : > { %p59_p3 = por %p58_p2, %p57_p1  ;;  %p41_p4 = scmp.ge.s32.totalorder %s4283_s20, 4 }
   0x9   : > { %s46_s21 = ssub.s32 %s3635_s16, %s4281_s19  ;;  %p2700_p6 = scmp.ge.s32.totalorder %s3643_s18, 8 }
   0xa   : > { %s4285_s20 = smov (%p41_p4, %s4283_s20), 0 }
   0xb   : > { %s43_s22 = ssub.s32 %s3639_s17, %s4285_s20  ;;  %175 = sbr.rel (%p2700_p6) target bundleno = 75 (0x4b), region = 20 }
   0xc   : > { %s47_s23 = sor.u32 %s46_s21, %s43_s22 }
   0xd   : > { %p48_p5 = scmp.eq.s32.totalorder %s47_s23, 0 }
   0xf   : > { %s3717_s25 = scalar_select %p48_p5, %s3623_s13, %s50_s24  }
  0x12   : > { %178 = sbr.rel (!%p59_p3) target bundleno = 75 (0x4b), region = 24  ;;  %s180_s26 = sand.u32 (%p59_p3), 1, %s3623_s13  }
  0x13   : > { %s184_s27 = smul.u32 (%p59_p3), 12, %s3635_s16 }
  0x14   : > { %s3288_s28 = smul.u32 (%p59_p3), 768, %s180_s26 }
  0x15   : > { %s3289_s29 = smul.u32 (%p59_p3), 384, %s3639_s17 }
  0x16   : > { %s3731_s8 = scalar_lea.vmem (%p59_p3), [#allocation3], %s3288_s28 }
  0x17   : > { %s188_s30 = sadd.s32 (%p59_p3), %s3289_s29, %s184_s27 }
  0x18   : > { %s2701_s4 = sshll.u32 (%p59_p3), %s188_s30, 2 }
  0x19   : > { %s3726_s7 = scalar_lea.vmem %s4270_s0, %s2701_s4 }
  0x1a   : > { %v203_v0 = vld [vmem:[%s3726_s7] sm:$0xff]  ;;  %v205_v1 = vld [vmem:[%s3726_s7 + $0x8] sm:$0xff]  ;;  %v207_v2 = vld [vmem:[%s3726_s7 + $0x10] sm:$0xff] }
  0x1b   : > { %204 = vst [vmem:[%s3731_s8] sm:$0xff] %v203_v0  ;;  %206 = vst [vmem:[%s3731_s8 + $0x8] sm:$0xff] %v205_v1  ;;  %v209_v3 = vld [vmem:[%s3726_s7 + $0x18] sm:$0xff]  ;;  %v211_v4 = vld [vmem:[%s3726_s7 + $0x20] sm:$0xff] }
  0x1c   : > { %208 = vst [vmem:[%s3731_s8 + $0x10] sm:$0xff] %v207_v2  ;;  %v213_v5 = vld [vmem:[%s3726_s7 + $0x28] sm:$0xff]  ;;  %210 = vst [vmem:[%s3731_s8 + $0x18] sm:$0xff] %v209_v3  ;;  %v215_v6 = vld [vmem:[%s3726_s7 + $0x60] sm:$0xff] }
  0x1d   : > { %212 = vst [vmem:[%s3731_s8 + $0x20] sm:$0xff] %v211_v4  ;;  %214 = vst [vmem:[%s3731_s8 + $0x28] sm:$0xff] %v213_v5  ;;  %v217_v7 = vld [vmem:[%s3726_s7 + $0x68] sm:$0xff]  ;;  %v219_v8 = vld [vmem:[%s3726_s7 + $0x70] sm:$0xff] }
  0x1e   : > { %216 = vst [vmem:[%s3731_s8 + $0x30] sm:$0xff] %v215_v6  ;;  %218 = vst [vmem:[%s3731_s8 + $0x38] sm:$0xff] %v217_v7  ;;  %v221_v9 = vld [vmem:[%s3726_s7 + $0x78] sm:$0xff]  ;;  %v223_v10 = vld [vmem:[%s3726_s7 + $0x80] sm:$0xff] }
  0x1f   : > { %220 = vst [vmem:[%s3731_s8 + $0x40] sm:$0xff] %v219_v8  ;;  %v225_v11 = vld [vmem:[%s3726_s7 + $0x88] sm:$0xff]  ;;  %222 = vst [vmem:[%s3731_s8 + $0x48] sm:$0xff] %v221_v9  ;;  %v227_v12 = vld [vmem:[%s3726_s7 + $0xc0] sm:$0xff] }
  0x20   : > { %224 = vst [vmem:[%s3731_s8 + $0x50] sm:$0xff] %v223_v10  ;;  %226 = vst [vmem:[%s3731_s8 + $0x58] sm:$0xff] %v225_v11  ;;  %v229_v13 = vld [vmem:[%s3726_s7 + $0xc8] sm:$0xff]  ;;  %v231_v14 = vld [vmem:[%s3726_s7 + $0xd0] sm:$0xff] }
  0x21   : > { %228 = vst [vmem:[%s3731_s8 + $0x60] sm:$0xff] %v227_v12  ;;  %230 = vst [vmem:[%s3731_s8 + $0x68] sm:$0xff] %v229_v13  ;;  %v233_v15 = vld [vmem:[%s3726_s7 + $0xd8] sm:$0xff]  ;;  %v235_v16 = vld [vmem:[%s3726_s7 + $0xe0] sm:$0xff] }
  0x22   : > { %232 = vst [vmem:[%s3731_s8 + $0x70] sm:$0xff] %v231_v14  ;;  %v237_v17 = vld [vmem:[%s3726_s7 + $0xe8] sm:$0xff]  ;;  %234 = vst [vmem:[%s3731_s8 + $0x78] sm:$0xff] %v233_v15  ;;  %v239_v18 = vld [vmem:[%s3726_s7 + $0x120] sm:$0xff] }
  0x23   : > { %236 = vst [vmem:[%s3731_s8 + $0x80] sm:$0xff] %v235_v16  ;;  %238 = vst [vmem:[%s3731_s8 + $0x88] sm:$0xff] %v237_v17  ;;  %v241_v19 = vld [vmem:[%s3726_s7 + $0x128] sm:$0xff]  ;;  %v243_v20 = vld [vmem:[%s3726_s7 + $0x130] sm:$0xff] }
  0x24   : > { %240 = vst [vmem:[%s3731_s8 + $0x90] sm:$0xff] %v239_v18  ;;  %242 = vst [vmem:[%s3731_s8 + $0x98] sm:$0xff] %v241_v19  ;;  %v245_v21 = vld [vmem:[%s3726_s7 + $0x138] sm:$0xff]  ;;  %v247_v22 = vld [vmem:[%s3726_s7 + $0x140] sm:$0xff] }
  0x25   : > { %244 = vst [vmem:[%s3731_s8 + $0xa0] sm:$0xff] %v243_v20  ;;  %v249_v23 = vld [vmem:[%s3726_s7 + $0x148] sm:$0xff]  ;;  %246 = vst [vmem:[%s3731_s8 + $0xa8] sm:$0xff] %v245_v21  ;;  %v251_v24 = vld [vmem:[%s3726_s7 + $0x180] sm:$0xff] }
  0x26   : > { %248 = vst [vmem:[%s3731_s8 + $0xb0] sm:$0xff] %v247_v22  ;;  %250 = vst [vmem:[%s3731_s8 + $0xb8] sm:$0xff] %v249_v23  ;;  %v253_v25 = vld [vmem:[%s3726_s7 + $0x188] sm:$0xff]  ;;  %v255_v26 = vld [vmem:[%s3726_s7 + $0x190] sm:$0xff] }
  0x27   : > { %252 = vst [vmem:[%s3731_s8 + $0xc0] sm:$0xff] %v251_v24  ;;  %254 = vst [vmem:[%s3731_s8 + $0xc8] sm:$0xff] %v253_v25  ;;  %v257_v27 = vld [vmem:[%s3726_s7 + $0x198] sm:$0xff]  ;;  %v259_v28 = vld [vmem:[%s3726_s7 + $0x1a0] sm:$0xff] }
  0x28   : > { %256 = vst [vmem:[%s3731_s8 + $0xd0] sm:$0xff] %v255_v26  ;;  %v261_v29 = vld [vmem:[%s3726_s7 + $0x1a8] sm:$0xff]  ;;  %258 = vst [vmem:[%s3731_s8 + $0xd8] sm:$0xff] %v257_v27  ;;  %v263_v30 = vld [vmem:[%s3726_s7 + $0x1e0] sm:$0xff] }
  0x29   : > { %260 = vst [vmem:[%s3731_s8 + $0xe0] sm:$0xff] %v259_v28  ;;  %262 = vst [vmem:[%s3731_s8 + $0xe8] sm:$0xff] %v261_v29  ;;  %v265_v31 = vld [vmem:[%s3726_s7 + $0x1e8] sm:$0xff]  ;;  %v267_v32 = vld [vmem:[%s3726_s7 + $0x1f0] sm:$0xff] }
  0x2a   : > { %264 = vst [vmem:[%s3731_s8 + $0xf0] sm:$0xff] %v263_v30  ;;  %266 = vst [vmem:[%s3731_s8 + $0xf8] sm:$0xff] %v265_v31  ;;  %v269_v33 = vld [vmem:[%s3726_s7 + $0x1f8] sm:$0xff]  ;;  %v271_v34 = vld [vmem:[%s3726_s7 + $0x200] sm:$0xff] }
  0x2b   : > { %268 = vst [vmem:[%s3731_s8 + $0x100] sm:$0xff] %v267_v32  ;;  %v273_v35 = vld [vmem:[%s3726_s7 + $0x208] sm:$0xff]  ;;  %270 = vst [vmem:[%s3731_s8 + $0x108] sm:$0xff] %v269_v33  ;;  %v275_v36 = vld [vmem:[%s3726_s7 + $0x240] sm:$0xff] }
  0x2c   : > { %272 = vst [vmem:[%s3731_s8 + $0x110] sm:$0xff] %v271_v34  ;;  %274 = vst [vmem:[%s3731_s8 + $0x118] sm:$0xff] %v273_v35  ;;  %v277_v37 = vld [vmem:[%s3726_s7 + $0x248] sm:$0xff]  ;;  %v279_v38 = vld [vmem:[%s3726_s7 + $0x250] sm:$0xff] }
  0x2d   : > { %276 = vst [vmem:[%s3731_s8 + $0x120] sm:$0xff] %v275_v36  ;;  %278 = vst [vmem:[%s3731_s8 + $0x128] sm:$0xff] %v277_v37  ;;  %v281_v39 = vld [vmem:[%s3726_s7 + $0x258] sm:$0xff]  ;;  %v283_v40 = vld [vmem:[%s3726_s7 + $0x260] sm:$0xff] }
  0x2e   : > { %280 = vst [vmem:[%s3731_s8 + $0x130] sm:$0xff] %v279_v38  ;;  %v285_v41 = vld [vmem:[%s3726_s7 + $0x268] sm:$0xff]  ;;  %282 = vst [vmem:[%s3731_s8 + $0x138] sm:$0xff] %v281_v39  ;;  %v287_v42 = vld [vmem:[%s3726_s7 + $0x2a0] sm:$0xff] }
  0x2f   : > { %284 = vst [vmem:[%s3731_s8 + $0x140] sm:$0xff] %v283_v40  ;;  %286 = vst [vmem:[%s3731_s8 + $0x148] sm:$0xff] %v285_v41  ;;  %v289_v43 = vld [vmem:[%s3726_s7 + $0x2a8] sm:$0xff]  ;;  %v291_v44 = vld [vmem:[%s3726_s7 + $0x2b0] sm:$0xff] }
  0x30   : > { %288 = vst [vmem:[%s3731_s8 + $0x150] sm:$0xff] %v287_v42  ;;  %290 = vst [vmem:[%s3731_s8 + $0x158] sm:$0xff] %v289_v43  ;;  %v293_v45 = vld [vmem:[%s3726_s7 + $0x2b8] sm:$0xff]  ;;  %v295_v46 = vld [vmem:[%s3726_s7 + $0x2c0] sm:$0xff] }
  0x31   : > { %292 = vst [vmem:[%s3731_s8 + $0x160] sm:$0xff] %v291_v44  ;;  %v297_v47 = vld [vmem:[%s3726_s7 + $0x2c8] sm:$0xff]  ;;  %294 = vst [vmem:[%s3731_s8 + $0x168] sm:$0xff] %v293_v45  ;;  %v299_v48 = vld [vmem:[%s3726_s7 + $0x300] sm:$0xff] }
  0x32   : > { %296 = vst [vmem:[%s3731_s8 + $0x170] sm:$0xff] %v295_v46  ;;  %298 = vst [vmem:[%s3731_s8 + $0x178] sm:$0xff] %v297_v47  ;;  %v301_v49 = vld [vmem:[%s3726_s7 + $0x308] sm:$0xff]  ;;  %v303_v50 = vld [vmem:[%s3726_s7 + $0x310] sm:$0xff] }
  0x33   : > { %300 = vst [vmem:[%s3731_s8 + $0x180] sm:$0xff] %v299_v48  ;;  %302 = vst [vmem:[%s3731_s8 + $0x188] sm:$0xff] %v301_v49  ;;  %v305_v51 = vld [vmem:[%s3726_s7 + $0x318] sm:$0xff]  ;;  %v307_v52 = vld [vmem:[%s3726_s7 + $0x320] sm:$0xff] }
  0x34   : > { %304 = vst [vmem:[%s3731_s8 + $0x190] sm:$0xff] %v303_v50  ;;  %v309_v53 = vld [vmem:[%s3726_s7 + $0x328] sm:$0xff]  ;;  %306 = vst [vmem:[%s3731_s8 + $0x198] sm:$0xff] %v305_v51  ;;  %v311_v54 = vld [vmem:[%s3726_s7 + $0x360] sm:$0xff] }
  0x35   : > { %308 = vst [vmem:[%s3731_s8 + $0x1a0] sm:$0xff] %v307_v52  ;;  %310 = vst [vmem:[%s3731_s8 + $0x1a8] sm:$0xff] %v309_v53  ;;  %v313_v55 = vld [vmem:[%s3726_s7 + $0x368] sm:$0xff]  ;;  %v315_v56 = vld [vmem:[%s3726_s7 + $0x370] sm:$0xff] }
  0x36   : > { %312 = vst [vmem:[%s3731_s8 + $0x1b0] sm:$0xff] %v311_v54  ;;  %314 = vst [vmem:[%s3731_s8 + $0x1b8] sm:$0xff] %v313_v55  ;;  %v317_v57 = vld [vmem:[%s3726_s7 + $0x378] sm:$0xff]  ;;  %v319_v58 = vld [vmem:[%s3726_s7 + $0x380] sm:$0xff] }
  0x37   : > { %316 = vst [vmem:[%s3731_s8 + $0x1c0] sm:$0xff] %v315_v56  ;;  %v321_v59 = vld [vmem:[%s3726_s7 + $0x388] sm:$0xff]  ;;  %318 = vst [vmem:[%s3731_s8 + $0x1c8] sm:$0xff] %v317_v57  ;;  %v323_v60 = vld [vmem:[%s3726_s7 + $0x3c0] sm:$0xff] }
  0x38   : > { %320 = vst [vmem:[%s3731_s8 + $0x1d0] sm:$0xff] %v319_v58  ;;  %322 = vst [vmem:[%s3731_s8 + $0x1d8] sm:$0xff] %v321_v59  ;;  %v325_v61 = vld [vmem:[%s3726_s7 + $0x3c8] sm:$0xff]  ;;  %v327_v62 = vld [vmem:[%s3726_s7 + $0x3d0] sm:$0xff] }
  0x39   : > { %324 = vst [vmem:[%s3731_s8 + $0x1e0] sm:$0xff] %v323_v60  ;;  %326 = vst [vmem:[%s3731_s8 + $0x1e8] sm:$0xff] %v325_v61  ;;  %v329_v63 = vld [vmem:[%s3726_s7 + $0x3d8] sm:$0xff]  ;;  %v331_v0 = vld [vmem:[%s3726_s7 + $0x3e0] sm:$0xff] }
  0x3a   : > { %328 = vst [vmem:[%s3731_s8 + $0x1f0] sm:$0xff] %v327_v62  ;;  %v333_v1 = vld [vmem:[%s3726_s7 + $0x3e8] sm:$0xff]  ;;  %330 = vst [vmem:[%s3731_s8 + $0x1f8] sm:$0xff] %v329_v63  ;;  %v335_v2 = vld [vmem:[%s3726_s7 + $0x420] sm:$0xff] }
  0x3b   : > { %332 = vst [vmem:[%s3731_s8 + $0x200] sm:$0xff] %v331_v0  ;;  %334 = vst [vmem:[%s3731_s8 + $0x208] sm:$0xff] %v333_v1  ;;  %v337_v3 = vld [vmem:[%s3726_s7 + $0x428] sm:$0xff]  ;;  %v339_v4 = vld [vmem:[%s3726_s7 + $0x430] sm:$0xff] }
  0x3c   : > { %336 = vst [vmem:[%s3731_s8 + $0x210] sm:$0xff] %v335_v2  ;;  %338 = vst [vmem:[%s3731_s8 + $0x218] sm:$0xff] %v337_v3  ;;  %v341_v5 = vld [vmem:[%s3726_s7 + $0x438] sm:$0xff]  ;;  %v343_v6 = vld [vmem:[%s3726_s7 + $0x440] sm:$0xff] }
  0x3d   : > { %340 = vst [vmem:[%s3731_s8 + $0x220] sm:$0xff] %v339_v4  ;;  %v345_v7 = vld [vmem:[%s3726_s7 + $0x448] sm:$0xff]  ;;  %342 = vst [vmem:[%s3731_s8 + $0x228] sm:$0xff] %v341_v5  ;;  %v347_v8 = vld [vmem:[%s3726_s7 + $0x480] sm:$0xff] }
  0x3e   : > { %344 = vst [vmem:[%s3731_s8 + $0x230] sm:$0xff] %v343_v6  ;;  %346 = vst [vmem:[%s3731_s8 + $0x238] sm:$0xff] %v345_v7  ;;  %v349_v9 = vld [vmem:[%s3726_s7 + $0x488] sm:$0xff]  ;;  %v351_v10 = vld [vmem:[%s3726_s7 + $0x490] sm:$0xff] }
  0x3f   : > { %348 = vst [vmem:[%s3731_s8 + $0x240] sm:$0xff] %v347_v8  ;;  %350 = vst [vmem:[%s3731_s8 + $0x248] sm:$0xff] %v349_v9  ;;  %v353_v11 = vld [vmem:[%s3726_s7 + $0x498] sm:$0xff]  ;;  %v355_v12 = vld [vmem:[%s3726_s7 + $0x4a0] sm:$0xff] }
  0x40   : > { %352 = vst [vmem:[%s3731_s8 + $0x250] sm:$0xff] %v351_v10  ;;  %v357_v13 = vld [vmem:[%s3726_s7 + $0x4a8] sm:$0xff]  ;;  %354 = vst [vmem:[%s3731_s8 + $0x258] sm:$0xff] %v353_v11  ;;  %v359_v14 = vld [vmem:[%s3726_s7 + $0x4e0] sm:$0xff] }
  0x41   : > { %356 = vst [vmem:[%s3731_s8 + $0x260] sm:$0xff] %v355_v12  ;;  %358 = vst [vmem:[%s3731_s8 + $0x268] sm:$0xff] %v357_v13  ;;  %v361_v15 = vld [vmem:[%s3726_s7 + $0x4e8] sm:$0xff]  ;;  %v363_v16 = vld [vmem:[%s3726_s7 + $0x4f0] sm:$0xff] }
  0x42   : > { %360 = vst [vmem:[%s3731_s8 + $0x270] sm:$0xff] %v359_v14  ;;  %362 = vst [vmem:[%s3731_s8 + $0x278] sm:$0xff] %v361_v15  ;;  %v365_v17 = vld [vmem:[%s3726_s7 + $0x4f8] sm:$0xff]  ;;  %v367_v18 = vld [vmem:[%s3726_s7 + $0x500] sm:$0xff] }
  0x43   : > { %364 = vst [vmem:[%s3731_s8 + $0x280] sm:$0xff] %v363_v16  ;;  %v369_v19 = vld [vmem:[%s3726_s7 + $0x508] sm:$0xff]  ;;  %366 = vst [vmem:[%s3731_s8 + $0x288] sm:$0xff] %v365_v17  ;;  %v371_v20 = vld [vmem:[%s3726_s7 + $0x540] sm:$0xff] }
  0x44   : > { %368 = vst [vmem:[%s3731_s8 + $0x290] sm:$0xff] %v367_v18  ;;  %370 = vst [vmem:[%s3731_s8 + $0x298] sm:$0xff] %v369_v19  ;;  %v373_v21 = vld [vmem:[%s3726_s7 + $0x548] sm:$0xff]  ;;  %v375_v22 = vld [vmem:[%s3726_s7 + $0x550] sm:$0xff] }
  0x45   : > { %372 = vst [vmem:[%s3731_s8 + $0x2a0] sm:$0xff] %v371_v20  ;;  %374 = vst [vmem:[%s3731_s8 + $0x2a8] sm:$0xff] %v373_v21  ;;  %v377_v23 = vld [vmem:[%s3726_s7 + $0x558] sm:$0xff]  ;;  %v379_v24 = vld [vmem:[%s3726_s7 + $0x560] sm:$0xff] }
  0x46   : > { %376 = vst [vmem:[%s3731_s8 + $0x2b0] sm:$0xff] %v375_v22  ;;  %v381_v25 = vld [vmem:[%s3726_s7 + $0x568] sm:$0xff]  ;;  %378 = vst [vmem:[%s3731_s8 + $0x2b8] sm:$0xff] %v377_v23  ;;  %v383_v26 = vld [vmem:[%s3726_s7 + $0x5a0] sm:$0xff] }
  0x47   : > { %380 = vst [vmem:[%s3731_s8 + $0x2c0] sm:$0xff] %v379_v24  ;;  %382 = vst [vmem:[%s3731_s8 + $0x2c8] sm:$0xff] %v381_v25  ;;  %v385_v27 = vld [vmem:[%s3726_s7 + $0x5a8] sm:$0xff]  ;;  %v387_v28 = vld [vmem:[%s3726_s7 + $0x5b0] sm:$0xff] }
  0x48   : > { %384 = vst [vmem:[%s3731_s8 + $0x2d0] sm:$0xff] %v383_v26  ;;  %386 = vst [vmem:[%s3731_s8 + $0x2d8] sm:$0xff] %v385_v27  ;;  %v389_v29 = vld [vmem:[%s3726_s7 + $0x5b8] sm:$0xff]  ;;  %v391_v30 = vld [vmem:[%s3726_s7 + $0x5c0] sm:$0xff] }
  0x49   : > { %388 = vst [vmem:[%s3731_s8 + $0x2e0] sm:$0xff] %v387_v28  ;;  %v393_v31 = vld [vmem:[%s3726_s7 + $0x5c8] sm:$0xff]  ;;  %390 = vst [vmem:[%s3731_s8 + $0x2e8] sm:$0xff] %v389_v29 }
  0x4a   : > { %392 = vst [vmem:[%s3731_s8 + $0x2f0] sm:$0xff] %v391_v30  ;;  %394 = vst [vmem:[%s3731_s8 + $0x2f8] sm:$0xff] %v393_v31 }
  0x4b PF: > { %p2702_p7 = scmp.ge.s32.totalorder %s3643_s18, 1  ;;  %p415_p8 = scmp.lt.s32.totalorder %s3643_s18, 9 }
  0x4d   : > { %p416_p9 = pnand %p2702_p7, %p415_p8 }
  0x4e   : > { %s422_s9 = sand.u32 (!%p416_p9), 1, %s3619_s12   ;;  %s469_s10 = smul.u32 (!%p416_p9), 192, %s3627_s14 }
  0x4f   : > { %419 = sbr.rel (%p416_p9) target bundleno = 548 (0x224), region = 51  ;;  %p470_p10 = scmp.lt.s32.totalorder (!%p416_p9), %s3631_s15, 3 }
  0x50   : > { %s3290_s11 = smul.u32 (!%p416_p9), 768, %s422_s9  ;;  %p472_p11 = scmp.lt.s32.totalorder (!%p416_p9), %s469_s10, 383 }
  0x51   : > { %p2706_p12 = scmp.ne.s32.totalorder (!%p416_p9), %s3627_s14, 0 }
  0x52   : > { %s3938_s12 = scalar_lea.vmem (!%p416_p9), [#allocation3], %s3290_s11 }
  0x56   : > { %s4287_s15 = smov (!%p470_p10, %s3631_s15), 3  ;;  %s4289_s10 = smov (!%p472_p11, %s469_s10), 383 }
  0x57   : > { %s3291_s21 = smul.u32 384, %s4287_s15  ;;  %s2903_s22 = sshll.u32 %s4287_s15, 7  ;;  %v3645_v32 = vmov (!%p2706_p12), 0.0  }
  0x58   : > { %s3931_s26 = scalar_lea.vmem %s4273_s3, %s2903_s22  ;;  %502 = sbr.rel (%p2706_p12) target bundleno = 96 (0x60), region = 59  ;;  %503 = vst [vmem:[#allocation2] sm:$0xff] (!%p2706_p12), %v3645_v32  ;;  %504 = vst [vmem:[#allocation2 + $0x8] sm:$0xff] (!%p2706_p12), %v3645_v32 }
  0x59   : > { %s478_s27 = sadd.s32 %s3291_s21, %s4289_s10  ;;  %505 = vst [vmem:[#allocation2 + $0x10] sm:$0xff] (!%p2706_p12), %v3645_v32  ;;  %506 = vst [vmem:[#allocation2 + $0x18] sm:$0xff] (!%p2706_p12), %v3645_v32 }
  0x5a   : > { %s2703_s28 = sshll.u32 %s478_s27, 2  ;;  %507 = vst [vmem:[#allocation2 + $0x20] sm:$0xff] (!%p2706_p12), %v3645_v32  ;;  %508 = vst [vmem:[#allocation2 + $0x28] sm:$0xff] (!%p2706_p12), %v3645_v32 }
  0x5b   : > { %s3936_s4 = scalar_lea.vmem %s4271_s1, %s2703_s28  ;;  %509 = vst [vmem:[#allocation2 + $0x30] sm:$0xff] (!%p2706_p12), %v3645_v32  ;;  %510 = vst [vmem:[#allocation2 + $0x38] sm:$0xff] (!%p2706_p12), %v3645_v32 }
  0x5c   : > { %511 = vst [vmem:[#allocation2 + $0x40] sm:$0xff] (!%p2706_p12), %v3645_v32  ;;  %512 = vst [vmem:[#allocation2 + $0x48] sm:$0xff] (!%p2706_p12), %v3645_v32 }
  0x5d   : > { %513 = vst [vmem:[#allocation2 + $0x50] sm:$0xff] (!%p2706_p12), %v3645_v32  ;;  %514 = vst [vmem:[#allocation2 + $0x58] sm:$0xff] (!%p2706_p12), %v3645_v32 }
  0x5e   : > { %515 = vst [vmem:[#allocation2 + $0x60] sm:$0xff] (!%p2706_p12), %v3645_v32  ;;  %516 = vst [vmem:[#allocation2 + $0x68] sm:$0xff] (!%p2706_p12), %v3645_v32 }
  0x5f   : > { %517 = vst [vmem:[#allocation2 + $0x70] sm:$0xff] %v3645_v32  ;;  %518 = vst [vmem:[#allocation2 + $0x78] sm:$0xff] %v3645_v32 }
  0x60 PF: > { %v3349_v33 = vld [vmem:[%s3936_s4 + $0x40] sm:$0xff]   ;;  %v3353_v37 = vld [vmem:[%s3936_s4 + $0x48] sm:$0xff]   ;;  %v3357_v41 = vld [vmem:[%s3936_s4 + $0x50] sm:$0xff]   ;;  %p2899_p13 = scmp.ne.s32.totalorder %s3627_s14, 1 }
  0x61   : > { %v3350_v34 = vld [vmem:[%s3936_s4 + $0xc0] sm:$0xff]   ;;  %2904 = vmatprep.subr.bf16.mxu0 %v3349_v33  ;;  %v3354_v38 = vld [vmem:[%s3936_s4 + $0xc8] sm:$0xff]   ;;  %v3358_v42 = vld [vmem:[%s3936_s4 + $0xd0] sm:$0xff]  }
  0x62   : > { %v3351_v35 = vld [vmem:[%s3936_s4] sm:$0xff]   ;;  %2968 = vmatprep.subr.bf16.mxu1 %v3350_v34  ;;  %v3355_v39 = vld [vmem:[%s3936_s4 + $0x8] sm:$0xff]   ;;  %v3359_v43 = vld [vmem:[%s3936_s4 + $0x10] sm:$0xff]  }
  0x63   : > { %v3352_v36 = vld [vmem:[%s3936_s4 + $0x80] sm:$0xff]   ;;  %2905 = vmatpush3.bf16.msra.mxu0 %v3351_v35  ;;  %v3356_v40 = vld [vmem:[%s3936_s4 + $0x88] sm:$0xff]   ;;  %v3360_v44 = vld [vmem:[%s3936_s4 + $0x90] sm:$0xff]  }
  0x64   : > { %2969 = vmatpush3.bf16.msra.mxu1 %v3352_v36  ;;  %2906 = vmatprep.subr.bf16.mxu0 %v3353_v37  ;;  %v3361_v45 = vld [vmem:[%s3936_s4 + $0x58] sm:$0xff]   ;;  %v3365_v49 = vld [vmem:[%s3936_s4 + $0x60] sm:$0xff]   ;;  %v3369_v53 = vld [vmem:[%s3936_s4 + $0x68] sm:$0xff]  }
  0x65   : > { %2970 = vmatprep.subr.bf16.mxu1 %v3354_v38  ;;  %v3362_v46 = vld [vmem:[%s3936_s4 + $0xd8] sm:$0xff]   ;;  %v3366_v50 = vld [vmem:[%s3936_s4 + $0xe0] sm:$0xff]   ;;  %v3370_v54 = vld [vmem:[%s3936_s4 + $0xe8] sm:$0xff]  }
  0x66   : > { %v3363_v47 = vld [vmem:[%s3936_s4 + $0x18] sm:$0xff]   ;;  %v3367_v51 = vld [vmem:[%s3936_s4 + $0x20] sm:$0xff]   ;;  %v3371_v55 = vld [vmem:[%s3936_s4 + $0x28] sm:$0xff]  }
  0x67   : > { %2907 = vmatpush3.bf16.msra.mxu0 %v3355_v39  ;;  %v3364_v48 = vld [vmem:[%s3936_s4 + $0x98] sm:$0xff]   ;;  %v3368_v52 = vld [vmem:[%s3936_s4 + $0xa0] sm:$0xff]   ;;  %v3372_v56 = vld [vmem:[%s3936_s4 + $0xa8] sm:$0xff]  }
  0x68   : > { %2971 = vmatpush3.bf16.msra.mxu1 %v3356_v40  ;;  %2908 = vmatprep.subr.bf16.mxu0 %v3357_v41  ;;  %v3373_v57 = vld [vmem:[%s3936_s4 + $0x70] sm:$0xff]   ;;  %v3377_v61 = vld [vmem:[%s3936_s4 + $0x78] sm:$0xff]   ;;  %v3387_v5 = vld [vmem:[%s3936_s4 + $0x140] sm:$0xff]  }
  0x69   : > { %2972 = vmatprep.subr.bf16.mxu1 %v3358_v42  ;;  %v3374_v58 = vld [vmem:[%s3936_s4 + $0xf0] sm:$0xff]   ;;  %v3378_v62 = vld [vmem:[%s3936_s4 + $0xf8] sm:$0xff]   ;;  %v3388_v6 = vld [vmem:[%s3936_s4 + $0x100] sm:$0xff]  }
  0x6a   : > { %v3375_v59 = vld [vmem:[%s3936_s4 + $0x30] sm:$0xff]   ;;  %v3379_v63 = vld [vmem:[%s3936_s4 + $0x38] sm:$0xff]   ;;  %v3389_v7 = vld [vmem:[%s3936_s4 + $0x1c0] sm:$0xff]  }
  0x6b   : > { %2909 = vmatpush3.bf16.msra.mxu0 %v3359_v43  ;;  %v3376_v60 = vld [vmem:[%s3936_s4 + $0xb0] sm:$0xff]   ;;  %v3380_v0 = vld [vmem:[%s3936_s4 + $0xb8] sm:$0xff]   ;;  %v3390_v8 = vld [vmem:[%s3936_s4 + $0x180] sm:$0xff]  }
  0x6c   : > { %2973 = vmatpush3.bf16.msra.mxu1 %v3360_v44  ;;  %2910 = vmatprep.subr.bf16.mxu0 %v3361_v45  ;;  %v3381_v1 = vld [vmem:[%s3938_s12] ss:$48 sps:$4 sm:$0xff]   ;;  %v3383_v2 = vld [vmem:[%s3938_s12 + $0x4] ss:$48 sps:$4 sm:$0xff]   ;;  %v3384_v3 = vld [vmem:[%s3938_s12 + $0x8] ss:$48 sps:$4 sm:$0xff]  }
  0x6d   : > { %2974 = vmatprep.subr.bf16.mxu1 %v3362_v46  ;;  %v3386_v4 = vld [vmem:[%s3938_s12 + $0xc] ss:$48 sps:$4 sm:$0xff]   ;;  %1911 = vmatprep.mubr.bf16.mxu0 %v3383_v2  ;;  %v3391_v9 = vld [vmem:[%s3938_s12 + $0x64] ss:$48 sps:$4 sm:$0xff]   ;;  %v3395_v11 = vld [vmem:[%s3938_s12 + $0x60] ss:$48 sps:$4 sm:$0xff]  }
  0x6e   : > { %2008 = vmatprep.mubr.bf16.mxu1 %v3386_v4  ;;  %v3393_v10 = vld [vmem:[%s3938_s12 + $0x6c] ss:$48 sps:$4 sm:$0xff]   ;;  %v3396_v12 = vld [vmem:[%s3938_s12 + $0x68] ss:$48 sps:$4 sm:$0xff]   ;;  %v3401_v17 = vld [vmem:[%s3938_s12 + $0xc4] ss:$48 sps:$4 sm:$0xff]  }
  0x6f   : > { %2911 = vmatpush3.bf16.msra.mxu0 %v3363_v47  ;;  %v3397_v13 = vld [vmem:[%s3936_s4 + $0x148] sm:$0xff]   ;;  %v3405_v19 = vld [vmem:[%s3938_s12 + $0xc0] ss:$48 sps:$4 sm:$0xff]   ;;  %v3411_v25 = vld [vmem:[%s3938_s12 + $0x124] ss:$48 sps:$4 sm:$0xff]  }
  0x70   : > { %2975 = vmatpush3.bf16.msra.mxu1 %v3364_v48  ;;  %2912 = vmatprep.subr.bf16.mxu0 %v3365_v49  ;;  %v3398_v14 = vld [vmem:[%s3936_s4 + $0x108] sm:$0xff]   ;;  %v3407_v21 = vld [vmem:[%s3936_s4 + $0x150] sm:$0xff]   ;;  %v3417_v29 = vld [vmem:[%s3936_s4 + $0x158] sm:$0xff]  }
  0x71   : > { %2976 = vmatprep.subr.bf16.mxu1 %v3366_v50  ;;  %v3399_v15 = vld [vmem:[%s3936_s4 + $0x1c8] sm:$0xff]   ;;  %v3408_v22 = vld [vmem:[%s3936_s4 + $0x110] sm:$0xff]   ;;  %v3418_v30 = vld [vmem:[%s3936_s4 + $0x118] sm:$0xff]  }
  0x72   : > { %v3400_v16 = vld [vmem:[%s3936_s4 + $0x188] sm:$0xff]   ;;  %v3409_v23 = vld [vmem:[%s3936_s4 + $0x1d0] sm:$0xff]   ;;  %v3419_v31 = vld [vmem:[%s3936_s4 + $0x1d8] sm:$0xff]  }
  0x73   : > { %2913 = vmatpush3.bf16.msra.mxu0 %v3367_v51  ;;  %v3403_v18 = vld [vmem:[%s3938_s12 + $0xcc] ss:$48 sps:$4 sm:$0xff]   ;;  %v3406_v20 = vld [vmem:[%s3938_s12 + $0xc8] ss:$48 sps:$4 sm:$0xff]   ;;  %v3410_v24 = vld [vmem:[%s3936_s4 + $0x190] sm:$0xff]  }
  0x74   : > { %2977 = vmatpush3.bf16.msra.mxu1 %v3368_v52  ;;  %2914 = vmatprep.subr.bf16.mxu0 %v3369_v53  ;;  %v3413_v26 = vld [vmem:[%s3938_s12 + $0x12c] ss:$48 sps:$4 sm:$0xff]   ;;  %v3415_v27 = vld [vmem:[%s3938_s12 + $0x120] ss:$48 sps:$4 sm:$0xff]   ;;  %v3416_v28 = vld [vmem:[%s3938_s12 + $0x128] ss:$48 sps:$4 sm:$0xff]  }
  0x75   : > { %2978 = vmatprep.subr.bf16.mxu1 %v3370_v54  ;;  %v3420_v32 = vld [vmem:[%s3936_s4 + $0x198] sm:$0xff]   ;;  %v3421_v33 = vld [vmem:[%s3938_s12 + $0x184] ss:$48 sps:$4 sm:$0xff]   ;;  %v3425_v35 = vld [vmem:[%s3938_s12 + $0x180] ss:$48 sps:$4 sm:$0xff]  }
  0x76   : > { %v3423_v34 = vld [vmem:[%s3938_s12 + $0x18c] ss:$48 sps:$4 sm:$0xff]   ;;  %v3427_v36 = vld [vmem:[%s3936_s4 + $0x160] sm:$0xff]   ;;  %v3426_v37 = vld [vmem:[%s3938_s12 + $0x188] ss:$48 sps:$4 sm:$0xff]  }
  0x77   : > { %2915 = vmatpush3.bf16.msra.mxu0 %v3371_v55  ;;  %v3428_v38 = vld [vmem:[%s3936_s4 + $0x120] sm:$0xff]   ;;  %v3433_v42 = vld [vmem:[%s3938_s12 + $0x1ec] ss:$48 sps:$4 sm:$0xff]   ;;  %v3436_v48 = vld [vmem:[%s3938_s12 + $0x1e8] ss:$48 sps:$4 sm:$0xff]  }
  0x78   : > { %2979 = vmatpush3.bf16.msra.mxu1 %v3372_v56  ;;  %2916 = vmatprep.subr.bf16.mxu0 %v3373_v57  ;;  %v3429_v39 = vld [vmem:[%s3936_s4 + $0x1e0] sm:$0xff]   ;;  %v3437_v43 = vld [vmem:[%s3936_s4 + $0x168] sm:$0xff]   ;;  %v3447_v51 = vld [vmem:[%s3936_s4 + $0x170] sm:$0xff]  }
  0x79   : > { %2980 = vmatprep.subr.bf16.mxu1 %v3374_v58  ;;  %v3430_v40 = vld [vmem:[%s3936_s4 + $0x1a0] sm:$0xff]   ;;  %v3438_v44 = vld [vmem:[%s3936_s4 + $0x128] sm:$0xff]   ;;  %v3448_v52 = vld [vmem:[%s3936_s4 + $0x130] sm:$0xff]  }
  0x7a   : > { %v3431_v41 = vld [vmem:[%s3938_s12 + $0x1e4] ss:$48 sps:$4 sm:$0xff]   ;;  %v3435_v45 = vld [vmem:[%s3938_s12 + $0x1e0] ss:$48 sps:$4 sm:$0xff]   ;;  %v3439_v46 = vld [vmem:[%s3936_s4 + $0x1e8] sm:$0xff]  }
  0x7b   : > { %2917 = vmatpush3.bf16.msra.mxu0 %v3375_v59  ;;  %v3440_v47 = vld [vmem:[%s3936_s4 + $0x1a8] sm:$0xff]   ;;  %v3441_v49 = vld [vmem:[%s3938_s12 + $0x244] ss:$48 sps:$4 sm:$0xff]   ;;  %v3445_v55 = vld [vmem:[%s3938_s12 + $0x240] ss:$48 sps:$4 sm:$0xff]  }
  0x7c   : > { %2981 = vmatpush3.bf16.msra.mxu1 %v3376_v60  ;;  %2918 = vmatprep.subr.bf16.mxu0 %v3377_v61  ;;  %v3443_v50 = vld [vmem:[%s3938_s12 + $0x24c] ss:$48 sps:$4 sm:$0xff]   ;;  %v3449_v53 = vld [vmem:[%s3936_s4 + $0x1f0] sm:$0xff]   ;;  %v3446_v56 = vld [vmem:[%s3938_s12 + $0x248] ss:$48 sps:$4 sm:$0xff]  }
  0x7d   : > { %2982 = vmatprep.subr.bf16.mxu1 %v3378_v62  ;;  %v3450_v54 = vld [vmem:[%s3936_s4 + $0x1b0] sm:$0xff]   ;;  %v3453_v58 = vld [vmem:[%s3938_s12 + $0x2ac] ss:$48 sps:$4 sm:$0xff]   ;;  %v3467_v2 = vld [vmem:[%s3936_s4 + $0x240] sm:$0xff]  }
  0x7e   : > { %v3451_v57 = vld [vmem:[%s3938_s12 + $0x2a4] ss:$48 sps:$4 sm:$0xff]   ;;  %v3457_v59 = vld [vmem:[%s3936_s4 + $0x178] sm:$0xff]  }
  0x7f   : > { %2919 = vmatpush3.bf16.msra.mxu0 %v3379_v63  ;;  %v3458_v60 = vld [vmem:[%s3936_s4 + $0x138] sm:$0xff]   ;;  %v3455_v63 = vld [vmem:[%s3938_s12 + $0x2a0] ss:$48 sps:$4 sm:$0xff]  }
  0x80   : > { %2983 = vmatpush3.bf16.msra.mxu1 %v3380_v0  ;;  %3032 = vmatprep.subr.bf16.mxu0 %v3387_v5  ;;  %v3459_v61 = vld [vmem:[%s3936_s4 + $0x1f8] sm:$0xff]   ;;  %v3469_v4 = vld [vmem:[%s3936_s4 + $0x2c0] sm:$0xff]  }
  0x81   : > { %3096 = vmatprep.subr.bf16.mxu1 %v3389_v7  ;;  %v3460_v62 = vld [vmem:[%s3936_s4 + $0x1b8] sm:$0xff]   ;;  %v3461_v5 = vld [vmem:[%s3938_s12 + $0x10] ss:$48 sps:$4 sm:$0xff]  }
  0x82   : > { %1912 = vmatmul.mubr.bf16.vlgmr.msra.gmra.mrb[0].mxu0 %v3381_v1  ;;  %v3456_v0 = vld [vmem:[%s3938_s12 + $0x2a8] ss:$48 sps:$4 sm:$0xff]   ;;  %v3463_v1 = vld [vmem:[%s3938_s12 + $0x14] ss:$48 sps:$4 sm:$0xff]  }
  0x83   : > { %2009 = vmatmul.mubr.bf16.vlgmr.msra.gmra.mrb[0].mxu1 %v3384_v3  ;;  %3033 = vmatpush3.bf16.msra.mxu0 %v3388_v6  ;;  %v3466_v3 = vld [vmem:[%s3938_s12 + $0x1c] ss:$48 sps:$4 sm:$0xff]   ;;  %v3464_v6 = vld [vmem:[%s3938_s12 + $0x18] ss:$48 sps:$4 sm:$0xff]   ;;  %v3468_v7 = vld [vmem:[%s3936_s4 + $0x200] sm:$0xff]  }
  0x84   : > { %3097 = vmatpush3.bf16.msra.mxu1 %v3390_v8  ;;  %1919 = vmatprep.mubr.bf16.mxu0 %v3391_v9  ;;  %v3470_v8 = vld [vmem:[%s3936_s4 + $0x280] sm:$0xff]  }
  0x85   : > { %2016 = vmatprep.mubr.bf16.mxu1 %v3393_v10  ;;  %3034 = vmatprep.subr.bf16.mxu0 %v3397_v13  ;;  %v3471_v9 = vld [vmem:[%s3938_s12 + $0x74] ss:$48 sps:$4 sm:$0xff]   ;;  %v3473_v10 = vld [vmem:[%s3938_s12 + $0x7c] ss:$48 sps:$4 sm:$0xff]  }
  0x86   : > { %3098 = vmatprep.subr.bf16.mxu1 %v3399_v15  ;;  %v3479_v13 = vld [vmem:[%s3936_s4 + $0x2c8] sm:$0xff]   ;;  %v3475_v15 = vld [vmem:[%s3938_s12 + $0x70] ss:$48 sps:$4 sm:$0xff]  }
  0x87   : > { %3035 = vmatpush3.bf16.msra.mxu0 %v3398_v14  ;;  %v3480_v14 = vld [vmem:[%s3936_s4 + $0x288] sm:$0xff]  }
  0x88   : > { %3099 = vmatpush3.bf16.msra.mxu1 %v3400_v16  ;;  %3036 = vmatprep.subr.bf16.mxu0 %v3407_v21  ;;  %v3487_v16 = vld [vmem:[%s3936_s4 + $0x250] sm:$0xff]  }
  0x89   : > { %3100 = vmatprep.subr.bf16.mxu1 %v3409_v23  ;;  %v3488_v21 = vld [vmem:[%s3936_s4 + $0x210] sm:$0xff]   ;;  %v3497_v23 = vld [vmem:[%s3936_s4 + $0x258] sm:$0xff]  }
  0x8a   : > { %1920 = vmatmul.mubr.bf16.gmra.mrb[4].mxu0 %v3395_v11  ;;  %v3477_v11 = vld [vmem:[%s3936_s4 + $0x248] sm:$0xff]  }
  0x8b   : > { %2017 = vmatmul.mubr.bf16.gmra.mrb[4].mxu1 %v3396_v12  ;;  %1927 = vmatprep.mubr.bf16.mxu0 %v3401_v17  ;;  %v3478_v12 = vld [vmem:[%s3936_s4 + $0x208] sm:$0xff]  }
  0x8c   : > { %2024 = vmatprep.mubr.bf16.mxu1 %v3403_v18  ;;  %3037 = vmatpush3.bf16.msra.mxu0 %v3408_v22  ;;  %v3476_v17 = vld [vmem:[%s3938_s12 + $0x78] ss:$48 sps:$4 sm:$0xff]   ;;  %v3481_v18 = vld [vmem:[%s3938_s12 + $0xd4] ss:$48 sps:$4 sm:$0xff]  }
  0x8d   : > { %3101 = vmatpush3.bf16.msra.mxu1 %v3410_v24  ;;  %3038 = vmatprep.subr.bf16.mxu0 %v3417_v29  ;;  %v3490_v22 = vld [vmem:[%s3936_s4 + $0x290] sm:$0xff]   ;;  %v3498_v24 = vld [vmem:[%s3936_s4 + $0x218] sm:$0xff]  }
  0x8e   : > { %3102 = vmatprep.subr.bf16.mxu1 %v3419_v31  ;;  %v3491_v29 = vld [vmem:[%s3938_s12 + $0x134] ss:$48 sps:$4 sm:$0xff]  }
  0x8f   : > { %v3507_v31 = vld [vmem:[%s3936_s4 + $0x260] sm:$0xff]  }
  0x90   : > { %3039 = vmatpush3.bf16.msra.mxu0 %v3418_v30  ;;  %v3493_v30 = vld [vmem:[%s3938_s12 + $0x13c] ss:$48 sps:$4 sm:$0xff]  }
  0x91   : > { %3103 = vmatpush3.bf16.msra.mxu1 %v3420_v32  ;;  %3040 = vmatprep.subr.bf16.mxu0 %v3427_v36  ;;  %v3508_v32 = vld [vmem:[%s3936_s4 + $0x220] sm:$0xff]   ;;  %v3496_v36 = vld [vmem:[%s3938_s12 + $0x138] ss:$48 sps:$4 sm:$0xff]  }
  0x92   : > { %1928 = vmatmul.mubr.bf16.gmra.mrb[8].mxu0 %v3405_v19  ;;  %3104 = vmatprep.subr.bf16.mxu1 %v3429_v39  ;;  %v3489_v19 = vld [vmem:[%s3936_s4 + $0x2d0] sm:$0xff]   ;;  %v3517_v39 = vld [vmem:[%s3936_s4 + $0x268] sm:$0xff]  }
  0x93   : > { %2025 = vmatmul.mubr.bf16.gmra.mrb[8].mxu1 %v3406_v20  ;;  %1935 = vmatprep.mubr.bf16.mxu0 %v3411_v25  ;;  %v3483_v20 = vld [vmem:[%s3938_s12 + $0xdc] ss:$48 sps:$4 sm:$0xff]   ;;  %v3485_v25 = vld [vmem:[%s3938_s12 + $0xd0] ss:$48 sps:$4 sm:$0xff]  }
  0x94   : > { %2032 = vmatprep.mubr.bf16.mxu1 %v3413_v26  ;;  %3041 = vmatpush3.bf16.msra.mxu0 %v3428_v38  ;;  %v3499_v26 = vld [vmem:[%s3936_s4 + $0x2d8] sm:$0xff]  }
  0x95   : > { %3105 = vmatpush3.bf16.msra.mxu1 %v3430_v40  ;;  %3042 = vmatprep.subr.bf16.mxu0 %v3437_v43  ;;  %v3503_v38 = vld [vmem:[%s3938_s12 + $0x19c] ss:$48 sps:$4 sm:$0xff]   ;;  %v3505_v43 = vld [vmem:[%s3938_s12 + $0x190] ss:$48 sps:$4 sm:$0xff]  }
  0x96   : > { %3106 = vmatprep.subr.bf16.mxu1 %v3439_v46  ;;  %v3518_v40 = vld [vmem:[%s3936_s4 + $0x228] sm:$0xff]  }
  0x97   : > { %v3513_v46 = vld [vmem:[%s3938_s12 + $0x1fc] ss:$48 sps:$4 sm:$0xff]  }
  0x98   : > { %3043 = vmatpush3.bf16.msra.mxu0 %v3438_v44  ;;  %v3506_v44 = vld [vmem:[%s3938_s12 + $0x198] ss:$48 sps:$4 sm:$0xff]  }
  0x99   : > { %3107 = vmatpush3.bf16.msra.mxu1 %v3440_v47  ;;  %3044 = vmatprep.subr.bf16.mxu0 %v3447_v51  ;;  %v3527_v47 = vld [vmem:[%s3936_s4 + $0x270] sm:$0xff]  }
  0x9a   : > { %1936 = vmatmul.mubr.bf16.gmra.mrb[12].mxu0 %v3415_v27  ;;  %3108 = vmatprep.subr.bf16.mxu1 %v3449_v53  ;;  %v3500_v27 = vld [vmem:[%s3936_s4 + $0x298] sm:$0xff]   ;;  %v3515_v51 = vld [vmem:[%s3938_s12 + $0x1f0] ss:$48 sps:$4 sm:$0xff]   ;;  %v3521_v53 = vld [vmem:[%s3938_s12 + $0x254] ss:$48 sps:$4 sm:$0xff]  }
  0x9b   : > { %2033 = vmatmul.mubr.bf16.gmra.mrb[12].mxu1 %v3416_v28  ;;  %1943 = vmatprep.mubr.bf16.mxu0 %v3421_v33  ;;  %v3486_v28 = vld [vmem:[%s3938_s12 + $0xd8] ss:$48 sps:$4 sm:$0xff]   ;;  %v3509_v33 = vld [vmem:[%s3936_s4 + $0x2e0] sm:$0xff]  }
  0x9c   : > { %2040 = vmatprep.mubr.bf16.mxu1 %v3423_v34  ;;  %3045 = vmatpush3.bf16.msra.mxu0 %v3448_v52  ;;  %v3510_v34 = vld [vmem:[%s3936_s4 + $0x2a0] sm:$0xff]   ;;  %v3516_v52 = vld [vmem:[%s3938_s12 + $0x1f8] ss:$48 sps:$4 sm:$0xff]  }
  0x9d   : > { %3109 = vmatpush3.bf16.msra.mxu1 %v3450_v54  ;;  %3046 = vmatprep.subr.bf16.mxu0 %v3457_v59  ;;  %v3537_v54 = vld [vmem:[%s3936_s4 + $0x278] sm:$0xff]   ;;  %v3525_v59 = vld [vmem:[%s3938_s12 + $0x250] ss:$48 sps:$4 sm:$0xff]  }
  0x9e   : > { %3110 = vmatprep.subr.bf16.mxu1 %v3459_v61  ;;  %v3531_v61 = vld [vmem:[%s3938_s12 + $0x2b4] ss:$48 sps:$4 sm:$0xff]  }
  0xa0   : > { %3047 = vmatpush3.bf16.msra.mxu0 %v3458_v60  ;;  %v3526_v60 = vld [vmem:[%s3938_s12 + $0x258] ss:$48 sps:$4 sm:$0xff]  }
  0xa1   : > { %3111 = vmatpush3.bf16.msra.mxu1 %v3460_v62  ;;  %3160 = vmatprep.subr.bf16.mxu0 %v3467_v2  ;;  %v3533_v62 = vld [vmem:[%s3938_s12 + $0x2bc] ss:$48 sps:$4 sm:$0xff]  }
  0xa2   : > { %1944 = vmatmul.mubr.bf16.gmra.mrb[16].mxu0 %v3425_v35  ;;  %3224 = vmatprep.subr.bf16.mxu1 %v3469_v4  ;;  %v3495_v35 = vld [vmem:[%s3938_s12 + $0x130] ss:$48 sps:$4 sm:$0xff]   ;;  %v3546_v2 = vld [vmem:[%s3938_s12 + $0x2c] ss:$48 sps:$4 sm:$0xff]   ;;  %v3544_v4 = vld [vmem:[%s3938_s12 + $0x28] ss:$48 sps:$4 sm:$0xff]  }
  0xa3   : > { %2041 = vmatmul.mubr.bf16.gmra.mrb[16].mxu1 %v3426_v37  ;;  %1951 = vmatprep.mubr.bf16.mxu0 %v3431_v41  ;;  %v3501_v37 = vld [vmem:[%s3938_s12 + $0x194] ss:$48 sps:$4 sm:$0xff]   ;;  %v3519_v41 = vld [vmem:[%s3936_s4 + $0x2e8] sm:$0xff]  }
  0xa4   : > { %2048 = vmatprep.mubr.bf16.mxu1 %v3433_v42  ;;  %v3520_v42 = vld [vmem:[%s3936_s4 + $0x2a8] sm:$0xff]  }
  0xaa   : > { %1952 = vmatmul.mubr.bf16.gmra.mrb[20].mxu0 %v3435_v45  ;;  %v3511_v45 = vld [vmem:[%s3938_s12 + $0x1f4] ss:$48 sps:$4 sm:$0xff]  }
  0xab   : > { %2049 = vmatmul.mubr.bf16.gmra.mrb[20].mxu1 %v3436_v48  ;;  %1959 = vmatprep.mubr.bf16.mxu0 %v3441_v49  ;;  %v3528_v48 = vld [vmem:[%s3936_s4 + $0x230] sm:$0xff]  }
  0xac   : > { %2056 = vmatprep.mubr.bf16.mxu1 %v3443_v50  ;;  %v3529_v49 = vld [vmem:[%s3936_s4 + $0x2f0] sm:$0xff]  }
  0xad   : > { %v3530_v50 = vld [vmem:[%s3936_s4 + $0x2b0] sm:$0xff]  }
  0xb2   : > { %1960 = vmatmul.mubr.bf16.gmra.mrb[24].mxu0 %v3445_v55  ;;  %v3523_v55 = vld [vmem:[%s3938_s12 + $0x25c] ss:$48 sps:$4 sm:$0xff]  }
  0xb3   : > { %2057 = vmatmul.mubr.bf16.gmra.mrb[24].mxu1 %v3446_v56  ;;  %1967 = vmatprep.mubr.bf16.mxu0 %v3451_v57  ;;  %v3538_v56 = vld [vmem:[%s3936_s4 + $0x238] sm:$0xff]  }
  0xb4   : > { %2064 = vmatprep.mubr.bf16.mxu1 %v3453_v58  ;;  %v3539_v57 = vld [vmem:[%s3936_s4 + $0x2f8] sm:$0xff]  }
  0xb5   : > { %v3540_v58 = vld [vmem:[%s3936_s4 + $0x2b8] sm:$0xff]  }
  0xba   : > { %1968 = vmatmul.mubr.bf16.gmra.mrb[28].mxu0 %v3455_v63  ;;  %v3535_v63 = vld [vmem:[%s3938_s12 + $0x2b0] ss:$48 sps:$4 sm:$0xff]  }
  0xbb   : > { %2065 = vmatmul.mubr.bf16.gmra.mrb[28].mxu1 %v3456_v0  ;;  %2105 = vmatprep.mubr.bf16.mxu0 %v3463_v1  ;;  %v3536_v0 = vld [vmem:[%s3938_s12 + $0x2b8] ss:$48 sps:$4 sm:$0xff]   ;;  %v3543_v1 = vld [vmem:[%s3938_s12 + $0x24] ss:$48 sps:$4 sm:$0xff]  }
  0xbc   : > { %2202 = vmatprep.mubr.bf16.mxu1 %v3466_v3  ;;  %v3541_v3 = vld [vmem:[%s3938_s12 + $0x20] ss:$48 sps:$4 sm:$0xff]  }
  0xc2   : > { %2106 = vmatmul.mubr.bf16.vlgmr.msra.gmra.mrb[32].mxu0 %v3461_v5  ;;  %v3547_v5 = vld [vmem:[%s3938_s12 + $0x84] ss:$48 sps:$4 sm:$0xff]  }
  0xc3   : > { %2203 = vmatmul.mubr.bf16.vlgmr.msra.gmra.mrb[32].mxu1 %v3464_v6  ;;  %3161 = vmatpush3.bf16.msra.mxu0 %v3468_v7  ;;  %v3549_v6 = vld [vmem:[%s3938_s12 + $0x8c] ss:$48 sps:$4 sm:$0xff]   ;;  %v3551_v7 = vld [vmem:[%s3938_s12 + $0x80] ss:$48 sps:$4 sm:$0xff]  }
  0xc4   : > { %3225 = vmatpush3.bf16.msra.mxu1 %v3470_v8  ;;  %2113 = vmatprep.mubr.bf16.mxu0 %v3471_v9  ;;  %v3552_v8 = vld [vmem:[%s3938_s12 + $0x88] ss:$48 sps:$4 sm:$0xff]   ;;  %v3553_v9 = vld [vmem:[%s3938_s12 + $0xe4] ss:$48 sps:$4 sm:$0xff]  }
  0xc5   : > { %2210 = vmatprep.mubr.bf16.mxu1 %v3473_v10  ;;  %3162 = vmatprep.subr.bf16.mxu0 %v3477_v11  ;;  %v3555_v10 = vld [vmem:[%s3938_s12 + $0xec] ss:$48 sps:$4 sm:$0xff]   ;;  %v3557_v11 = vld [vmem:[%s3938_s12 + $0xe0] ss:$48 sps:$4 sm:$0xff]  }
  0xc6   : > { %3226 = vmatprep.subr.bf16.mxu1 %v3479_v13  ;;  %v3559_v13 = vld [vmem:[%s3938_s12 + $0x144] ss:$48 sps:$4 sm:$0xff]  }
  0xc7   : > { %3163 = vmatpush3.bf16.msra.mxu0 %v3478_v12  ;;  %v3558_v12 = vld [vmem:[%s3938_s12 + $0xe8] ss:$48 sps:$4 sm:$0xff]  }
  0xc8   : > { %3227 = vmatpush3.bf16.msra.mxu1 %v3480_v14  ;;  %3164 = vmatprep.subr.bf16.mxu0 %v3487_v16  ;;  %v3561_v14 = vld [vmem:[%s3938_s12 + $0x14c] ss:$48 sps:$4 sm:$0xff]   ;;  %v3564_v16 = vld [vmem:[%s3938_s12 + $0x148] ss:$48 sps:$4 sm:$0xff]  }
  0xc9   : > { %3228 = vmatprep.subr.bf16.mxu1 %v3489_v19  ;;  %v3569_v19 = vld [vmem:[%s3938_s12 + $0x1a0] ss:$48 sps:$4 sm:$0xff]  }
  0xca   : > { %2114 = vmatmul.mubr.bf16.gmra.mrb[36].mxu0 %v3475_v15  ;;  %v3563_v15 = vld [vmem:[%s3938_s12 + $0x140] ss:$48 sps:$4 sm:$0xff]  }
  0xcb   : > { %2211 = vmatmul.mubr.bf16.gmra.mrb[36].mxu1 %v3476_v17  ;;  %2121 = vmatprep.mubr.bf16.mxu0 %v3481_v18  ;;  %v3565_v17 = vld [vmem:[%s3938_s12 + $0x1a4] ss:$48 sps:$4 sm:$0xff]   ;;  %v3567_v18 = vld [vmem:[%s3938_s12 + $0x1ac] ss:$48 sps:$4 sm:$0xff]  }
  0xcc   : > { %2218 = vmatprep.mubr.bf16.mxu1 %v3483_v20  ;;  %3165 = vmatpush3.bf16.msra.mxu0 %v3488_v21  ;;  %v3570_v20 = vld [vmem:[%s3938_s12 + $0x1a8] ss:$48 sps:$4 sm:$0xff]   ;;  %v3571_v21 = vld [vmem:[%s3938_s12 + $0x204] ss:$48 sps:$4 sm:$0xff]  }
  0xcd   : > { %3229 = vmatpush3.bf16.msra.mxu1 %v3490_v22  ;;  %3166 = vmatprep.subr.bf16.mxu0 %v3497_v23  ;;  %v3573_v22 = vld [vmem:[%s3938_s12 + $0x20c] ss:$48 sps:$4 sm:$0xff]   ;;  %v3575_v23 = vld [vmem:[%s3938_s12 + $0x200] ss:$48 sps:$4 sm:$0xff]  }
  0xce   : > { %3230 = vmatprep.subr.bf16.mxu1 %v3499_v26  ;;  %v3579_v26 = vld [vmem:[%s3938_s12 + $0x26c] ss:$48 sps:$4 sm:$0xff]  }
  0xd0   : > { %3167 = vmatpush3.bf16.msra.mxu0 %v3498_v24  ;;  %v3576_v24 = vld [vmem:[%s3938_s12 + $0x208] ss:$48 sps:$4 sm:$0xff]  }
  0xd1   : > { %3231 = vmatpush3.bf16.msra.mxu1 %v3500_v27  ;;  %3168 = vmatprep.subr.bf16.mxu0 %v3507_v31  ;;  %v3581_v27 = vld [vmem:[%s3938_s12 + $0x260] ss:$48 sps:$4 sm:$0xff]  }
  0xd2   : > { %2122 = vmatmul.mubr.bf16.gmra.mrb[40].mxu0 %v3485_v25  ;;  %3232 = vmatprep.subr.bf16.mxu1 %v3509_v33  ;;  %v3577_v25 = vld [vmem:[%s3938_s12 + $0x264] ss:$48 sps:$4 sm:$0xff]   ;;  %v3587_v31 = vld [vmem:[%s3938_s12 + $0x2c0] ss:$48 sps:$4 sm:$0xff]  }
  0xd3   : > { %2219 = vmatmul.mubr.bf16.gmra.mrb[40].mxu1 %v3486_v28  ;;  %2129 = vmatprep.mubr.bf16.mxu0 %v3491_v29  ;;  %v3582_v28 = vld [vmem:[%s3938_s12 + $0x268] ss:$48 sps:$4 sm:$0xff]   ;;  %v3583_v29 = vld [vmem:[%s3938_s12 + $0x2c4] ss:$48 sps:$4 sm:$0xff]  }
  0xd4   : > { %2226 = vmatprep.mubr.bf16.mxu1 %v3493_v30  ;;  %3169 = vmatpush3.bf16.msra.mxu0 %v3508_v32  ;;  %v3585_v30 = vld [vmem:[%s3938_s12 + $0x2cc] ss:$48 sps:$4 sm:$0xff]   ;;  %v3588_v32 = vld [vmem:[%s3938_s12 + $0x2c8] ss:$48 sps:$4 sm:$0xff]  }
  0xd5   : > { %3233 = vmatpush3.bf16.msra.mxu1 %v3510_v34  ;;  %3170 = vmatprep.subr.bf16.mxu0 %v3517_v39 }
  0xd6   : > { %3234 = vmatprep.subr.bf16.mxu1 %v3519_v41 }
  0xd8   : > { %3171 = vmatpush3.bf16.msra.mxu0 %v3518_v40 }
  0xd9   : > { %3235 = vmatpush3.bf16.msra.mxu1 %v3520_v42  ;;  %3172 = vmatprep.subr.bf16.mxu0 %v3527_v47 }
  0xda   : > { %2130 = vmatmul.mubr.bf16.gmra.mrb[44].mxu0 %v3495_v35  ;;  %3236 = vmatprep.subr.bf16.mxu1 %v3529_v49 }
  0xdb   : > { %2227 = vmatmul.mubr.bf16.gmra.mrb[44].mxu1 %v3496_v36  ;;  %2137 = vmatprep.mubr.bf16.mxu0 %v3501_v37 }
  0xdc   : > { %2234 = vmatprep.mubr.bf16.mxu1 %v3503_v38  ;;  %3173 = vmatpush3.bf16.msra.mxu0 %v3528_v48 }
  0xdd   : > { %3237 = vmatpush3.bf16.msra.mxu1 %v3530_v50  ;;  %3174 = vmatprep.subr.bf16.mxu0 %v3537_v54 }
  0xde   : > { %3238 = vmatprep.subr.bf16.mxu1 %v3539_v57 }
  0xe0   : > { %3175 = vmatpush3.bf16.msra.mxu0 %v3538_v56 }
  0xe1   : > { %3239 = vmatpush3.bf16.msra.mxu1 %v3540_v58 }
  0xe2   : > { %2138 = vmatmul.mubr.bf16.gmra.mrb[48].mxu0 %v3505_v43 }
  0xe3   : > { %2235 = vmatmul.mubr.bf16.gmra.mrb[48].mxu1 %v3506_v44  ;;  %2145 = vmatprep.mubr.bf16.mxu0 %v3511_v45 }
  0xe4   : > { %2242 = vmatprep.mubr.bf16.mxu1 %v3513_v46 }
  0xea   : > { %2146 = vmatmul.mubr.bf16.gmra.mrb[52].mxu0 %v3515_v51 }
  0xeb   : > { %2243 = vmatmul.mubr.bf16.gmra.mrb[52].mxu1 %v3516_v52  ;;  %2153 = vmatprep.mubr.bf16.mxu0 %v3521_v53 }
  0xec   : > { %2250 = vmatprep.mubr.bf16.mxu1 %v3523_v55 }
  0xf2   : > { %2154 = vmatmul.mubr.bf16.gmra.mrb[56].mxu0 %v3525_v59 }
  0xf3   : > { %2251 = vmatmul.mubr.bf16.gmra.mrb[56].mxu1 %v3526_v60  ;;  %2161 = vmatprep.mubr.bf16.mxu0 %v3531_v61 }
  0xf4   : > { %2258 = vmatprep.mubr.bf16.mxu1 %v3533_v62 }
  0xfa   : > { %2162 = vmatmul.mubr.bf16.gmra.mrb[60].mxu0 %v3535_v63 }
  0xfb   : > { %2259 = vmatmul.mubr.bf16.gmra.mrb[60].mxu1 %v3536_v0  ;;  %2299 = vmatprep.mubr.bf16.mxu0 %v3543_v1 }
  0xfc   : > { %2396 = vmatprep.mubr.bf16.mxu1 %v3546_v2 }
 0x102   : > { %2300 = vmatmul.mubr.bf16.vlgmr.msra.gmra.mrb[64].mxu0 %v3541_v3 }
 0x103   : > { %2397 = vmatmul.mubr.bf16.vlgmr.msra.gmra.mrb[64].mxu1 %v3544_v4  ;;  %2307 = vmatprep.mubr.bf16.mxu0 %v3547_v5 }
 0x104   : > { %2404 = vmatprep.mubr.bf16.mxu1 %v3549_v6 }
 0x10a   : > { %2308 = vmatmul.mubr.bf16.gmra.mrb[68].mxu0 %v3551_v7 }
 0x10b   : > { %2405 = vmatmul.mubr.bf16.gmra.mrb[68].mxu1 %v3552_v8  ;;  %2315 = vmatprep.mubr.bf16.mxu0 %v3553_v9 }
 0x10c   : > { %2412 = vmatprep.mubr.bf16.mxu1 %v3555_v10 }
 0x112   : > { %2316 = vmatmul.mubr.bf16.gmra.mrb[72].mxu0 %v3557_v11 }
 0x113   : > { %2413 = vmatmul.mubr.bf16.gmra.mrb[72].mxu1 %v3558_v12  ;;  %2323 = vmatprep.mubr.bf16.mxu0 %v3559_v13 }
 0x114   : > { %2420 = vmatprep.mubr.bf16.mxu1 %v3561_v14 }
 0x11a   : > { %2324 = vmatmul.mubr.bf16.gmra.mrb[76].mxu0 %v3563_v15 }
 0x11b   : > { %2421 = vmatmul.mubr.bf16.gmra.mrb[76].mxu1 %v3564_v16  ;;  %2331 = vmatprep.mubr.bf16.mxu0 %v3565_v17 }
 0x11c   : > { %2428 = vmatprep.mubr.bf16.mxu1 %v3567_v18 }
 0x122   : > { %2332 = vmatmul.mubr.bf16.gmra.mrb[80].mxu0 %v3569_v19 }
 0x123   : > { %2429 = vmatmul.mubr.bf16.gmra.mrb[80].mxu1 %v3570_v20  ;;  %2339 = vmatprep.mubr.bf16.mxu0 %v3571_v21 }
 0x124   : > { %2436 = vmatprep.mubr.bf16.mxu1 %v3573_v22 }
 0x12a   : > { %2340 = vmatmul.mubr.bf16.gmra.mrb[84].mxu0 %v3575_v23 }
 0x12b   : > { %2437 = vmatmul.mubr.bf16.gmra.mrb[84].mxu1 %v3576_v24  ;;  %2347 = vmatprep.mubr.bf16.mxu0 %v3577_v25 }
 0x12c   : > { %2444 = vmatprep.mubr.bf16.mxu1 %v3579_v26 }
 0x132   : > { %2348 = vmatmul.mubr.bf16.gmra.mrb[88].mxu0 %v3581_v27 }
 0x133   : > { %2445 = vmatmul.mubr.bf16.gmra.mrb[88].mxu1 %v3582_v28  ;;  %2355 = vmatprep.mubr.bf16.mxu0 %v3583_v29 }
 0x134   : > { %2452 = vmatprep.mubr.bf16.mxu1 %v3585_v30 }
 0x13a   : > { %2356 = vmatmul.mubr.bf16.gmra.mrb[92].mxu0 %v3587_v31 }
 0x13b   : > { %2453 = vmatmul.mubr.bf16.gmra.mrb[92].mxu1 %v3588_v32 }
 0x155   : > { %v2920_v33 = vpop.f32.mrb[0].mxu0 }
 0x156   : > { %v2984_v34 = vpop.f32.mrb[0].mxu1  ;;  %v2921_v35 = vpop.f32.mrb[1].mxu0 }
 0x157   : > { %v2922_v36 = vadd.f32 %v2921_v35, %v2920_v33  ;;  %v2985_v37 = vpop.f32.mrb[1].mxu1  ;;  %v2923_v38 = vpop.f32.mrb[2].mxu0 }
 0x158   : > { %v2986_v39 = vadd.f32 %v2985_v37, %v2984_v34  ;;  %v2987_v40 = vpop.f32.mrb[2].mxu1  ;;  %v2924_v41 = vpop.f32.mrb[3].mxu0 }
 0x159   : > { %v2925_v42 = vadd.f32 %v2924_v41, %v2923_v38  ;;  %v2988_v43 = vpop.f32.mrb[3].mxu1 }
 0x15a   : > { %v4133_v44 = vadd.f32 %v2986_v39, %v2922_v36  ;;  %v2989_v45 = vadd.f32 %v2988_v43, %v2987_v40 }
 0x15c   : > { %v4135_v46 = vadd.f32 %v2989_v45, %v2925_v42 }
 0x15d   : > { %v2926_v47 = vpop.f32.mrb[4].mxu0 }
 0x15e   : > { %v2990_v48 = vpop.f32.mrb[4].mxu1  ;;  %v2927_v49 = vpop.f32.mrb[5].mxu0 }
 0x15f   : > { %v2928_v50 = vadd.f32 %v2927_v49, %v2926_v47  ;;  %v2991_v51 = vpop.f32.mrb[5].mxu1  ;;  %v2929_v52 = vpop.f32.mrb[6].mxu0 }
 0x160   : > { %v2992_v53 = vadd.f32 %v2991_v51, %v2990_v48  ;;  %v2993_v54 = vpop.f32.mrb[6].mxu1  ;;  %v2930_v55 = vpop.f32.mrb[7].mxu0 }
 0x161   : > { %v2931_v56 = vadd.f32 %v2930_v55, %v2929_v52  ;;  %v2994_v57 = vpop.f32.mrb[7].mxu1 }
 0x162   : > { %v4137_v58 = vadd.f32 %v2992_v53, %v2928_v50  ;;  %v2995_v59 = vadd.f32 %v2994_v57, %v2993_v54 }
 0x164   : > { %v4139_v60 = vadd.f32 %v2995_v59, %v2931_v56 }
 0x165   : > { %v2932_v61 = vpop.f32.mrb[8].mxu0 }
 0x166   : > { %v2996_v62 = vpop.f32.mrb[8].mxu1  ;;  %v2933_v63 = vpop.f32.mrb[9].mxu0 }
 0x167   : > { %v2934_v0 = vadd.f32 %v2933_v63, %v2932_v61  ;;  %v2997_v1 = vpop.f32.mrb[9].mxu1  ;;  %v2935_v2 = vpop.f32.mrb[10].mxu0 }
 0x168   : > { %v2998_v3 = vadd.f32 %v2997_v1, %v2996_v62  ;;  %v2999_v4 = vpop.f32.mrb[10].mxu1  ;;  %v2936_v5 = vpop.f32.mrb[11].mxu0 }
 0x169   : > { %v2937_v6 = vadd.f32 %v2936_v5, %v2935_v2  ;;  %v3000_v7 = vpop.f32.mrb[11].mxu1 }
 0x16a   : > { %v4141_v8 = vadd.f32 %v2998_v3, %v2934_v0  ;;  %v3001_v9 = vadd.f32 %v3000_v7, %v2999_v4 }
 0x16c   : > { %v4143_v10 = vadd.f32 %v3001_v9, %v2937_v6 }
 0x16d   : > { %v2938_v11 = vpop.f32.mrb[12].mxu0 }
 0x16e   : > { %v3002_v12 = vpop.f32.mrb[12].mxu1  ;;  %v2939_v13 = vpop.f32.mrb[13].mxu0 }
 0x16f   : > { %v2940_v14 = vadd.f32 %v2939_v13, %v2938_v11  ;;  %v3003_v15 = vpop.f32.mrb[13].mxu1  ;;  %v2941_v16 = vpop.f32.mrb[14].mxu0 }
 0x170   : > { %v3004_v17 = vadd.f32 %v3003_v15, %v3002_v12  ;;  %v3005_v18 = vpop.f32.mrb[14].mxu1  ;;  %v2942_v19 = vpop.f32.mrb[15].mxu0 }
 0x171   : > { %v2943_v20 = vadd.f32 %v2942_v19, %v2941_v16  ;;  %v3006_v21 = vpop.f32.mrb[15].mxu1 }
 0x172   : > { %v4145_v22 = vadd.f32 %v3004_v17, %v2940_v14  ;;  %v3007_v23 = vadd.f32 %v3006_v21, %v3005_v18 }
 0x174   : > { %v4147_v24 = vadd.f32 %v3007_v23, %v2943_v20 }
 0x175   : > { %v2944_v25 = vpop.f32.mrb[16].mxu0 }
 0x176   : > { %v3008_v26 = vpop.f32.mrb[16].mxu1  ;;  %v2945_v27 = vpop.f32.mrb[17].mxu0 }
 0x177   : > { %v2946_v28 = vadd.f32 %v2945_v27, %v2944_v25  ;;  %v3009_v29 = vpop.f32.mrb[17].mxu1  ;;  %v2947_v30 = vpop.f32.mrb[18].mxu0 }
 0x178   : > { %v3010_v31 = vadd.f32 %v3009_v29, %v3008_v26  ;;  %v3011_v32 = vpop.f32.mrb[18].mxu1  ;;  %v2948_v33 = vpop.f32.mrb[19].mxu0 }
 0x179   : > { %v2949_v34 = vadd.f32 %v2948_v33, %v2947_v30  ;;  %v3012_v35 = vpop.f32.mrb[19].mxu1 }
 0x17a   : > { %v4149_v36 = vadd.f32 %v3010_v31, %v2946_v28  ;;  %v3013_v37 = vadd.f32 %v3012_v35, %v3011_v32 }
 0x17c   : > { %v4151_v38 = vadd.f32 %v3013_v37, %v2949_v34 }
 0x17d   : > { %v2950_v39 = vpop.f32.mrb[20].mxu0 }
 0x17e   : > { %v3014_v40 = vpop.f32.mrb[20].mxu1  ;;  %v2951_v41 = vpop.f32.mrb[21].mxu0 }
 0x17f   : > { %v2952_v42 = vadd.f32 %v2951_v41, %v2950_v39  ;;  %v3015_v43 = vpop.f32.mrb[21].mxu1  ;;  %v2953_v45 = vpop.f32.mrb[22].mxu0 }
 0x180   : > { %v3016_v47 = vadd.f32 %v3015_v43, %v3014_v40  ;;  %v3017_v48 = vpop.f32.mrb[22].mxu1  ;;  %v2954_v49 = vpop.f32.mrb[23].mxu0 }
 0x181   : > { %v2955_v50 = vadd.f32 %v2954_v49, %v2953_v45  ;;  %v3018_v51 = vpop.f32.mrb[23].mxu1 }
 0x182   : > { %v4153_v52 = vadd.f32 %v3016_v47, %v2952_v42  ;;  %v3019_v53 = vadd.f32 %v3018_v51, %v3017_v48 }
 0x184   : > { %v4155_v54 = vadd.f32 %v3019_v53, %v2955_v50 }
 0x185   : > { %v2956_v55 = vpop.f32.mrb[24].mxu0 }
 0x186   : > { %v3020_v56 = vpop.f32.mrb[24].mxu1  ;;  %v2957_v57 = vpop.f32.mrb[25].mxu0 }
 0x187   : > { %v2958_v59 = vadd.f32 %v2957_v57, %v2956_v55  ;;  %v3021_v61 = vpop.f32.mrb[25].mxu1  ;;  %v2959_v62 = vpop.f32.mrb[26].mxu0 }
 0x188   : > { %v3022_v63 = vadd.f32 %v3021_v61, %v3020_v56  ;;  %v3023_v0 = vpop.f32.mrb[26].mxu1  ;;  %v2960_v1 = vpop.f32.mrb[27].mxu0 }
 0x189   : > { %v2961_v2 = vadd.f32 %v2960_v1, %v2959_v62  ;;  %v3024_v3 = vpop.f32.mrb[27].mxu1 }
 0x18a   : > { %v4157_v4 = vadd.f32 %v3022_v63, %v2958_v59  ;;  %v3025_v5 = vadd.f32 %v3024_v3, %v3023_v0 }
 0x18c   : > { %v4159_v6 = vadd.f32 %v3025_v5, %v2961_v2 }
 0x18d   : > { %v2962_v7 = vpop.f32.mrb[28].mxu0 }
 0x18e   : > { %v3026_v9 = vpop.f32.mrb[28].mxu1  ;;  %v2963_v11 = vpop.f32.mrb[29].mxu0 }
 0x18f   : > { %v2964_v12 = vadd.f32 %v2963_v11, %v2962_v7  ;;  %v3027_v13 = vpop.f32.mrb[29].mxu1  ;;  %v2965_v14 = vpop.f32.mrb[30].mxu0 }
 0x190   : > { %v3028_v15 = vadd.f32 %v3027_v13, %v3026_v9  ;;  %v3029_v16 = vpop.f32.mrb[30].mxu1  ;;  %v2966_v17 = vpop.f32.mrb[31].mxu0 }
 0x191   : > { %v2967_v18 = vadd.f32 %v2966_v17, %v2965_v14  ;;  %v3030_v19 = vpop.f32.mrb[31].mxu1 }
 0x192   : > { %v4161_v20 = vadd.f32 %v3028_v15, %v2964_v12  ;;  %v3031_v21 = vadd.f32 %v3030_v19, %v3029_v16 }
 0x194   : > { %v4163_v23 = vadd.f32 %v3031_v21, %v2967_v18 }
 0x195   : > { %v3048_v25 = vpop.f32.mrb[32].mxu0 }
 0x196   : > { %v3112_v26 = vpop.f32.mrb[32].mxu1  ;;  %v3049_v27 = vpop.f32.mrb[33].mxu0 }
 0x197   : > { %v3050_v28 = vadd.f32 %v3049_v27, %v3048_v25  ;;  %v3113_v29 = vpop.f32.mrb[33].mxu1  ;;  %v3051_v30 = vpop.f32.mrb[34].mxu0 }
 0x198   : > { %v3114_v31 = vadd.f32 %v3113_v29, %v3112_v26  ;;  %v3115_v32 = vpop.f32.mrb[34].mxu1  ;;  %v3052_v33 = vpop.f32.mrb[35].mxu0 }
 0x199   : > { %v2108_v34 = vadd.f32 %v3050_v28, %v4133_v44  ;;  %v3053_v35 = vadd.f32 %v3052_v33, %v3051_v30  ;;  %v3116_v37 = vpop.f32.mrb[35].mxu1 }
 0x19a   : > { %v3117_v39 = vadd.f32 %v3116_v37, %v3115_v32 }
 0x19b   : > { %v4166_v40 = vadd.f32 %v3114_v31, %v2108_v34  ;;  %v2111_v41 = vadd.f32 %v3053_v35, %v4135_v46 }
 0x19d   : > { %v4169_v42 = vadd.f32 %v3117_v39, %v2111_v41  ;;  %v3054_v43 = vpop.f32.mrb[36].mxu0 }
 0x19e   : > { %v3118_v45 = vpop.f32.mrb[36].mxu1  ;;  %v3055_v47 = vpop.f32.mrb[37].mxu0 }
 0x19f   : > { %v3056_v48 = vadd.f32 %v3055_v47, %v3054_v43  ;;  %v3119_v49 = vpop.f32.mrb[37].mxu1  ;;  %v3057_v50 = vpop.f32.mrb[38].mxu0 }
 0x1a0   : > { %v3120_v51 = vadd.f32 %v3119_v49, %v3118_v45  ;;  %v3121_v53 = vpop.f32.mrb[38].mxu1  ;;  %v3058_v55 = vpop.f32.mrb[39].mxu0 }
 0x1a1   : > { %v2116_v44 = vadd.f32 %v3056_v48, %v4137_v58  ;;  %v3059_v56 = vadd.f32 %v3058_v55, %v3057_v50  ;;  %v3122_v57 = vpop.f32.mrb[39].mxu1 }
 0x1a2   : > { %v3123_v59 = vadd.f32 %v3122_v57, %v3121_v53 }
 0x1a3   : > { %v4172_v61 = vadd.f32 %v3120_v51, %v2116_v44  ;;  %v2119_v46 = vadd.f32 %v3059_v56, %v4139_v60 }
 0x1a5   : > { %v4175_v62 = vadd.f32 %v3123_v59, %v2119_v46  ;;  %v3060_v63 = vpop.f32.mrb[40].mxu0 }
 0x1a6   : > { %v3124_v0 = vpop.f32.mrb[40].mxu1  ;;  %v3061_v1 = vpop.f32.mrb[41].mxu0 }
 0x1a7   : > { %v3062_v2 = vadd.f32 %v3061_v1, %v3060_v63  ;;  %v3125_v3 = vpop.f32.mrb[41].mxu1  ;;  %v3063_v5 = vpop.f32.mrb[42].mxu0 }
 0x1a8   : > { %v3126_v7 = vadd.f32 %v3125_v3, %v3124_v0  ;;  %v3127_v9 = vpop.f32.mrb[42].mxu1  ;;  %v3064_v11 = vpop.f32.mrb[43].mxu0 }
 0x1a9   : > { %v2124_v58 = vadd.f32 %v3062_v2, %v4141_v8  ;;  %v3065_v12 = vadd.f32 %v3064_v11, %v3063_v5  ;;  %v3128_v13 = vpop.f32.mrb[43].mxu1 }
 0x1aa   : > { %v3129_v14 = vadd.f32 %v3128_v13, %v3127_v9 }
 0x1ab   : > { %v4178_v15 = vadd.f32 %v3126_v7, %v2124_v58  ;;  %v2127_v60 = vadd.f32 %v3065_v12, %v4143_v10 }
 0x1ad   : > { %v4181_v16 = vadd.f32 %v3129_v14, %v2127_v60  ;;  %v3066_v17 = vpop.f32.mrb[44].mxu0 }
 0x1ae   : > { %v3130_v18 = vpop.f32.mrb[44].mxu1  ;;  %v3067_v19 = vpop.f32.mrb[45].mxu0 }
 0x1af   : > { %v3068_v21 = vadd.f32 %v3067_v19, %v3066_v17  ;;  %v3131_v25 = vpop.f32.mrb[45].mxu1  ;;  %v3069_v26 = vpop.f32.mrb[46].mxu0 }
 0x1b0   : > { %v3132_v27 = vadd.f32 %v3131_v25, %v3130_v18  ;;  %v3133_v28 = vpop.f32.mrb[46].mxu1  ;;  %v3070_v29 = vpop.f32.mrb[47].mxu0 }
 0x1b1   : > { %v2132_v8 = vadd.f32 %v3068_v21, %v4145_v22  ;;  %v3071_v30 = vadd.f32 %v3070_v29, %v3069_v26  ;;  %v3134_v31 = vpop.f32.mrb[47].mxu1 }
 0x1b2   : > { %v3135_v32 = vadd.f32 %v3134_v31, %v3133_v28 }
 0x1b3   : > { %v4184_v33 = vadd.f32 %v3132_v27, %v2132_v8  ;;  %v2135_v10 = vadd.f32 %v3071_v30, %v4147_v24 }
 0x1b5   : > { %v4187_v34 = vadd.f32 %v3135_v32, %v2135_v10  ;;  %v3072_v35 = vpop.f32.mrb[48].mxu0 }
 0x1b6   : > { %v3136_v37 = vpop.f32.mrb[48].mxu1  ;;  %v3073_v39 = vpop.f32.mrb[49].mxu0 }
 0x1b7   : > { %v3074_v41 = vadd.f32 %v3073_v39, %v3072_v35  ;;  %v3137_v43 = vpop.f32.mrb[49].mxu1  ;;  %v3075_v45 = vpop.f32.mrb[50].mxu0 }
 0x1b8   : > { %v3138_v47 = vadd.f32 %v3137_v43, %v3136_v37  ;;  %v3139_v48 = vpop.f32.mrb[50].mxu1  ;;  %v3076_v49 = vpop.f32.mrb[51].mxu0 }
 0x1b9   : > { %v2140_v22 = vadd.f32 %v3074_v41, %v4149_v36  ;;  %v3077_v50 = vadd.f32 %v3076_v49, %v3075_v45  ;;  %v3140_v51 = vpop.f32.mrb[51].mxu1 }
 0x1ba   : > { %v3141_v53 = vadd.f32 %v3140_v51, %v3139_v48 }
 0x1bb   : > { %v4190_v55 = vadd.f32 %v3138_v47, %v2140_v22  ;;  %v2143_v24 = vadd.f32 %v3077_v50, %v4151_v38 }
 0x1bd   : > { %v4193_v44 = vadd.f32 %v3141_v53, %v2143_v24  ;;  %v3078_v56 = vpop.f32.mrb[52].mxu0 }
 0x1be   : > { %v3142_v57 = vpop.f32.mrb[52].mxu1  ;;  %v3079_v59 = vpop.f32.mrb[53].mxu0 }
 0x1bf   : > { %v3080_v46 = vadd.f32 %v3079_v59, %v3078_v56  ;;  %v3143_v63 = vpop.f32.mrb[53].mxu1  ;;  %v3081_v0 = vpop.f32.mrb[54].mxu0 }
 0x1c0   : > { %v3144_v1 = vadd.f32 %v3143_v63, %v3142_v57  ;;  %v3145_v2 = vpop.f32.mrb[54].mxu1  ;;  %v3082_v3 = vpop.f32.mrb[55].mxu0 }
 0x1c1   : > { %v2148_v36 = vadd.f32 %v3080_v46, %v4153_v52  ;;  %v3083_v5 = vadd.f32 %v3082_v3, %v3081_v0  ;;  %v3146_v7 = vpop.f32.mrb[55].mxu1 }
 0x1c2   : > { %v3147_v9 = vadd.f32 %v3146_v7, %v3145_v2  ;;  %v519_v2 = vld [vmem:[#allocation2] sm:$0xff] }
 0x1c3   : > { %v4196_v11 = vadd.f32 %v3144_v1, %v2148_v36  ;;  %v2151_v38 = vadd.f32 %v3083_v5, %v4155_v54  ;;  %v520_v5 = vld [vmem:[#allocation2 + $0x8] sm:$0xff] }
 0x1c5   : > { %v4199_v58 = vadd.f32 %v3147_v9, %v2151_v38  ;;  %v3084_v12 = vpop.f32.mrb[56].mxu0 }
 0x1c6   : > { %v3148_v13 = vpop.f32.mrb[56].mxu1  ;;  %v3085_v14 = vpop.f32.mrb[57].mxu0 }
 0x1c7   : > { %v3086_v60 = vadd.f32 %v3085_v14, %v3084_v12  ;;  %v3149_v17 = vpop.f32.mrb[57].mxu1  ;;  %v3087_v18 = vpop.f32.mrb[58].mxu0 }
 0x1c8   : > { %v3150_v19 = vadd.f32 %v3149_v17, %v3148_v13  ;;  %v3151_v21 = vpop.f32.mrb[58].mxu1  ;;  %v3088_v25 = vpop.f32.mrb[59].mxu0 }
 0x1c9   : > { %v2156_v52 = vadd.f32 %v3086_v60, %v4157_v4  ;;  %v3089_v26 = vadd.f32 %v3088_v25, %v3087_v18  ;;  %v3152_v27 = vpop.f32.mrb[59].mxu1 }
 0x1ca   : > { %v3153_v28 = vadd.f32 %v3152_v27, %v3151_v21 }
 0x1cb   : > { %v4202_v29 = vadd.f32 %v3150_v19, %v2156_v52  ;;  %v2159_v54 = vadd.f32 %v3089_v26, %v4159_v6 }
 0x1cd   : > { %v4205_v8 = vadd.f32 %v3153_v28, %v2159_v54  ;;  %v3090_v30 = vpop.f32.mrb[60].mxu0 }
 0x1ce   : > { %v3154_v31 = vpop.f32.mrb[60].mxu1  ;;  %v3091_v32 = vpop.f32.mrb[61].mxu0 }
 0x1cf   : > { %v3092_v10 = vadd.f32 %v3091_v32, %v3090_v30  ;;  %v3155_v35 = vpop.f32.mrb[61].mxu1  ;;  %v3093_v37 = vpop.f32.mrb[62].mxu0  ;;  %v522_v30 = vld [vmem:[#allocation2 + $0x18] sm:$0xff] }
 0x1d0   : > { %v3156_v39 = vadd.f32 %v3155_v35, %v3154_v31  ;;  %v3157_v41 = vpop.f32.mrb[62].mxu1  ;;  %v3094_v43 = vpop.f32.mrb[63].mxu0 }
 0x1d1   : > { %v2164_v4 = vadd.f32 %v3092_v10, %v4161_v20  ;;  %v3095_v45 = vadd.f32 %v3094_v43, %v3093_v37  ;;  %v3158_v47 = vpop.f32.mrb[63].mxu1 }
 0x1d2   : > { %v3159_v48 = vadd.f32 %v3158_v47, %v3157_v41 }
 0x1d3   : > { %v4208_v49 = vadd.f32 %v3156_v39, %v2164_v4  ;;  %v2167_v6 = vadd.f32 %v3095_v45, %v4163_v23 }
 0x1d5   : > { %v4211_v22 = vadd.f32 %v3159_v48, %v2167_v6  ;;  %v3176_v50 = vpop.f32.mrb[64].mxu0 }
 0x1d6   : > { %v3240_v51 = vpop.f32.mrb[64].mxu1  ;;  %v3177_v53 = vpop.f32.mrb[65].mxu0 }
 0x1d7   : > { %v3178_v24 = vadd.f32 %v3177_v53, %v3176_v50  ;;  %v3241_v56 = vpop.f32.mrb[65].mxu1  ;;  %v3179_v57 = vpop.f32.mrb[66].mxu0 }
 0x1d8   : > { %v3242_v59 = vadd.f32 %v3241_v56, %v3240_v51  ;;  %v3243_v46 = vpop.f32.mrb[66].mxu1  ;;  %v3180_v63 = vpop.f32.mrb[67].mxu0  ;;  %v524_v56 = vld [vmem:[#allocation2 + $0x28] sm:$0xff] }
 0x1d9   : > { %v2302_v20 = vadd.f32 %v3178_v24, %v4166_v40  ;;  %v3181_v0 = vadd.f32 %v3180_v63, %v3179_v57  ;;  %v3244_v1 = vpop.f32.mrb[67].mxu1 }
 0x1da   : > { %v3245_v3 = vadd.f32 %v3244_v1, %v3243_v46 }
 0x1db   : > { %v2399_v36 = vadd.f32 %v3242_v59, %v2302_v20  ;;  %v2305_v23 = vadd.f32 %v3181_v0, %v4169_v42  ;;  %v521_v42 = vld [vmem:[#allocation2 + $0x10] sm:$0xff] }
 0x1dd   : > { %v2461_v7 = vadd.f32 %v2399_v36, %v519_v2  ;;  %v2402_v9 = vadd.f32 %v3245_v3, %v2305_v23  ;;  %v3182_v38 = vpop.f32.mrb[68].mxu0 }
 0x1de   : > { %v3246_v12 = vpop.f32.mrb[68].mxu1  ;;  %v3183_v13 = vpop.f32.mrb[69].mxu0 }
 0x1df   : > { %2477 = vst [vmem:[#allocation2] sm:$0xff] %v2461_v7  ;;  %v2462_v14 = vadd.f32 %v2402_v9, %v520_v5  ;;  %v3184_v60 = vadd.f32 %v3183_v13, %v3182_v38  ;;  %v3247_v17 = vpop.f32.mrb[69].mxu1  ;;  %v3185_v18 = vpop.f32.mrb[70].mxu0 }
 0x1e0   : > { %v3248_v19 = vadd.f32 %v3247_v17, %v3246_v12  ;;  %v3249_v40 = vpop.f32.mrb[70].mxu1  ;;  %v3186_v21 = vpop.f32.mrb[71].mxu0 }
 0x1e1   : > { %2478 = vst [vmem:[#allocation2 + $0x8] sm:$0xff] %v2462_v14  ;;  %v2310_v25 = vadd.f32 %v3184_v60, %v4172_v61  ;;  %v3187_v52 = vadd.f32 %v3186_v21, %v3185_v18  ;;  %v3250_v26 = vpop.f32.mrb[71].mxu1  ;;  %v526_v14 = vld [vmem:[#allocation2 + $0x38] sm:$0xff] }
 0x1e2   : > { %v3251_v27 = vadd.f32 %v3250_v26, %v3249_v40 }
 0x1e3   : > { %v2407_v28 = vadd.f32 %v3248_v19, %v2310_v25  ;;  %v2313_v54 = vadd.f32 %v3187_v52, %v4175_v62  ;;  %v523_v62 = vld [vmem:[#allocation2 + $0x20] sm:$0xff] }
 0x1e5   : > { %v2463_v31 = vadd.f32 %v2407_v28, %v521_v42  ;;  %v2410_v32 = vadd.f32 %v3251_v27, %v2313_v54  ;;  %v3188_v10 = vpop.f32.mrb[72].mxu0 }
 0x1e6   : > { %v3252_v35 = vpop.f32.mrb[72].mxu1  ;;  %v3189_v37 = vpop.f32.mrb[73].mxu0 }
 0x1e7   : > { %2479 = vst [vmem:[#allocation2 + $0x10] sm:$0xff] %v2463_v31  ;;  %v2464_v39 = vadd.f32 %v2410_v32, %v522_v30  ;;  %v3190_v41 = vadd.f32 %v3189_v37, %v3188_v10  ;;  %v3253_v43 = vpop.f32.mrb[73].mxu1  ;;  %v3191_v4 = vpop.f32.mrb[74].mxu0 }
 0x1e8   : > { %v3254_v45 = vadd.f32 %v3253_v43, %v3252_v35  ;;  %v3255_v61 = vpop.f32.mrb[74].mxu1  ;;  %v3192_v47 = vpop.f32.mrb[75].mxu0  ;;  %v528_v35 = vld [vmem:[#allocation2 + $0x48] sm:$0xff] }
 0x1e9   : > { %2480 = vst [vmem:[#allocation2 + $0x18] sm:$0xff] %v2464_v39  ;;  %v2318_v48 = vadd.f32 %v3190_v41, %v4178_v15  ;;  %v3193_v6 = vadd.f32 %v3192_v47, %v3191_v4  ;;  %v3256_v50 = vpop.f32.mrb[75].mxu1 }
 0x1ea   : > { %v3257_v51 = vadd.f32 %v3256_v50, %v3255_v61 }
 0x1eb   : > { %v2415_v53 = vadd.f32 %v3254_v45, %v2318_v48  ;;  %v2321_v24 = vadd.f32 %v3193_v6, %v4181_v16  ;;  %v525_v16 = vld [vmem:[#allocation2 + $0x30] sm:$0xff] }
 0x1ed   : > { %v2465_v57 = vadd.f32 %v2415_v53, %v523_v62  ;;  %v2418_v59 = vadd.f32 %v3257_v51, %v2321_v24  ;;  %v3194_v46 = vpop.f32.mrb[76].mxu0 }
 0x1ee   : > { %v3258_v63 = vpop.f32.mrb[76].mxu1  ;;  %v3195_v20 = vpop.f32.mrb[77].mxu0 }
 0x1ef   : > { %2481 = vst [vmem:[#allocation2 + $0x20] sm:$0xff] %v2465_v57  ;;  %v2466_v0 = vadd.f32 %v2418_v59, %v524_v56  ;;  %v3196_v1 = vadd.f32 %v3195_v20, %v3194_v46  ;;  %v3259_v2 = vpop.f32.mrb[77].mxu1  ;;  %v3197_v3 = vpop.f32.mrb[78].mxu0  ;;  %v530_v59 = vld [vmem:[#allocation2 + $0x58] sm:$0xff] }
 0x1f0   : > { %v3260_v36 = vadd.f32 %v3259_v2, %v3258_v63  ;;  %v3261_v15 = vpop.f32.mrb[78].mxu1  ;;  %v3198_v23 = vpop.f32.mrb[79].mxu0 }
 0x1f1   : > { %2482 = vst [vmem:[#allocation2 + $0x28] sm:$0xff] %v2466_v0  ;;  %v2326_v5 = vadd.f32 %v3196_v1, %v4184_v33  ;;  %v3199_v7 = vadd.f32 %v3198_v23, %v3197_v3  ;;  %v3262_v9 = vpop.f32.mrb[79].mxu1 }
 0x1f2   : > { %v3263_v38 = vadd.f32 %v3262_v9, %v3261_v15 }
 0x1f3   : > { %v2423_v12 = vadd.f32 %v3260_v36, %v2326_v5  ;;  %v2329_v13 = vadd.f32 %v3199_v7, %v4187_v34  ;;  %v527_v34 = vld [vmem:[#allocation2 + $0x40] sm:$0xff] }
 0x1f5   : > { %v2467_v60 = vadd.f32 %v2423_v12, %v525_v16  ;;  %v2426_v17 = vadd.f32 %v3263_v38, %v2329_v13  ;;  %v3200_v18 = vpop.f32.mrb[80].mxu0 }
 0x1f6   : > { %v3264_v19 = vpop.f32.mrb[80].mxu1  ;;  %v3201_v40 = vpop.f32.mrb[81].mxu0 }
 0x1f7   : > { %2483 = vst [vmem:[#allocation2 + $0x30] sm:$0xff] %v2467_v60  ;;  %v2468_v21 = vadd.f32 %v2426_v17, %v526_v14  ;;  %v3202_v25 = vadd.f32 %v3201_v40, %v3200_v18  ;;  %v3265_v52 = vpop.f32.mrb[81].mxu1  ;;  %v3203_v26 = vpop.f32.mrb[82].mxu0  ;;  %v532_v14 = vld [vmem:[#allocation2 + $0x68] sm:$0xff] }
 0x1f8   : > { %v3266_v42 = vadd.f32 %v3265_v52, %v3264_v19  ;;  %v3267_v33 = vpop.f32.mrb[82].mxu1  ;;  %v3204_v27 = vpop.f32.mrb[83].mxu0 }
 0x1f9   : > { %2484 = vst [vmem:[#allocation2 + $0x38] sm:$0xff] %v2468_v21  ;;  %v2334_v28 = vadd.f32 %v3202_v25, %v4190_v55  ;;  %v3205_v54 = vadd.f32 %v3204_v27, %v3203_v26  ;;  %v3268_v30 = vpop.f32.mrb[83].mxu1 }
 0x1fa   : > { %v3269_v31 = vadd.f32 %v3268_v30, %v3267_v33 }
 0x1fb   : > { %v2431_v32 = vadd.f32 %v3266_v42, %v2334_v28  ;;  %v2337_v10 = vadd.f32 %v3205_v54, %v4193_v44  ;;  %v529_v44 = vld [vmem:[#allocation2 + $0x50] sm:$0xff] }
 0x1fd   : > { %v2469_v37 = vadd.f32 %v2431_v32, %v527_v34  ;;  %v2434_v39 = vadd.f32 %v3269_v31, %v2337_v10  ;;  %v3206_v41 = vpop.f32.mrb[84].mxu0  ;;  %v534_v32 = vld [vmem:[#allocation2 + $0x78] sm:$0xff] }
 0x1fe   : > { %v3270_v43 = vpop.f32.mrb[84].mxu1  ;;  %v3207_v4 = vpop.f32.mrb[85].mxu0 }
 0x1ff   : > { %2485 = vst [vmem:[#allocation2 + $0x40] sm:$0xff] %v2469_v37  ;;  %v2470_v45 = vadd.f32 %v2434_v39, %v528_v35  ;;  %v3208_v61 = vadd.f32 %v3207_v4, %v3206_v41  ;;  %v3271_v47 = vpop.f32.mrb[85].mxu1  ;;  %v3209_v48 = vpop.f32.mrb[86].mxu0  ;;  %v2497_v39 = vld [vmem:[#allocation2] sm:$0xff] (!%p2899_p13)  ;;  %v2498_v41 = vld [vmem:[#allocation2 + $0x8] sm:$0xff] (!%p2899_p13) }
 0x200   : > { %v3272_v6 = vadd.f32 %v3271_v47, %v3270_v43  ;;  %v3273_v55 = vpop.f32.mrb[86].mxu1  ;;  %v3210_v50 = vpop.f32.mrb[87].mxu0 }
 0x201   : > { %2486 = vst [vmem:[#allocation2 + $0x48] sm:$0xff] %v2470_v45  ;;  %v2342_v62 = vadd.f32 %v3208_v61, %v4196_v11  ;;  %v3211_v51 = vadd.f32 %v3210_v50, %v3209_v48  ;;  %v3274_v53 = vpop.f32.mrb[87].mxu1  ;;  %v2500_v45 = vld [vmem:[#allocation2 + $0x18] sm:$0xff] (!%p2899_p13)  ;;  %v2501_v61 = vld [vmem:[#allocation2 + $0x20] sm:$0xff] (!%p2899_p13)  ;;  %v2503_v50 = vld [vmem:[#allocation2 + $0x30] sm:$0xff] (!%p2899_p13) }
 0x202   : > { %v3275_v24 = vadd.f32 %v3274_v53, %v3273_v55  ;;  %v2502_v55 = vld [vmem:[#allocation2 + $0x28] sm:$0xff] (!%p2899_p13) }
 0x203   : > { %v2439_v56 = vadd.f32 %v3272_v6, %v2342_v62  ;;  %v2345_v57 = vadd.f32 %v3211_v51, %v4199_v58  ;;  %v531_v58 = vld [vmem:[#allocation2 + $0x60] sm:$0xff]  ;;  %v2504_v62 = vld [vmem:[#allocation2 + $0x38] sm:$0xff] (!%p2899_p13) }
 0x205   : > { %v2471_v46 = vadd.f32 %v2439_v56, %v529_v44  ;;  %v2442_v63 = vadd.f32 %v3275_v24, %v2345_v57  ;;  %v3212_v20 = vpop.f32.mrb[88].mxu0 }
 0x206   : > { %v3276_v0 = vpop.f32.mrb[88].mxu1  ;;  %v3213_v1 = vpop.f32.mrb[89].mxu0  ;;  %v2505_v24 = vld [vmem:[#allocation2 + $0x40] sm:$0xff] (!%p2899_p13) }
 0x207   : > { %2487 = vst [vmem:[#allocation2 + $0x50] sm:$0xff] %v2471_v46  ;;  %v2472_v2 = vadd.f32 %v2442_v63, %v530_v59  ;;  %v3214_v3 = vadd.f32 %v3213_v1, %v3212_v20  ;;  %v3277_v36 = vpop.f32.mrb[89].mxu1  ;;  %v3215_v15 = vpop.f32.mrb[90].mxu0 }
 0x208   : > { %v3278_v23 = vadd.f32 %v3277_v36, %v3276_v0  ;;  %v3279_v11 = vpop.f32.mrb[90].mxu1  ;;  %v3216_v5 = vpop.f32.mrb[91].mxu0  ;;  %v2506_v56 = vld [vmem:[#allocation2 + $0x48] sm:$0xff] (!%p2899_p13) }
 0x209   : > { %2488 = vst [vmem:[#allocation2 + $0x58] sm:$0xff] %v2472_v2  ;;  %v2350_v7 = vadd.f32 %v3214_v3, %v4202_v29  ;;  %v3217_v9 = vadd.f32 %v3216_v5, %v3215_v15  ;;  %v3280_v16 = vpop.f32.mrb[91].mxu1 }
 0x20a   : > { %v3281_v38 = vadd.f32 %v3280_v16, %v3279_v11 }
 0x20b   : > { %v2447_v12 = vadd.f32 %v3278_v23, %v2350_v7  ;;  %v2353_v13 = vadd.f32 %v3217_v9, %v4205_v8  ;;  %v533_v8 = vld [vmem:[#allocation2 + $0x70] sm:$0xff] }
 0x20d   : > { %v2473_v60 = vadd.f32 %v2447_v12, %v531_v58  ;;  %v2450_v17 = vadd.f32 %v3281_v38, %v2353_v13  ;;  %v3218_v18 = vpop.f32.mrb[92].mxu0 }
 0x20e   : > { %v3282_v19 = vpop.f32.mrb[92].mxu1  ;;  %v3219_v40 = vpop.f32.mrb[93].mxu0  ;;  %v2507_v57 = vld [vmem:[#allocation2 + $0x50] sm:$0xff] (!%p2899_p13) }
 0x20f   : > { %2489 = vst [vmem:[#allocation2 + $0x60] sm:$0xff] %v2473_v60  ;;  %v2474_v21 = vadd.f32 %v2450_v17, %v532_v14  ;;  %v3220_v25 = vadd.f32 %v3219_v40, %v3218_v18  ;;  %v3283_v52 = vpop.f32.mrb[93].mxu1  ;;  %v3221_v26 = vpop.f32.mrb[94].mxu0 }
 0x210   : > { %v3284_v42 = vadd.f32 %v3283_v52, %v3282_v19  ;;  %v3285_v29 = vpop.f32.mrb[94].mxu1  ;;  %v3222_v33 = vpop.f32.mrb[95].mxu0  ;;  %v2508_v20 = vld [vmem:[#allocation2 + $0x58] sm:$0xff] (!%p2899_p13) }
 0x211   : > { %2490 = vst [vmem:[#allocation2 + $0x68] sm:$0xff] %v2474_v21  ;;  %v2358_v27 = vadd.f32 %v3220_v25, %v4208_v49  ;;  %v3223_v28 = vadd.f32 %v3222_v33, %v3221_v26  ;;  %v3286_v54 = vpop.f32.mrb[95].mxu1  ;;  %v2900_v49 = vld [vmem:[%s4272_s2] ss:$0 sm:$0xff] (!%p2899_p13) }
 0x212   : > { %v3287_v30 = vadd.f32 %v3286_v54, %v3285_v29  ;;  %v2520_v43 = vadd.f32 (!%p2899_p13), %v2900_v49, %v2497_v39  ;;  %v2521_v4 = vadd.f32 (!%p2899_p13), %v2900_v49, %v2498_v41  ;;  %v2523_v48 = vadd.f32 (!%p2899_p13), %v2900_v49, %v2500_v45 }
 0x213   : > { %v2455_v34 = vadd.f32 %v3284_v42, %v2358_v27  ;;  %v2361_v31 = vadd.f32 %v3223_v28, %v4211_v22  ;;  %2496 = sbr.rel (%p2899_p13) target bundleno = 548 (0x224), region = 63  ;;  %v2499_v22 = vld [vmem:[#allocation2 + $0x10] sm:$0xff] (!%p2899_p13)  ;;  %v2524_v6 = vadd.f32 (!%p2899_p13), %v2900_v49, %v2501_v61  ;;  %v2525_v51 = vadd.f32 (!%p2899_p13), %v2900_v49, %v2502_v55 }
 0x214   : > { %v2522_v47 = vadd.f32 (!%p2899_p13), %v2900_v49, %v2499_v22  ;;  %2536 = vst [vmem:[%s3931_s26] sm:$0xff] (!%p2899_p13), %v2520_v43  ;;  %2537 = vst [vmem:[%s3931_s26 + $0x8] sm:$0xff] (!%p2899_p13), %v2521_v4  ;;  %v2526_v53 = vadd.f32 (!%p2899_p13), %v2900_v49, %v2503_v50  ;;  %v2527_v44 = vadd.f32 (!%p2899_p13), %v2900_v49, %v2504_v62 }
 0x215   : > { %v2475_v10 = vadd.f32 %v2455_v34, %v533_v8  ;;  %v2458_v35 = vadd.f32 %v3287_v30, %v2361_v31  ;;  %2539 = vst [vmem:[%s3931_s26 + $0x18] sm:$0xff] (!%p2899_p13), %v2523_v48  ;;  %2540 = vst [vmem:[%s3931_s26 + $0x20] sm:$0xff] (!%p2899_p13), %v2524_v6  ;;  %v2528_v59 = vadd.f32 (!%p2899_p13), %v2900_v49, %v2505_v24 }
 0x216   : > { %2538 = vst [vmem:[%s3931_s26 + $0x10] sm:$0xff] (!%p2899_p13), %v2522_v47  ;;  %v2529_v46 = vadd.f32 (!%p2899_p13), %v2900_v49, %v2506_v56  ;;  %v2530_v63 = vadd.f32 (!%p2899_p13), %v2900_v49, %v2507_v57  ;;  %v2509_v0 = vld [vmem:[#allocation2 + $0x60] sm:$0xff] (!%p2899_p13)  ;;  %2541 = vst [vmem:[%s3931_s26 + $0x28] sm:$0xff] (!%p2899_p13), %v2525_v51  ;;  %v2531_v2 = vadd.f32 (!%p2899_p13), %v2900_v49, %v2508_v20 }
 0x217   : > { %2491 = vst [vmem:[#allocation2 + $0x70] sm:$0xff] %v2475_v10  ;;  %v2476_v37 = vadd.f32 %v2458_v35, %v534_v32  ;;  %2542 = vst [vmem:[%s3931_s26 + $0x30] sm:$0xff] (!%p2899_p13), %v2526_v53  ;;  %v2532_v3 = vadd.f32 (!%p2899_p13), %v2900_v49, %v2509_v0 }
 0x218   : > { %v2510_v1 = vld [vmem:[#allocation2 + $0x68] sm:$0xff] (!%p2899_p13)  ;;  %2543 = vst [vmem:[%s3931_s26 + $0x38] sm:$0xff] (!%p2899_p13), %v2527_v44  ;;  %2544 = vst [vmem:[%s3931_s26 + $0x40] sm:$0xff] (!%p2899_p13), %v2528_v59 }
 0x219   : > { %2492 = vst [vmem:[#allocation2 + $0x78] sm:$0xff] %v2476_v37  ;;  %v2533_v36 = vadd.f32 (!%p2899_p13), %v2900_v49, %v2510_v1  ;;  %2545 = vst [vmem:[%s3931_s26 + $0x48] sm:$0xff] (!%p2899_p13), %v2529_v46 }
 0x21a   : > { %2546 = vst [vmem:[%s3931_s26 + $0x50] sm:$0xff] %v2530_v63  ;;  %2547 = vst [vmem:[%s3931_s26 + $0x58] sm:$0xff] %v2531_v2 }
 0x21b   : > { %2548 = vst [vmem:[%s3931_s26 + $0x60] sm:$0xff] %v2532_v3  ;;  %2549 = vst [vmem:[%s3931_s26 + $0x68] sm:$0xff] %v2533_v36 }
 0x21e   : > { %v2511_v15 = vld [vmem:[#allocation2 + $0x70] sm:$0xff] }
 0x21f   : > { %v2534_v11 = vadd.f32 %v2900_v49, %v2511_v15 }
 0x220   : > { %v2512_v23 = vld [vmem:[#allocation2 + $0x78] sm:$0xff] }
 0x221   : > { %v2535_v5 = vadd.f32 %v2900_v49, %v2512_v23  ;;  %2550 = vst [vmem:[%s3931_s26 + $0x70] sm:$0xff] %v2534_v11 }
 0x223   : > { %2551 = vst [vmem:[%s3931_s26 + $0x78] sm:$0xff] %v2535_v5 }
 0x224 PF: > { %s13_s18 = sadd.s32 1, %s3643_s18   ;;  %s4274_s12 = smov %s3623_s13 }
 0x225   : > { %p10_p0 = scmp.ge.s32.totalorder %s13_s18, 10   ;;  %s4275_s13 = smov %s3717_s25 }
 0x226   : > { %s4276_s14 = smov %s3635_s16  ;;  %s4277_s15 = smov %s3639_s17 }
 0x227   : > { %s4278_s16 = smov %s4281_s19  ;;  %s4279_s17 = smov %s4285_s20 }
 0x228   :  { %12 = sbr.rel (!%p10_p0) target bundleno = 4 (0x4), region = 104 }

// kernel: pixel_decoder_forward.7
= control target key start
LH: loop header
LB: loop body
LE: loop exit
PB: predicated region body
PF: predicated region fallthrough
CT: control target
= control target key end

     0   :  { %s4184_s12 = smov 0   ;;  %s4186_s13 = smov 0   ;;  %s4993_s0 = inlined_call_operand.vmem [shape: bf16[1,512,1152], index: 0, kind: input, shape index: {}]   ;;  %s4994_s1 = inlined_call_operand.vmem [shape: bf16[1,1152,128], index: 1, kind: input, shape index: {}]   ;;  %s4995_s2 = inlined_call_operand.vmem [shape: f32[1,128], index: 2, kind: input, shape index: {}]   ;;  %s4996_s3 = inlined_call_operand.vmem [shape: f32[1,512,128], index: 3, kind: output, shape index: {}]  }
   0x1   :  { %s4188_s14 = smov 0  }
   0x2 LB: > { %s35_s15 = sadd.s32 1, %s4158_s13  ;;  %p3011_p0 = scmp.ge.s32.totalorder %s4162_s14, 1  ;;  %s4162_s14 = sphi %s4188_s14, %s13_s14   ;;  %s4158_s13 = sphi %s4186_s13, %s4998_s13   ;;  %s4154_s12 = sphi %s4184_s12, %s4997_s12  }
   0x3   : > { %p37_p1 = scmp.ge.s32.totalorder %s35_s15, 2  ;;  %p212_p2 = scmp.lt.s32.totalorder %s4162_s14, 3 }
   0x5   : > { %s5000_s15 = smov (%p37_p1, %s35_s15), 0  ;;  %p213_p3 = pnand %p3011_p0, %p212_p2 }
   0x6   : > { %v3796_v0 = vld [vmem:[%s4994_s1 + $0x40] sm:$0xff] (!%p213_p3)   ;;  %s3012_s18 = sshll.u32 (!%p213_p3), %s4154_s12, 5  ;;  %v3798_v2 = vld [vmem:[%s4994_s1 + $0x48] sm:$0xff] (!%p213_p3)   ;;  %v3800_v4 = vld [vmem:[%s4994_s1 + $0x50] sm:$0xff] (!%p213_p3)  }
   0x7   : > { %216 = sbr.rel (%p213_p3) target bundleno = 556 (0x22c), region = 32  ;;  %v3797_v1 = vld [vmem:[%s4994_s1] sm:$0xff] (!%p213_p3)   ;;  %3235 = vmatprep.subr.bf16.mxu0 (!%p213_p3), %v3796_v0  ;;  %3755 = vmatprep.subr.bf16.mxu1 (!%p213_p3), %v3796_v0  ;;  %p271_p4 = scmp.lt.s32.totalorder (!%p213_p3), %s3012_s18, 63  ;;  %v3799_v3 = vld [vmem:[%s4994_s1 + $0x8] sm:$0xff] (!%p213_p3)   ;;  %v3801_v5 = vld [vmem:[%s4994_s1 + $0x10] sm:$0xff] (!%p213_p3)  }
   0x8   : > { %3236 = vmatpush3.bf16.msra.mxu0 (!%p213_p3), %v3797_v1  ;;  %3763 = vmatpush3.bf16.msra.mxu1 (!%p213_p3), %v3797_v1  ;;  %v3802_v6 = vld [vmem:[%s4994_s1 + $0x58] sm:$0xff] (!%p213_p3)   ;;  %v3804_v8 = vld [vmem:[%s4994_s1 + $0x60] sm:$0xff] (!%p213_p3)   ;;  %v3806_v10 = vld [vmem:[%s4994_s1 + $0x68] sm:$0xff] (!%p213_p3)  }
   0x9   : > { %3237 = vmatprep.subr.bf16.mxu0 (!%p213_p3), %v3798_v2  ;;  %3756 = vmatprep.subr.bf16.mxu1 (!%p213_p3), %v3798_v2  ;;  %v3803_v7 = vld [vmem:[%s4994_s1 + $0x18] sm:$0xff] (!%p213_p3)   ;;  %v3805_v9 = vld [vmem:[%s4994_s1 + $0x20] sm:$0xff] (!%p213_p3)   ;;  %v3807_v13 = vld [vmem:[%s4994_s1 + $0x28] sm:$0xff] (!%p213_p3)  }
   0xa   : > { %v3808_v14 = vld [vmem:[%s4994_s1 + $0x70] sm:$0xff] (!%p213_p3)   ;;  %v3810_v16 = vld [vmem:[%s4994_s1 + $0x78] sm:$0xff] (!%p213_p3)   ;;  %v3818_v18 = vld [vmem:[%s4994_s1 + $0xc0] sm:$0xff] (!%p213_p3)  }
   0xb   : > { %v3809_v15 = vld [vmem:[%s4994_s1 + $0x30] sm:$0xff] (!%p213_p3)   ;;  %v3811_v17 = vld [vmem:[%s4994_s1 + $0x38] sm:$0xff] (!%p213_p3)   ;;  %v3821_v21 = vld [vmem:[%s4994_s1 + $0x140] sm:$0xff] (!%p213_p3)  }
   0xc   : > { %3238 = vmatpush3.bf16.msra.mxu0 (!%p213_p3), %v3799_v3  ;;  %3764 = vmatpush3.bf16.msra.mxu1 (!%p213_p3), %v3799_v3  ;;  %v3819_v22 = vld [vmem:[%s4994_s1 + $0x80] sm:$0xff] (!%p213_p3)   ;;  %v3820_v23 = vld [vmem:[%s4994_s1 + $0xc8] sm:$0xff] (!%p213_p3)   ;;  %v3830_v31 = vld [vmem:[%s4994_s1 + $0xd0] sm:$0xff] (!%p213_p3)  }
   0xd   : > { %3239 = vmatprep.subr.bf16.mxu0 (!%p213_p3), %v3800_v4  ;;  %3757 = vmatprep.subr.bf16.mxu1 (!%p213_p3), %v3800_v4  ;;  %v3823_v24 = vld [vmem:[%s4994_s1 + $0x100] sm:$0xff] (!%p213_p3)   ;;  %v3822_v27 = vld [vmem:[%s4994_s1 + $0x88] sm:$0xff] (!%p213_p3)   ;;  %v3831_v32 = vld [vmem:[%s4994_s1 + $0x90] sm:$0xff] (!%p213_p3)  }
   0xe   : > { %s5002_s18 = smov (!%p271_p4, %s3012_s18), 63  ;;  %v3841_v28 = vld [vmem:[%s4994_s1 + $0x148] sm:$0xff]   ;;  %v3832_v34 = vld [vmem:[%s4994_s1 + $0xd8] sm:$0xff]   ;;  %v3840_v40 = vld [vmem:[%s4994_s1 + $0xe0] sm:$0xff]  }
   0xf   : > { %s3771_s4 = smul.u32 36, %s5002_s18  ;;  %v3843_v33 = vld [vmem:[%s4994_s1 + $0x108] sm:$0xff]   ;;  %v3833_v37 = vld [vmem:[%s4994_s1 + $0x98] sm:$0xff]   ;;  %v3842_v41 = vld [vmem:[%s4994_s1 + $0xa0] sm:$0xff]   ;;  %s3015_s6 = sshll.u32 %s5002_s18, 3 }
  0x10   : > { %3240 = vmatpush3.bf16.msra.mxu0 %v3801_v5  ;;  %3765 = vmatpush3.bf16.msra.mxu1 %v3801_v5  ;;  %v3844_v42 = vld [vmem:[%s4994_s1 + $0xe8] sm:$0xff]   ;;  %v3855_v43 = vld [vmem:[%s4994_s1 + $0x150] sm:$0xff]   ;;  %v3854_v52 = vld [vmem:[%s4994_s1 + $0xf8] sm:$0xff]   ;;  %s4891_s8 = scalar_lea.vmem %s4996_s3, %s3015_s6 }
  0x11   : > { %3241 = vmatprep.subr.bf16.mxu0 %v3802_v6  ;;  %3758 = vmatprep.subr.bf16.mxu1 %v3802_v6  ;;  %s4235_s11 = scalar_lea.vmem %s4993_s0, %s3771_s4  ;;  %v3857_v46 = vld [vmem:[%s4994_s1 + $0x110] sm:$0xff]   ;;  %v3845_v47 = vld [vmem:[%s4994_s1 + $0xa8] sm:$0xff]   ;;  %v3872_v55 = vld [vmem:[%s4994_s1 + $0x158] sm:$0xff]  }
  0x12   : > { %v3814_v11 = vld [vmem:[%s4235_s11 + $0x4] ss:$36 sps:$4 sm:$0xff]   ;;  %v3824_v25 = vld [vmem:[%s4235_s11 + $0x4c] ss:$36 sps:$4 sm:$0xff]   ;;  %v3834_v35 = vld [vmem:[%s4235_s11 + $0x94] ss:$36 sps:$4 sm:$0xff]  }
  0x13   : > { %v3817_v12 = vld [vmem:[%s4235_s11 + $0x364] ss:$36 sps:$4 sm:$0xff]   ;;  %1885 = vmatprep.mubr.bf16.mxu0 %v3814_v11  ;;  %v3826_v26 = vld [vmem:[%s4235_s11 + $0x3ac] ss:$36 sps:$4 sm:$0xff]   ;;  %v3836_v36 = vld [vmem:[%s4235_s11 + $0x3f4] ss:$36 sps:$4 sm:$0xff]  }
  0x14   : > { %3242 = vmatpush3.bf16.msra.mxu0 %v3803_v7  ;;  %3766 = vmatpush3.bf16.msra.mxu1 %v3803_v7  ;;  %v3812_v19 = vld [vmem:[%s4235_s11] ss:$36 sps:$4 sm:$0xff]   ;;  %v3828_v29 = vld [vmem:[%s4235_s11 + $0x48] ss:$36 sps:$4 sm:$0xff]   ;;  %v3838_v38 = vld [vmem:[%s4235_s11 + $0x90] ss:$36 sps:$4 sm:$0xff]  }
  0x15   : > { %3243 = vmatprep.subr.bf16.mxu0 %v3804_v8  ;;  %3759 = vmatprep.subr.bf16.mxu1 %v3804_v8  ;;  %v3815_v20 = vld [vmem:[%s4235_s11 + $0x360] ss:$36 sps:$4 sm:$0xff]   ;;  %v3829_v30 = vld [vmem:[%s4235_s11 + $0x3a8] ss:$36 sps:$4 sm:$0xff]   ;;  %v3839_v39 = vld [vmem:[%s4235_s11 + $0x3f0] ss:$36 sps:$4 sm:$0xff]  }
  0x16   : > { %1981 = vmatprep.mubr.bf16.mxu1 %v3817_v12  ;;  %v3846_v44 = vld [vmem:[%s4235_s11 + $0xdc] ss:$36 sps:$4 sm:$0xff]   ;;  %v3852_v48 = vld [vmem:[%s4994_s1 + $0xf0] sm:$0xff]   ;;  %v3858_v53 = vld [vmem:[%s4235_s11 + $0x124] ss:$36 sps:$4 sm:$0xff]  }
  0x17   : > { %v3848_v45 = vld [vmem:[%s4235_s11 + $0x43c] ss:$36 sps:$4 sm:$0xff]   ;;  %v3853_v51 = vld [vmem:[%s4994_s1 + $0xb0] sm:$0xff]   ;;  %v3860_v58 = vld [vmem:[%s4235_s11 + $0x8] ss:$36 sps:$4 sm:$0xff]  }
  0x18   : > { %3244 = vmatpush3.bf16.msra.mxu0 %v3805_v9  ;;  %3767 = vmatpush3.bf16.msra.mxu1 %v3805_v9  ;;  %v3850_v49 = vld [vmem:[%s4235_s11 + $0xd8] ss:$36 sps:$4 sm:$0xff]   ;;  %v3862_v54 = vld [vmem:[%s4235_s11 + $0xc] ss:$36 sps:$4 sm:$0xff]   ;;  %v3863_v59 = vld [vmem:[%s4235_s11 + $0x120] ss:$36 sps:$4 sm:$0xff]  }
  0x19   : > { %3245 = vmatprep.subr.bf16.mxu0 %v3806_v10  ;;  %3760 = vmatprep.subr.bf16.mxu1 %v3806_v10  ;;  %v3851_v50 = vld [vmem:[%s4235_s11 + $0x438] ss:$36 sps:$4 sm:$0xff]   ;;  %v3864_v60 = vld [vmem:[%s4994_s1 + $0x1c0] sm:$0xff]   ;;  %v3866_v62 = vld [vmem:[%s4235_s11 + $0x16c] ss:$36 sps:$4 sm:$0xff]  }
  0x1a   : > { %v3873_v56 = vld [vmem:[%s4994_s1 + $0x118] sm:$0xff]   ;;  %v3865_v61 = vld [vmem:[%s4994_s1 + $0x180] sm:$0xff]   ;;  %v3880_v1 = vld [vmem:[%s4994_s1 + $0x1c8] sm:$0xff]  }
  0x1b   : > { %v3856_v57 = vld [vmem:[%s4994_s1 + $0xb8] sm:$0xff]   ;;  %v3882_v0 = vld [vmem:[%s4994_s1 + $0x160] sm:$0xff]   ;;  %v3881_v3 = vld [vmem:[%s4994_s1 + $0x188] sm:$0xff]  }
  0x1c   : > { %3246 = vmatpush3.bf16.msra.mxu0 %v3807_v13  ;;  %3768 = vmatpush3.bf16.msra.mxu1 %v3807_v13  ;;  %v3868_v63 = vld [vmem:[%s4235_s11 + $0x54] ss:$36 sps:$4 sm:$0xff]   ;;  %v3883_v2 = vld [vmem:[%s4994_s1 + $0x120] sm:$0xff]   ;;  %v3870_v4 = vld [vmem:[%s4235_s11 + $0x168] ss:$36 sps:$4 sm:$0xff]  }
  0x1d   : > { %3247 = vmatprep.subr.bf16.mxu0 %v3808_v14  ;;  %3761 = vmatprep.subr.bf16.mxu1 %v3808_v14  ;;  %v3871_v5 = vld [vmem:[%s4235_s11 + $0x50] ss:$36 sps:$4 sm:$0xff]   ;;  %v3876_v7 = vld [vmem:[%s4235_s11 + $0x9c] ss:$36 sps:$4 sm:$0xff]   ;;  %v3896_v8 = vld [vmem:[%s4994_s1 + $0x168] sm:$0xff]  }
  0x1e   : > { %v3874_v6 = vld [vmem:[%s4235_s11 + $0x1b4] ss:$36 sps:$4 sm:$0xff]   ;;  %v3898_v10 = vld [vmem:[%s4994_s1 + $0x128] sm:$0xff]   ;;  %v3884_v14 = vld [vmem:[%s4235_s11 + $0x1fc] ss:$36 sps:$4 sm:$0xff]  }
  0x1f   : > { %v3897_v9 = vld [vmem:[%s4994_s1 + $0x1d0] sm:$0xff]   ;;  %v3879_v13 = vld [vmem:[%s4235_s11 + $0x98] ss:$36 sps:$4 sm:$0xff]  }
  0x20   : > { %3248 = vmatpush3.bf16.msra.mxu0 %v3809_v15  ;;  %3769 = vmatpush3.bf16.msra.mxu1 %v3809_v15  ;;  %v3899_v11 = vld [vmem:[%s4994_s1 + $0x190] sm:$0xff]  }
  0x21   : > { %3249 = vmatprep.subr.bf16.mxu0 %v3810_v16  ;;  %3762 = vmatprep.subr.bf16.mxu1 %v3810_v16  ;;  %v3878_v12 = vld [vmem:[%s4235_s11 + $0x1b0] ss:$36 sps:$4 sm:$0xff]  }
  0x22   : > { %v3906_v15 = vld [vmem:[%s4994_s1 + $0x170] sm:$0xff]  }
  0x23   : > { %v3907_v16 = vld [vmem:[%s4994_s1 + $0x130] sm:$0xff]  }
  0x24   : > { %3250 = vmatpush3.bf16.msra.mxu0 %v3811_v17  ;;  %3770 = vmatpush3.bf16.msra.mxu1 %v3811_v17  ;;  %v3886_v17 = vld [vmem:[%s4235_s11 + $0xe4] ss:$36 sps:$4 sm:$0xff]  }
  0x25   : > { %3347 = vmatprep.subr.bf16.mxu1 %v3818_v18  ;;  %3459 = vmatprep.subr.bf16.mxu0 %v3821_v21  ;;  %v3914_v18 = vld [vmem:[%s4994_s1 + $0x1d8] sm:$0xff]   ;;  %v3889_v21 = vld [vmem:[%s4235_s11 + $0xe0] ss:$36 sps:$4 sm:$0xff]  }
  0x27   : > { %1886 = vmatmul.mubr.bf16.vlgmr.msra.gmra.mrb[0].mxu0 %v3812_v19  ;;  %1982 = vmatmul.mubr.bf16.vlgmr.msra.gmra.mrb[0].mxu1 %v3815_v20  ;;  %v3915_v19 = vld [vmem:[%s4994_s1 + $0x198] sm:$0xff]  }
  0x28   : > { %3348 = vmatpush3.bf16.msra.mxu1 %v3819_v22  ;;  %3460 = vmatpush3.bf16.msra.mxu0 %v3823_v24  ;;  %v3888_v20 = vld [vmem:[%s4235_s11 + $0x1f8] ss:$36 sps:$4 sm:$0xff]   ;;  %v3890_v22 = vld [vmem:[%s4235_s11 + $0x244] ss:$36 sps:$4 sm:$0xff]  }
  0x29   : > { %3349 = vmatprep.subr.bf16.mxu1 %v3820_v23  ;;  %1893 = vmatprep.mubr.bf16.mxu0 %v3824_v25  ;;  %v3892_v23 = vld [vmem:[%s4235_s11 + $0x12c] ss:$36 sps:$4 sm:$0xff]   ;;  %v3922_v24 = vld [vmem:[%s4994_s1 + $0x178] sm:$0xff]  }
  0x2a   : > { %1989 = vmatprep.mubr.bf16.mxu1 %v3826_v26  ;;  %3461 = vmatprep.subr.bf16.mxu0 %v3841_v28  ;;  %v3923_v25 = vld [vmem:[%s4994_s1 + $0x138] sm:$0xff]   ;;  %v3930_v26 = vld [vmem:[%s4994_s1 + $0x1e0] sm:$0xff]  }
  0x2b   : > { %v3931_v28 = vld [vmem:[%s4994_s1 + $0x1a0] sm:$0xff]  }
  0x2c   : > { %3350 = vmatpush3.bf16.msra.mxu1 %v3822_v27  ;;  %3462 = vmatpush3.bf16.msra.mxu0 %v3843_v33  ;;  %v3894_v27 = vld [vmem:[%s4235_s11 + $0x240] ss:$36 sps:$4 sm:$0xff]   ;;  %v3945_v33 = vld [vmem:[%s4994_s1 + $0x1e8] sm:$0xff]  }
  0x2d   : > { %3351 = vmatprep.subr.bf16.mxu1 %v3830_v31  ;;  %3463 = vmatprep.subr.bf16.mxu0 %v3855_v43  ;;  %v3900_v31 = vld [vmem:[%s4235_s11 + $0x28c] ss:$36 sps:$4 sm:$0xff]   ;;  %v3916_v43 = vld [vmem:[%s4235_s11 + $0x31c] ss:$36 sps:$4 sm:$0xff]  }
  0x2f   : > { %1894 = vmatmul.mubr.bf16.gmra.mrb[4].mxu0 %v3828_v29  ;;  %1990 = vmatmul.mubr.bf16.gmra.mrb[4].mxu1 %v3829_v30  ;;  %v3932_v29 = vld [vmem:[%s4994_s1 + $0x200] sm:$0xff]   ;;  %v3895_v30 = vld [vmem:[%s4235_s11 + $0x128] ss:$36 sps:$4 sm:$0xff]  }
  0x30   : > { %3352 = vmatpush3.bf16.msra.mxu1 %v3831_v32  ;;  %1901 = vmatprep.mubr.bf16.mxu0 %v3834_v35  ;;  %v3902_v32 = vld [vmem:[%s4235_s11 + $0x174] ss:$36 sps:$4 sm:$0xff]   ;;  %v3946_v35 = vld [vmem:[%s4994_s1 + $0x1a8] sm:$0xff]  }
  0x31   : > { %3353 = vmatprep.subr.bf16.mxu1 %v3832_v34  ;;  %1997 = vmatprep.mubr.bf16.mxu1 %v3836_v36  ;;  %v3904_v34 = vld [vmem:[%s4235_s11 + $0x288] ss:$36 sps:$4 sm:$0xff]   ;;  %v3905_v36 = vld [vmem:[%s4235_s11 + $0x170] ss:$36 sps:$4 sm:$0xff]  }
  0x32   : > { %3464 = vmatpush3.bf16.msra.mxu0 %v3857_v46  ;;  %v3921_v46 = vld [vmem:[%s4235_s11 + $0x200] ss:$36 sps:$4 sm:$0xff]  }
  0x33   : > { %3465 = vmatprep.subr.bf16.mxu0 %v3872_v55  ;;  %v3947_v55 = vld [vmem:[%s4994_s1 + $0x208] sm:$0xff]  }
  0x34   : > { %3354 = vmatpush3.bf16.msra.mxu1 %v3833_v37  ;;  %v3908_v37 = vld [vmem:[%s4235_s11 + $0x2d4] ss:$36 sps:$4 sm:$0xff]  }
  0x35   : > { %3355 = vmatprep.subr.bf16.mxu1 %v3840_v40  ;;  %v3913_v40 = vld [vmem:[%s4235_s11 + $0x1b8] ss:$36 sps:$4 sm:$0xff]  }
  0x36   : > { %3466 = vmatpush3.bf16.msra.mxu0 %v3873_v56  ;;  %v3962_v56 = vld [vmem:[%s4994_s1 + $0x210] sm:$0xff]  }
  0x37   : > { %1902 = vmatmul.mubr.bf16.gmra.mrb[8].mxu0 %v3838_v38  ;;  %1998 = vmatmul.mubr.bf16.gmra.mrb[8].mxu1 %v3839_v39  ;;  %v3910_v38 = vld [vmem:[%s4235_s11 + $0x1bc] ss:$36 sps:$4 sm:$0xff]   ;;  %v3912_v39 = vld [vmem:[%s4235_s11 + $0x2d0] ss:$36 sps:$4 sm:$0xff]  }
  0x38   : > { %3356 = vmatpush3.bf16.msra.mxu1 %v3842_v41  ;;  %1909 = vmatprep.mubr.bf16.mxu0 %v3846_v44  ;;  %v3960_v41 = vld [vmem:[%s4994_s1 + $0x1f0] sm:$0xff]   ;;  %v3918_v44 = vld [vmem:[%s4235_s11 + $0x204] ss:$36 sps:$4 sm:$0xff]  }
  0x39   : > { %3357 = vmatprep.subr.bf16.mxu1 %v3844_v42  ;;  %2005 = vmatprep.mubr.bf16.mxu1 %v3848_v45  ;;  %v3961_v42 = vld [vmem:[%s4994_s1 + $0x1b0] sm:$0xff]   ;;  %v3920_v45 = vld [vmem:[%s4235_s11 + $0x318] ss:$36 sps:$4 sm:$0xff]  }
  0x3a   : > { %3467 = vmatprep.subr.bf16.mxu0 %v3882_v0  ;;  %v3944_v0 = vld [vmem:[%s4235_s11 + $0xa0] ss:$36 sps:$4 sm:$0xff]  }
  0x3b   : > { %3468 = vmatpush3.bf16.msra.mxu0 %v3883_v2  ;;  %v3950_v2 = vld [vmem:[%s4235_s11 + $0xec] ss:$36 sps:$4 sm:$0xff]  }
  0x3c   : > { %3358 = vmatpush3.bf16.msra.mxu1 %v3845_v47  ;;  %3469 = vmatprep.subr.bf16.mxu0 %v3896_v8  ;;  %v3975_v47 = vld [vmem:[%s4994_s1 + $0x1f8] sm:$0xff]  }
  0x3d   : > { %3359 = vmatprep.subr.bf16.mxu1 %v3852_v48  ;;  %v3976_v48 = vld [vmem:[%s4994_s1 + $0x1b8] sm:$0xff]  }
  0x3e   : > { %v3956_v8 = vld [vmem:[%s4235_s11 + $0x134] ss:$36 sps:$4 sm:$0xff]  }
  0x3f   : > { %1910 = vmatmul.mubr.bf16.gmra.mrb[12].mxu0 %v3850_v49  ;;  %2006 = vmatmul.mubr.bf16.gmra.mrb[12].mxu1 %v3851_v50  ;;  %v3924_v49 = vld [vmem:[%s4235_s11 + $0x24c] ss:$36 sps:$4 sm:$0xff]   ;;  %v3928_v50 = vld [vmem:[%s4235_s11 + $0x14] ss:$36 sps:$4 sm:$0xff]  }
  0x40   : > { %3360 = vmatpush3.bf16.msra.mxu1 %v3853_v51  ;;  %1917 = vmatprep.mubr.bf16.mxu0 %v3858_v53  ;;  %v3926_v51 = vld [vmem:[%s4235_s11 + $0x10] ss:$36 sps:$4 sm:$0xff]  }
  0x41   : > { %3361 = vmatprep.subr.bf16.mxu1 %v3854_v52  ;;  %2046 = vmatprep.mubr.bf16.mxu1 %v3862_v54  ;;  %v3929_v52 = vld [vmem:[%s4235_s11 + $0x248] ss:$36 sps:$4 sm:$0xff]   ;;  %v3933_v53 = vld [vmem:[%s4235_s11 + $0x294] ss:$36 sps:$4 sm:$0xff]   ;;  %v3935_v54 = vld [vmem:[%s4235_s11 + $0x5c] ss:$36 sps:$4 sm:$0xff]  }
  0x42   : > { %3470 = vmatpush3.bf16.msra.mxu0 %v3898_v10  ;;  %v3958_v10 = vld [vmem:[%s4235_s11 + $0x368] ss:$36 sps:$4 sm:$0xff]  }
  0x43   : > { %3471 = vmatprep.subr.bf16.mxu0 %v3906_v15  ;;  %v3968_v15 = vld [vmem:[%s4235_s11 + $0x178] ss:$36 sps:$4 sm:$0xff]  }
  0x44   : > { %3362 = vmatpush3.bf16.msra.mxu1 %v3856_v57  ;;  %v3937_v57 = vld [vmem:[%s4235_s11 + $0x290] ss:$36 sps:$4 sm:$0xff]  }
  0x45   : > { %3571 = vmatprep.subr.bf16.mxu1 %v3864_v60  ;;  %v3941_v60 = vld [vmem:[%s4235_s11 + $0xa4] ss:$36 sps:$4 sm:$0xff]  }
  0x46   : > { %3472 = vmatpush3.bf16.msra.mxu0 %v3907_v16  ;;  %v3969_v16 = vld [vmem:[%s4235_s11 + $0x3fc] ss:$36 sps:$4 sm:$0xff]  }
  0x47   : > { %1918 = vmatmul.mubr.bf16.gmra.mrb[16].mxu0 %v3863_v59  ;;  %2047 = vmatmul.mubr.bf16.vlgmr.msra.gmra.mrb[16].mxu1 %v3860_v58  ;;  %v3938_v58 = vld [vmem:[%s4235_s11 + $0x58] ss:$36 sps:$4 sm:$0xff]  }
  0x48   : > { %3572 = vmatpush3.bf16.msra.mxu1 %v3865_v61  ;;  %1925 = vmatprep.mubr.bf16.mxu0 %v3866_v62  ;;  %v3939_v59 = vld [vmem:[%s4235_s11 + $0x2dc] ss:$36 sps:$4 sm:$0xff]  }
  0x49   : > { %2054 = vmatprep.mubr.bf16.mxu1 %v3868_v63  ;;  %3573 = vmatprep.subr.bf16.mxu1 %v3880_v1  ;;  %v3977_v61 = vld [vmem:[%s4994_s1 + $0x218] sm:$0xff]   ;;  %v3990_v62 = vld [vmem:[%s4994_s1 + $0x220] sm:$0xff]  }
  0x4a   : > { %3473 = vmatprep.subr.bf16.mxu0 %v3922_v24  ;;  %v3943_v63 = vld [vmem:[%s4235_s11 + $0x2d8] ss:$36 sps:$4 sm:$0xff]   ;;  %v3948_v1 = vld [vmem:[%s4235_s11 + $0x324] ss:$36 sps:$4 sm:$0xff]  }
  0x4b   : > { %3474 = vmatpush3.bf16.msra.mxu0 %v3923_v25  ;;  %v3984_v24 = vld [vmem:[%s4235_s11 + $0x254] ss:$36 sps:$4 sm:$0xff]   ;;  %v3988_v25 = vld [vmem:[%s4235_s11 + $0x1c] ss:$36 sps:$4 sm:$0xff]  }
  0x4c   : > { %3574 = vmatpush3.bf16.msra.mxu1 %v3881_v3  ;;  %3707 = vmatprep.subr.bf16.mxu0 %v3932_v29  ;;  %v4003_v3 = vld [vmem:[%s4994_s1 + $0x228] sm:$0xff]  }
  0x4d   : > { %3575 = vmatprep.subr.bf16.mxu1 %v3897_v9  ;;  %v4029_v9 = vld [vmem:[%s4994_s1 + $0x238] sm:$0xff]  }
  0x4f   : > { %1926 = vmatmul.mubr.bf16.gmra.mrb[20].mxu0 %v3870_v4  ;;  %2055 = vmatmul.mubr.bf16.gmra.mrb[20].mxu1 %v3871_v5  ;;  %v3952_v4 = vld [vmem:[%s4235_s11 + $0x320] ss:$36 sps:$4 sm:$0xff]   ;;  %v3953_v5 = vld [vmem:[%s4235_s11 + $0xe8] ss:$36 sps:$4 sm:$0xff]  }
  0x50   : > { %1933 = vmatprep.mubr.bf16.mxu0 %v3874_v6  ;;  %2062 = vmatprep.mubr.bf16.mxu1 %v3876_v7  ;;  %v4016_v6 = vld [vmem:[%s4994_s1 + $0x230] sm:$0xff]  }
  0x51   : > { %3576 = vmatpush3.bf16.msra.mxu1 %v3899_v11  ;;  %v3954_v7 = vld [vmem:[%s4235_s11 + $0x36c] ss:$36 sps:$4 sm:$0xff]  }
  0x52   : > { %3577 = vmatprep.subr.bf16.mxu1 %v3914_v18  ;;  %v3959_v11 = vld [vmem:[%s4235_s11 + $0x130] ss:$36 sps:$4 sm:$0xff]   ;;  %v3973_v18 = vld [vmem:[%s4235_s11 + $0x3f8] ss:$36 sps:$4 sm:$0xff]  }
  0x55   : > { %3578 = vmatpush3.bf16.msra.mxu1 %v3915_v19  ;;  %v3974_v19 = vld [vmem:[%s4235_s11 + $0x1c0] ss:$36 sps:$4 sm:$0xff]  }
  0x56   : > { %3579 = vmatprep.subr.bf16.mxu1 %v3930_v26  ;;  %v3986_v26 = vld [vmem:[%s4235_s11 + $0x18] ss:$36 sps:$4 sm:$0xff]  }
  0x57   : > { %1934 = vmatmul.mubr.bf16.gmra.mrb[24].mxu0 %v3878_v12  ;;  %2063 = vmatmul.mubr.bf16.gmra.mrb[24].mxu1 %v3879_v13  ;;  %v3963_v12 = vld [vmem:[%s4235_s11 + $0x3b4] ss:$36 sps:$4 sm:$0xff]   ;;  %v3965_v13 = vld [vmem:[%s4235_s11 + $0x17c] ss:$36 sps:$4 sm:$0xff]  }
  0x58   : > { %1941 = vmatprep.mubr.bf16.mxu0 %v3884_v14  ;;  %2070 = vmatprep.mubr.bf16.mxu1 %v3886_v17  ;;  %v3967_v14 = vld [vmem:[%s4235_s11 + $0x3b0] ss:$36 sps:$4 sm:$0xff]   ;;  %v3971_v17 = vld [vmem:[%s4235_s11 + $0x1c4] ss:$36 sps:$4 sm:$0xff]  }
  0x59   : > { %3580 = vmatpush3.bf16.msra.mxu1 %v3931_v28  ;;  %v3991_v28 = vld [vmem:[%s4235_s11 + $0x29c] ss:$36 sps:$4 sm:$0xff]  }
  0x5a   : > { %3581 = vmatprep.subr.bf16.mxu1 %v3945_v33  ;;  %v3999_v33 = vld [vmem:[%s4235_s11 + $0xac] ss:$36 sps:$4 sm:$0xff]  }
  0x5d   : > { %3582 = vmatpush3.bf16.msra.mxu1 %v3946_v35  ;;  %v4002_v35 = vld [vmem:[%s4235_s11 + $0xa8] ss:$36 sps:$4 sm:$0xff]  }
  0x5e   : > { %3583 = vmatprep.subr.bf16.mxu1 %v3960_v41  ;;  %v4012_v41 = vld [vmem:[%s4235_s11 + $0x13c] ss:$36 sps:$4 sm:$0xff]  }
  0x5f   : > { %1942 = vmatmul.mubr.bf16.gmra.mrb[28].mxu0 %v3888_v20  ;;  %2071 = vmatmul.mubr.bf16.gmra.mrb[28].mxu1 %v3889_v21  ;;  %v3978_v20 = vld [vmem:[%s4235_s11 + $0x444] ss:$36 sps:$4 sm:$0xff]   ;;  %v3980_v21 = vld [vmem:[%s4235_s11 + $0x20c] ss:$36 sps:$4 sm:$0xff]  }
  0x60   : > { %1949 = vmatprep.mubr.bf16.mxu0 %v3890_v22  ;;  %2078 = vmatprep.mubr.bf16.mxu1 %v3892_v23  ;;  %v3982_v22 = vld [vmem:[%s4235_s11 + $0x440] ss:$36 sps:$4 sm:$0xff]   ;;  %v3983_v23 = vld [vmem:[%s4235_s11 + $0x208] ss:$36 sps:$4 sm:$0xff]  }
  0x61   : > { %3584 = vmatpush3.bf16.msra.mxu1 %v3961_v42  ;;  %v4014_v42 = vld [vmem:[%s4235_s11 + $0x370] ss:$36 sps:$4 sm:$0xff]  }
  0x62   : > { %3585 = vmatprep.subr.bf16.mxu1 %v3975_v47  ;;  %v4022_v47 = vld [vmem:[%s4235_s11 + $0x180] ss:$36 sps:$4 sm:$0xff]  }
  0x65   : > { %3586 = vmatpush3.bf16.msra.mxu1 %v3976_v48  ;;  %v4023_v48 = vld [vmem:[%s4235_s11 + $0x404] ss:$36 sps:$4 sm:$0xff]  }
  0x67   : > { %1950 = vmatmul.mubr.bf16.gmra.mrb[32].mxu0 %v3894_v27  ;;  %2079 = vmatmul.mubr.bf16.gmra.mrb[32].mxu1 %v3895_v30  ;;  %v3989_v27 = vld [vmem:[%s4235_s11 + $0x250] ss:$36 sps:$4 sm:$0xff]   ;;  %v3995_v30 = vld [vmem:[%s4235_s11 + $0x298] ss:$36 sps:$4 sm:$0xff]  }
  0x68   : > { %1957 = vmatprep.mubr.bf16.mxu0 %v3900_v31  ;;  %2086 = vmatprep.mubr.bf16.mxu1 %v3902_v32  ;;  %v3996_v31 = vld [vmem:[%s4235_s11 + $0x60] ss:$36 sps:$4 sm:$0xff]  }
  0x69   : > { %v3997_v32 = vld [vmem:[%s4235_s11 + $0x2e4] ss:$36 sps:$4 sm:$0xff]  }
  0x6f   : > { %1958 = vmatmul.mubr.bf16.gmra.mrb[36].mxu0 %v3904_v34  ;;  %2087 = vmatmul.mubr.bf16.gmra.mrb[36].mxu1 %v3905_v36  ;;  %v4001_v34 = vld [vmem:[%s4235_s11 + $0x2e0] ss:$36 sps:$4 sm:$0xff]   ;;  %v4004_v36 = vld [vmem:[%s4235_s11 + $0x32c] ss:$36 sps:$4 sm:$0xff]  }
  0x70   : > { %1965 = vmatprep.mubr.bf16.mxu0 %v3908_v37  ;;  %2094 = vmatprep.mubr.bf16.mxu1 %v3910_v38  ;;  %v4006_v37 = vld [vmem:[%s4235_s11 + $0xf4] ss:$36 sps:$4 sm:$0xff]   ;;  %v4008_v38 = vld [vmem:[%s4235_s11 + $0x328] ss:$36 sps:$4 sm:$0xff]  }
  0x77   : > { %1966 = vmatmul.mubr.bf16.gmra.mrb[40].mxu0 %v3912_v39  ;;  %2095 = vmatmul.mubr.bf16.gmra.mrb[40].mxu1 %v3913_v40  ;;  %v4009_v39 = vld [vmem:[%s4235_s11 + $0xf0] ss:$36 sps:$4 sm:$0xff]  }
  0x78   : > { %1973 = vmatprep.mubr.bf16.mxu0 %v3916_v43  ;;  %2102 = vmatprep.mubr.bf16.mxu1 %v3918_v44  ;;  %v4010_v40 = vld [vmem:[%s4235_s11 + $0x374] ss:$36 sps:$4 sm:$0xff]   ;;  %v4017_v44 = vld [vmem:[%s4235_s11 + $0x3bc] ss:$36 sps:$4 sm:$0xff]  }
  0x79   : > { %v4015_v43 = vld [vmem:[%s4235_s11 + $0x138] ss:$36 sps:$4 sm:$0xff]  }
  0x7f   : > { %1974 = vmatmul.mubr.bf16.gmra.mrb[44].mxu0 %v3920_v45  ;;  %2103 = vmatmul.mubr.bf16.gmra.mrb[44].mxu1 %v3921_v46  ;;  %v4019_v45 = vld [vmem:[%s4235_s11 + $0x184] ss:$36 sps:$4 sm:$0xff]   ;;  %v4021_v46 = vld [vmem:[%s4235_s11 + $0x3b8] ss:$36 sps:$4 sm:$0xff]  }
  0x80   : > { %2110 = vmatprep.mubr.bf16.mxu1 %v3924_v49  ;;  %2207 = vmatprep.mubr.bf16.mxu0 %v3928_v50  ;;  %v4025_v49 = vld [vmem:[%s4235_s11 + $0x1cc] ss:$36 sps:$4 sm:$0xff]   ;;  %v4027_v50 = vld [vmem:[%s4235_s11 + $0x400] ss:$36 sps:$4 sm:$0xff]  }
  0x87   : > { %2111 = vmatmul.mubr.bf16.gmra.mrb[48].mxu1 %v3929_v52  ;;  %2208 = vmatmul.mubr.bf16.vlgmr.msra.gmra.mrb[48].mxu0 %v3926_v51  ;;  %v4028_v51 = vld [vmem:[%s4235_s11 + $0x1c8] ss:$36 sps:$4 sm:$0xff]  }
  0x88   : > { %3708 = vmatpush3.bf16.msra.mxu0 %v3932_v29  ;;  %2118 = vmatprep.mubr.bf16.mxu1 %v3933_v53  ;;  %v3993_v29 = vld [vmem:[%s4235_s11 + $0x64] ss:$36 sps:$4 sm:$0xff]   ;;  %v4030_v52 = vld [vmem:[%s4235_s11 + $0x44c] ss:$36 sps:$4 sm:$0xff]   ;;  %v4032_v53 = vld [vmem:[%s4235_s11 + $0x214] ss:$36 sps:$4 sm:$0xff]  }
  0x89   : > { %2215 = vmatprep.mubr.bf16.mxu0 %v3935_v54  ;;  %3709 = vmatprep.subr.bf16.mxu0 %v3947_v55 }
  0x8c   : > { %3710 = vmatpush3.bf16.msra.mxu0 %v3947_v55 }
  0x8d   : > { %3711 = vmatprep.subr.bf16.mxu0 %v3962_v56 }
  0x8f   : > { %2119 = vmatmul.mubr.bf16.gmra.mrb[52].mxu1 %v3937_v57  ;;  %2216 = vmatmul.mubr.bf16.gmra.mrb[52].mxu0 %v3938_v58  ;;  %v4034_v58 = vld [vmem:[%s4235_s11 + $0x448] ss:$36 sps:$4 sm:$0xff]  }
  0x90   : > { %2126 = vmatprep.mubr.bf16.mxu1 %v3939_v59  ;;  %2223 = vmatprep.mubr.bf16.mxu0 %v3941_v60  ;;  %v4035_v59 = vld [vmem:[%s4235_s11 + $0x210] ss:$36 sps:$4 sm:$0xff]  }
  0x91   : > { %3712 = vmatpush3.bf16.msra.mxu0 %v3962_v56 }
  0x92   : > { %3713 = vmatprep.subr.bf16.mxu0 %v3977_v61 }
  0x95   : > { %3714 = vmatpush3.bf16.msra.mxu0 %v3977_v61 }
  0x96   : > { %3715 = vmatprep.subr.bf16.mxu0 %v3990_v62 }
  0x97   : > { %2127 = vmatmul.mubr.bf16.gmra.mrb[56].mxu1 %v3943_v63  ;;  %2224 = vmatmul.mubr.bf16.gmra.mrb[56].mxu0 %v3944_v0  ;;  %v4036_v0 = vld [vmem:[%s4235_s11 + $0x25c] ss:$36 sps:$4 sm:$0xff]  }
  0x98   : > { %2134 = vmatprep.mubr.bf16.mxu1 %v3948_v1  ;;  %2231 = vmatprep.mubr.bf16.mxu0 %v3950_v2  ;;  %v4038_v1 = vld [vmem:[%s4235_s11 + $0x20] ss:$36 sps:$4 sm:$0xff]  }
  0x99   : > { %3716 = vmatpush3.bf16.msra.mxu0 %v3990_v62 }
  0x9a   : > { %3717 = vmatprep.subr.bf16.mxu0 %v4003_v3 }
  0x9d   : > { %3718 = vmatpush3.bf16.msra.mxu0 %v4003_v3 }
  0x9e   : > { %3719 = vmatprep.subr.bf16.mxu0 %v4016_v6 }
  0x9f   : > { %2135 = vmatmul.mubr.bf16.gmra.mrb[60].mxu1 %v3952_v4  ;;  %2232 = vmatmul.mubr.bf16.gmra.mrb[60].mxu0 %v3953_v5 }
  0xa0   : > { %2142 = vmatprep.mubr.bf16.mxu1 %v3954_v7  ;;  %2239 = vmatprep.mubr.bf16.mxu0 %v3956_v8 }
  0xa1   : > { %3720 = vmatpush3.bf16.msra.mxu0 %v4016_v6 }
  0xa2   : > { %3721 = vmatprep.subr.bf16.mxu0 %v4029_v9 }
  0xa5   : > { %3722 = vmatpush3.bf16.msra.mxu0 %v4029_v9 }
  0xa7   : > { %2143 = vmatmul.mubr.bf16.gmra.mrb[64].mxu1 %v3958_v10  ;;  %2240 = vmatmul.mubr.bf16.gmra.mrb[64].mxu0 %v3959_v11  ;;  %v4039_v10 = vld [vmem:[%s4235_s11 + $0x258] ss:$36 sps:$4 sm:$0xff]   ;;  %v4040_v11 = vld [vmem:[%s4235_s11 + $0x68] ss:$36 sps:$4 sm:$0xff]  }
  0xa8   : > { %2150 = vmatprep.mubr.bf16.mxu1 %v3963_v12  ;;  %2247 = vmatprep.mubr.bf16.mxu0 %v3965_v13 }
  0xaf   : > { %2151 = vmatmul.mubr.bf16.gmra.mrb[68].mxu1 %v3967_v14  ;;  %2248 = vmatmul.mubr.bf16.gmra.mrb[68].mxu0 %v3968_v15 }
  0xb0   : > { %2158 = vmatprep.mubr.bf16.mxu1 %v3969_v16  ;;  %2255 = vmatprep.mubr.bf16.mxu0 %v3971_v17  ;;  %v4041_v16 = vld [vmem:[%s4235_s11 + $0x2a4] ss:$36 sps:$4 sm:$0xff]   ;;  %v4043_v17 = vld [vmem:[%s4235_s11 + $0xb0] ss:$36 sps:$4 sm:$0xff]  }
  0xb7   : > { %2159 = vmatmul.mubr.bf16.gmra.mrb[72].mxu1 %v3973_v18  ;;  %2256 = vmatmul.mubr.bf16.gmra.mrb[72].mxu0 %v3974_v19 }
  0xb8   : > { %2166 = vmatprep.mubr.bf16.mxu1 %v3978_v20  ;;  %2263 = vmatprep.mubr.bf16.mxu0 %v3980_v21 }
  0xbf   : > { %2167 = vmatmul.mubr.bf16.gmra.mrb[76].mxu1 %v3982_v22  ;;  %2264 = vmatmul.mubr.bf16.gmra.mrb[76].mxu0 %v3983_v23 }
  0xc0   : > { %2271 = vmatprep.mubr.bf16.mxu0 %v3984_v24  ;;  %2368 = vmatprep.mubr.bf16.mxu1 %v3988_v25 }
  0xc7   : > { %2272 = vmatmul.mubr.bf16.gmra.mrb[80].mxu0 %v3989_v27  ;;  %2369 = vmatmul.mubr.bf16.vlgmr.msra.gmra.mrb[80].mxu1 %v3986_v26  ;;  %v4044_v26 = vld [vmem:[%s4235_s11 + $0x2a0] ss:$36 sps:$4 sm:$0xff]   ;;  %v4045_v27 = vld [vmem:[%s4235_s11 + $0xf8] ss:$36 sps:$4 sm:$0xff]  }
  0xc8   : > { %2279 = vmatprep.mubr.bf16.mxu0 %v3991_v28  ;;  %2376 = vmatprep.mubr.bf16.mxu1 %v3993_v29 }
  0xcf   : > { %2280 = vmatmul.mubr.bf16.gmra.mrb[84].mxu0 %v3995_v30  ;;  %2377 = vmatmul.mubr.bf16.gmra.mrb[84].mxu1 %v3996_v31 }
  0xd0   : > { %2287 = vmatprep.mubr.bf16.mxu0 %v3997_v32  ;;  %2384 = vmatprep.mubr.bf16.mxu1 %v3999_v33  ;;  %v4046_v32 = vld [vmem:[%s4235_s11 + $0x2ec] ss:$36 sps:$4 sm:$0xff]   ;;  %v4048_v33 = vld [vmem:[%s4235_s11 + $0x140] ss:$36 sps:$4 sm:$0xff]  }
  0xd7   : > { %2288 = vmatmul.mubr.bf16.gmra.mrb[88].mxu0 %v4001_v34  ;;  %2385 = vmatmul.mubr.bf16.gmra.mrb[88].mxu1 %v4002_v35 }
  0xd8   : > { %2295 = vmatprep.mubr.bf16.mxu0 %v4004_v36  ;;  %2392 = vmatprep.mubr.bf16.mxu1 %v4006_v37 }
  0xdf   : > { %2296 = vmatmul.mubr.bf16.gmra.mrb[92].mxu0 %v4008_v38  ;;  %2393 = vmatmul.mubr.bf16.gmra.mrb[92].mxu1 %v4009_v39 }
  0xe0   : > { %2303 = vmatprep.mubr.bf16.mxu0 %v4010_v40  ;;  %2400 = vmatprep.mubr.bf16.mxu1 %v4012_v41 }
  0xe7   : > { %2304 = vmatmul.mubr.bf16.gmra.mrb[96].mxu0 %v4014_v42  ;;  %2401 = vmatmul.mubr.bf16.gmra.mrb[96].mxu1 %v4015_v43  ;;  %v4049_v42 = vld [vmem:[%s4235_s11 + $0x2e8] ss:$36 sps:$4 sm:$0xff]  }
  0xe8   : > { %2311 = vmatprep.mubr.bf16.mxu0 %v4017_v44  ;;  %2408 = vmatprep.mubr.bf16.mxu1 %v4019_v45  ;;  %v4050_v43 = vld [vmem:[%s4235_s11 + $0x188] ss:$36 sps:$4 sm:$0xff]  }
  0xef   : > { %2312 = vmatmul.mubr.bf16.gmra.mrb[100].mxu0 %v4021_v46  ;;  %2409 = vmatmul.mubr.bf16.gmra.mrb[100].mxu1 %v4022_v47 }
  0xf0   : > { %2319 = vmatprep.mubr.bf16.mxu0 %v4023_v48  ;;  %2416 = vmatprep.mubr.bf16.mxu1 %v4025_v49  ;;  %v4051_v48 = vld [vmem:[%s4235_s11 + $0x334] ss:$36 sps:$4 sm:$0xff]  }
  0xf1   : > { %v4053_v49 = vld [vmem:[%s4235_s11 + $0x1d0] ss:$36 sps:$4 sm:$0xff]  }
  0xf7   : > { %2320 = vmatmul.mubr.bf16.gmra.mrb[104].mxu0 %v4027_v50  ;;  %2417 = vmatmul.mubr.bf16.gmra.mrb[104].mxu1 %v4028_v51 }
  0xf8   : > { %2327 = vmatprep.mubr.bf16.mxu0 %v4030_v52  ;;  %2424 = vmatprep.mubr.bf16.mxu1 %v4032_v53 }
  0xfa   : > { %v3323_v54 = vpop.f32.mrb[0].mxu1  ;;  %v3251_v55 = vpop.f32.mrb[0].mxu0 }
  0xfb   : > { %v3324_v56 = vpop.f32.mrb[1].mxu1  ;;  %v3252_v57 = vpop.f32.mrb[1].mxu0 }
  0xfc   : > { %v4538_v60 = vadd.f32 %v3324_v56, %v3323_v54  ;;  %v3326_v61 = vpop.f32.mrb[2].mxu1  ;;  %v4540_v62 = vadd.f32 %v3252_v57, %v3251_v55  ;;  %v3254_v63 = vpop.f32.mrb[2].mxu0 }
  0xfd   : > { %v3327_v2 = vpop.f32.mrb[3].mxu1  ;;  %v3255_v3 = vpop.f32.mrb[3].mxu0 }
  0xfe   : > { %v4544_v4 = vadd.f32 %v3327_v2, %v3326_v61  ;;  %v4546_v5 = vadd.f32 %v3255_v3, %v3254_v63  ;;  %v4056_v2 = vld [vmem:[%s4235_s11 + $0x37c] ss:$36 sps:$4 sm:$0xff]  }
  0xff   : > { %2328 = vmatmul.mubr.bf16.gmra.mrb[108].mxu0 %v4034_v58  ;;  %2425 = vmatmul.mubr.bf16.gmra.mrb[108].mxu1 %v4035_v59  ;;  %v4054_v58 = vld [vmem:[%s4235_s11 + $0x330] ss:$36 sps:$4 sm:$0xff]   ;;  %v4055_v59 = vld [vmem:[%s4235_s11 + $0x218] ss:$36 sps:$4 sm:$0xff]   ;;  %v4058_v3 = vld [vmem:[%s4235_s11 + $0x260] ss:$36 sps:$4 sm:$0xff]  }
 0x100   : > { %2432 = vmatprep.mubr.bf16.mxu1 %v4036_v0  ;;  %3723 = vmatprep.mubr.bf16.mxu0 %v4038_v1 }
 0x102   : > { %v3329_v6 = vpop.f32.mrb[4].mxu1  ;;  %v3257_v7 = vpop.f32.mrb[4].mxu0 }
 0x103   : > { %v3330_v8 = vpop.f32.mrb[5].mxu1  ;;  %v3258_v9 = vpop.f32.mrb[5].mxu0 }
 0x104   : > { %v4550_v12 = vadd.f32 %v3330_v8, %v3329_v6  ;;  %v3332_v13 = vpop.f32.mrb[6].mxu1  ;;  %v4552_v14 = vadd.f32 %v3258_v9, %v3257_v7  ;;  %v3260_v15 = vpop.f32.mrb[6].mxu0 }
 0x105   : > { %v3333_v18 = vpop.f32.mrb[7].mxu1  ;;  %v3261_v19 = vpop.f32.mrb[7].mxu0 }
 0x106   : > { %v4556_v20 = vadd.f32 %v3333_v18, %v3332_v13  ;;  %v4558_v21 = vadd.f32 %v3261_v19, %v3260_v15  ;;  %v4059_v18 = vld [vmem:[%s4235_s11 + $0x378] ss:$36 sps:$4 sm:$0xff]   ;;  %v4060_v19 = vld [vmem:[%s4235_s11 + $0x2a8] ss:$36 sps:$4 sm:$0xff]  }
 0x107   : > { %2433 = vmatmul.mubr.bf16.gmra.mrb[112].mxu1 %v4039_v10  ;;  %3724 = vmatmul.mubr.bf16.vlgmr.msra.gmra.mrb[112].mxu0 %v4040_v11 }
 0x108   : > { %2440 = vmatprep.mubr.bf16.mxu1 %v4041_v16  ;;  %3727 = vmatprep.mubr.bf16.mxu0 %v4043_v17 }
 0x10a   : > { %v3335_v22 = vpop.f32.mrb[8].mxu1  ;;  %v3263_v23 = vpop.f32.mrb[8].mxu0 }
 0x10b   : > { %v3336_v24 = vpop.f32.mrb[9].mxu1  ;;  %v3264_v25 = vpop.f32.mrb[9].mxu0 }
 0x10c   : > { %v4562_v28 = vadd.f32 %v3336_v24, %v3335_v22  ;;  %v3338_v29 = vpop.f32.mrb[10].mxu1  ;;  %v4564_v30 = vadd.f32 %v3264_v25, %v3263_v23  ;;  %v3266_v31 = vpop.f32.mrb[10].mxu0  ;;  %v4061_v25 = vld [vmem:[%s4235_s11 + $0x3c4] ss:$36 sps:$4 sm:$0xff]  }
 0x10d   : > { %v3339_v34 = vpop.f32.mrb[11].mxu1  ;;  %v3267_v35 = vpop.f32.mrb[11].mxu0 }
 0x10e   : > { %v4568_v36 = vadd.f32 %v3339_v34, %v3338_v29  ;;  %v4570_v37 = vadd.f32 %v3267_v35, %v3266_v31 }
 0x10f   : > { %2441 = vmatmul.mubr.bf16.gmra.mrb[116].mxu1 %v4044_v26  ;;  %3728 = vmatmul.mubr.bf16.gmra.mrb[116].mxu0 %v4045_v27  ;;  %v4063_v26 = vld [vmem:[%s4235_s11 + $0x2f0] ss:$36 sps:$4 sm:$0xff]  }
 0x110   : > { %2448 = vmatprep.mubr.bf16.mxu1 %v4046_v32  ;;  %3731 = vmatprep.mubr.bf16.mxu0 %v4048_v33 }
 0x112   : > { %v3341_v38 = vpop.f32.mrb[12].mxu1  ;;  %v3269_v39 = vpop.f32.mrb[12].mxu0 }
 0x113   : > { %v3342_v40 = vpop.f32.mrb[13].mxu1  ;;  %v3270_v41 = vpop.f32.mrb[13].mxu0 }
 0x114   : > { %v4574_v44 = vadd.f32 %v3342_v40, %v3341_v38  ;;  %v3344_v45 = vpop.f32.mrb[14].mxu1  ;;  %v4576_v46 = vadd.f32 %v3270_v41, %v3269_v39  ;;  %v3272_v47 = vpop.f32.mrb[14].mxu0  ;;  %v4064_v40 = vld [vmem:[%s4235_s11 + $0x3c0] ss:$36 sps:$4 sm:$0xff]   ;;  %v4065_v41 = vld [vmem:[%s4235_s11 + $0x338] ss:$36 sps:$4 sm:$0xff]  }
 0x115   : > { %v3345_v50 = vpop.f32.mrb[15].mxu1  ;;  %v3273_v51 = vpop.f32.mrb[15].mxu0 }
 0x116   : > { %v4580_v52 = vadd.f32 %v3345_v50, %v3344_v45  ;;  %v4582_v53 = vadd.f32 %v3273_v51, %v3272_v47  ;;  %v4066_v47 = vld [vmem:[%s4235_s11 + $0x40c] ss:$36 sps:$4 sm:$0xff]  }
 0x117   : > { %2449 = vmatmul.mubr.bf16.gmra.mrb[120].mxu1 %v4049_v42  ;;  %3732 = vmatmul.mubr.bf16.gmra.mrb[120].mxu0 %v4050_v43 }
 0x118   : > { %2456 = vmatprep.mubr.bf16.mxu1 %v4051_v48  ;;  %3735 = vmatprep.mubr.bf16.mxu0 %v4053_v49  ;;  %v4068_v48 = vld [vmem:[%s4235_s11 + $0x380] ss:$36 sps:$4 sm:$0xff]  }
 0x11a   : > { %v3363_v54 = vpop.f32.mrb[16].mxu1  ;;  %v3275_v55 = vpop.f32.mrb[16].mxu0 }
 0x11b   : > { %v3364_v56 = vpop.f32.mrb[17].mxu1  ;;  %v3276_v57 = vpop.f32.mrb[17].mxu0 }
 0x11c   : > { %v3365_v61 = vadd.f32 %v3364_v56, %v3363_v54  ;;  %v3366_v63 = vpop.f32.mrb[18].mxu1  ;;  %v4586_v0 = vadd.f32 %v3276_v57, %v3275_v55  ;;  %v3278_v1 = vpop.f32.mrb[18].mxu0 }
 0x11d   : > { %v3367_v6 = vpop.f32.mrb[19].mxu1  ;;  %v3279_v7 = vpop.f32.mrb[19].mxu0 }
 0x11e   : > { %v4591_v8 = vadd.f32 %v3365_v61, %v4540_v62  ;;  %v3368_v9 = vadd.f32 %v3367_v6, %v3366_v63  ;;  %v4593_v10 = vadd.f32 %v3279_v7, %v3278_v1  ;;  %v4069_v61 = vld [vmem:[%s4235_s11 + $0x408] ss:$36 sps:$4 sm:$0xff]   ;;  %v4071_v6 = vld [vmem:[%s4235_s11 + $0x454] ss:$36 sps:$4 sm:$0xff]  }
 0x11f   : > { %2457 = vmatmul.mubr.bf16.gmra.mrb[124].mxu1 %v4054_v58  ;;  %3736 = vmatmul.mubr.bf16.gmra.mrb[124].mxu0 %v4055_v59  ;;  %v4070_v63 = vld [vmem:[%s4235_s11 + $0x3c8] ss:$36 sps:$4 sm:$0xff]   ;;  %v4073_v7 = vld [vmem:[%s4235_s11 + $0x410] ss:$36 sps:$4 sm:$0xff]  }
 0x120   : > { %v4596_v11 = vadd.f32 %v3368_v9, %v4546_v5  ;;  %2464 = vmatprep.mubr.bf16.mxu1 %v4056_v2  ;;  %3739 = vmatprep.mubr.bf16.mxu0 %v4058_v3 }
 0x122   : > { %v3369_v13 = vpop.f32.mrb[20].mxu1  ;;  %v3281_v15 = vpop.f32.mrb[20].mxu0 }
 0x123   : > { %v3370_v16 = vpop.f32.mrb[21].mxu1  ;;  %v3282_v17 = vpop.f32.mrb[21].mxu0 }
 0x124   : > { %v3371_v62 = vadd.f32 %v3370_v16, %v3369_v13  ;;  %v3372_v22 = vpop.f32.mrb[22].mxu1  ;;  %v4600_v23 = vadd.f32 %v3282_v17, %v3281_v15  ;;  %v3284_v24 = vpop.f32.mrb[22].mxu0 }
 0x125   : > { %v3373_v27 = vpop.f32.mrb[23].mxu1  ;;  %v3285_v5 = vpop.f32.mrb[23].mxu0 }
 0x126   : > { %v4605_v29 = vadd.f32 %v3371_v62, %v4552_v14  ;;  %v3374_v31 = vadd.f32 %v3373_v27, %v3372_v22  ;;  %v4607_v32 = vadd.f32 %v3285_v5, %v3284_v24  ;;  %v4074_v24 = vld [vmem:[%s4235_s11 + $0x450] ss:$36 sps:$4 sm:$0xff]  }
 0x127   : > { %2465 = vmatmul.mubr.bf16.gmra.mrb[128].mxu1 %v4059_v18  ;;  %3740 = vmatmul.mubr.bf16.gmra.mrb[128].mxu0 %v4060_v19 }
 0x128   : > { %v4610_v33 = vadd.f32 %v3374_v31, %v4558_v21  ;;  %2472 = vmatprep.mubr.bf16.mxu1 %v4061_v25  ;;  %3743 = vmatprep.mubr.bf16.mxu0 %v4063_v26  ;;  %v4075_v25 = vld [vmem:[%s4235_s11 + $0x458] ss:$36 sps:$4 sm:$0xff]  }
 0x12a   : > { %v3375_v34 = vpop.f32.mrb[24].mxu1  ;;  %v3287_v35 = vpop.f32.mrb[24].mxu0 }
 0x12b   : > { %v3376_v38 = vpop.f32.mrb[25].mxu1  ;;  %v3288_v39 = vpop.f32.mrb[25].mxu0 }
 0x12c   : > { %v3377_v14 = vadd.f32 %v3376_v38, %v3375_v34  ;;  %v3378_v42 = vpop.f32.mrb[26].mxu1  ;;  %v4614_v43 = vadd.f32 %v3288_v39, %v3287_v35  ;;  %v3290_v45 = vpop.f32.mrb[26].mxu0 }
 0x12d   : > { %v3379_v49 = vpop.f32.mrb[27].mxu1  ;;  %v3291_v21 = vpop.f32.mrb[27].mxu0 }
 0x12e   : > { %v4619_v50 = vadd.f32 %v3377_v14, %v4564_v30  ;;  %v3380_v51 = vadd.f32 %v3379_v49, %v3378_v42  ;;  %v4621_v54 = vadd.f32 %v3291_v21, %v3290_v45 }
 0x12f   : > { %2473 = vmatmul.mubr.bf16.gmra.mrb[132].mxu1 %v4064_v40  ;;  %3744 = vmatmul.mubr.bf16.gmra.mrb[132].mxu0 %v4065_v41 }
 0x130   : > { %v4624_v55 = vadd.f32 %v3380_v51, %v4570_v37  ;;  %2480 = vmatprep.mubr.bf16.mxu1 %v4066_v47  ;;  %3747 = vmatprep.mubr.bf16.mxu0 %v4068_v48 }
 0x132   : > { %v3381_v56 = vpop.f32.mrb[28].mxu1  ;;  %v3293_v57 = vpop.f32.mrb[28].mxu0 }
 0x133   : > { %v3382_v58 = vpop.f32.mrb[29].mxu1  ;;  %v3294_v59 = vpop.f32.mrb[29].mxu0 }
 0x134   : > { %v3383_v30 = vadd.f32 %v3382_v58, %v3381_v56  ;;  %v3384_v1 = vpop.f32.mrb[30].mxu1  ;;  %v4628_v2 = vadd.f32 %v3294_v59, %v3293_v57  ;;  %v3296_v3 = vpop.f32.mrb[30].mxu0 }
 0x135   : > { %v3385_v9 = vpop.f32.mrb[31].mxu1  ;;  %v3297_v37 = vpop.f32.mrb[31].mxu0 }
 0x136   : > { %v4633_v13 = vadd.f32 %v3383_v30, %v4576_v46  ;;  %v3386_v15 = vadd.f32 %v3385_v9, %v3384_v1  ;;  %v4635_v16 = vadd.f32 %v3297_v37, %v3296_v3 }
 0x137   : > { %2481 = vmatmul.mubr.bf16.gmra.mrb[136].mxu1 %v4069_v61  ;;  %3748 = vmatmul.mubr.bf16.gmra.mrb[136].mxu0 %v4070_v63 }
 0x138   : > { %v4638_v17 = vadd.f32 %v3386_v15, %v4582_v53  ;;  %2488 = vmatprep.mubr.bf16.mxu1 %v4071_v6  ;;  %3751 = vmatprep.mubr.bf16.mxu0 %v4073_v7 }
 0x13a   : > { %v3387_v18 = vpop.f32.mrb[32].mxu1  ;;  %v3299_v19 = vpop.f32.mrb[32].mxu0 }
 0x13b   : > { %v3388_v62 = vpop.f32.mrb[33].mxu1  ;;  %v3300_v22 = vpop.f32.mrb[33].mxu0 }
 0x13c   : > { %v3389_v26 = vadd.f32 %v3388_v62, %v3387_v18  ;;  %v3390_v27 = vpop.f32.mrb[34].mxu1  ;;  %v3301_v46 = vadd.f32 %v3300_v22, %v3299_v19  ;;  %v3302_v5 = vpop.f32.mrb[34].mxu0 }
 0x13d   : > { %v3391_v31 = vpop.f32.mrb[35].mxu1  ;;  %v3303_v34 = vpop.f32.mrb[35].mxu0 }
 0x13e   : > { %v4643_v35 = vadd.f32 %v3389_v26, %v4586_v0  ;;  %v3392_v38 = vadd.f32 %v3391_v31, %v3390_v27  ;;  %v3304_v53 = vadd.f32 %v3303_v34, %v3302_v5 }
 0x13f   : > { %2489 = vmatmul.mubr.bf16.gmra.mrb[140].mxu1 %v4074_v24  ;;  %3752 = vmatmul.mubr.bf16.gmra.mrb[140].mxu0 %v4075_v25 }
 0x140   : > { %v4646_v39 = vadd.f32 %v3392_v38, %v4593_v10 }
 0x142   : > { %v3393_v40 = vpop.f32.mrb[36].mxu1  ;;  %v3305_v41 = vpop.f32.mrb[36].mxu0 }
 0x143   : > { %v3394_v14 = vpop.f32.mrb[37].mxu1  ;;  %v3306_v42 = vpop.f32.mrb[37].mxu0 }
 0x144   : > { %v3395_v45 = vadd.f32 %v3394_v14, %v3393_v40  ;;  %v3396_v47 = vpop.f32.mrb[38].mxu1  ;;  %v3307_v48 = vadd.f32 %v3306_v42, %v3305_v41  ;;  %v3308_v49 = vpop.f32.mrb[38].mxu0 }
 0x145   : > { %v3397_v21 = vpop.f32.mrb[39].mxu1  ;;  %v3309_v51 = vpop.f32.mrb[39].mxu0 }
 0x146   : > { %v4649_v0 = vadd.f32 %v3395_v45, %v4600_v23  ;;  %v3398_v56 = vadd.f32 %v3397_v21, %v3396_v47  ;;  %v3310_v57 = vadd.f32 %v3309_v51, %v3308_v49 }
 0x148   : > { %v4652_v58 = vadd.f32 %v3398_v56, %v4607_v32 }
 0x14a   : > { %v3399_v10 = vpop.f32.mrb[40].mxu1  ;;  %v3311_v59 = vpop.f32.mrb[40].mxu0 }
 0x14b   : > { %v3400_v61 = vpop.f32.mrb[41].mxu1  ;;  %v3312_v63 = vpop.f32.mrb[41].mxu0 }
 0x14c   : > { %v3401_v30 = vadd.f32 %v3400_v61, %v3399_v10  ;;  %v3402_v1 = vpop.f32.mrb[42].mxu1  ;;  %v4654_v3 = vadd.f32 %v3312_v63, %v3311_v59  ;;  %v3314_v6 = vpop.f32.mrb[42].mxu0 }
 0x14d   : > { %v3403_v7 = vpop.f32.mrb[43].mxu1  ;;  %v3315_v9 = vpop.f32.mrb[43].mxu0 }
 0x14e   : > { %v4657_v37 = vadd.f32 %v3401_v30, %v4614_v43  ;;  %v3404_v23 = vadd.f32 %v3403_v7, %v3402_v1  ;;  %v3316_v15 = vadd.f32 %v3315_v9, %v3314_v6 }
 0x150   : > { %v4660_v18 = vadd.f32 %v3404_v23, %v4621_v54 }
 0x152   : > { %v3405_v32 = vpop.f32.mrb[44].mxu1  ;;  %v3317_v19 = vpop.f32.mrb[44].mxu0 }
 0x153   : > { %v3406_v62 = vpop.f32.mrb[45].mxu1  ;;  %v3318_v22 = vpop.f32.mrb[45].mxu0 }
 0x154   : > { %v3407_v24 = vadd.f32 %v3406_v62, %v3405_v32  ;;  %v3408_v25 = vpop.f32.mrb[46].mxu1  ;;  %v4662_v26 = vadd.f32 %v3318_v22, %v3317_v19  ;;  %v3320_v27 = vpop.f32.mrb[46].mxu0 }
 0x155   : > { %v3409_v5 = vpop.f32.mrb[47].mxu1  ;;  %v3321_v31 = vpop.f32.mrb[47].mxu0 }
 0x156   : > { %v4665_v34 = vadd.f32 %v3407_v24, %v4628_v2  ;;  %v3410_v43 = vadd.f32 %v3409_v5, %v3408_v25  ;;  %v4667_v38 = vadd.f32 %v3321_v31, %v3320_v27 }
 0x158   : > { %v4670_v54 = vadd.f32 %v3410_v43, %v4635_v16 }
 0x15a   : > { %v3411_v40 = vpop.f32.mrb[48].mxu1  ;;  %v3475_v41 = vpop.f32.mrb[48].mxu0 }
 0x15b   : > { %v3412_v14 = vpop.f32.mrb[49].mxu1  ;;  %v3476_v42 = vpop.f32.mrb[49].mxu0 }
 0x15c   : > { %v3413_v45 = vadd.f32 %v3412_v14, %v3411_v40  ;;  %v3477_v47 = vadd.f32 %v3476_v42, %v3475_v41  ;;  %v3414_v49 = vpop.f32.mrb[50].mxu1  ;;  %v3478_v21 = vpop.f32.mrb[50].mxu0 }
 0x15d   : > { %v3415_v51 = vpop.f32.mrb[51].mxu1  ;;  %v3479_v56 = vpop.f32.mrb[51].mxu0 }
 0x15e   : > { %v4672_v10 = vadd.f32 %v3413_v45, %v3301_v46  ;;  %v4675_v2 = vadd.f32 %v3477_v47, %v4591_v8  ;;  %v3416_v59 = vadd.f32 %v3415_v51, %v3414_v49  ;;  %v3480_v61 = vadd.f32 %v3479_v56, %v3478_v21 }
 0x160   : > { %v4677_v63 = vadd.f32 %v3416_v59, %v3304_v53  ;;  %v4680_v16 = vadd.f32 %v3480_v61, %v4596_v11 }
 0x162   : > { %v3417_v30 = vpop.f32.mrb[52].mxu1  ;;  %v3481_v1 = vpop.f32.mrb[52].mxu0 }
 0x163   : > { %v3418_v6 = vpop.f32.mrb[53].mxu1  ;;  %v3482_v7 = vpop.f32.mrb[53].mxu0 }
 0x164   : > { %v3419_v9 = vadd.f32 %v3418_v6, %v3417_v30  ;;  %v3483_v23 = vadd.f32 %v3482_v7, %v3481_v1  ;;  %v3420_v32 = vpop.f32.mrb[54].mxu1  ;;  %v3484_v19 = vpop.f32.mrb[54].mxu0 }
 0x165   : > { %v3421_v46 = vpop.f32.mrb[55].mxu1  ;;  %v3485_v62 = vpop.f32.mrb[55].mxu0 }
 0x166   : > { %v4682_v22 = vadd.f32 %v3419_v9, %v3307_v48  ;;  %v4685_v8 = vadd.f32 %v3483_v23, %v4605_v29  ;;  %v3422_v53 = vadd.f32 %v3421_v46, %v3420_v32  ;;  %v3486_v24 = vadd.f32 %v3485_v62, %v3484_v19 }
 0x168   : > { %v4687_v25 = vadd.f32 %v3422_v53, %v3310_v57  ;;  %v4690_v11 = vadd.f32 %v3486_v24, %v4610_v33 }
 0x16a   : > { %v3423_v27 = vpop.f32.mrb[56].mxu1  ;;  %v3487_v5 = vpop.f32.mrb[56].mxu0 }
 0x16b   : > { %v3424_v31 = vpop.f32.mrb[57].mxu1  ;;  %v3488_v43 = vpop.f32.mrb[57].mxu0 }
 0x16c   : > { %v3425_v40 = vadd.f32 %v3424_v31, %v3423_v27  ;;  %v3489_v41 = vadd.f32 %v3488_v43, %v3487_v5  ;;  %v3426_v14 = vpop.f32.mrb[58].mxu1  ;;  %v3490_v42 = vpop.f32.mrb[58].mxu0 }
 0x16d   : > { %v3427_v48 = vpop.f32.mrb[59].mxu1  ;;  %v3491_v45 = vpop.f32.mrb[59].mxu0 }
 0x16e   : > { %v4693_v29 = vadd.f32 %v3425_v40, %v4654_v3  ;;  %v4696_v47 = vadd.f32 %v3489_v41, %v4619_v50  ;;  %v3428_v57 = vadd.f32 %v3427_v48, %v3426_v14  ;;  %v3492_v49 = vadd.f32 %v3491_v45, %v3490_v42 }
 0x170   : > { %v4698_v33 = vadd.f32 %v3428_v57, %v3316_v15  ;;  %v4701_v21 = vadd.f32 %v3492_v49, %v4624_v55 }
 0x172   : > { %v3429_v51 = vpop.f32.mrb[60].mxu1  ;;  %v3493_v56 = vpop.f32.mrb[60].mxu0 }
 0x173   : > { %v3430_v59 = vpop.f32.mrb[61].mxu1  ;;  %v3494_v61 = vpop.f32.mrb[61].mxu0 }
 0x174   : > { %v3431_v30 = vadd.f32 %v3430_v59, %v3429_v51  ;;  %v3495_v1 = vadd.f32 %v3494_v61, %v3493_v56  ;;  %v3432_v6 = vpop.f32.mrb[62].mxu1  ;;  %v3496_v7 = vpop.f32.mrb[62].mxu0 }
 0x175   : > { %v3433_v3 = vpop.f32.mrb[63].mxu1  ;;  %v3497_v9 = vpop.f32.mrb[63].mxu0 }
 0x176   : > { %v4704_v50 = vadd.f32 %v3431_v30, %v4662_v26  ;;  %v4707_v23 = vadd.f32 %v3495_v1, %v4633_v13  ;;  %v3434_v15 = vadd.f32 %v3433_v3, %v3432_v6  ;;  %v3498_v32 = vadd.f32 %v3497_v9, %v3496_v7 }
 0x178   : > { %v4710_v55 = vadd.f32 %v3434_v15, %v4667_v38  ;;  %v4713_v19 = vadd.f32 %v3498_v32, %v4638_v17 }
 0x17a   : > { %v3435_v46 = vpop.f32.mrb[64].mxu1  ;;  %v3499_v62 = vpop.f32.mrb[64].mxu0 }
 0x17b   : > { %v3436_v53 = vpop.f32.mrb[65].mxu1  ;;  %v3500_v24 = vpop.f32.mrb[65].mxu0 }
 0x17c   : > { %v3437_v27 = vadd.f32 %v3436_v53, %v3435_v46  ;;  %v3501_v5 = vadd.f32 %v3500_v24, %v3499_v62  ;;  %v3438_v31 = vpop.f32.mrb[66].mxu1  ;;  %v3502_v26 = vpop.f32.mrb[66].mxu0 }
 0x17d   : > { %v3439_v43 = vpop.f32.mrb[67].mxu1  ;;  %v3503_v40 = vpop.f32.mrb[67].mxu0 }
 0x17e   : > { %v4716_v13 = vadd.f32 %v3437_v27, %v4538_v60  ;;  %v4719_v41 = vadd.f32 %v3501_v5, %v4643_v35  ;;  %v3440_v38 = vadd.f32 %v3439_v43, %v3438_v31  ;;  %v3504_v14 = vadd.f32 %v3503_v40, %v3502_v26 }
 0x180   : > { %v4722_v17 = vadd.f32 %v3440_v38, %v4544_v4  ;;  %v4725_v42 = vadd.f32 %v3504_v14, %v4646_v39 }
 0x182   : > { %v3441_v48 = vpop.f32.mrb[68].mxu1  ;;  %v3505_v45 = vpop.f32.mrb[68].mxu0 }
 0x183   : > { %v3442_v57 = vpop.f32.mrb[69].mxu1  ;;  %v3506_v49 = vpop.f32.mrb[69].mxu0 }
 0x184   : > { %v3443_v51 = vadd.f32 %v3442_v57, %v3441_v48  ;;  %v3507_v56 = vadd.f32 %v3506_v49, %v3505_v45  ;;  %v3444_v59 = vpop.f32.mrb[70].mxu1  ;;  %v3508_v60 = vpop.f32.mrb[70].mxu0 }
 0x185   : > { %v3445_v61 = vpop.f32.mrb[71].mxu1  ;;  %v3509_v30 = vpop.f32.mrb[71].mxu0 }
 0x186   : > { %v4728_v35 = vadd.f32 %v3443_v51, %v4550_v12  ;;  %v4731_v1 = vadd.f32 %v3507_v56, %v4649_v0  ;;  %v3446_v4 = vadd.f32 %v3445_v61, %v3444_v59  ;;  %v3510_v6 = vadd.f32 %v3509_v30, %v3508_v60 }
 0x188   : > { %v4734_v39 = vadd.f32 %v3446_v4, %v4556_v20  ;;  %v4737_v7 = vadd.f32 %v3510_v6, %v4652_v58 }
 0x18a   : > { %v3447_v3 = vpop.f32.mrb[72].mxu1  ;;  %v3511_v9 = vpop.f32.mrb[72].mxu0 }
 0x18b   : > { %v3448_v15 = vpop.f32.mrb[73].mxu1  ;;  %v3512_v32 = vpop.f32.mrb[73].mxu0 }
 0x18c   : > { %v3449_v46 = vadd.f32 %v3448_v15, %v3447_v3  ;;  %v3513_v62 = vadd.f32 %v3512_v32, %v3511_v9  ;;  %v3450_v53 = vpop.f32.mrb[74].mxu1  ;;  %v3514_v12 = vpop.f32.mrb[74].mxu0 }
 0x18d   : > { %v3451_v24 = vpop.f32.mrb[75].mxu1  ;;  %v3515_v27 = vpop.f32.mrb[75].mxu0 }
 0x18e   : > { %v4740_v0 = vadd.f32 %v3449_v46, %v4562_v28  ;;  %v4743_v5 = vadd.f32 %v3513_v62, %v4657_v37  ;;  %v3452_v20 = vadd.f32 %v3451_v24, %v3450_v53  ;;  %v3516_v31 = vadd.f32 %v3515_v27, %v3514_v12 }
 0x190   : > { %v4746_v58 = vadd.f32 %v3452_v20, %v4568_v36  ;;  %v4749_v26 = vadd.f32 %v3516_v31, %v4660_v18 }
 0x192   : > { %v3453_v43 = vpop.f32.mrb[76].mxu1  ;;  %v3517_v40 = vpop.f32.mrb[76].mxu0 }
 0x193   : > { %v3454_v38 = vpop.f32.mrb[77].mxu1  ;;  %v3518_v14 = vpop.f32.mrb[77].mxu0 }
 0x194   : > { %v3455_v48 = vadd.f32 %v3454_v38, %v3453_v43  ;;  %v3519_v45 = vadd.f32 %v3518_v14, %v3517_v40  ;;  %v3456_v57 = vpop.f32.mrb[78].mxu1  ;;  %v3520_v28 = vpop.f32.mrb[78].mxu0 }
 0x195   : > { %v3457_v49 = vpop.f32.mrb[79].mxu1  ;;  %v3521_v51 = vpop.f32.mrb[79].mxu0 }
 0x196   : > { %v4752_v37 = vadd.f32 %v3455_v48, %v4574_v44  ;;  %v4755_v56 = vadd.f32 %v3519_v45, %v4665_v34  ;;  %v3458_v36 = vadd.f32 %v3457_v49, %v3456_v57  ;;  %v3522_v59 = vadd.f32 %v3521_v51, %v3520_v28 }
 0x198   : > { %v4758_v18 = vadd.f32 %v3458_v36, %v4580_v52  ;;  %v4761_v60 = vadd.f32 %v3522_v59, %v4670_v54 }
 0x19a   : > { %v3523_v61 = vpop.f32.mrb[80].mxu0  ;;  %v3587_v30 = vpop.f32.mrb[80].mxu1 }
 0x19b   : > { %v3524_v4 = vpop.f32.mrb[81].mxu0  ;;  %v3588_v6 = vpop.f32.mrb[81].mxu1 }
 0x19c   : > { %v3525_v3 = vadd.f32 %v3524_v4, %v3523_v61  ;;  %v3589_v9 = vadd.f32 %v3588_v6, %v3587_v30  ;;  %v3526_v15 = vpop.f32.mrb[82].mxu0  ;;  %v3590_v44 = vpop.f32.mrb[82].mxu1 }
 0x19d   : > { %v3527_v32 = vpop.f32.mrb[83].mxu0  ;;  %v3591_v46 = vpop.f32.mrb[83].mxu1 }
 0x19e   : > { %v4764_v34 = vadd.f32 %v3525_v3, %v4672_v10  ;;  %v3528_v62 = vadd.f32 %v3527_v32, %v3526_v15  ;;  %v3592_v53 = vadd.f32 %v3591_v46, %v3590_v44  ;;  %v4767_v52 = vadd.f32 %v3589_v9, %v4675_v2 }
 0x1a0   : > { %v4770_v54 = vadd.f32 %v3528_v62, %v4677_v63  ;;  %v4773_v12 = vadd.f32 %v3592_v53, %v4680_v16 }
 0x1a2   : > { %v3529_v24 = vpop.f32.mrb[84].mxu0  ;;  %v3593_v27 = vpop.f32.mrb[84].mxu1 }
 0x1a3   : > { %v3530_v20 = vpop.f32.mrb[85].mxu0  ;;  %v3594_v31 = vpop.f32.mrb[85].mxu1 }
 0x1a4   : > { %v3531_v43 = vadd.f32 %v3530_v20, %v3529_v24  ;;  %v3595_v40 = vadd.f32 %v3594_v31, %v3593_v27  ;;  %v3532_v38 = vpop.f32.mrb[86].mxu0  ;;  %v3596_v10 = vpop.f32.mrb[86].mxu1 }
 0x1a5   : > { %v3533_v14 = vpop.f32.mrb[87].mxu0  ;;  %v3597_v48 = vpop.f32.mrb[87].mxu1 }
 0x1a6   : > { %v4776_v45 = vadd.f32 %v3531_v43, %v4682_v22  ;;  %v3534_v2 = vadd.f32 %v3533_v14, %v3532_v38  ;;  %v3598_v57 = vadd.f32 %v3597_v48, %v3596_v10  ;;  %v4779_v63 = vadd.f32 %v3595_v40, %v4685_v8 }
 0x1a8   : > { %v4782_v16 = vadd.f32 %v3534_v2, %v4687_v25  ;;  %v4785_v28 = vadd.f32 %v3598_v57, %v4690_v11 }
 0x1aa   : > { %v3535_v49 = vpop.f32.mrb[88].mxu0  ;;  %v3599_v51 = vpop.f32.mrb[88].mxu1 }
 0x1ab   : > { %v3536_v36 = vpop.f32.mrb[89].mxu0  ;;  %v3600_v59 = vpop.f32.mrb[89].mxu1 }
 0x1ac   : > { %v3537_v61 = vadd.f32 %v3536_v36, %v3535_v49  ;;  %v3601_v30 = vadd.f32 %v3600_v59, %v3599_v51  ;;  %v3538_v4 = vpop.f32.mrb[90].mxu0  ;;  %v3602_v22 = vpop.f32.mrb[90].mxu1 }
 0x1ad   : > { %v3539_v6 = vpop.f32.mrb[91].mxu0  ;;  %v3603_v3 = vpop.f32.mrb[91].mxu1 }
 0x1ae   : > { %v4788_v9 = vadd.f32 %v3537_v61, %v4693_v29  ;;  %v3540_v8 = vadd.f32 %v3539_v6, %v3538_v4  ;;  %v3604_v15 = vadd.f32 %v3603_v3, %v3602_v22  ;;  %v4791_v25 = vadd.f32 %v3601_v30, %v4696_v47 }
 0x1b0   : > { %v4794_v11 = vadd.f32 %v3540_v8, %v4698_v33  ;;  %v4797_v44 = vadd.f32 %v3604_v15, %v4701_v21 }
 0x1b2   : > { %v3541_v32 = vpop.f32.mrb[92].mxu0  ;;  %v3605_v46 = vpop.f32.mrb[92].mxu1 }
 0x1b3   : > { %v3542_v62 = vpop.f32.mrb[93].mxu0  ;;  %v3606_v53 = vpop.f32.mrb[93].mxu1 }
 0x1b4   : > { %v3543_v24 = vadd.f32 %v3542_v62, %v3541_v32  ;;  %v3607_v27 = vadd.f32 %v3606_v53, %v3605_v46  ;;  %v3544_v20 = vpop.f32.mrb[94].mxu0  ;;  %v3608_v29 = vpop.f32.mrb[94].mxu1 }
 0x1b5   : > { %v3545_v31 = vpop.f32.mrb[95].mxu0  ;;  %v3609_v43 = vpop.f32.mrb[95].mxu1 }
 0x1b6   : > { %v4800_v40 = vadd.f32 %v3543_v24, %v4704_v50  ;;  %v3546_v47 = vadd.f32 %v3545_v31, %v3544_v20  ;;  %v3610_v38 = vadd.f32 %v3609_v43, %v3608_v29  ;;  %v4803_v33 = vadd.f32 %v3607_v27, %v4707_v23 }
 0x1b8   : > { %v4806_v21 = vadd.f32 %v3546_v47, %v4710_v55  ;;  %v4809_v10 = vadd.f32 %v3610_v38, %v4713_v19 }
 0x1ba   : > { %v3547_v14 = vpop.f32.mrb[96].mxu0  ;;  %v3611_v48 = vpop.f32.mrb[96].mxu1 }
 0x1bb   : > { %v3548_v2 = vpop.f32.mrb[97].mxu0  ;;  %v3612_v57 = vpop.f32.mrb[97].mxu1 }
 0x1bc   : > { %v3549_v49 = vadd.f32 %v3548_v2, %v3547_v14  ;;  %v3613_v51 = vadd.f32 %v3612_v57, %v3611_v48  ;;  %v3550_v36 = vpop.f32.mrb[98].mxu0  ;;  %v3614_v50 = vpop.f32.mrb[98].mxu1 }
 0x1bd   : > { %v3551_v59 = vpop.f32.mrb[99].mxu0  ;;  %v3615_v61 = vpop.f32.mrb[99].mxu1 }
 0x1be   : > { %v4812_v30 = vadd.f32 %v3549_v49, %v4716_v13  ;;  %v3552_v23 = vadd.f32 %v3551_v59, %v3550_v36  ;;  %v3616_v4 = vadd.f32 %v3615_v61, %v3614_v50  ;;  %v4815_v55 = vadd.f32 %v3613_v51, %v4719_v41 }
 0x1c0   : > { %v4818_v19 = vadd.f32 %v3552_v23, %v4722_v17  ;;  %v4821_v22 = vadd.f32 %v3616_v4, %v4725_v42 }
 0x1c2   : > { %v3553_v6 = vpop.f32.mrb[100].mxu0  ;;  %v3617_v3 = vpop.f32.mrb[100].mxu1 }
 0x1c3   : > { %v3554_v8 = vpop.f32.mrb[101].mxu0  ;;  %v3618_v15 = vpop.f32.mrb[101].mxu1 }
 0x1c4   : > { %v3555_v32 = vadd.f32 %v3554_v8, %v3553_v6  ;;  %v3619_v46 = vadd.f32 %v3618_v15, %v3617_v3  ;;  %v3556_v62 = vpop.f32.mrb[102].mxu0  ;;  %v3620_v13 = vpop.f32.mrb[102].mxu1 }
 0x1c5   : > { %v3557_v53 = vpop.f32.mrb[103].mxu0  ;;  %v3621_v24 = vpop.f32.mrb[103].mxu1 }
 0x1c6   : > { %v4824_v27 = vadd.f32 %v3555_v32, %v4728_v35  ;;  %v3558_v41 = vadd.f32 %v3557_v53, %v3556_v62  ;;  %v3622_v20 = vadd.f32 %v3621_v24, %v3620_v13  ;;  %v4827_v17 = vadd.f32 %v3619_v46, %v4731_v1 }
 0x1c8   : > { %v4830_v42 = vadd.f32 %v3558_v41, %v4734_v39  ;;  %v4833_v29 = vadd.f32 %v3622_v20, %v4737_v7  ;;  %v4862_v41 = vld [vmem:[%s4995_s2] ss:$0 sm:$0xff] }
 0x1ca   : > { %v3559_v31 = vpop.f32.mrb[104].mxu0  ;;  %v3623_v43 = vpop.f32.mrb[104].mxu1 }
 0x1cb   : > { %v3560_v47 = vpop.f32.mrb[105].mxu0  ;;  %v3624_v38 = vpop.f32.mrb[105].mxu1 }
 0x1cc   : > { %v3561_v14 = vadd.f32 %v3560_v47, %v3559_v31  ;;  %v3625_v48 = vadd.f32 %v3624_v38, %v3623_v43  ;;  %v3562_v2 = vpop.f32.mrb[106].mxu0  ;;  %v3626_v35 = vpop.f32.mrb[106].mxu1 }
 0x1cd   : > { %v3563_v57 = vpop.f32.mrb[107].mxu0  ;;  %v3627_v49 = vpop.f32.mrb[107].mxu1 }
 0x1ce   : > { %v4836_v51 = vadd.f32 %v3561_v14, %v4740_v0  ;;  %v3564_v1 = vadd.f32 %v3563_v57, %v3562_v2  ;;  %v3628_v36 = vadd.f32 %v3627_v49, %v3626_v35  ;;  %v4839_v39 = vadd.f32 %v3625_v48, %v4743_v5 }
 0x1d0   : > { %v4842_v7 = vadd.f32 %v3564_v1, %v4746_v58  ;;  %v4845_v50 = vadd.f32 %v3628_v36, %v4749_v26 }
 0x1d2   : > { %v3565_v59 = vpop.f32.mrb[108].mxu0  ;;  %v3629_v61 = vpop.f32.mrb[108].mxu1 }
 0x1d3   : > { %v3566_v23 = vpop.f32.mrb[109].mxu0  ;;  %v3630_v4 = vpop.f32.mrb[109].mxu1 }
 0x1d4   : > { %v3567_v6 = vadd.f32 %v3566_v23, %v3565_v59  ;;  %v3631_v3 = vadd.f32 %v3630_v4, %v3629_v61  ;;  %v3568_v8 = vpop.f32.mrb[110].mxu0  ;;  %v3632_v0 = vpop.f32.mrb[110].mxu1 }
 0x1d5   : > { %v3569_v15 = vpop.f32.mrb[111].mxu0  ;;  %v3633_v32 = vpop.f32.mrb[111].mxu1 }
 0x1d6   : > { %v4848_v46 = vadd.f32 %v3567_v6, %v4752_v37  ;;  %v3570_v5 = vadd.f32 %v3569_v15, %v3568_v8  ;;  %v3634_v62 = vadd.f32 %v3633_v32, %v3632_v0  ;;  %v4851_v58 = vadd.f32 %v3631_v3, %v4755_v56 }
 0x1d8   : > { %v4854_v26 = vadd.f32 %v3570_v5, %v4758_v18  ;;  %v4857_v13 = vadd.f32 %v3634_v62, %v4761_v60 }
 0x1da   : > { %v3635_v53 = vpop.f32.mrb[112].mxu1  ;;  %v3725_v24 = vpop.f32.mrb[112].mxu0 }
 0x1db   : > { %v2540_v37 = vadd.f32 %v3725_v24, %v4779_v63  ;;  %v3636_v20 = vpop.f32.mrb[113].mxu1  ;;  %v2531_v31 = vpop.f32.mrb[113].mxu0 }
 0x1dc   : > { %v3637_v43 = vadd.f32 %v3636_v20, %v3635_v53  ;;  %v2532_v56 = vadd.f32 %v2531_v31, %v4767_v52  ;;  %v3638_v47 = vpop.f32.mrb[114].mxu1  ;;  %v3726_v18 = vpop.f32.mrb[114].mxu0 }
 0x1dd   : > { %v2766_v38 = vadd.f32 %v4862_v41, %v2540_v37  ;;  %v2543_v60 = vadd.f32 %v3726_v18, %v4785_v28  ;;  %v3639_v14 = vpop.f32.mrb[115].mxu1  ;;  %v2534_v48 = vpop.f32.mrb[115].mxu0 }
 0x1de   : > { %v2764_v2 = vadd.f32 %v4862_v41, %v2532_v56  ;;  %v3640_v35 = vadd.f32 %v3639_v14, %v3638_v47  ;;  %v2535_v57 = vadd.f32 %v2534_v48, %v4773_v12  ;;  %v4871_v63 = vadd.f32 %v3637_v43, %v4764_v34 }
 0x1df   : > { %4076 = vtanh.f32 %v2766_v38  ;;  %v2767_v52 = vadd.f32 %v4862_v41, %v2543_v60 }
 0x1e0   : > { %4078 = vtanh.f32 %v2764_v2  ;;  %v2765_v49 = vadd.f32 %v4862_v41, %v2535_v57  ;;  %v4876_v1 = vadd.f32 %v3640_v35, %v4770_v54 }
 0x1e1   : > { %4080 = vtanh.f32 %v2767_v52 }
 0x1e2   : > { %4082 = vtanh.f32 %v2765_v49  ;;  %v3641_v28 = vpop.f32.mrb[116].mxu1  ;;  %v3729_v36 = vpop.f32.mrb[116].mxu0 }
 0x1e3   : > { %v2556_v59 = vadd.f32 %v3729_v36, %v4803_v33  ;;  %v3642_v61 = vpop.f32.mrb[117].mxu1  ;;  %v2547_v12 = vpop.f32.mrb[117].mxu0 }
 0x1e4   : > { %v3643_v34 = vadd.f32 %v3642_v61, %v3641_v28  ;;  %v2548_v23 = vadd.f32 %v2547_v12, %v4791_v25  ;;  %v3644_v4 = vpop.f32.mrb[118].mxu1  ;;  %v3730_v6 = vpop.f32.mrb[118].mxu0 }
 0x1e5   : > { %v2770_v3 = vadd.f32 %v4862_v41, %v2556_v59  ;;  %v2559_v8 = vadd.f32 %v3730_v6, %v4809_v10  ;;  %v3645_v54 = vpop.f32.mrb[119].mxu1  ;;  %v2550_v0 = vpop.f32.mrb[119].mxu0 }
 0x1e6   : > { %v2768_v15 = vadd.f32 %v4862_v41, %v2548_v23  ;;  %v3646_v32 = vadd.f32 %v3645_v54, %v3644_v4  ;;  %v2551_v5 = vadd.f32 %v2550_v0, %v4797_v44  ;;  %v4886_v33 = vadd.f32 %v3643_v34, %v4776_v45 }
 0x1e7   : > { %4084 = vtanh.f32 %v2770_v3  ;;  %v2771_v25 = vadd.f32 %v4862_v41, %v2559_v8 }
 0x1e8   : > { %4086 = vtanh.f32 %v2768_v15  ;;  %v2769_v10 = vadd.f32 %v4862_v41, %v2551_v5  ;;  %v4896_v62 = vadd.f32 %v3646_v32, %v4782_v16 }
 0x1e9   : > { %v4077_v44 = vpop.eup %4076  ;;  %4088 = vtanh.f32 %v2771_v25 }
 0x1ea   : > { %v4079_v45 = vpop.eup %4078  ;;  %2830 = vst [vmem:[%s4891_s8 + $0x10] sm:$0xff] %v4077_v44  ;;  %4090 = vtanh.f32 %v2769_v10  ;;  %v3647_v53 = vpop.f32.mrb[120].mxu1 }
 0x1eb   : > { %v3733_v24 = vpop.f32.mrb[120].mxu0  ;;  %v4081_v37 = vpop.eup %4080  ;;  %2828 = vst [vmem:[%s4891_s8] sm:$0xff] %v4079_v45 }
 0x1ec   : > { %v2572_v20 = vadd.f32 %v3733_v24, %v4827_v17  ;;  %v3648_v31 = vpop.f32.mrb[121].mxu1  ;;  %v2563_v43 = vpop.f32.mrb[121].mxu0  ;;  %2831 = vst [vmem:[%s4891_s8 + $0x18] sm:$0xff] %v4081_v37 }
 0x1ed   : > { %v4083_v56 = vpop.eup %4082  ;;  %v3649_v47 = vadd.f32 %v3648_v31, %v3647_v53  ;;  %v2564_v16 = vadd.f32 %v2563_v43, %v4815_v55  ;;  %v3650_v18 = vpop.f32.mrb[122].mxu1 }
 0x1ee   : > { %v3734_v38 = vpop.f32.mrb[122].mxu0  ;;  %2829 = vst [vmem:[%s4891_s8 + $0x8] sm:$0xff] %v4083_v56  ;;  %v2774_v60 = vadd.f32 %v4862_v41, %v2572_v20  ;;  %v3651_v48 = vpop.f32.mrb[123].mxu1 }
 0x1ef   : > { %v2575_v14 = vadd.f32 %v3734_v38, %v4833_v29  ;;  %v2566_v2 = vpop.f32.mrb[123].mxu0  ;;  %v2772_v35 = vadd.f32 %v4862_v41, %v2564_v16  ;;  %v3652_v17 = vadd.f32 %v3651_v48, %v3650_v18  ;;  %v4909_v52 = vadd.f32 %v3649_v47, %v4788_v9 }
 0x1f0   : > { %v2567_v57 = vadd.f32 %v2566_v2, %v4821_v22  ;;  %4092 = vtanh.f32 %v2774_v60 }
 0x1f1   : > { %v2775_v55 = vadd.f32 %v4862_v41, %v2575_v14  ;;  %4094 = vtanh.f32 %v2772_v35  ;;  %v4914_v29 = vadd.f32 %v3652_v17, %v4794_v11  ;;  %v4085_v28 = vpop.eup %4084 }
 0x1f2   : > { %v2773_v49 = vadd.f32 %v4862_v41, %v2567_v57  ;;  %v4087_v36 = vpop.eup %4086  ;;  %2834 = vst [vmem:[%s4891_s8 + $0x30] sm:$0xff] %v4085_v28  ;;  %v3653_v22 = vpop.f32.mrb[124].mxu1 }
 0x1f3   : > { %4096 = vtanh.f32 %v2775_v55  ;;  %v3737_v59 = vpop.f32.mrb[124].mxu0  ;;  %v4089_v9 = vpop.eup %4088  ;;  %2832 = vst [vmem:[%s4891_s8 + $0x20] sm:$0xff] %v4087_v36 }
 0x1f4   : > { %4098 = vtanh.f32 %v2773_v49  ;;  %v2588_v61 = vadd.f32 %v3737_v59, %v4851_v58  ;;  %v3654_v12 = vpop.f32.mrb[125].mxu1  ;;  %v2579_v34 = vpop.f32.mrb[125].mxu0  ;;  %2835 = vst [vmem:[%s4891_s8 + $0x38] sm:$0xff] %v4089_v9 }
 0x1f5   : > { %v4091_v23 = vpop.eup %4090  ;;  %v3655_v4 = vadd.f32 %v3654_v12, %v3653_v22  ;;  %v2580_v11 = vadd.f32 %v2579_v34, %v4839_v39  ;;  %v3656_v6 = vpop.f32.mrb[126].mxu1 }
 0x1f6   : > { %v3738_v3 = vpop.f32.mrb[126].mxu0  ;;  %2833 = vst [vmem:[%s4891_s8 + $0x28] sm:$0xff] %v4091_v23  ;;  %v2778_v8 = vadd.f32 %v4862_v41, %v2588_v61  ;;  %v3657_v0 = vpop.f32.mrb[127].mxu1 }
 0x1f7   : > { %v2591_v54 = vadd.f32 %v3738_v3, %v4857_v13  ;;  %v2582_v15 = vpop.f32.mrb[127].mxu0  ;;  %v2776_v32 = vadd.f32 %v4862_v41, %v2580_v11  ;;  %v3658_v58 = vadd.f32 %v3657_v0, %v3656_v6  ;;  %v2459_v25 = vadd.f32 %v3655_v4, %v4800_v40 }
 0x1f8   : > { %v2583_v5 = vadd.f32 %v2582_v15, %v4845_v50  ;;  %4100 = vtanh.f32 %v2778_v8 }
 0x1f9   : > { %v2779_v39 = vadd.f32 %v4862_v41, %v2591_v54  ;;  %4102 = vtanh.f32 %v2776_v32  ;;  %v2462_v44 = vadd.f32 %v3658_v58, %v4806_v21 }
 0x1fa   : > { %v2777_v10 = vadd.f32 %v4862_v41, %v2583_v5  ;;  %v4093_v13 = vpop.eup %4092  ;;  %v3659_v53 = vpop.f32.mrb[128].mxu1 }
 0x1fb   : > { %4104 = vtanh.f32 %v2779_v39  ;;  %v4095_v45 = vpop.eup %4094  ;;  %2838 = vst [vmem:[%s4891_s8 + $0x50] sm:$0xff] %v4093_v13  ;;  %v3741_v24 = vpop.f32.mrb[128].mxu0 }
 0x1fc   : > { %4106 = vtanh.f32 %v2777_v10  ;;  %2836 = vst [vmem:[%s4891_s8 + $0x40] sm:$0xff] %v4095_v45  ;;  %v2604_v40 = vadd.f32 %v3741_v24, %v4886_v33  ;;  %v3660_v37 = vpop.f32.mrb[129].mxu1  ;;  %v2595_v20 = vpop.f32.mrb[129].mxu0 }
 0x1fd   : > { %v4097_v50 = vpop.eup %4096  ;;  %v3661_v43 = vadd.f32 %v3660_v37, %v3659_v53  ;;  %v2596_v56 = vadd.f32 %v2595_v20, %v4871_v63  ;;  %v3662_v21 = vpop.f32.mrb[130].mxu1 }
 0x1fe   : > { %v4099_v31 = vpop.eup %4098  ;;  %2839 = vst [vmem:[%s4891_s8 + $0x58] sm:$0xff] %v4097_v50  ;;  %v3742_v47 = vpop.f32.mrb[130].mxu0  ;;  %v2782_v16 = vadd.f32 %v4862_v41, %v2604_v40 }
 0x1ff   : > { %2837 = vst [vmem:[%s4891_s8 + $0x48] sm:$0xff] %v4099_v31  ;;  %v2607_v18 = vadd.f32 %v3742_v47, %v4896_v62  ;;  %v3663_v38 = vpop.f32.mrb[131].mxu1  ;;  %v2598_v60 = vpop.f32.mrb[131].mxu0  ;;  %v2780_v14 = vadd.f32 %v4862_v41, %v2596_v56  ;;  %v2467_v2 = vadd.f32 %v3661_v43, %v4812_v30 }
 0x200   : > { %v3664_v33 = vadd.f32 %v3663_v38, %v3662_v21  ;;  %v2599_v48 = vadd.f32 %v2598_v60, %v4876_v1  ;;  %4108 = vtanh.f32 %v2782_v16 }
 0x201   : > { %v2783_v63 = vadd.f32 %v4862_v41, %v2607_v18  ;;  %4110 = vtanh.f32 %v2780_v14 }
 0x202   : > { %v2781_v35 = vadd.f32 %v4862_v41, %v2599_v48  ;;  %v2470_v17 = vadd.f32 %v3664_v33, %v4818_v19  ;;  %v4101_v62 = vpop.eup %4100  ;;  %v3665_v55 = vpop.f32.mrb[132].mxu1 }
 0x203   : > { %4112 = vtanh.f32 %v2783_v63  ;;  %v4103_v57 = vpop.eup %4102  ;;  %2842 = vst [vmem:[%s4891_s8 + $0x70] sm:$0xff] %v4101_v62  ;;  %v3745_v49 = vpop.f32.mrb[132].mxu0 }
 0x204   : > { %4114 = vtanh.f32 %v2781_v35  ;;  %2840 = vst [vmem:[%s4891_s8 + $0x60] sm:$0xff] %v4103_v57  ;;  %v2620_v30 = vadd.f32 %v3745_v49, %v2459_v25  ;;  %v3666_v28 = vpop.f32.mrb[133].mxu1  ;;  %v2611_v36 = vpop.f32.mrb[133].mxu0 }
 0x205   : > { %v4105_v1 = vpop.eup %4104  ;;  %v3667_v59 = vadd.f32 %v3666_v28, %v3665_v55  ;;  %v2612_v9 = vadd.f32 %v2611_v36, %v4909_v52  ;;  %v3668_v61 = vpop.f32.mrb[134].mxu1 }
 0x206   : > { %v4107_v22 = vpop.eup %4106  ;;  %2843 = vst [vmem:[%s4891_s8 + $0x78] sm:$0xff] %v4105_v1  ;;  %v3746_v19 = vpop.f32.mrb[134].mxu0  ;;  %v2786_v12 = vadd.f32 %v4862_v41, %v2620_v30 }
 0x207   : > { %2841 = vst [vmem:[%s4891_s8 + $0x68] sm:$0xff] %v4107_v22  ;;  %v2623_v34 = vadd.f32 %v3746_v19, %v2462_v44  ;;  %v3669_v23 = vpop.f32.mrb[135].mxu1  ;;  %v2614_v4 = vpop.f32.mrb[135].mxu0  ;;  %v2784_v11 = vadd.f32 %v4862_v41, %v2612_v9  ;;  %v2475_v8 = vadd.f32 %v3667_v59, %v4824_v27 }
 0x208   : > { %v3670_v6 = vadd.f32 %v3669_v23, %v3668_v61  ;;  %v2615_v3 = vadd.f32 %v2614_v4, %v4914_v29  ;;  %4116 = vtanh.f32 %v2786_v12 }
 0x209   : > { %v2787_v52 = vadd.f32 %v4862_v41, %v2623_v34  ;;  %4118 = vtanh.f32 %v2784_v11 }
 0x20a   : > { %v2785_v54 = vadd.f32 %v4862_v41, %v2615_v3  ;;  %v2478_v0 = vadd.f32 %v3670_v6, %v4830_v42  ;;  %v4109_v15 = vpop.eup %4108  ;;  %v3671_v58 = vpop.f32.mrb[136].mxu1 }
 0x20b   : > { %4120 = vtanh.f32 %v2787_v52  ;;  %v4111_v32 = vpop.eup %4110  ;;  %2846 = vst [vmem:[%s4891_s8 + $0x90] sm:$0xff] %v4109_v15  ;;  %v3749_v5 = vpop.f32.mrb[136].mxu0 }
 0x20c   : > { %4122 = vtanh.f32 %v2785_v54  ;;  %2844 = vst [vmem:[%s4891_s8 + $0x80] sm:$0xff] %v4111_v32  ;;  %v2636_v27 = vadd.f32 %v3749_v5, %v2475_v8  ;;  %v3672_v25 = vpop.f32.mrb[137].mxu1  ;;  %v2627_v39 = vpop.f32.mrb[137].mxu0 }
 0x20d   : > { %v4113_v29 = vpop.eup %4112  ;;  %v3673_v44 = vadd.f32 %v3672_v25, %v3671_v58  ;;  %v2628_v13 = vadd.f32 %v2627_v39, %v2467_v2  ;;  %v3674_v45 = vpop.f32.mrb[138].mxu1 }
 0x20e   : > { %v4115_v10 = vpop.eup %4114  ;;  %2847 = vst [vmem:[%s4891_s8 + $0x98] sm:$0xff] %v4113_v29  ;;  %v3750_v53 = vpop.f32.mrb[138].mxu0  ;;  %v2790_v42 = vadd.f32 %v4862_v41, %v2636_v27 }
 0x20f   : > { %2845 = vst [vmem:[%s4891_s8 + $0x88] sm:$0xff] %v4115_v10  ;;  %v2639_v24 = vadd.f32 %v3750_v53, %v2478_v0  ;;  %v3675_v50 = vpop.f32.mrb[139].mxu1  ;;  %v2630_v40 = vpop.f32.mrb[139].mxu0  ;;  %v2788_v37 = vadd.f32 %v4862_v41, %v2628_v13  ;;  %v2483_v43 = vadd.f32 %v3673_v44, %v4836_v51 }
 0x210   : > { %v3676_v20 = vadd.f32 %v3675_v50, %v3674_v45  ;;  %v2631_v31 = vadd.f32 %v2630_v40, %v2470_v17  ;;  %4124 = vtanh.f32 %v2790_v42 }
 0x211   : > { %v2791_v56 = vadd.f32 %v4862_v41, %v2639_v24  ;;  %4126 = vtanh.f32 %v2788_v37 }
 0x212   : > { %v2789_v21 = vadd.f32 %v4862_v41, %v2631_v31  ;;  %v2486_v47 = vadd.f32 %v3676_v20, %v4842_v7  ;;  %v4117_v16 = vpop.eup %4116  ;;  %v3677_v38 = vpop.f32.mrb[140].mxu1 }
 0x213   : > { %4128 = vtanh.f32 %v2791_v56  ;;  %v4119_v18 = vpop.eup %4118  ;;  %2850 = vst [vmem:[%s4891_s8 + $0xb0] sm:$0xff] %v4117_v16  ;;  %v3753_v60 = vpop.f32.mrb[140].mxu0 }
 0x214   : > { %4130 = vtanh.f32 %v2789_v21  ;;  %2848 = vst [vmem:[%s4891_s8 + $0xa0] sm:$0xff] %v4119_v18  ;;  %v3678_v51 = vpop.f32.mrb[141].mxu1  ;;  %v2643_v33 = vpop.f32.mrb[141].mxu0 }
 0x215   : > { %v4121_v14 = vpop.eup %4120  ;;  %v3679_v2 = vadd.f32 %v3678_v51, %v3677_v38  ;;  %v2644_v63 = vadd.f32 %v2643_v33, %v2483_v43  ;;  %v3680_v35 = vpop.f32.mrb[142].mxu1 }
 0x216   : > { %v4123_v48 = vpop.eup %4122  ;;  %2851 = vst [vmem:[%s4891_s8 + $0xb8] sm:$0xff] %v4121_v14  ;;  %v3754_v17 = vpop.f32.mrb[142].mxu0 }
 0x217   : > { %2849 = vst [vmem:[%s4891_s8 + $0xa8] sm:$0xff] %v4123_v48  ;;  %v3681_v7 = vpop.f32.mrb[143].mxu1  ;;  %v2646_v62 = vpop.f32.mrb[143].mxu0  ;;  %v2491_v57 = vadd.f32 %v3679_v2, %v4848_v46  ;;  %v2792_v55 = vadd.f32 %v4862_v41, %v2644_v63 }
 0x218   : > { %v3682_v49 = vadd.f32 %v3681_v7, %v3680_v35  ;;  %v2647_v1 = vadd.f32 %v2646_v62, %v2486_v47 }
 0x219   : > { %v2652_v30 = vadd.f32 %v3753_v60, %v2491_v57  ;;  %4132 = vtanh.f32 %v2792_v55 }
 0x21a   : > { %v2494_v28 = vadd.f32 %v3682_v49, %v4854_v26  ;;  %v2793_v36 = vadd.f32 %v4862_v41, %v2647_v1  ;;  %v4125_v22 = vpop.eup %4124 }
 0x21b   : > { %v4127_v59 = vpop.eup %4126  ;;  %2854 = vst [vmem:[%s4891_s8 + $0xd0] sm:$0xff] %v4125_v22  ;;  %v2794_v9 = vadd.f32 %v4862_v41, %v2652_v30 }
 0x21c   : > { %v2655_v46 = vadd.f32 %v3754_v17, %v2494_v28  ;;  %4134 = vtanh.f32 %v2793_v36  ;;  %2852 = vst [vmem:[%s4891_s8 + $0xc0] sm:$0xff] %v4127_v59 }
 0x21d   : > { %v4129_v61 = vpop.eup %4128  ;;  %4136 = vtanh.f32 %v2794_v9 }
 0x21e   : > { %v4131_v19 = vpop.eup %4130  ;;  %2855 = vst [vmem:[%s4891_s8 + $0xd8] sm:$0xff] %v4129_v61  ;;  %v2795_v26 = vadd.f32 %v4862_v41, %v2655_v46 }
 0x21f   : > { %2853 = vst [vmem:[%s4891_s8 + $0xc8] sm:$0xff] %v4131_v19 }
 0x220   : > { %4138 = vtanh.f32 %v2795_v26 }
 0x223   : > { %v4133_v12 = vpop.eup %4132 }
 0x224   : > { %2856 = vst [vmem:[%s4891_s8 + $0xe0] sm:$0xff] %v4133_v12 }
 0x226   : > { %v4135_v34 = vpop.eup %4134 }
 0x227   : > { %2857 = vst [vmem:[%s4891_s8 + $0xe8] sm:$0xff] %v4135_v34  ;;  %v4137_v23 = vpop.eup %4136 }
 0x228   : > { %2858 = vst [vmem:[%s4891_s8 + $0xf0] sm:$0xff] %v4137_v23 }
 0x22a   : > { %v4139_v4 = vpop.eup %4138 }
 0x22b   : > { %2859 = vst [vmem:[%s4891_s8 + $0xf8] sm:$0xff] %v4139_v4 }
 0x22c PF: > { %s13_s14 = sadd.s32 1, %s4162_s14   ;;  %s4997_s12 = smov %s4158_s13 }
 0x22d   : > { %p10_p5 = scmp.ge.s32.totalorder %s13_s14, 4   ;;  %s4998_s13 = smov %s5000_s15 }
 0x22f   :  { %12 = sbr.rel (!%p10_p5) target bundleno = 2 (0x2), region = 76 }

</bundles_post_ra>
